<compile_context>
chip_gen: v5e
topology: v5e:2x2
jax: 0.10.0
libtpu: 0.0.40
codegen_flags: <defaults>
</compile_context>

<pallas_src>
import math

import jax
import jax.numpy as jnp
from jax.experimental import pallas as pl
from jax.experimental.pallas import tpu as pltpu


def _round_up(x, m):
    return (x + m - 1) // m * m


def _local_periodic_kernel(params_ref, x_ref, x2_ref, out_ref):
    """Hot path: per-row value on a (block_m, 1) column, broadcast-last store.

    params_ref : SMEM (2,) f32 = [pi/(period*length_scale), scale*scale]
    x_ref      : VMEM (N_pad, 1) f32  -- full X, resident across the grid
    x2_ref     : VMEM (N_pad, 1) f32  -- full X2, resident across the grid
    out_ref    : VMEM (block_m, block_n) f32
    """
    c = params_ref[0]      # pi / (period * length_scale)
    sc2 = params_ref[1]    # scale ** 2

    bm, bn = out_ref.shape
    row0 = pl.multiple_of(pl.program_id(0) * bm, bm)

    x = x_ref[pl.ds(row0, bm), :]      # (bm, 1)
    x2 = x2_ref[pl.ds(row0, bm), :]    # (bm, 1)

    # Reference broadcasting bug: both X and X2 are expanded along columns,
    # so the value depends only on the row index.  Compute on (bm, 1).
    k = sc2 * jnp.exp(-2.0 * jnp.sin(c * jnp.abs(x - x2)))     # (bm, 1)
    v = k * jnp.exp(-0.5 * k)                                  # K * K2, (bm, 1)

    # Lane broadcast only at the store -> pure writeback work on the big tile.
    out_ref[...] = jnp.broadcast_to(v, (bm, bn))


def local_periodic_forward(X, X2, raw_length_scale, raw_scale, period,
                           exp_restrict=True, block_m=256, block_n=2048):
    """JAX wrapper mirroring Local_Periodic_kernel.forward."""
    # Glue: flatten >2-D inputs like the reference.
    if X.ndim > 2:
        assert X2.ndim > 2, "X and X2 should be same dim"
        X = X.reshape(X.shape[0], -1)
        X2 = X2.reshape(X2.shape[0], -1)

    X = X.astype(jnp.float32)
    X2 = X2.astype(jnp.float32)
    N, D = X.shape
    M, D2 = X2.shape
    # The reference's .expand() calls require these:
    assert D == 1 and D2 == 1, "reference expand() semantics require D == 1"
    assert M == N, "reference expand() semantics require X2.shape[0] == X.shape[0]"

    if exp_restrict:
        length_scale = jnp.exp(raw_length_scale)
        scale = jnp.exp(raw_scale)
    else:
        length_scale = raw_length_scale
        scale = raw_scale

    # Fold all scalar preprocessing: one multiply per row inside the kernel.
    c = jnp.float32(math.pi) / (period * length_scale)
    sc2 = scale * scale
    params = jnp.stack([c, sc2]).astype(jnp.float32)  # (2,) -> SMEM

    # Tile sizes: rows multiple of 8, columns multiple of 128 (lane-dense vst).
    block_m = min(block_m, _round_up(N, 8))
    block_n = min(block_n, _round_up(M, 128))
    N_pad = _round_up(N, block_m)
    M_pad = _round_up(M, block_n)

    X_pad = X if N_pad == N else jnp.pad(X, ((0, N_pad - N), (0, 0)))
    X2_pad = X2 if N_pad == N else jnp.pad(X2, ((0, N_pad - N), (0, 0)))

    grid = (N_pad // block_m, M_pad // block_n)
    out = pl.pallas_call(
        _local_periodic_kernel,
        out_shape=jax.ShapeDtypeStruct((N_pad, M_pad), jnp.float32),
        grid_spec=pltpu.PrefetchScalarGridSpec(
            num_scalar_prefetch=0,
            grid=grid,
            in_specs=[
                pl.BlockSpec(memory_space=pltpu.MemorySpace.SMEM),  # params
                pl.BlockSpec((N_pad, 1), lambda i, j: (0, 0)),      # X resident
                pl.BlockSpec((N_pad, 1), lambda i, j: (0, 0)),      # X2 resident
            ],
            out_specs=pl.BlockSpec((block_m, block_n), lambda i, j: (i, j)),
        ),
        compiler_params=pltpu.CompilerParams(
            dimension_semantics=("parallel", "parallel")),
    )(params, X_pad, X2_pad)

    if N_pad != N or M_pad != M:
        out = out[:N, :M]
    return out


if __name__ == "__main__":
    # Deterministic parameter init, matching __init__(exp_restrict=True,
    # length_scale=1.5, scale=0.7, period=2.0): stored params are log(value).
    raw_length_scale = jnp.log(jnp.float32(1.5))
    raw_scale = jnp.log(jnp.float32(0.7))
    period = jnp.float32(2.0)

    key = jax.random.PRNGKey(0)
    k1, k2 = jax.random.split(key)
    N = 512
    X = jax.random.normal(k1, (N, 1), dtype=jnp.float32)
    X2 = jax.random.normal(k2, (N, 1), dtype=jnp.float32)

    out = local_periodic_forward(X, X2, raw_length_scale, raw_scale, period)
    out = jax.block_until_ready(out)

    # Pure-JAX reference reproducing the PyTorch broadcasting exactly.
    ls = jnp.exp(raw_length_scale)
    sc = jnp.exp(raw_scale)
    Xs = X / ls
    X2s = X2 / ls
    K = -2.0 * jnp.sin(
        math.pi * jnp.abs(jnp.broadcast_to(Xs, (N, N)) - jnp.broadcast_to(X2s, (N, N)))
        / period)
    K = sc ** 2 * jnp.exp(K)
    K2 = jnp.exp(-0.5 * K)
    ref = K * K2

    assert out.shape == (N, N)
    assert out.dtype == jnp.float32
    assert jnp.allclose(out, ref, atol=1e-5, rtol=1e-5), (
        float(jnp.max(jnp.abs(out - ref))))
    print("KERNEL_OK")
</pallas_src>

<mosaic_0001>
module attributes {stable_mosaic.version = 11 : i64} {
  func.func @_local_periodic_kernel(%arg0: i32, %arg1: i32, %arg2: memref<2xf32, #tpu.memory_space<smem>>, %arg3: memref<512x1xf32, #tpu.memory_space<vmem>>, %arg4: memref<512x1xf32, #tpu.memory_space<vmem>>, %arg5: memref<256x512xf32, #tpu.memory_space<vmem>>) attributes {dimension_semantics = [#tpu.dimension_semantics<parallel>, #tpu.dimension_semantics<parallel>], iteration_bounds = array<i64: 2, 1>, scalar_prefetch = 0 : i64, scratch_operands = 0 : i64, tpu.core_type = #tpu.core_type<tc>, window_params = [{transform_indices = @transform_0, window_bounds = array<i64: 2>}, {pipeline_mode = #tpu.pipeline_mode<synchronous>, transform_indices = @transform_1, window_bounds = array<i64: 512, 1>}, {pipeline_mode = #tpu.pipeline_mode<synchronous>, transform_indices = @transform_2, window_bounds = array<i64: 512, 1>}, {transform_indices = @transform_3, window_bounds = array<i64: 256, 512>}]} {
    %c0 = arith.constant 0 : index
    %0 = memref.load %arg2[%c0] : memref<2xf32, #tpu.memory_space<smem>>
    %c1 = arith.constant 1 : index
    %1 = memref.load %arg2[%c1] : memref<2xf32, #tpu.memory_space<smem>>
    %c256_i32 = arith.constant 256 : i32
    %2 = arith.muli %arg0, %c256_i32 : i32
    %3 = tpu.assume_multiple %2, 256 : i32
    %4 = arith.index_cast %3 : i32 to index
    %c0_0 = arith.constant 0 : index
    %5 = vector.load %arg3[%4, %c0_0] : memref<512x1xf32, #tpu.memory_space<vmem>>, vector<256x1xf32>
    %6 = arith.index_cast %3 : i32 to index
    %c0_1 = arith.constant 0 : index
    %7 = vector.load %arg4[%6, %c0_1] : memref<512x1xf32, #tpu.memory_space<vmem>>, vector<256x1xf32>
    %8 = arith.subf %5, %7 : vector<256x1xf32>
    %9 = math.absf %8 : vector<256x1xf32>
    %10 = vector.broadcast %0 : f32 to vector<256x1xf32>
    %11 = arith.mulf %10, %9 : vector<256x1xf32>
    %12 = math.sin %11 : vector<256x1xf32>
    %cst = arith.constant -2.000000e+00 : f32
    %13 = vector.broadcast %cst : f32 to vector<256x1xf32>
    %14 = arith.mulf %13, %12 : vector<256x1xf32>
    %15 = math.exp %14 : vector<256x1xf32>
    %16 = vector.broadcast %1 : f32 to vector<256x1xf32>
    %17 = arith.mulf %16, %15 : vector<256x1xf32>
    %cst_2 = arith.constant -5.000000e-01 : f32
    %18 = vector.broadcast %cst_2 : f32 to vector<256x1xf32>
    %19 = arith.mulf %18, %17 : vector<256x1xf32>
    %20 = math.exp %19 : vector<256x1xf32>
    %21 = arith.mulf %17, %20 : vector<256x1xf32>
    %22 = vector.shape_cast %21 : vector<256x1xf32> to vector<256x1xf32>
    %23 = vector.broadcast %22 : vector<256x1xf32> to vector<256x512xf32>
    %c0_3 = arith.constant 0 : index
    %c0_4 = arith.constant 0 : index
    %24 = vector.load %arg5[%c0_3, %c0_4] : memref<256x512xf32, #tpu.memory_space<vmem>>, vector<256x512xf32>
    tpu.vector_store %arg5[%c0_3, %c0_4], %23 {strides = array<i32>} : memref<256x512xf32, #tpu.memory_space<vmem>>, vector<256x512xf32>,
    return
  }
  func.func @transform_0(%arg0: i32, %arg1: i32) -> i32 {
    %c0_i32 = arith.constant 0 : i32
    %c0_i32_0 = arith.constant 0 : i32
    return %c0_i32 : i32
  }
  func.func @transform_1(%arg0: i32, %arg1: i32) -> (i32, i32) {
    %c0_i32 = arith.constant 0 : i32
    %c0_i32_0 = arith.constant 0 : i32
    %c0_i32_1 = arith.constant 0 : i32
    return %c0_i32, %c0_i32_0 : i32, i32
  }
  func.func @transform_2(%arg0: i32, %arg1: i32) -> (i32, i32) {
    %c0_i32 = arith.constant 0 : i32
    %c0_i32_0 = arith.constant 0 : i32
    %c0_i32_1 = arith.constant 0 : i32
    return %c0_i32, %c0_i32_0 : i32, i32
  }
  func.func @transform_3(%arg0: i32, %arg1: i32) -> (i32, i32) {
    %c0_i32 = arith.constant 0 : i32
    return %arg0, %arg1 : i32, i32
  }
}

</mosaic_0001>

<bundles_post_ra>
// kernel: tpu_custom_call.1
= control target key start
LH: loop header
LB: loop body
LE: loop exit
PB: predicated region body
PF: predicated region fallthrough
CT: control target
= control target key end

     0   :  { %8 = vsyncpa [#allocation4], 0  ;;  %s10270_s0 = inlined_call_operand.vmem [shape: f32[2], index: 0, kind: input, shape index: {}]   ;;  %s10271_s1 = inlined_call_operand.vmem [shape: f32[512,1], index: 1, kind: input, shape index: {}]   ;;  %s10272_s2 = inlined_call_operand.vmem [shape: f32[512,1], index: 2, kind: input, shape index: {}]   ;;  %s10273_s3 = inlined_call_operand.hbm [shape: f32[512,512], index: 3, kind: output, shape index: {}]  }
   0x1   :  { %9 = vsyncpa [#allocation3], 0 }
   0x2   :  { %11 = vsyncpa [#allocation3 + $0x1], 0  ;;  %s6394_s12 = smov 0   ;;  %s6396_s13 = smov 0  }
   0x3   :  { %s6398_s14 = smov 0   ;;  %s6400_s15 = smov 0  }
   0x4   :  { %s6402_s16 = smov 0   ;;  %s6404_s17 = smov 0  }
   0x5 LB: > { %s5946_s18 = sadd.s32 4294967295, %s6362_s17   ;;  %s5947_s19 = sadd.s32 4294967294, %s6362_s17   ;;  %s6362_s17 = sphi %s6404_s17, %s17_s17   ;;  %s6358_s16 = sphi %s6402_s16, %s10344_s16   ;;  %s6354_s15 = sphi %s6400_s15, %s10343_s15   ;;  %s6350_s14 = sphi %s6398_s14, %s10342_s14   ;;  %s6346_s13 = sphi %s6396_s13, %s10341_s13   ;;  %s6342_s12 = sphi %s6394_s12, %s10340_s12  }
   0x6   : > { %s29_s20 = sadd.s32 1, %s6358_s16  ;;  %s101_s21 = sadd.s32 1, %s6350_s14 }
   0x7   : > { %p31_p0 = scmp.ge.s32.totalorder %s29_s20, 2  ;;  %p111_p1 = scmp.ne.s32.totalorder %s6350_s14, %s6346_s13 }
   0x8   : > { %p112_p2 = scmp.eq.s32.totalorder %s5946_s18, 1  ;;  %p117_p3 = scmp.ne.s32.totalorder %s6346_s13, %s6342_s12 }
   0x9   : > { %s10346_s20 = smov (%p31_p0, %s29_s20), 0  ;;  %p118_p5 = scmp.eq.s32.totalorder %s5947_s19, 1 }
   0xa   : > { %p6434_p4 = por %p112_p2, %p111_p1  ;;  %s96_s23 = ssub.s32 %s6358_s16, %s10346_s20 }
   0xb   : > { %p5948_p6 = scmp.ge.s32.totalorder %s6362_s17, 1  ;;  %p99_p7 = scmp.eq.s32.totalorder %s96_s23, 0 }
   0xc   : > { %p6441_p8 = por %p118_p5, %p117_p3  ;;  %p125_p9 = scmp.lt.s32.totalorder %s6362_s17, 3 }
   0xd   : > { %s6447_s25 = scalar_select %p99_p7, %s6350_s14, %s101_s21  }
   0xe   : > { %p126_p10 = pnand %p5948_p6, %p125_p9  ;;  %p6073_p11 = scmp.eq.s32.totalorder %s5946_s18, 0 }
   0xf   : > { %s137_s28 = sshll.u32 %s10270_s0, 4  ;;  %s6364_s29 = smov [#allocation2]   ;;  %s138_s28 = int_to_ptr.vmem [resolvable:$true] %s137_s28 }
  0x10   : > { %p6065_p12 = pneg %p126_p10  ;;  %156 = sbr.rel (%p126_p10) target bundleno = 1492 (0x5d4), region = 32 }
  0x12   : > { %p6066_p13 = pnand %p6073_p11, %p6065_p12 }
  0x14   : > { %6068 = dma.vmem_to_smem (!%p6066_p13), %s138_s28, 16, %s6364_s29, [#allocation4]  }
  0x15   : > { %6333 = dma.done.wait (%p6073_p11), [#allocation4], 16  }
  0x16   : > { %6335 = vsyncadd (%p6073_p11), [#allocation4], 4294967280 }
  0x17   : > { %163 = sfence }
  0x18   : > { %s179_s30 = sld [smem:[#allocation2]]  ;;  %s5954_s4 = sshll.u32 %s6354_s15, 8  ;;  %v6365_v0 = vmov 0   ;;  %v6366_v42 = vmov 683565275  }
  0x19   : > { %6136 = vset.pattern.permute.xlu2 %v6365_v0  ;;  %6135 = vset.pattern.permute.xlu1 %v6365_v0  ;;  %s6458_s7 = scalar_lea.vmem %s10271_s1, %s5954_s4  ;;  %s6465_s10 = scalar_lea.vmem %s10272_s2, %s5954_s4  ;;  %v6367_v44 = vmov 2475754826   ;;  %v6368_v46 = vmov 2131351028   ;;  %v6369_v48 = vmov 2102212464  }
  0x1a   : > { %6134 = vset.pattern.permute.xlu0 %v6365_v0  ;;  %v187_v1 = vld [vmem:[%s6458_s7 + $0x20] sm:$0xff]  ;;  %v185_v2 = vld [vmem:[%s6458_s7 + $0x10] sm:$0xff]  ;;  %v6370_v50 = vmov 920167782   ;;  %v6371_v59 = vmov 1326507024  }
  0x1b   : > { %v220_v3 = vld [vmem:[%s6465_s10 + $0x20] sm:$0xff]  ;;  %v218_v4 = vld [vmem:[%s6465_s10 + $0x10] sm:$0xff]  ;;  %s6780_s11 = sld [smem:[#allocation2 + $0x1]]  ;;  %s174_s18 = sand.u32 1, %s6346_s13  }
  0x1c   : > { %v183_v5 = vld [vmem:[%s6458_s7] sm:$0xff]  ;;  %v252_v6 = vsub.f32 %v187_v1, %v220_v3  ;;  %v250_v7 = vsub.f32 %v185_v2, %v218_v4  ;;  %s5952_s19 = sshll.u32 %s174_s18, 10  ;;  %s6058_s23 = sshll.u32 %s6354_s15, 10 }
  0x1d   : > { %v216_v8 = vld [vmem:[%s6465_s10] sm:$0xff]  ;;  %s10099_s21 = scalar_lea.vmem [#allocation5], %s5952_s19  ;;  %s5865_s28 = scalar_lea.hbm %s10273_s3, %s6058_s23 }
  0x1e   : > { %v248_v9 = vsub.f32 %v183_v5, %v216_v8  ;;  %v284_v10 = vand.u32 2147483647, %v252_v6  ;;  %v6472_v11 = vstv %s179_s30  ;;  %v282_v12 = vand.u32 2147483647, %v250_v7  ;;  %s5866_s29 = sshll.u32 %s10099_s21, 4  ;;  %s5868_s30 = sshll.u32 %s5865_s28, 4  ;;  %s5867_s29 = int_to_ptr.vmem [resolvable:$true] %s5866_s29  ;;  %s5869_s30 = int_to_ptr.hbm [resolvable:$true] %s5868_s30 }
  0x1f   : > { %s5851_s4 = scalar_lea.sflag [#allocation3], %s174_s18  ;;  %s6294_s5 = sshra.s32 %s5869_s30, 4  ;;  %s6295_s5 = int_to_ptr.hbm [resolvable:$true] %s6294_s5 }
  0x20   : > { %v280_v13 = vand.u32 2147483647, %v248_v9  ;;  %v6475_v14 = vmul.f32 %v6472_v11, %v284_v10  ;;  %v6478_v15 = vmul.f32 %v6472_v11, %v282_v12  ;;  %s6296_s6 = scalar_lea.hbm %s6295_s5, 1024  ;;  %s6300_s8 = scalar_lea.hbm %s10273_s3, 2048 }
  0x21   : > { %p6297_p0 = scmp.ne.s32.totalorder %s6295_s5, %s6296_s6  ;;  %p6301_p3 = scmp.lt.s32.totalorder %s6295_s5, %s10273_s3 }
  0x22   : > { %v6481_v16 = vmul.f32 %v6472_v11, %v280_v13  ;;  %v965_v17 = vand.u32 2147483647, %v6475_v14  ;;  %v968_v18 = vand.u32 2139095040, %v6475_v14  ;;  %v655_v19 = vand.u32 2147483647, %v6478_v15  ;;  %p6302_p5 = scmp.lt.s32.totalorder %s6300_s8, %s6296_s6 }
  0x23   : > { %v658_v20 = vand.u32 2139095040, %v6478_v15  ;;  %p6298_p1 = pnand %p6297_p0, %p6434_p4 }
  0x24   : > { %v348_v21 = vand.u32 2139095040, %v6481_v16  ;;  %v969_v22 = vshrl.u32 %v968_v18, 23  ;;  %v972_v23 = vand.u32 8388607, %v965_v17  ;;  %v662_v25 = vand.u32 8388607, %v655_v19  ;;  %p6303_p6 = por %p6302_p5, %p6301_p3 }
  0x25   : > { %v659_v24 = vshrl.u32 %v658_v20, 23  ;;  %p6299_p2 = pneg %p6298_p1 }
  0x26   : > { %v5967_v26 = vadd.s32 4294967169, %v969_v22  ;;  %v973_v27 = vor.u32 8388608, %v972_v23  ;;  %v349_v29 = vshrl.u32 %v348_v21, 23  ;;  %v663_v31 = vor.u32 8388608, %v662_v25 }
  0x27   : > { %v5961_v28 = vadd.s32 4294967169, %v659_v24  ;;  %p6304_p7 = pnand %p6303_p6, %p6299_p2 }
  0x28   : > { %v975_v30 = vadd.s32 1, %v5967_v26  ;;  %v6492_v34 = vshll.u32 %v973_v27, 8  ;;  %v5955_v35 = vadd.s32 4294967169, %v349_v29  ;;  %v6498_v40 = vshll.u32 %v663_v31, 8 }
  0x29   : > { %v665_v32 = vadd.s32 1, %v5961_v28 }
  0x2a   : > { %vm976_vm0 = vcmp.gt.s32.totalorder %v975_v30, 0  ;;  %v1014_v52 = vand.u32 65535, %v6492_v34  ;;  %v6506_v53 = vadd.s32 1, %v5955_v35  ;;  %v1015_v57 = vshrl.u32 %v6492_v34, 16 }
  0x2b   : > { %v977_v33 = vsel %vm976_vm0, %v975_v30, 0  ;;  %vm666_vm1 = vcmp.gt.s32.totalorder %v665_v32, 0 }
  0x2c   : > { %v979_v36 = vand.u32 31, %v977_v33  ;;  %v667_v37 = vsel %vm666_vm1, %v665_v32, 0  ;;  %v6494_v38 = vshrl.u32 %v977_v33, 5  ;;  %vm356_vm15 = vcmp.gt.s32.totalorder %v6506_v53, 0 }
  0x2d   : > { %v6496_v39 = vand.u32 31, %v667_v37  ;;  %v6526_v7 = vshrl.u32 %v667_v37, 5 }
  0x2e   : > { %v980_v41 = vsub.s32 32, %v979_v36  ;;  %v982_v43 = vshll.u32 %v6366_v42, %v979_v36  ;;  %v985_v45 = vshll.u32 %v6367_v44, %v979_v36  ;;  %v988_v47 = vshll.u32 %v6368_v46, %v979_v36 }
  0x2f   : > { %v991_v49 = vshll.u32 %v6369_v48, %v979_v36  ;;  %v994_v51 = vshll.u32 %v6370_v50, %v979_v36  ;;  %vm997_vm2 = vcmp.lt.s32.totalorder %v6494_v38, 1  ;;  %vm1000_vm3 = vcmp.lt.s32.totalorder %v6494_v38, 4 }
  0x30   : > { %v983_v54 = vshrl.u32 %v6367_v44, %v980_v41  ;;  %v986_v55 = vshrl.u32 %v6368_v46, %v980_v41  ;;  %v989_v56 = vshrl.u32 %v6369_v48, %v980_v41  ;;  %v992_v58 = vshrl.u32 %v6370_v50, %v980_v41 }
  0x31   : > { %v995_v60 = vshrl.u32 %v6371_v59, %v980_v41  ;;  %v6517_v1 = vsub.s32 32, %v6496_v39  ;;  %v981_v2 = vshrl.u32 %v6366_v42, %v980_v41  ;;  %vm999_vm4 = vcmp.lt.s32.totalorder %v6494_v38, 3 }
  0x32   : > { %v984_v61 = vor.u32 %v983_v54, %v982_v43  ;;  %v987_v62 = vor.u32 %v986_v55, %v985_v45  ;;  %v990_v63 = vor.u32 %v989_v56, %v988_v47  ;;  %v993_v3 = vor.u32 %v992_v58, %v991_v49 }
  0x33   : > { %v996_v4 = vor.u32 %v995_v60, %v994_v51  ;;  %vm998_vm5 = vcmp.lt.s32.totalorder %v6494_v38, 2  ;;  %v672_v10 = vshll.u32 %v6366_v42, %v6496_v39  ;;  %v675_v12 = vshll.u32 %v6367_v44, %v6496_v39 }
  0x34   : > { %v1005_v5 = vsel %vm997_vm2, %v984_v61, %v987_v62  ;;  %v1009_v6 = vsel %vm997_vm2, %v987_v62, %v990_v63  ;;  %v1006_v8 = vsel %vm1000_vm3, %v993_v3, 920167782  ;;  %v1002_v13 = vsel %vm1000_vm3, %v990_v63, 2102212464 }
  0x35   : > { %v1010_v9 = vsel %vm1000_vm3, %v996_v4, 1326507024  ;;  %v1007_v18 = vsel %vm999_vm4, %v990_v63, %v1006_v8  ;;  %v673_v21 = vshrl.u32 %v6367_v44, %v6517_v1  ;;  %v1001_v22 = vsel %vm997_vm2, %v981_v2, %v984_v61 }
  0x36   : > { %v1011_v20 = vsel %vm999_vm4, %v993_v3, %v1010_v9  ;;  %v1008_v23 = vsel %vm998_vm5, %v1005_v5, %v1007_v18  ;;  %v676_v25 = vshrl.u32 %v6368_v46, %v6517_v1  ;;  %v1003_v30 = vsel %vm999_vm4, %v987_v62, %v1002_v13 }
  0x37   : > { %v1012_v24 = vsel %vm998_vm5, %v1009_v6, %v1011_v20  ;;  %v1038_v28 = vand.u32 65535, %v1008_v23  ;;  %v1039_v29 = vshrl.u32 %v1008_v23, 16  ;;  %v6554_v31 = vor.u32 %v673_v21, %v672_v10 }
  0x38   : > { %v1016_v26 = vand.u32 65535, %v1012_v24  ;;  %v1017_v27 = vshrl.u32 %v1012_v24, 16  ;;  %v6556_v32 = vor.u32 %v676_v25, %v675_v12  ;;  %v678_v33 = vshll.u32 %v6368_v46, %v6496_v39 }
  0x39   : > { %v679_v41 = vshrl.u32 %v6369_v48, %v6517_v1  ;;  %v1040_v45 = vmul.u32 %v1038_v28, %v1014_v52  ;;  %v1041_v47 = vmul.u32 %v1039_v29, %v1014_v52  ;;  %v1042_v49 = vmul.u32 %v1038_v28, %v1015_v57 }
  0x3a   : > { %v1018_v35 = vmul.u32 %v1016_v26, %v1014_v52  ;;  %v1019_v36 = vmul.u32 %v1017_v27, %v1014_v52  ;;  %v1020_v37 = vmul.u32 %v1016_v26, %v1015_v57  ;;  %v1021_v43 = vmul.u32 %v1017_v27, %v1015_v57 }
  0x3b   : > { %v1043_v56 = vmul.u32 %v1039_v29, %v1015_v57  ;;  %v1044_v60 = vshll.u32 %v1041_v47, 16  ;;  %v1045_v61 = vshrl.u32 %v1041_v47, 16  ;;  %v1046_v62 = vshll.u32 %v1042_v49, 16 }
  0x3c   : > { %v1022_v51 = vshll.u32 %v1019_v36, 16  ;;  %v1023_v54 = vshrl.u32 %v1019_v36, 16  ;;  %v1024_v55 = vshll.u32 %v1020_v37, 16  ;;  %v1025_v58 = vshrl.u32 %v1020_v37, 16 }
  0x3d   : > { %v1047_v2 = vshrl.u32 %v1042_v49, 16  ;;  %v681_v3 = vshll.u32 %v6369_v48, %v6496_v39  ;;  %vm1048_vm7 = vc.u32 %v1040_v45, %v1044_v60  ;;  %v1050_v5 = vadd.s32 %v1044_v60, %v1040_v45 }
  0x3e   : > { %vm1026_vm6 = vc.u32 %v1018_v35, %v1022_v51  ;;  %v1028_v63 = vadd.s32 %v1022_v51, %v1018_v35  ;;  %v682_v52 = vshrl.u32 %v6370_v50, %v6517_v1  ;;  %v1049_v57 = vsel %vm1048_vm7, 1, %v6365_v0 }
  0x3f   : > { %v1027_v4 = vsel %vm1026_vm6, 1, %v6365_v0  ;;  %v684_v8 = vshll.u32 %v6370_v50, %v6496_v39  ;;  %v1051_v10 = vadd.s32 %v1049_v57, %v1043_v56  ;;  %vm1052_vm9 = vc.u32 %v1050_v5, %v1046_v62 }
  0x40   : > { %v1029_v6 = vadd.s32 %v1027_v4, %v1021_v43  ;;  %vm1030_vm8 = vc.u32 %v1028_v63, %v1024_v55  ;;  %v680_v12 = vor.u32 %v679_v41, %v678_v33  ;;  %v1053_v18 = vsel %vm1052_vm9, 1, %v6365_v0 }
  0x41   : > { %v1031_v9 = vsel %vm1030_vm8, 1, %v6365_v0  ;;  %v683_v20 = vor.u32 %v682_v52, %v681_v3  ;;  %v685_v21 = vshrl.u32 %v6371_v59, %v6517_v1  ;;  %v6574_v23 = vadd.s32 %v1050_v5, %v1046_v62 }
  0x42   : > { %v1033_v13 = vadd.s32 %v1031_v9, %v1029_v6  ;;  %v1055_v24 = vadd.s32 %v1053_v18, %v1051_v10  ;;  %vm687_vm10 = vcmp.lt.s32.totalorder %v6526_v7, 1  ;;  %vm689_vm11 = vcmp.lt.s32.totalorder %v6526_v7, 3 }
  0x43   : > { %v686_v25 = vor.u32 %v685_v21, %v684_v8  ;;  %vm688_vm12 = vcmp.lt.s32.totalorder %v6526_v7, 2  ;;  %vm690_vm13 = vcmp.lt.s32.totalorder %v6526_v7, 4  ;;  %v1004_v26 = vsel %vm998_vm5, %v1001_v22, %v1003_v30 }
  0x44   : > { %v1034_v39 = vadd.s32 %v1033_v13, %v1023_v54  ;;  %v1056_v27 = vadd.s32 %v1055_v24, %v1045_v61  ;;  %v695_v28 = vsel %vm687_vm10, %v6554_v31, %v6556_v32  ;;  %v696_v29 = vsel %vm690_vm13, %v683_v20, 920167782 }
  0x45   : > { %v697_v35 = vsel %vm689_vm11, %v680_v12, %v696_v29  ;;  %v699_v36 = vsel %vm687_vm10, %v6556_v32, %v680_v12  ;;  %v704_v38 = vand.u32 65535, %v6498_v40  ;;  %v700_v37 = vsel %vm690_vm13, %v686_v25, 1326507024 }
  0x46   : > { %v6588_v33 = vadd.s32 %v1034_v39, %v1025_v58  ;;  %v1057_v22 = vadd.s32 %v1056_v27, %v1047_v2  ;;  %v698_v30 = vsel %vm688_vm12, %v695_v28, %v697_v35  ;;  %v705_v41 = vshrl.u32 %v6498_v40, 16 }
  0x47   : > { %v1058_v43 = vmul.u32 %v6492_v34, %v1004_v26  ;;  %v701_v45 = vsel %vm689_vm11, %v683_v20, %v700_v37  ;;  %v728_v47 = vand.u32 65535, %v698_v30  ;;  %v729_v54 = vshrl.u32 %v698_v30, 16 }
  0x48   : > { %vm1060_vm14 = vc.u32 %v6588_v33, %v6574_v23  ;;  %v1061_v49 = vadd.s32 1, %v1057_v22  ;;  %v702_v51 = vsel %vm688_vm12, %v699_v36, %v701_v45  ;;  %v671_v55 = vshrl.u32 %v6366_v42, %v6517_v1 }
  0x49   : > { %v706_v56 = vand.u32 65535, %v702_v51  ;;  %v707_v58 = vshrl.u32 %v702_v51, 16  ;;  %v692_v60 = vsel %vm690_vm13, %v680_v12, 2102212464  ;;  %v731_v61 = vmul.u32 %v729_v54, %v704_v38 }
  0x4a   : > { %v1062_v34 = vsel %vm1060_vm14, %v1061_v49, %v1057_v22  ;;  %v732_v62 = vmul.u32 %v728_v47, %v705_v41  ;;  %v730_v4 = vmul.u32 %v728_v47, %v704_v38  ;;  %v357_v6 = vsel %vm356_vm15, %v6506_v53, 0 }
  0x4b   : > { %v1063_v63 = vadd.s32 %v1062_v34, %v1058_v43  ;;  %v708_v2 = vmul.u32 %v706_v56, %v704_v38  ;;  %v709_v3 = vmul.u32 %v707_v58, %v704_v38  ;;  %v710_v5 = vmul.u32 %v706_v56, %v705_v41 }
  0x4c   : > { %v734_v52 = vshll.u32 %v731_v61, 16  ;;  %v691_v1 = vsel %vm687_vm10, %v671_v55, %v6554_v31  ;;  %v711_v8 = vmul.u32 %v707_v58, %v705_v41  ;;  %v693_v10 = vsel %vm689_vm11, %v6556_v32, %v692_v60 }
  0x4d   : > { %v1064_v57 = vadd.s32 536870912, %v1063_v63  ;;  %v712_v9 = vshll.u32 %v709_v3, 16  ;;  %v714_v12 = vshll.u32 %v710_v5, 16  ;;  %v733_v13 = vmul.u32 %v729_v54, %v705_v41 }
  0x4e   : > { %v736_v18 = vshll.u32 %v732_v62, 16  ;;  %vm738_vm1 = vc.u32 %v730_v4, %v734_v52  ;;  %v713_v24 = vshrl.u32 %v709_v3, 16  ;;  %v740_v25 = vadd.s32 %v734_v52, %v730_v4 }
  0x4f   : > { %v1065_v20 = vshrl.u32 %v1064_v57, 30  ;;  %vm716_vm0 = vc.u32 %v708_v2, %v712_v9  ;;  %v718_v21 = vadd.s32 %v712_v9, %v708_v2  ;;  %v739_v39 = vsel %vm738_vm1, 1, %v6365_v0 }
  0x50   : > { %v717_v53 = vsel %vm716_vm0, 1, %v6365_v0  ;;  %v735_v27 = vshrl.u32 %v731_v61, 16  ;;  %v715_v28 = vshrl.u32 %v710_v5, 16  ;;  %v741_v29 = vadd.s32 %v739_v39, %v733_v13 }
  0x51   : > { %v1066_v31 = vshll.u32 %v1065_v20, 30  ;;  %v719_v26 = vadd.s32 %v717_v53, %v711_v8  ;;  %vm720_vm2 = vc.u32 %v718_v21, %v714_v12  ;;  %vm742_vm3 = vc.u32 %v740_v25, %v736_v18 }
  0x52   : > { %v721_v32 = vsel %vm720_vm2, 1, %v6365_v0  ;;  %v743_v38 = vsel %vm742_vm3, 1, %v6365_v0  ;;  %v359_v22 = vand.u32 31, %v357_v6  ;;  %v737_v30 = vshrl.u32 %v732_v62, 16 }
  0x53   : > { %v1067_v35 = vsub.s32 %v1063_v63, %v1066_v31  ;;  %v723_v36 = vadd.s32 %v721_v32, %v719_v26  ;;  %v745_v37 = vadd.s32 %v743_v38, %v741_v29  ;;  %v345_v41 = vand.u32 2147483647, %v6481_v16 }
  0x54   : > { %v6625_v47 = vadd.s32 %v740_v25, %v736_v18  ;;  %v694_v49 = vsel %vm688_vm12, %v691_v1, %v693_v10  ;;  %v360_v56 = vsub.s32 32, %v359_v22  ;;  %vm967_vm5 = vcmp.lt.s32.totalorder %v6475_v14, 0 }
  0x55   : > { %vm1068_vm4 = vcmp.lt.s32.totalorder %v1067_v35, 0  ;;  %v1069_v43 = vsub.s32 0, %v1067_v35  ;;  %v724_v45 = vadd.s32 %v723_v36, %v713_v24  ;;  %v746_v51 = vadd.s32 %v745_v37, %v735_v27 }
  0x56   : > { %v352_v60 = vand.u32 8388607, %v345_v41  ;;  %v1059_v61 = vadd.s32 %v6574_v23, %v6588_v33  ;;  %v748_v62 = vmul.u32 %v6498_v40, %v694_v49  ;;  %v6639_v7 = vshrl.u32 %v357_v6, 5 }
  0x57   : > { %v1070_v54 = vsel %vm1068_vm4, %v1069_v43, %v1067_v35  ;;  %v6629_v55 = vadd.s32 %v724_v45, %v715_v28  ;;  %v747_v34 = vadd.s32 %v746_v51, %v737_v30  ;;  %v1089_v2 = vsub.s32 4, %v1065_v20 }
  0x58   : > { %v1071_v58 = vclz %v1070_v54  ;;  %v362_v4 = vshll.u32 %v6366_v42, %v359_v22  ;;  %v365_v5 = vshll.u32 %v6367_v44, %v359_v22  ;;  %v366_v52 = vshrl.u32 %v6368_v46, %v360_v56 }
  0x59   : > { %vm750_vm6 = vc.u32 %v6629_v55, %v6625_v47  ;;  %v751_v3 = vadd.s32 1, %v747_v34  ;;  %v368_v57 = vshll.u32 %v6368_v46, %v359_v22  ;;  %v369_v23 = vshrl.u32 %v6369_v48, %v360_v56 }
  0x5a   : > { %v5968_v63 = vadd.s32 4294967294, %v1071_v58  ;;  %v371_v33 = vshll.u32 %v6369_v48, %v359_v22  ;;  %v372_v6 = vshrl.u32 %v6370_v50, %v360_v56  ;;  %v374_v9 = vshll.u32 %v6370_v50, %v359_v22 }
  0x5b   : > { %v752_v40 = vsel %vm750_vm6, %v751_v3, %v747_v34  ;;  %v375_v10 = vshrl.u32 %v6371_v59, %v360_v56  ;;  %v363_v21 = vshrl.u32 %v6367_v44, %v360_v56  ;;  %v1090_v24 = vsel %vm967_vm5, %v1089_v2, %v1065_v20 }
  0x5c   : > { %vm5969_vm7 = vcmp.lt.s32.totalorder %v5968_v63, 0  ;;  %v753_v8 = vadd.s32 %v752_v40, %v748_v62  ;;  %v353_v39 = vor.u32 8388608, %v352_v60  ;;  %v6653_v25 = vor.u32 %v366_v52, %v365_v5 }
  0x5d   : > { %v1074_v1 = vsel %vm5969_vm7, 0, %v5968_v63  ;;  %v370_v27 = vor.u32 %v369_v23, %v368_v57  ;;  %v373_v28 = vor.u32 %v372_v6, %v371_v33  ;;  %v376_v29 = vor.u32 %v375_v10, %v374_v9  ;;  %v188_v9 = vld [vmem:[%s6458_s7 + $0x28] sm:$0xff] }
  0x5e   : > { %v1075_v12 = vsub.s32 32, %v1074_v1  ;;  %v1076_v13 = vshll.u32 %v1067_v35, %v1074_v1  ;;  %v1079_v18 = vsub.s32 4294967266, %v1074_v1  ;;  %v754_v53 = vadd.s32 536870912, %v753_v8  ;;  %v221_v10 = vld [vmem:[%s6465_s10 + $0x28] sm:$0xff] }
  0x5f   : > { %vm377_vm8 = vcmp.lt.s32.totalorder %v6639_v7, 1  ;;  %vm380_vm9 = vcmp.lt.s32.totalorder %v6639_v7, 4  ;;  %vm6661_vm10 = vcmp.le.f32.partialorder %v965_v17, 0.7853982  ;;  %v364_v38 = vor.u32 %v363_v21, %v362_v4 }
  0x60   : > { %v1077_v31 = vshrl.u32 %v1059_v61, %v1075_v12  ;;  %v1080_v26 = vadd.s32 127, %v1079_v18  ;;  %v6655_v32 = vshrl.u32 %v754_v53, 30  ;;  %v1092_v22 = vsel %vm6661_vm10, 0, %v1090_v24 }
  0x61   : > { %vm378_vm11 = vcmp.lt.s32.totalorder %v6639_v7, 2  ;;  %vm379_vm12 = vcmp.lt.s32.totalorder %v6639_v7, 3  ;;  %v386_v17 = vsel %vm380_vm9, %v373_v28, 920167782  ;;  %v389_v45 = vsel %vm377_vm8, %v6653_v25, %v370_v27 }
  0x62   : > { %v1078_v20 = vor.u32 %v1077_v31, %v1076_v13  ;;  %v1081_v36 = vshll.u32 %v1080_v26, 23  ;;  %v756_v30 = vshll.u32 %v6655_v32, 30  ;;  %v361_v51 = vshrl.u32 %v6366_v42, %v360_v56 }
  0x63   : > { %v390_v54 = vsel %vm380_vm9, %v376_v29, 1326507024  ;;  %v6680_v58 = vshll.u32 %v353_v39, 8  ;;  %v1109_v60 = vadd.s32 3, %v1092_v22  ;;  %v385_v61 = vsel %vm377_vm8, %v364_v38, %v6653_v25 }
  0x64   : > { %v1082_v37 = vor.u32 4788187, %v1081_v36  ;;  %v1085_v43 = vcvt.s32.f32 %v1078_v20  ;;  %v6675_v49 = vsub.s32 %v753_v8, %v756_v30  ;;  %v391_v62 = vsel %vm379_vm12, %v373_v28, %v390_v54 }
  0x65   : > { %v387_v63 = vsel %vm379_vm12, %v370_v27, %v386_v17  ;;  %v392_v2 = vsel %vm378_vm11, %v389_v45, %v391_v62  ;;  %v394_v4 = vand.u32 65535, %v6680_v58  ;;  %v6695_v5 = vshrl.u32 %v6680_v58, 16 }
  0x66   : > { %v1083_v34 = vand.u32 2147483647, %v1082_v37  ;;  %vm758_vm13 = vcmp.lt.s32.totalorder %v6675_v49, 0  ;;  %v759_v56 = vsub.s32 0, %v6675_v49  ;;  %v396_v52 = vand.u32 65535, %v392_v2 }
  0x67   : > { %v749_v57 = vadd.s32 %v6625_v47, %v6629_v55  ;;  %v397_v40 = vshrl.u32 %v392_v2, 16  ;;  %v6700_v6 = vand.u32 3, %v1109_v60  ;;  %v388_v8 = vsel %vm378_vm11, %v385_v61, %v387_v63 }
  0x68   : > { %v1086_v3 = vmul.f32 %v1085_v43, %v1083_v34  ;;  %v760_v23 = vsel %vm758_vm13, %v759_v56, %v6675_v49  ;;  %vm657_vm14 = vcmp.lt.s32.totalorder %v6478_v15, 0  ;;  %v6709_v12 = vsel %vm377_vm8, %v361_v51, %v364_v38 }
  0x69   : > { %v761_v1 = vclz %v760_v23  ;;  %v398_v13 = vmul.u32 %v396_v52, %v394_v4  ;;  %v399_v47 = vmul.u32 %v397_v40, %v394_v4  ;;  %v6712_v55 = vmul.u32 %v396_v52, %v6695_v5 }
  0x6a   : > { %v1087_v33 = vxor.u32 2147483648, %v1086_v3  ;;  %v382_v24 = vsel %vm380_vm9, %v370_v27, 2102212464  ;;  %v418_v53 = vand.u32 65535, %v388_v8  ;;  %v419_v26 = vshrl.u32 %v388_v8, 16 }
  0x6b   : > { %v5962_v21 = vadd.s32 4294967294, %v761_v1  ;;  %v402_v31 = vshll.u32 %v399_v47, 16  ;;  %v253_v28 = vsub.f32 %v188_v9, %v221_v10  ;;  %v401_v20 = vmul.u32 %v397_v40, %v6695_v5 }
  0x6c   : > { %v1088_v18 = vsel %vm967_vm5, %v1087_v33, %v1086_v3  ;;  %v404_v36 = vshll.u32 %v6712_v55, 16  ;;  %vm6729_vm0 = vcmp.le.f32.partialorder %v655_v19, 0.7853982  ;;  %v779_v38 = vsub.s32 4, %v6655_v32 }
  0x6d   : > { %v6721_v39 = vsel %vm6661_vm10, %v6475_v14, %v1088_v18  ;;  %vm5963_vm15 = vcmp.lt.s32.totalorder %v5962_v21, 0  ;;  %vm406_vm1 = vc.u32 %v398_v13, %v402_v31  ;;  %v408_v22 = vadd.s32 %v402_v31, %v398_v13 }
  0x6e   : > { %v1093_v29 = vmul.f32 %v6721_v39, %v6721_v39  ;;  %v764_v35 = vsel %vm5963_vm15, 0, %v5962_v21  ;;  %v383_v51 = vsel %vm379_vm12, %v6653_v25, %v382_v24  ;;  %v407_v19 = vsel %vm406_vm1, 1, %v6365_v0 }
  0x6f   : > { %v765_v43 = vsub.s32 32, %v764_v35  ;;  %v766_v17 = vshll.u32 %v6675_v49, %v764_v35  ;;  %v769_v45 = vsub.s32 4294967266, %v764_v35  ;;  %vm6739_vm2 = vc.u32 %v408_v22, %v404_v36 }
  0x70   : > { %v1094_v30 = vmul.f32 -0.001358992, %v1093_v29  ;;  %v1101_v37 = vmul.f32 -0.00019511016, %v1093_v29  ;;  %v409_v62 = vadd.s32 %v407_v19, %v401_v20  ;;  %vm1115_vm3 = vcmp.eq.s32.totalorder %v6700_v6, 2 }
  0x71   : > { %v767_v61 = vshrl.u32 %v749_v57, %v765_v43  ;;  %v770_v56 = vadd.s32 127, %v769_v45  ;;  %v420_v63 = vmul.u32 %v418_v53, %v394_v4  ;;  %v421_v49 = vmul.u32 %v419_v26, %v394_v4 }
  0x72   : > { %v1095_v34 = vadd.f32 0.041655596, %v1094_v30  ;;  %v1102_v60 = vadd.f32 0.008332121, %v1101_v37  ;;  %v285_v2 = vand.u32 2147483647, %v253_v28  ;;  %v780_v25 = vsel %vm657_vm14, %v779_v38, %v6655_v32 }
  0x73   : > { %v768_v23 = vor.u32 %v767_v61, %v766_v17  ;;  %vm1112_vm4 = vcmp.eq.s32.totalorder %v6700_v6, 0  ;;  %v771_v40 = vshll.u32 %v770_v56, 23  ;;  %v403_v33 = vshrl.u32 %v399_v47, 16 }
  0x74   : > { %v1096_v3 = vmul.f32 %v1095_v34, %v1093_v29  ;;  %v1103_v52 = vmul.f32 %v1102_v60, %v1093_v29  ;;  %v411_v57 = vsel %vm6739_vm2, 1, %v6365_v0  ;;  %v422_v1 = vmul.u32 %v418_v53, %v6695_v5 }
  0x75   : > { %vm1111_vm5 = vcmp.lt.s32.totalorder %v6700_v6, 2  ;;  %v413_v9 = vadd.s32 %v411_v57, %v409_v62  ;;  %v423_v10 = vmul.u32 %v419_v26, %v6695_v5  ;;  %vm1108_vm6 = vweird.f32 %v6475_v14  ;;  %v186_v6 = vld [vmem:[%s6458_s7 + $0x18] sm:$0xff] }
  0x76   : > { %v1097_v8 = vadd.f32 -0.4999988, %v1096_v3  ;;  %v1104_v4 = vadd.f32 -0.16666654, %v1103_v52  ;;  %v772_v32 = vor.u32 4788187, %v771_v40  ;;  %v775_v13 = vcvt.s32.f32 %v768_v23 }
  0x77   : > { %v424_v18 = vshll.u32 %v421_v49, 16  ;;  %v426_v21 = vshll.u32 %v422_v1, 16  ;;  %v782_v31 = vsel %vm6729_vm0, 0, %v780_v25  ;;  %v405_v53 = vshrl.u32 %v6712_v55, 16 }
  0x78   : > { %v1098_v47 = vmul.f32 %v1097_v8, %v1093_v29  ;;  %v1105_v24 = vmul.f32 %v1104_v4, %v1093_v29  ;;  %v773_v28 = vand.u32 2147483647, %v772_v32  ;;  %v414_v20 = vadd.s32 %v413_v9, %v403_v33 }
  0x79   : > { %vm428_vm7 = vc.u32 %v420_v63, %v424_v18  ;;  %v430_v36 = vadd.s32 %v424_v18, %v420_v63  ;;  %v6760_v26 = vmul.f32 %v6472_v11, %v285_v2  ;;  %v425_v30 = vshrl.u32 %v421_v49, 16 }
  0x7a   : > { %v1099_v35 = vadd.f32 1.0, %v1098_v47  ;;  %v1106_v38 = vadd.f32 1.0, %v1105_v24  ;;  %v429_v5 = vsel %vm428_vm7, 1, %v6365_v0  ;;  %v776_v22 = vmul.f32 %v775_v13, %v773_v28  ;;  %v219_v13 = vld [vmem:[%s6465_s10 + $0x18] sm:$0xff] }
  0x7b   : > { %v431_v37 = vadd.s32 %v429_v5, %v423_v10  ;;  %vm432_vm8 = vc.u32 %v430_v36, %v426_v21  ;;  %v1120_v17 = vand.u32 2147483647, %v6760_v26  ;;  %v415_v19 = vadd.s32 %v414_v20, %v405_v53 }
  0x7c   : > { %v1107_v29 = vmul.f32 %v1106_v38, %v6721_v39  ;;  %v1116_v43 = vxor.u32 2147483648, %v1099_v35  ;;  %v433_v55 = vsel %vm432_vm8, 1, %v6365_v0  ;;  %v777_v45 = vxor.u32 2147483648, %v776_v22 }
  0x7d   : > { %v427_v54 = vshrl.u32 %v422_v1, 16  ;;  %v435_v34 = vadd.s32 %v433_v55, %v431_v37  ;;  %v434_v62 = vadd.s32 %v430_v36, %v426_v21  ;;  %v1123_v56 = vand.u32 2139095040, %v6760_v26 }
  0x7e   : > { %v1113_v60 = vxor.u32 2147483648, %v1107_v29  ;;  %v1117_v61 = vsel %vm1115_vm3, %v1116_v43, %v1107_v29  ;;  %v778_v63 = vsel %vm657_vm14, %v777_v45, %v776_v22  ;;  %v799_v39 = vadd.s32 3, %v782_v31 }
  0x7f   : > { %v384_v49 = vsel %vm378_vm11, %v6709_v12, %v383_v51  ;;  %v436_v2 = vadd.s32 %v435_v34, %v425_v30  ;;  %v781_v52 = vsel %vm6729_vm0, %v6478_v15, %v778_v63  ;;  %v1124_v23 = vshrl.u32 %v1123_v56, 23 }
  0x80   : > { %v1114_v3 = vsel %vm1112_vm4, %v1099_v35, %v1113_v60  ;;  %v1127_v25 = vand.u32 8388607, %v1120_v17  ;;  %v783_v12 = vmul.f32 %v781_v52, %v781_v52  ;;  %v438_v33 = vmul.u32 %v6680_v58, %v384_v49 }
  0x81   : > { %v1118_v7 = vsel %vm1111_vm5, %v1114_v3, %v1117_v61  ;;  %v437_v51 = vadd.s32 %v436_v2, %v427_v54  ;;  %vm440_vm9 = vc.u32 %v415_v19, %v434_v62  ;;  %v5970_v27 = vadd.s32 4294967169, %v1124_v23 }
  0x82   : > { %v1119_v40 = vsel %vm1108_vm6, nan, %v1118_v7  ;;  %v784_v1 = vmul.f32 -0.001358992, %v783_v12  ;;  %v791_v8 = vmul.f32 -0.00019511016, %v783_v12  ;;  %v6787_v9 = vand.u32 3, %v799_v39 }
  0x83   : > { %v5309_v57 = vmul.f32 -2.0, %v1119_v40  ;;  %v441_v4 = vadd.s32 1, %v437_v51  ;;  %v1128_v10 = vor.u32 8388608, %v1127_v25  ;;  %v1130_v32 = vadd.s32 1, %v5970_v27 }
  0x84   : > { %v785_v21 = vadd.f32 0.041655596, %v784_v1  ;;  %v792_v47 = vadd.f32 0.008332121, %v791_v8  ;;  %v251_v35 = vsub.f32 %v186_v6, %v219_v13  ;;  %v6794_v38 = vstv %s6780_s11 }
  0x85   : > { %v5345_v18 = vmul.f32 1.442695, %v5309_v57  ;;  %v442_v14 = vsel %vm440_vm9, %v441_v4, %v437_v51  ;;  %vm1131_vm10 = vcmp.gt.s32.totalorder %v1130_v32, 0  ;;  %v6791_v36 = vshll.u32 %v1128_v10, 8 }
  0x86   : > { %v443_v24 = vadd.s32 %v442_v14, %v438_v33  ;;  %v786_v58 = vmul.f32 %v785_v21, %v783_v12  ;;  %v793_v31 = vmul.f32 %v792_v47, %v783_v12  ;;  %v1132_v53 = vsel %vm1131_vm10, %v1130_v32, 0 }
  0x87   : > { %6137 = vpow2.f32 %v5345_v18  ;;  %v1134_v20 = vand.u32 31, %v1132_v53  ;;  %vm801_vm11 = vcmp.lt.s32.totalorder %v6787_v9, 2  ;;  %vm802_vm12 = vcmp.eq.s32.totalorder %v6787_v9, 0 }
  0x88   : > { %v444_v28 = vadd.s32 536870912, %v443_v24  ;;  %v787_v5 = vadd.f32 -0.4999988, %v786_v58  ;;  %v794_v22 = vadd.f32 -0.16666654, %v793_v31  ;;  %vm805_vm13 = vcmp.eq.s32.totalorder %v6787_v9, 2 }
  0x89   : > { %v6801_v37 = vsub.s32 32, %v1134_v20  ;;  %vm798_vm14 = vweird.f32 %v6478_v15  ;;  %v6804_v55 = vadd.s32 %v434_v62, %v415_v19  ;;  %v1137_v54 = vshll.u32 %v6366_v42, %v1134_v20 }
  0x8a   : > { %v6799_v30 = vshrl.u32 %v444_v28, 30  ;;  %v788_v29 = vmul.f32 %v787_v5, %v783_v12  ;;  %v795_v43 = vmul.f32 %v794_v22, %v783_v12  ;;  %v6809_v34 = vand.u32 65535, %v6791_v36 }
  0x8b   : > { %v283_v60 = vand.u32 2147483647, %v251_v35  ;;  %v1140_v39 = vshll.u32 %v6367_v44, %v1134_v20  ;;  %v1146_v49 = vshll.u32 %v6369_v48, %v1134_v20  ;;  %v1138_v19 = vshrl.u32 %v6367_v44, %v6801_v37 }
  0x8c   : > { %v446_v45 = vshll.u32 %v6799_v30, 30  ;;  %v789_v56 = vadd.f32 1.0, %v788_v29  ;;  %v796_v63 = vadd.f32 1.0, %v795_v43  ;;  %v1147_v62 = vshrl.u32 %v6370_v50, %v6801_v37 }
  0x8d   : > { %v6138_v61 = vpop.eup %6137  ;;  %v1141_v7 = vshrl.u32 %v6368_v46, %v6801_v37  ;;  %v1143_v12 = vshll.u32 %v6368_v46, %v1134_v20  ;;  %v1144_v33 = vshrl.u32 %v6369_v48, %v6801_v37  ;;  %vm347_vm0 = vcmp.lt.s32.totalorder %v6481_v16, 0 }
  0x8e   : > { %v5406_v2 = vmul.f32 %v6138_v61, %v6794_v38  ;;  %v6814_v3 = vsub.s32 %v443_v24, %v446_v45  ;;  %v797_v23 = vmul.f32 %v796_v63, %v781_v52  ;;  %v806_v25 = vxor.u32 2147483648, %v789_v56 }
  0x8f   : > { %v6830_v52 = vshrl.u32 %v1132_v53, 5  ;;  %v6833_v1 = vmul.f32 %v6472_v11, %v283_v60  ;;  %v1139_v10 = vor.u32 %v1138_v19, %v1137_v54  ;;  %v1148_v32 = vor.u32 %v1147_v62, %v1146_v49 }
  0x90   : > { %v5438_v51 = vmul.f32 -0.5, %v5406_v2  ;;  %vm448_vm15 = vcmp.lt.s32.totalorder %v6814_v3, 0  ;;  %v449_v40 = vsub.s32 0, %v6814_v3  ;;  %v803_v27 = vxor.u32 2147483648, %v797_v23 }
  0x91   : > { %v807_v57 = vsel %vm805_vm13, %v806_v25, %v797_v23  ;;  %v1149_v18 = vshll.u32 %v6370_v50, %v1134_v20  ;;  %v1150_v21 = vshrl.u32 %v6371_v59, %v6801_v37  ;;  %vm6845_vm1 = vcmp.le.f32.partialorder %v345_v41, 0.7853982 }
  0x92   : > { %v5474_v8 = vmul.f32 1.442695, %v5438_v51  ;;  %v450_v4 = vsel %vm448_vm15, %v449_v40, %v6814_v3  ;;  %v804_v6 = vsel %vm802_vm12, %v789_v56, %v803_v27  ;;  %v1142_v24 = vor.u32 %v1141_v7, %v1140_v39 }
  0x93   : > { %v451_v13 = vclz %v450_v4  ;;  %v808_v47 = vsel %vm801_vm11, %v804_v6, %v807_v57  ;;  %v1145_v58 = vor.u32 %v1144_v33, %v1143_v12  ;;  %vm1152_vm2 = vcmp.lt.s32.totalorder %v6830_v52, 1 }
  0x94   : > { %6139 = vpow2.f32 %v5474_v8  ;;  %v809_v31 = vsel %vm798_vm14, nan, %v808_v47  ;;  %vm1155_vm3 = vcmp.lt.s32.totalorder %v6830_v52, 4  ;;  %v469_v9 = vsub.s32 4, %v6799_v30 }
  0x95   : > { %v5956_v53 = vadd.s32 4294967294, %v451_v13  ;;  %v5307_v28 = vmul.f32 -2.0, %v809_v31  ;;  %vm1154_vm4 = vcmp.lt.s32.totalorder %v6830_v52, 3  ;;  %v813_v41 = vand.u32 2139095040, %v6833_v1 }
  0x96   : > { %v1151_v20 = vor.u32 %v1150_v21, %v1149_v18  ;;  %v1161_v35 = vsel %vm1155_vm3, %v1148_v32, 920167782  ;;  %v1170_v15 = vshrl.u32 %v6791_v36, 16  ;;  %vm1153_vm6 = vcmp.lt.s32.totalorder %v6830_v52, 2 }
  0x97   : > { %vm5957_vm5 = vcmp.lt.s32.totalorder %v5956_v53, 0  ;;  %v5341_v5 = vmul.f32 1.442695, %v5307_v28  ;;  %v1160_v29 = vsel %vm1152_vm2, %v1139_v10, %v1142_v24  ;;  %v1162_v60 = vsel %vm1154_vm4, %v1145_v58, %v1161_v35 }
  0x98   : > { %v454_v22 = vsel %vm5957_vm5, 0, %v5956_v53  ;;  %v470_v56 = vsel %vm347_vm0, %v469_v9, %v6799_v30  ;;  %v1136_v63 = vshrl.u32 %v6366_v42, %v6801_v37  ;;  %v814_v39 = vshrl.u32 %v813_v41, 23 }
  0x99   : > { %v455_v43 = vsub.s32 32, %v454_v22  ;;  %v456_v45 = vshll.u32 %v6814_v3, %v454_v22  ;;  %v459_v54 = vsub.s32 4294967266, %v454_v22  ;;  %6141 = vpow2.f32 %v5341_v5 }
  0x9a   : > { %v6140_v61 = vpop.eup %6139  ;;  %v1163_v3 = vsel %vm1153_vm6, %v1160_v29, %v1162_v60  ;;  %v1164_v23 = vsel %vm1152_vm2, %v1142_v24, %v1145_v58  ;;  %v1165_v25 = vsel %vm1155_vm3, %v1151_v20, 1326507024  ;;  %v472_v37 = vsel %vm6845_vm1, 0, %v470_v56 }
  0x9b   : > { %v5534_v49 = vmul.f32 %v6140_v61, %v5406_v2  ;;  %v457_v19 = vshrl.u32 %v6804_v55, %v455_v43  ;;  %v460_v62 = vadd.s32 127, %v459_v54  ;;  %v1193_v7 = vand.u32 65535, %v1163_v3 }
  0x9c   : > { %v1194_v12 = vshrl.u32 %v1163_v3, 16  ;;  %v1166_v55 = vsel %vm1154_vm4, %v1148_v32, %v1165_v25  ;;  %v1157_v2 = vsel %vm1155_vm3, %v1145_v58, 2102212464  ;;  %v489_v18 = vadd.s32 3, %v472_v37 }
  0x9d   : > { %5584 = vperm.xlu2 %6136, %v5534_v49   ;;  %v458_v30 = vor.u32 %v457_v19, %v456_v45  ;;  %v461_v51 = vshll.u32 %v460_v62, 23  ;;  %v1167_v40 = vsel %vm1153_vm6, %v1164_v23, %v1166_v55  ;;  %v1195_v33 = vmul.u32 %v1193_v7, %v6809_v34 }
  0x9e   : > { %v1196_v27 = vmul.u32 %v1194_v12, %v6809_v34  ;;  %v1171_v4 = vand.u32 65535, %v1167_v40  ;;  %v1172_v6 = vshrl.u32 %v1167_v40, 16  ;;  %v1156_v21 = vsel %vm1152_vm2, %v1136_v63, %v1139_v10 }
  0x9f   : > { %v462_v57 = vor.u32 4788187, %v461_v51  ;;  %v465_v8 = vcvt.s32.f32 %v458_v30  ;;  %v6142_v13 = vpop.eup %6141  ;;  %v1197_v32 = vmul.u32 %v1193_v7, %v1170_v15  ;;  %v1158_v9 = vsel %vm1154_vm4, %v1142_v24, %v1157_v2 }
  0xa0   : > { %v1199_v47 = vshll.u32 %v1196_v27, 16  ;;  %v5404_v58 = vmul.f32 %v6142_v13, %v6794_v38  ;;  %v1173_v53 = vmul.u32 %v1171_v4, %v6809_v34  ;;  %v1174_v28 = vmul.u32 %v1172_v6, %v6809_v34 }
  0xa1   : > { %v463_v31 = vand.u32 2147483647, %v462_v57  ;;  %v1175_v41 = vmul.u32 %v1171_v4, %v1170_v15  ;;  %v1176_v20 = vmul.u32 %v1172_v6, %v1170_v15  ;;  %v1198_v35 = vmul.u32 %v1194_v12, %v1170_v15 }
  0xa2   : > { %v5436_v5 = vmul.f32 -0.5, %v5404_v58  ;;  %v1177_v29 = vshll.u32 %v1174_v28, 16  ;;  %vm1203_vm7 = vc.u32 %v1195_v33, %v1199_v47  ;;  %v1178_v10 = vshrl.u32 %v1174_v28, 16 }
  0xa3   : > { %v466_v22 = vmul.f32 %v465_v8, %v463_v31  ;;  %v1179_v43 = vshll.u32 %v1175_v41, 16  ;;  %v1200_v45 = vshrl.u32 %v1196_v27, 16  ;;  %v1201_v54 = vshll.u32 %v1197_v32, 16 }
  0xa4   : > { %v5470_v60 = vmul.f32 1.442695, %v5436_v5  ;;  %vm1181_vm8 = vc.u32 %v1173_v53, %v1177_v29  ;;  %v1183_v56 = vadd.s32 %v1177_v29, %v1173_v53  ;;  %v1204_v63 = vsel %vm1203_vm7, 1, %v6365_v0 }
  0xa5   : > { %v467_v61 = vxor.u32 2147483648, %v466_v22  ;;  %v1182_v34 = vsel %vm1181_vm8, 1, %v6365_v0  ;;  %v1205_v24 = vadd.s32 %v1199_v47, %v1195_v33  ;;  %v5964_v49 = vadd.s32 4294967169, %v814_v39 }
  0xa6   : > { %6143 = vpow2.f32 %v5470_v60  ;;  %v1184_v19 = vadd.s32 %v1182_v34, %v1176_v20  ;;  %vm1185_vm9 = vc.u32 %v1183_v56, %v1179_v43  ;;  %v1206_v23 = vadd.s32 %v1204_v63, %v1198_v35 }
  0xa7   : > { %v468_v15 = vsel %vm347_vm0, %v467_v61, %v466_v22  ;;  %v1186_v3 = vsel %vm1185_vm9, 1, %v6365_v0  ;;  %vm1207_vm10 = vc.u32 %v1205_v24, %v1201_v54  ;;  %v1180_v7 = vshrl.u32 %v1175_v41, 16 }
  0xa8   : > { %v471_v62 = vsel %vm6845_vm1, %v6481_v16, %v468_v15  ;;  %v1188_v12 = vadd.s32 %v1186_v3, %v1184_v19  ;;  %v1208_v30 = vsel %vm1207_vm10, 1, %v6365_v0  ;;  %v1202_v39 = vshrl.u32 %v1197_v32, 16 }
  0xa9   : > { %v473_v25 = vmul.f32 %v471_v62, %v471_v62  ;;  %v1210_v51 = vadd.s32 %v1208_v30, %v1206_v23  ;;  %v820_v37 = vadd.s32 1, %v5964_v49  ;;  %v6903_v33 = vadd.s32 %v1205_v24, %v1201_v54 }
  0xaa   : > { %v1189_v40 = vadd.s32 %v1188_v12, %v1178_v10  ;;  %v6905_v27 = vand.u32 3, %v489_v18  ;;  %v1159_v14 = vsel %vm1153_vm6, %v1156_v21, %v1158_v9  ;;  %v810_v18 = vand.u32 2147483647, %v6833_v1 }
  0xab   : > { %v474_v55 = vmul.f32 -0.001358992, %v473_v25  ;;  %v481_v2 = vmul.f32 -0.00019511016, %v473_v25  ;;  %v1211_v57 = vadd.s32 %v1210_v51, %v1200_v45  ;;  %vm821_vm11 = vcmp.gt.s32.totalorder %v820_v37, 0 }
  0xac   : > { %v6144_v8 = vpop.eup %6143  ;;  %v6909_v13 = vadd.s32 %v1189_v40, %v1180_v7  ;;  %v822_v32 = vsel %vm821_vm11, %v820_v37, 0  ;;  %v1213_v20 = vmul.u32 %v6791_v36, %v1159_v14  ;;  %vm491_vm13 = vcmp.lt.s32.totalorder %v6905_v27, 2  ;;  %v184_v14 = vld [vmem:[%s6458_s7 + $0x8] sm:$0xff] }
  0xad   : > { %v475_v4 = vadd.f32 0.041655596, %v474_v55  ;;  %v482_v6 = vadd.f32 0.008332121, %v481_v2  ;;  %v5532_v47 = vmul.f32 %v6144_v8, %v5404_v58  ;;  %v1212_v31 = vadd.s32 %v1211_v57, %v1202_v39 }
  0xae   : > { %v824_v53 = vand.u32 31, %v822_v32  ;;  %vm1215_vm12 = vc.u32 %v6909_v13, %v6903_v33  ;;  %vm495_vm14 = vcmp.eq.s32.totalorder %v6905_v27, 2  ;;  %v6920_v58 = vshrl.u32 %v822_v32, 5 }
  0xaf   : > { %v476_v28 = vmul.f32 %v475_v4, %v473_v25  ;;  %v483_v41 = vmul.f32 %v482_v6, %v473_v25  ;;  %5574 = vperm.xlu1 %6135, %v5532_v47   ;;  %v1216_v52 = vadd.s32 1, %v1212_v31  ;;  %vm488_vm15 = vweird.f32 %v6481_v16 }
  0xb0   : > { %v6915_v21 = vsub.s32 32, %v824_v53  ;;  %v827_v9 = vshll.u32 %v6366_v42, %v824_v53  ;;  %v830_v29 = vshll.u32 %v6367_v44, %v824_v53  ;;  %v836_v60 = vshll.u32 %v6369_v48, %v824_v53 }
  0xb1   : > { %v477_v35 = vadd.f32 -0.4999988, %v476_v28  ;;  %v484_v5 = vadd.f32 -0.16666654, %v483_v41  ;;  %v1217_v36 = vsel %vm1215_vm12, %v1216_v52, %v1212_v31  ;;  %v817_v61 = vand.u32 8388607, %v810_v18 }
  0xb2   : > { %v828_v22 = vshrl.u32 %v6367_v44, %v6915_v21  ;;  %v831_v10 = vshrl.u32 %v6368_v46, %v6915_v21  ;;  %v1218_v54 = vadd.s32 %v1217_v36, %v1213_v20  ;;  %v833_v34 = vshll.u32 %v6368_v46, %v824_v53 }
  0xb3   : > { %v478_v43 = vmul.f32 %v477_v35, %v473_v25  ;;  %v485_v45 = vmul.f32 %v484_v5, %v473_v25  ;;  %v834_v63 = vshrl.u32 %v6369_v48, %v6915_v21  ;;  %v837_v19 = vshrl.u32 %v6370_v50, %v6915_v21 }
  0xb4   : > { %v6931_v56 = vor.u32 %v828_v22, %v827_v9  ;;  %v1219_v15 = vadd.s32 536870912, %v1218_v54  ;;  %v6938_v3 = vor.u32 %v831_v10, %v830_v29  ;;  %v839_v23 = vshll.u32 %v6370_v50, %v824_v53 }
  0xb5   : > { %v479_v24 = vadd.f32 1.0, %v478_v43  ;;  %v486_v49 = vadd.f32 1.0, %v485_v45  ;;  %v840_v25 = vshrl.u32 %v6371_v59, %v6915_v21  ;;  %vm842_vm0 = vcmp.lt.s32.totalorder %v6920_v58, 1 }
  0xb6   : > { %v6944_v30 = vshrl.u32 %v1219_v15, 30  ;;  %v838_v39 = vor.u32 %v837_v19, %v836_v60  ;;  %vm492_vm1 = vcmp.eq.s32.totalorder %v6905_v27, 0  ;;  %v818_v51 = vor.u32 8388608, %v817_v61 }
  0xb7   : > { %v487_v7 = vmul.f32 %v486_v49, %v471_v62  ;;  %v496_v12 = vxor.u32 2147483648, %v479_v24  ;;  %v835_v37 = vor.u32 %v834_v63, %v833_v34  ;;  %vm845_vm2 = vcmp.lt.s32.totalorder %v6920_v58, 4  ;;  %v217_v62 = vld [vmem:[%s6465_s10 + $0x8] sm:$0xff] }
  0xb8   : > { %v1221_v40 = vshll.u32 %v6944_v30, 30  ;;  %vm844_vm3 = vcmp.lt.s32.totalorder %v6920_v58, 3  ;;  %v841_v57 = vor.u32 %v840_v25, %v839_v23  ;;  %vm843_vm4 = vcmp.lt.s32.totalorder %v6920_v58, 2 }
  0xb9   : > { %v493_v55 = vxor.u32 2147483648, %v487_v7  ;;  %v497_v2 = vsel %vm495_vm14, %v496_v12, %v487_v7  ;;  %v850_v8 = vsel %vm842_vm0, %v6931_v56, %v6938_v3  ;;  %v851_v4 = vsel %vm845_vm2, %v838_v39, 920167782 }
  0xba   : > { %v1222_v32 = vsub.s32 %v1218_v54, %v1221_v40  ;;  %v852_v31 = vsel %vm844_vm3, %v835_v37, %v851_v4  ;;  %v249_v53 = vsub.f32 %v184_v14, %v217_v62  ;;  %v854_v9 = vsel %vm842_vm0, %v6938_v3, %v835_v37 }
  0xbb   : > { %v494_v6 = vsel %vm492_vm1, %v479_v24, %v493_v55  ;;  %v853_v20 = vsel %vm843_vm4, %v850_v8, %v852_v31  ;;  %v855_v27 = vsel %vm845_vm2, %v841_v57, 1326507024  ;;  %v6974_v35 = vshll.u32 %v818_v51, 8 }
  0xbc   : > { %v498_v47 = vsel %vm491_vm13, %v494_v6, %v497_v2  ;;  %vm1223_vm5 = vcmp.lt.s32.totalorder %v1222_v32, 0  ;;  %v1224_v41 = vsub.s32 0, %v1222_v32  ;;  %v856_v16 = vsel %vm844_vm3, %v838_v39, %v855_v27 }
  0xbd   : > { %v499_v28 = vsel %vm488_vm15, nan, %v498_v47  ;;  %v857_v29 = vsel %vm843_vm4, %v854_v9, %v856_v16  ;;  %v859_v10 = vand.u32 65535, %v6974_v35  ;;  %v860_v43 = vshrl.u32 %v6974_v35, 16 }
  0xbe   : > { %v5305_v52 = vmul.f32 -2.0, %v499_v28  ;;  %v1225_v5 = vsel %vm1223_vm5, %v1224_v41, %v1222_v32  ;;  %v861_v45 = vand.u32 65535, %v857_v29  ;;  %v862_v54 = vshrl.u32 %v857_v29, 16 }
  0xbf   : > { %v1226_v22 = vclz %v1225_v5  ;;  %v884_v60 = vshrl.u32 %v853_v20, 16  ;;  %v281_v34 = vand.u32 2147483647, %v249_v53  ;;  %vm1122_vm6 = vcmp.lt.s32.totalorder %v6760_v26, 0 }
  0xc0   : > { %v5337_v36 = vmul.f32 1.442695, %v5305_v52  ;;  %v826_v63 = vshrl.u32 %v6366_v42, %v6915_v21  ;;  %v864_v24 = vmul.u32 %v862_v54, %v859_v10  ;;  %v6985_v49 = vmul.u32 %v861_v45, %v860_v43 }
  0xc1   : > { %v5971_v61 = vadd.s32 4294967294, %v1226_v22  ;;  %v883_v15 = vand.u32 65535, %v853_v20  ;;  %v1214_v19 = vadd.s32 %v6903_v33, %v6909_v13  ;;  %v1244_v23 = vsub.s32 4, %v6944_v30 }
  0xc2   : > { %6145 = vpow2.f32 %v5337_v36  ;;  %v863_v25 = vmul.u32 %v861_v45, %v859_v10  ;;  %v866_v12 = vmul.u32 %v862_v54, %v860_v43  ;;  %v867_v39 = vshll.u32 %v864_v24, 16 }
  0xc3   : > { %vm5972_vm7 = vcmp.lt.s32.totalorder %v5971_v61, 0  ;;  %v886_v51 = vmul.u32 %v884_v60, %v859_v10  ;;  %v869_v21 = vshll.u32 %v6985_v49, 16  ;;  %vm6993_vm8 = vcmp.le.f32.partialorder %v1120_v17, 0.7853982 }
  0xc4   : > { %v1229_v7 = vsel %vm5972_vm7, 0, %v5971_v61  ;;  %v846_v33 = vsel %vm842_vm0, %v826_v63, %v6931_v56  ;;  %v847_v13 = vsel %vm845_vm2, %v835_v37, 2102212464  ;;  %v885_v62 = vmul.u32 %v883_v15, %v859_v10 }
  0xc5   : > { %v1230_v55 = vsub.s32 32, %v1229_v7  ;;  %v1231_v2 = vshll.u32 %v1222_v32, %v1229_v7  ;;  %v1234_v40 = vsub.s32 4294967266, %v1229_v7  ;;  %v887_v57 = vmul.u32 %v883_v15, %v860_v43  ;;  %v191_v7 = vld [vmem:[%s6458_s7 + $0x40] sm:$0xff] }
  0xc6   : > { %vm871_vm9 = vc.u32 %v863_v25, %v867_v39  ;;  %v873_v32 = vadd.s32 %v867_v39, %v863_v25  ;;  %v868_v17 = vshrl.u32 %v864_v24, 16  ;;  %v889_v53 = vshll.u32 %v886_v51, 16 }
  0xc7   : > { %v1232_v4 = vshrl.u32 %v1214_v19, %v1230_v55  ;;  %v1235_v6 = vadd.s32 127, %v1234_v40  ;;  %v872_v31 = vsel %vm871_vm9, 1, %v6365_v0  ;;  %v888_v52 = vmul.u32 %v884_v60, %v860_v43 }
  0xc8   : > { %v6146_v8 = vpop.eup %6145  ;;  %v874_v20 = vadd.s32 %v872_v31, %v866_v12  ;;  %vm875_vm10 = vc.u32 %v873_v32, %v869_v21  ;;  %v891_v9 = vshll.u32 %v887_v57, 16  ;;  %v1245_v16 = vsel %vm1122_vm6, %v1244_v23, %v6944_v30  ;;  %v224_v12 = vld [vmem:[%s6465_s10 + $0x40] sm:$0xff] }
  0xc9   : > { %v5402_v47 = vmul.f32 %v6146_v8, %v6794_v38  ;;  %v1233_v28 = vor.u32 %v1232_v4, %v1231_v2  ;;  %v1236_v41 = vshll.u32 %v1235_v6, 23  ;;  %v876_v37 = vsel %vm875_vm10, 1, %v6365_v0 }
  0xca   : > { %v878_v36 = vadd.s32 %v876_v37, %v874_v20  ;;  %vm893_vm11 = vc.u32 %v885_v62, %v889_v53  ;;  %v895_v29 = vadd.s32 %v889_v53, %v885_v62  ;;  %v7009_v10 = vmul.f32 %v6472_v11, %v281_v34 }
  0xcb   : > { %v5434_v56 = vmul.f32 -0.5, %v5402_v47  ;;  %v1237_v27 = vor.u32 4788187, %v1236_v41  ;;  %v1240_v5 = vcvt.s32.f32 %v1233_v28  ;;  %v870_v54 = vshrl.u32 %v6985_v49, 16 }
  0xcc   : > { %v879_v43 = vadd.s32 %v878_v36, %v868_v17  ;;  %v894_v60 = vsel %vm893_vm11, 1, %v6365_v0  ;;  %v890_v61 = vshrl.u32 %v886_v51, 16  ;;  %vm897_vm12 = vc.u32 %v895_v29, %v891_v9 }
  0xcd   : > { %v5466_v22 = vmul.f32 1.442695, %v5434_v56  ;;  %v1238_v45 = vand.u32 2147483647, %v1237_v27  ;;  %v896_v63 = vadd.s32 %v894_v60, %v888_v52  ;;  %v1247_v24 = vsel %vm6993_vm8, 0, %v1245_v16 }
  0xce   : > { %v848_v34 = vsel %vm844_vm3, %v6938_v3, %v847_v13  ;;  %v898_v15 = vsel %vm897_vm12, 1, %v6365_v0  ;;  %v892_v19 = vshrl.u32 %v887_v57, 16  ;;  %v500_v23 = vand.u32 2147483647, %v7009_v10 }
  0xcf   : > { %6147 = vpow2.f32 %v5466_v22  ;;  %v1241_v30 = vmul.f32 %v1240_v5, %v1238_v45  ;;  %v900_v49 = vadd.s32 %v898_v15, %v896_v63  ;;  %v503_v25 = vand.u32 2139095040, %v7009_v10 }
  0xd0   : > { %v880_v51 = vadd.s32 %v879_v43, %v870_v54  ;;  %v899_v55 = vadd.s32 %v895_v29, %v891_v9  ;;  %v849_v2 = vsel %vm843_vm4, %v846_v33, %v848_v34  ;;  %v1264_v13 = vadd.s32 3, %v1247_v24 }
  0xd1   : > { %v1242_v39 = vxor.u32 2147483648, %v1241_v30  ;;  %v901_v40 = vadd.s32 %v900_v49, %v890_v61  ;;  %v504_v21 = vshrl.u32 %v503_v25, 23  ;;  %v256_v62 = vsub.f32 %v191_v7, %v224_v12 }
  0xd2   : > { %v507_v32 = vand.u32 8388607, %v500_v23  ;;  %v903_v33 = vmul.u32 %v6974_v35, %v849_v2  ;;  %vm905_vm13 = vc.u32 %v880_v51, %v899_v55  ;;  %v7033_v20 = vand.u32 3, %v1264_v13 }
  0xd3   : > { %v1243_v3 = vsel %vm1122_vm6, %v1242_v39, %v1241_v30  ;;  %v902_v4 = vadd.s32 %v901_v40, %v892_v19  ;;  %v5958_v6 = vadd.s32 4294967169, %v504_v21  ;;  %v288_v37 = vand.u32 2147483647, %v256_v62 }
  0xd4   : > { %v1246_v8 = vsel %vm6993_vm8, %v6760_v26, %v1243_v3  ;;  %v508_v14 = vor.u32 8388608, %v507_v32  ;;  %vm1270_vm15 = vcmp.eq.s32.totalorder %v7033_v20, 2  ;;  %vm1267_vm0 = vcmp.eq.s32.totalorder %v7033_v20, 0 }
  0xd5   : > { %v6148_v57 = vpop.eup %6147  ;;  %v1248_v58 = vmul.f32 %v1246_v8, %v1246_v8  ;;  %v906_v31 = vadd.s32 1, %v902_v4  ;;  %v510_v53 = vadd.s32 1, %v5958_v6  ;;  %v7037_v22 = vadd.s32 %v899_v55, %v880_v51 }
  0xd6   : > { %v5530_v17 = vmul.f32 %v6148_v57, %v5402_v47  ;;  %v7039_v45 = vshll.u32 %v508_v14, 8  ;;  %v7042_v54 = vmul.f32 %v6472_v11, %v288_v37  ;;  %vm1266_vm1 = vcmp.lt.s32.totalorder %v7033_v20, 2 }
  0xd7   : > { %v1249_v28 = vmul.f32 -0.001358992, %v1248_v58  ;;  %v1256_v41 = vmul.f32 -0.00019511016, %v1248_v58  ;;  %v907_v56 = vsel %vm905_vm13, %v906_v31, %v902_v4  ;;  %vm511_vm14 = vcmp.gt.s32.totalorder %v510_v53, 0 }
  0xd8   : > { %5564 = vperm.xlu0 %6134, %v5530_v17   ;;  %v908_v27 = vadd.s32 %v907_v56, %v903_v33  ;;  %v512_v5 = vsel %vm511_vm14, %v510_v53, 0  ;;  %vm1263_vm2 = vweird.f32 %v6760_v26  ;;  %v1588_v55 = vand.u32 2139095040, %v7042_v54 }
  0xd9   : > { %v1250_v52 = vadd.f32 0.041655596, %v1249_v28  ;;  %v1257_v9 = vadd.f32 0.008332121, %v1256_v41  ;;  %v514_v47 = vand.u32 31, %v512_v5  ;;  %v7055_v12 = vshrl.u32 %v512_v5, 5 }
  0xda   : > { %v909_v35 = vadd.s32 536870912, %v908_v27  ;;  %vm812_vm7 = vcmp.lt.s32.totalorder %v6833_v1, 0  ;;  %v550_v56 = vshrl.u32 %v7039_v45, 16  ;;  %v1585_v14 = vand.u32 2147483647, %v7042_v54 }
  0xdb   : > { %v1251_v16 = vmul.f32 %v1250_v52, %v1248_v58  ;;  %v1258_v36 = vmul.f32 %v1257_v9, %v1248_v58  ;;  %v515_v29 = vsub.s32 32, %v514_v47  ;;  %v517_v63 = vshll.u32 %v6366_v42, %v514_v47 }
  0xdc   : > { %v7045_v61 = vshrl.u32 %v909_v35, 30  ;;  %v520_v24 = vshll.u32 %v6367_v44, %v514_v47  ;;  %v526_v15 = vshll.u32 %v6369_v48, %v514_v47  ;;  %v523_v39 = vshll.u32 %v6368_v46, %v514_v47 }
  0xdd   : > { %v1252_v43 = vadd.f32 -0.4999988, %v1251_v16  ;;  %v1259_v60 = vadd.f32 -0.16666654, %v1258_v36  ;;  %v518_v30 = vshrl.u32 %v6367_v44, %v515_v29  ;;  %v521_v34 = vshrl.u32 %v6368_v46, %v515_v29 }
  0xde   : > { %v911_v25 = vshll.u32 %v7045_v61, 30  ;;  %v527_v7 = vshrl.u32 %v6370_v50, %v515_v29  ;;  %v524_v51 = vshrl.u32 %v6369_v48, %v515_v29  ;;  %v529_v3 = vshll.u32 %v6370_v50, %v514_v47 }
  0xdf   : > { %v1253_v19 = vmul.f32 %v1252_v43, %v1248_v58  ;;  %v1260_v49 = vmul.f32 %v1259_v60, %v1248_v58  ;;  %v519_v13 = vor.u32 %v518_v30, %v517_v63  ;;  %v522_v62 = vor.u32 %v521_v34, %v520_v24 }
  0xe0   : > { %v912_v21 = vsub.s32 %v908_v27, %v911_v25  ;;  %v528_v57 = vor.u32 %v527_v7, %v526_v15  ;;  %v530_v4 = vshrl.u32 %v6371_v59, %v515_v29  ;;  %v525_v58 = vor.u32 %v524_v51, %v523_v39 }
  0xe1   : > { %v1254_v2 = vadd.f32 1.0, %v1253_v19  ;;  %v1261_v40 = vadd.f32 1.0, %v1260_v49  ;;  %vm532_vm4 = vcmp.lt.s32.totalorder %v7055_v12, 1  ;;  %vm534_vm5 = vcmp.lt.s32.totalorder %v7055_v12, 3 }
  0xe2   : > { %vm913_vm3 = vcmp.lt.s32.totalorder %v912_v21, 0  ;;  %v914_v17 = vsub.s32 0, %v912_v21  ;;  %vm535_vm6 = vcmp.lt.s32.totalorder %v7055_v12, 4  ;;  %v531_v28 = vor.u32 %v530_v4, %v529_v3 }
  0xe3   : > { %v1262_v6 = vmul.f32 %v1261_v40, %v1246_v8  ;;  %v1271_v32 = vxor.u32 2147483648, %v1254_v2  ;;  %v549_v8 = vand.u32 65535, %v7039_v45  ;;  %vm533_vm8 = vcmp.lt.s32.totalorder %v7055_v12, 2 }
  0xe4   : > { %v915_v53 = vsel %vm913_vm3, %v914_v17, %v912_v21  ;;  %v540_v52 = vsel %vm532_vm4, %v519_v13, %v522_v62  ;;  %v541_v9 = vsel %vm535_vm6, %v528_v57, 920167782  ;;  %v544_v16 = vsel %vm532_vm4, %v522_v62, %v525_v58 }
  0xe5   : > { %v1268_v33 = vxor.u32 2147483648, %v1262_v6  ;;  %v1272_v31 = vsel %vm1270_vm15, %v1271_v32, %v1262_v6  ;;  %v916_v41 = vclz %v915_v53  ;;  %v542_v47 = vsel %vm534_vm5, %v525_v58, %v541_v9 }
  0xe6   : > { %v516_v35 = vshrl.u32 %v6366_v42, %v515_v29  ;;  %v545_v43 = vsel %vm535_vm6, %v531_v28, 1326507024  ;;  %v1589_v60 = vshrl.u32 %v1588_v55, 23  ;;  %vm7091_vm9 = vcmp.le.f32.partialorder %v810_v18, 0.7853982 }
  0xe7   : > { %v1269_v37 = vsel %vm1267_vm0, %v1254_v2, %v1268_v33  ;;  %v5965_v5 = vadd.s32 4294967294, %v916_v41  ;;  %v934_v30 = vsub.s32 4, %v7045_v61  ;;  %v546_v26 = vsel %vm534_vm5, %v528_v57, %v545_v43 }
  0xe8   : > { %v1273_v27 = vsel %vm1266_vm1, %v1269_v37, %v1272_v31  ;;  %v537_v29 = vsel %vm535_vm6, %v525_v58, 2102212464  ;;  %v543_v34 = vsel %vm533_vm8, %v540_v52, %v542_v47  ;;  %v547_v15 = vsel %vm533_vm8, %v544_v16, %v546_v26 }
  0xe9   : > { %v1274_v36 = vsel %vm1263_vm2, nan, %v1273_v27  ;;  %vm5966_vm10 = vcmp.lt.s32.totalorder %v5965_v5, 0  ;;  %v536_v7 = vsel %vm532_vm4, %v516_v35, %v519_v13  ;;  %v551_v39 = vand.u32 65535, %v547_v15 }
  0xea   : > { %v5310_v63 = vmul.f32 -2.0, %v1274_v36  ;;  %v919_v24 = vsel %vm5966_vm10, 0, %v5965_v5  ;;  %v573_v51 = vand.u32 65535, %v543_v34  ;;  %v5979_v55 = vadd.s32 4294967169, %v1589_v60 }
  0xeb   : > { %v920_v19 = vsub.s32 32, %v919_v24  ;;  %v921_v49 = vshll.u32 %v912_v21, %v919_v24  ;;  %v924_v25 = vsub.s32 4294967266, %v919_v24  ;;  %v552_v3 = vshrl.u32 %v547_v15, 16 }
  0xec   : > { %v5347_v18 = vmul.f32 1.442695, %v5310_v63  ;;  %v935_v57 = vsel %vm812_vm7, %v934_v30, %v7045_v61  ;;  %v538_v4 = vsel %vm534_vm5, %v522_v62, %v537_v29  ;;  %v555_v21 = vmul.u32 %v551_v39, %v550_v56 }
  0xed   : > { %v922_v2 = vshrl.u32 %v7037_v22, %v920_v19  ;;  %v925_v40 = vadd.s32 127, %v924_v25  ;;  %v574_v6 = vshrl.u32 %v543_v34, 16  ;;  %v553_v13 = vmul.u32 %v551_v39, %v549_v8 }
  0xee   : > { %6149 = vpow2.f32 %v5347_v18  ;;  %v554_v58 = vmul.u32 %v552_v3, %v549_v8  ;;  %v556_v33 = vmul.u32 %v552_v3, %v550_v56  ;;  %v575_v31 = vmul.u32 %v573_v51, %v549_v8 }
  0xef   : > { %v923_v32 = vor.u32 %v922_v2, %v921_v49  ;;  %v926_v17 = vshll.u32 %v925_v40, 23  ;;  %v576_v53 = vmul.u32 %v574_v6, %v549_v8  ;;  %v577_v28 = vmul.u32 %v573_v51, %v550_v56 }
  0xf0   : > { %v557_v37 = vshll.u32 %v554_v58, 16  ;;  %v559_v52 = vshll.u32 %v555_v21, 16  ;;  %v937_v61 = vsel %vm7091_vm9, 0, %v935_v57  ;;  %v560_v9 = vshrl.u32 %v555_v21, 16 }
  0xf1   : > { %v927_v22 = vor.u32 4788187, %v926_v17  ;;  %v930_v41 = vcvt.s32.f32 %v923_v32  ;;  %v578_v27 = vmul.u32 %v574_v6, %v550_v56  ;;  %v579_v62 = vshll.u32 %v576_v53, 16 }
  0xf2   : > { %vm561_vm11 = vc.u32 %v553_v13, %v557_v37  ;;  %v563_v16 = vadd.s32 %v557_v37, %v553_v13  ;;  %v581_v36 = vshll.u32 %v577_v28, 16  ;;  %v558_v63 = vshrl.u32 %v554_v58, 16 }
  0xf3   : > { %v928_v47 = vand.u32 2147483647, %v927_v22  ;;  %v562_v8 = vsel %vm561_vm11, 1, %v6365_v0  ;;  %vm583_vm12 = vc.u32 %v575_v31, %v579_v62  ;;  %v585_v43 = vadd.s32 %v579_v62, %v575_v31 }
  0xf4   : > { %v6150_v5 = vpop.eup %6149  ;;  %v564_v30 = vadd.s32 %v562_v8, %v556_v33  ;;  %vm565_vm13 = vc.u32 %v563_v16, %v559_v52  ;;  %v580_v56 = vshrl.u32 %v576_v53, 16  ;;  %v584_v29 = vsel %vm583_vm12, 1, %v6365_v0 }
  0xf5   : > { %v5407_v35 = vmul.f32 %v6150_v5, %v6794_v38  ;;  %v931_v60 = vmul.f32 %v930_v41, %v928_v47  ;;  %v566_v24 = vsel %vm565_vm13, 1, %v6365_v0  ;;  %v586_v18 = vadd.s32 %v584_v29, %v578_v27 }
  0xf6   : > { %v568_v15 = vadd.s32 %v566_v24, %v564_v30  ;;  %vm587_vm14 = vc.u32 %v585_v43, %v581_v36  ;;  %v539_v49 = vsel %vm533_vm8, %v536_v7, %v538_v4  ;;  %v582_v25 = vshrl.u32 %v577_v28, 16 }
  0xf7   : > { %v5439_v26 = vmul.f32 -0.5, %v5407_v35  ;;  %v932_v34 = vxor.u32 2147483648, %v931_v60  ;;  %v588_v39 = vsel %vm587_vm14, 1, %v6365_v0  ;;  %v1595_v3 = vadd.s32 1, %v5979_v55 }
  0xf8   : > { %v569_v2 = vadd.s32 %v568_v15, %v558_v63  ;;  %v590_v40 = vadd.s32 %v588_v39, %v586_v18  ;;  %v954_v21 = vadd.s32 3, %v937_v61  ;;  %v7126_v6 = vadd.s32 %v585_v43, %v581_v36  ;;  %v223_v15 = vld [vmem:[%s6465_s10 + $0x38] sm:$0xff] }
  0xf9   : > { %v5476_v19 = vmul.f32 1.442695, %v5439_v26  ;;  %v933_v51 = vsel %vm812_vm7, %v932_v34, %v931_v60  ;;  %vm1596_vm15 = vcmp.gt.s32.totalorder %v1595_v3, 0  ;;  %v1592_v4 = vand.u32 8388607, %v1585_v14  ;;  %v190_v34 = vld [vmem:[%s6458_s7 + $0x38] sm:$0xff] }
  0xfa   : > { %v936_v57 = vsel %vm7091_vm9, %v6833_v1, %v933_v51  ;;  %v7128_v12 = vadd.s32 %v569_v2, %v560_v9  ;;  %v591_v7 = vadd.s32 %v590_v40, %v580_v56  ;;  %v1597_v17 = vsel %vm1596_vm15, %v1595_v3, 0 }
  0xfb   : > { %6151 = vpow2.f32 %v5476_v19  ;;  %v938_v32 = vmul.f32 %v936_v57, %v936_v57  ;;  %v7132_v33 = vand.u32 3, %v954_v21  ;;  %v593_v20 = vmul.u32 %v7039_v45, %v539_v49 }
  0xfc   : > { %v592_v55 = vadd.s32 %v591_v7, %v582_v25  ;;  %vm595_vm0 = vc.u32 %v7128_v12, %v7126_v6  ;;  %v1599_v31 = vand.u32 31, %v1597_v17  ;;  %v1593_v37 = vor.u32 8388608, %v1592_v4 }
  0xfd   : > { %v939_v13 = vmul.f32 -0.001358992, %v938_v32  ;;  %v946_v58 = vmul.f32 -0.00019511016, %v938_v32  ;;  %vm960_vm1 = vcmp.eq.s32.totalorder %v7132_v33, 2  ;;  %vm956_vm2 = vcmp.lt.s32.totalorder %v7132_v33, 2 }
  0xfe   : > { %v596_v22 = vadd.s32 1, %v592_v55  ;;  %v7137_v52 = vsub.s32 32, %v1599_v31  ;;  %v1602_v45 = vshll.u32 %v6366_v42, %v1599_v31  ;;  %v1605_v47 = vshll.u32 %v6367_v44, %v1599_v31 }
  0xff   : > { %v940_v53 = vadd.f32 0.041655596, %v939_v13  ;;  %v947_v28 = vadd.f32 0.008332121, %v946_v58  ;;  %vm953_vm3 = vweird.f32 %v6833_v1  ;;  %v7148_v60 = vshrl.u32 %v1597_v17, 5 }
 0x100   : > { %v597_v62 = vsel %vm595_vm0, %v596_v22, %v592_v55  ;;  %v1606_v8 = vshrl.u32 %v6368_v46, %v7137_v52  ;;  %v1611_v63 = vshll.u32 %v6369_v48, %v1599_v31  ;;  %v1612_v30 = vshrl.u32 %v6370_v50, %v7137_v52 }
 0x101   : > { %v6152_v41 = vpop.eup %6151  ;;  %v941_v9 = vmul.f32 %v940_v53, %v938_v32  ;;  %v948_v27 = vmul.f32 %v947_v28, %v938_v32  ;;  %v598_v5 = vadd.s32 %v597_v62, %v593_v20  ;;  %v1608_v56 = vshll.u32 %v6368_v46, %v1599_v31 }
 0x102   : > { %v5535_v61 = vmul.f32 %v6152_v41, %v5407_v35  ;;  %v1603_v35 = vshrl.u32 %v6367_v44, %v7137_v52  ;;  %v1609_v29 = vshrl.u32 %v6369_v48, %v7137_v52  ;;  %v1614_v19 = vshll.u32 %v6370_v50, %v1599_v31 }
 0x103   : > { %v942_v16 = vadd.f32 -0.4999988, %v941_v9  ;;  %v949_v36 = vadd.f32 -0.16666654, %v948_v27  ;;  %v599_v43 = vadd.s32 536870912, %v598_v5  ;;  %v1615_v49 = vshrl.u32 %v6371_v59, %v7137_v52 }
 0x104   : > { %5589 = vperm.xlu2 %6136, %v5535_v61   ;;  %v7163_v25 = vshll.u32 %v1593_v37, 8  ;;  %v1604_v2 = vor.u32 %v1603_v35, %v1602_v45  ;;  %v7165_v40 = vor.u32 %v1606_v8, %v1605_v47  ;;  %v1613_v21 = vor.u32 %v1612_v30, %v1611_v63 }
 0x105   : > { %v943_v26 = vmul.f32 %v942_v16, %v938_v32  ;;  %v950_v24 = vmul.f32 %v949_v36, %v938_v32  ;;  %v7158_v18 = vshrl.u32 %v599_v43, 30  ;;  %vm1617_vm4 = vcmp.lt.s32.totalorder %v7148_v60, 1 }
 0x106   : > { %v255_v32 = vsub.f32 %v190_v34, %v223_v15  ;;  %v1610_v17 = vor.u32 %v1609_v29, %v1608_v56  ;;  %vm1620_vm5 = vcmp.lt.s32.totalorder %v7148_v60, 4  ;;  %vm957_vm6 = vcmp.eq.s32.totalorder %v7132_v33, 0 }
 0x107   : > { %v944_v39 = vadd.f32 1.0, %v943_v26  ;;  %v951_v51 = vadd.f32 1.0, %v950_v24  ;;  %v601_v3 = vshll.u32 %v7158_v18, 30  ;;  %v1616_v58 = vor.u32 %v1615_v49, %v1614_v19 }
 0x108   : > { %vm1619_vm7 = vcmp.lt.s32.totalorder %v7148_v60, 3  ;;  %vm1618_vm8 = vcmp.lt.s32.totalorder %v7148_v60, 2  ;;  %v1626_v53 = vsel %vm1620_vm5, %v1613_v21, 920167782  ;;  %v1634_v28 = vand.u32 65535, %v7163_v25 }
 0x109   : > { %v952_v7 = vmul.f32 %v951_v51, %v936_v57  ;;  %v961_v4 = vxor.u32 2147483648, %v944_v39  ;;  %v602_v13 = vsub.s32 %v598_v5, %v601_v3  ;;  %v1625_v57 = vsel %vm1617_vm4, %v1604_v2, %v7165_v40 }
 0x10a   : > { %v1627_v41 = vsel %vm1619_vm7, %v1610_v17, %v1626_v53  ;;  %v1629_v37 = vsel %vm1617_vm4, %v7165_v40, %v1610_v17  ;;  %v287_v61 = vand.u32 2147483647, %v255_v32  ;;  %v1630_v5 = vsel %vm1620_vm5, %v1616_v58, 1326507024 }
 0x10b   : > { %v958_v55 = vxor.u32 2147483648, %v952_v7  ;;  %v962_v20 = vsel %vm960_vm1, %v961_v4, %v952_v7  ;;  %vm603_vm9 = vcmp.lt.s32.totalorder %v602_v13, 0  ;;  %v604_v31 = vsub.s32 0, %v602_v13 }
 0x10c   : > { %v1628_v62 = vsel %vm1618_vm8, %v1625_v57, %v1627_v41  ;;  %v1601_v16 = vshrl.u32 %v6366_v42, %v7137_v52  ;;  %v1631_v36 = vsel %vm1619_vm7, %v1613_v21, %v1630_v5  ;;  %v1635_v8 = vshrl.u32 %v7163_v25, 16 }
 0x10d   : > { %v959_v22 = vsel %vm957_vm6, %v944_v39, %v958_v55  ;;  %v605_v27 = vsel %vm603_vm9, %v604_v31, %v602_v13  ;;  %v1632_v33 = vsel %vm1618_vm8, %v1629_v37, %v1631_v36  ;;  %v1659_v26 = vshrl.u32 %v1628_v62, 16 }
 0x10e   : > { %v963_v9 = vsel %vm956_vm2, %v959_v22, %v962_v20  ;;  %v606_v47 = vclz %v605_v27  ;;  %v1636_v63 = vand.u32 65535, %v1632_v33  ;;  %v1637_v30 = vshrl.u32 %v1632_v33, 16 }
 0x10f   : > { %v964_v45 = vsel %vm953_vm3, nan, %v963_v9  ;;  %v594_v1 = vadd.s32 %v7126_v6, %v7128_v12  ;;  %v1658_v56 = vand.u32 65535, %v1628_v62  ;;  %v7204_v52 = vmul.f32 %v6472_v11, %v287_v61 }
 0x110   : > { %v5308_v35 = vmul.f32 -2.0, %v964_v45  ;;  %v5959_v43 = vadd.s32 4294967294, %v606_v47  ;;  %vm502_vm10 = vcmp.lt.s32.totalorder %v7009_v10, 0  ;;  %v1621_v29 = vsel %vm1617_vm4, %v1601_v16, %v1604_v2 }
 0x111   : > { %v1622_v34 = vsel %vm1620_vm5, %v1610_v17, 2102212464  ;;  %v1639_v15 = vmul.u32 %v1637_v30, %v1634_v28  ;;  %v1638_v49 = vmul.u32 %v1636_v63, %v1634_v28  ;;  %v1640_v39 = vmul.u32 %v1636_v63, %v1635_v8 }
 0x112   : > { %v5343_v24 = vmul.f32 1.442695, %v5308_v35  ;;  %vm5960_vm11 = vcmp.lt.s32.totalorder %v5959_v43, 0  ;;  %v1661_v3 = vmul.u32 %v1659_v26, %v1634_v28  ;;  %v624_v21 = vsub.s32 4, %v7158_v18 }
 0x113   : > { %v609_v19 = vsel %vm5960_vm11, 0, %v5959_v43  ;;  %v1641_v32 = vmul.u32 %v1637_v30, %v1635_v8  ;;  %v1642_v7 = vshll.u32 %v1639_v15, 16  ;;  %v1662_v4 = vmul.u32 %v1658_v56, %v1635_v8 }
 0x114   : > { %6153 = vpow2.f32 %v5343_v24  ;;  %v610_v51 = vsub.s32 32, %v609_v19  ;;  %v611_v6 = vshll.u32 %v602_v13, %v609_v19  ;;  %v614_v12 = vsub.s32 4294967266, %v609_v19 }
 0x115   : > { %vm7214_vm12 = vcmp.le.f32.partialorder %v500_v23, 0.7853982  ;;  %v1623_v55 = vsel %vm1619_vm7, %v7165_v40, %v1622_v34  ;;  %v1644_v13 = vshll.u32 %v1640_v39, 16  ;;  %v1643_v20 = vshrl.u32 %v1639_v15, 16 }
 0x116   : > { %v612_v17 = vshrl.u32 %v594_v1, %v610_v51  ;;  %v615_v58 = vadd.s32 127, %v614_v12  ;;  %vm1646_vm13 = vc.u32 %v1638_v49, %v1642_v7  ;;  %v1648_v57 = vadd.s32 %v1642_v7, %v1638_v49 }
 0x117   : > { %v1660_v31 = vmul.u32 %v1658_v56, %v1634_v28  ;;  %v1647_v41 = vsel %vm1646_vm13, 1, %v6365_v0  ;;  %v1664_v37 = vshll.u32 %v1661_v3, 16  ;;  %v1663_v9 = vmul.u32 %v1659_v26, %v1635_v8 }
 0x118   : > { %v613_v53 = vor.u32 %v612_v17, %v611_v6  ;;  %v616_v22 = vshll.u32 %v615_v58, 23  ;;  %v1649_v61 = vadd.s32 %v1647_v41, %v1641_v32  ;;  %vm1650_vm14 = vc.u32 %v1648_v57, %v1644_v13 }
 0x119   : > { %v1666_v27 = vshll.u32 %v1662_v4, 16  ;;  %v1651_v40 = vsel %vm1650_vm14, 1, %v6365_v0  ;;  %v625_v28 = vsel %vm502_vm10, %v624_v21, %v7158_v18  ;;  %vm1668_vm15 = vc.u32 %v1660_v31, %v1664_v37 }
 0x11a   : > { %v6154_v23 = vpop.eup %6153  ;;  %v617_v5 = vor.u32 4788187, %v616_v22  ;;  %v620_v45 = vcvt.s32.f32 %v613_v53  ;;  %v1653_v47 = vadd.s32 %v1651_v40, %v1649_v61  ;;  %v1670_v16 = vadd.s32 %v1664_v37, %v1660_v31 }
 0x11b   : > { %v5405_v62 = vmul.f32 %v6154_v23, %v6794_v38  ;;  %v1645_v33 = vshrl.u32 %v1640_v39, 16  ;;  %v1669_v43 = vsel %vm1668_vm15, 1, %v6365_v0  ;;  %v1665_v63 = vshrl.u32 %v1661_v3, 16 }
 0x11c   : > { %v618_v35 = vand.u32 2147483647, %v617_v5  ;;  %v1654_v8 = vadd.s32 %v1653_v47, %v1643_v20  ;;  %v1671_v30 = vadd.s32 %v1669_v43, %v1663_v9  ;;  %vm1672_vm0 = vc.u32 %v1670_v16, %v1666_v27 }
 0x11d   : > { %v5437_v36 = vmul.f32 -0.5, %v5405_v62  ;;  %v1673_v1 = vsel %vm1672_vm0, 1, %v6365_v0  ;;  %v1433_v56 = vand.u32 2139095040, %v7204_v52  ;;  %v627_v18 = vsel %vm7214_vm12, 0, %v625_v28 }
 0x11e   : > { %v621_v24 = vmul.f32 %v620_v45, %v618_v35  ;;  %v1667_v34 = vshrl.u32 %v1662_v4, 16  ;;  %v7232_v15 = vadd.s32 %v1670_v16, %v1666_v27  ;;  %v1675_v19 = vadd.s32 %v1673_v1, %v1671_v30 }
 0x11f   : > { %v5472_v26 = vmul.f32 1.442695, %v5437_v36  ;;  %v7234_v39 = vadd.s32 %v1654_v8, %v1645_v33  ;;  %v1434_v51 = vshrl.u32 %v1433_v56, 23  ;;  %v1624_v6 = vsel %vm1618_vm8, %v1621_v29, %v1623_v55  ;;  %v189_v29 = vld [vmem:[%s6458_s7 + $0x30] sm:$0xff] }
 0x120   : > { %v622_v49 = vxor.u32 2147483648, %v621_v24  ;;  %v1676_v12 = vadd.s32 %v1675_v19, %v1665_v63  ;;  %v1430_v3 = vand.u32 2147483647, %v7204_v52  ;;  %v644_v32 = vadd.s32 3, %v627_v18  ;;  %v222_v55 = vld [vmem:[%s6465_s10 + $0x30] sm:$0xff] }
 0x121   : > { %6155 = vpow2.f32 %v5472_v26  ;;  %v5976_v7 = vadd.s32 4294967169, %v1434_v51  ;;  %v1678_v13 = vmul.u32 %v7163_v25, %v1624_v6  ;;  %vm1680_vm1 = vc.u32 %v7234_v39, %v7232_v15 }
 0x122   : > { %v623_v21 = vsel %vm502_vm10, %v622_v49, %v621_v24  ;;  %v1677_v17 = vadd.s32 %v1676_v12, %v1667_v34  ;;  %v1437_v57 = vand.u32 8388607, %v1430_v3  ;;  %v7251_v41 = vand.u32 3, %v644_v32 }
 0x123   : > { %v626_v4 = vsel %vm7214_vm12, %v7009_v10, %v623_v21  ;;  %v1440_v60 = vadd.s32 1, %v5976_v7  ;;  %v254_v25 = vsub.f32 %v189_v29, %v222_v55  ;;  %vm643_vm6 = vweird.f32 %v7009_v10 }
 0x124   : > { %v628_v58 = vmul.f32 %v626_v4, %v626_v4  ;;  %v1681_v20 = vadd.s32 1, %v1677_v17  ;;  %vm647_vm3 = vcmp.eq.s32.totalorder %v7251_v41, 0  ;;  %vm650_vm4 = vcmp.eq.s32.totalorder %v7251_v41, 2 }
 0x125   : > { %vm1441_vm2 = vcmp.gt.s32.totalorder %v1440_v60, 0  ;;  %v1438_v47 = vor.u32 8388608, %v1437_v57  ;;  %v286_v36 = vand.u32 2147483647, %v254_v25  ;;  %vm646_vm5 = vcmp.lt.s32.totalorder %v7251_v41, 2 }
 0x126   : > { %v629_v53 = vmul.f32 -0.001358992, %v628_v58  ;;  %v636_v22 = vmul.f32 -0.00019511016, %v628_v58  ;;  %v1682_v37 = vsel %vm1680_vm1, %v1681_v20, %v1677_v17  ;;  %v1442_v23 = vsel %vm1441_vm2, %v1440_v60, 0 }
 0x127   : > { %v6156_v31 = vpop.eup %6155  ;;  %v1683_v27 = vadd.s32 %v1682_v37, %v1678_v13  ;;  %v1444_v5 = vand.u32 31, %v1442_v23  ;;  %v7266_v34 = vshrl.u32 %v1442_v23, 5  ;;  %v7270_v51 = vshll.u32 %v1438_v47, 8 }
 0x128   : > { %v5533_v2 = vmul.f32 %v6156_v31, %v5405_v62  ;;  %v630_v61 = vadd.f32 0.041655596, %v629_v53  ;;  %v637_v9 = vadd.f32 0.008332121, %v636_v22  ;;  %v7277_v57 = vmul.f32 %v6472_v11, %v286_v36 }
 0x129   : > { %v1684_v28 = vadd.s32 536870912, %v1683_v27  ;;  %v1445_v16 = vsub.s32 32, %v1444_v5  ;;  %v1447_v43 = vshll.u32 %v6366_v42, %v1444_v5  ;;  %v1450_v63 = vshll.u32 %v6367_v44, %v1444_v5 }
 0x12a   : > { %5579 = vperm.xlu1 %6135, %v5533_v2   ;;  %v631_v45 = vmul.f32 %v630_v61, %v628_v58  ;;  %v638_v40 = vmul.f32 %v637_v9, %v628_v58  ;;  %v1456_v26 = vshll.u32 %v6369_v48, %v1444_v5  ;;  %v1453_v19 = vshll.u32 %v6368_v46, %v1444_v5 }
 0x12b   : > { %v7256_v33 = vshrl.u32 %v1684_v28, 30  ;;  %v1448_v8 = vshrl.u32 %v6367_v44, %v1445_v16  ;;  %v1451_v30 = vshrl.u32 %v6368_v46, %v1445_v16  ;;  %v1457_v18 = vshrl.u32 %v6370_v50, %v1445_v16 }
 0x12c   : > { %v632_v35 = vadd.f32 -0.4999988, %v631_v45  ;;  %v639_v62 = vadd.f32 -0.16666654, %v638_v40  ;;  %v1454_v49 = vshrl.u32 %v6369_v48, %v1445_v16  ;;  %v1460_v13 = vshrl.u32 %v6371_v59, %v1445_v16 }
 0x12d   : > { %v1686_v56 = vshll.u32 %v7256_v33, 30  ;;  %v1449_v32 = vor.u32 %v1448_v8, %v1447_v43  ;;  %v1452_v7 = vor.u32 %v1451_v30, %v1450_v63  ;;  %v1458_v17 = vor.u32 %v1457_v18, %v1456_v26 }
 0x12e   : > { %v633_v24 = vmul.f32 %v632_v35, %v628_v58  ;;  %v640_v1 = vmul.f32 %v639_v62, %v628_v58  ;;  %v1459_v58 = vshll.u32 %v6370_v50, %v1444_v5  ;;  %v1455_v20 = vor.u32 %v1454_v49, %v1453_v19 }
 0x12f   : > { %v1687_v21 = vsub.s32 %v1683_v27, %v1686_v56  ;;  %vm1462_vm8 = vcmp.lt.s32.totalorder %v7266_v34, 1  ;;  %vm1465_vm9 = vcmp.lt.s32.totalorder %v7266_v34, 4  ;;  %vm1464_vm10 = vcmp.lt.s32.totalorder %v7266_v34, 3 }
 0x130   : > { %v634_v6 = vadd.f32 1.0, %v633_v24  ;;  %v641_v12 = vadd.f32 1.0, %v640_v1  ;;  %vm1587_vm11 = vcmp.lt.s32.totalorder %v7042_v54, 0  ;;  %v1461_v37 = vor.u32 %v1460_v13, %v1459_v58 }
 0x131   : > { %vm1688_vm7 = vcmp.lt.s32.totalorder %v1687_v21, 0  ;;  %v1689_v55 = vsub.s32 0, %v1687_v21  ;;  %v1480_v23 = vshrl.u32 %v7270_v51, 16  ;;  %vm1463_vm12 = vcmp.lt.s32.totalorder %v7266_v34, 2 }
 0x132   : > { %v642_v60 = vmul.f32 %v641_v12, %v626_v4  ;;  %v651_v29 = vxor.u32 2147483648, %v634_v6  ;;  %v1679_v4 = vadd.s32 %v7232_v15, %v7234_v39  ;;  %v1470_v61 = vsel %vm1462_vm8, %v1449_v32, %v1452_v7 }
 0x133   : > { %v1690_v22 = vsel %vm1688_vm7, %v1689_v55, %v1687_v21  ;;  %v1471_v9 = vsel %vm1465_vm9, %v1458_v17, 920167782  ;;  %v1278_v39 = vand.u32 2139095040, %v7277_v57  ;;  %vm7302_vm13 = vcmp.le.f32.partialorder %v1585_v14, 0.7853982 }
 0x134   : > { %v648_v31 = vxor.u32 2147483648, %v642_v60  ;;  %v652_v53 = vsel %vm650_vm4, %v651_v29, %v642_v60  ;;  %v1691_v2 = vclz %v1690_v22  ;;  %v1472_v15 = vsel %vm1464_vm10, %v1455_v20, %v1471_v9 }
 0x135   : > { %v1709_v28 = vsub.s32 4, %v7256_v33  ;;  %v1446_v41 = vshrl.u32 %v6366_v42, %v1445_v16  ;;  %v1474_v47 = vsel %vm1462_vm8, %v1452_v7, %v1455_v20  ;;  %v1473_v35 = vsel %vm1463_vm12, %v1470_v61, %v1472_v15 }
 0x136   : > { %v649_v25 = vsel %vm647_vm3, %v634_v6, %v648_v31  ;;  %v5980_v5 = vadd.s32 4294967294, %v1691_v2  ;;  %v1475_v10 = vsel %vm1465_vm9, %v1461_v37, 1326507024  ;;  %v1467_v14 = vsel %vm1465_vm9, %v1455_v20, 2102212464 }
 0x137   : > { %v653_v27 = vsel %vm646_vm5, %v649_v25, %v652_v53  ;;  %v1476_v43 = vsel %vm1464_vm10, %v1458_v17, %v1475_v10  ;;  %v1503_v8 = vand.u32 65535, %v1473_v35  ;;  %v7320_v24 = vsel %vm1462_vm8, %v1446_v41, %v1449_v32 }
 0x138   : > { %v654_v45 = vsel %vm643_vm6, nan, %v653_v27  ;;  %vm5981_vm14 = vcmp.lt.s32.totalorder %v5980_v5, 0  ;;  %v1477_v1 = vsel %vm1463_vm12, %v1474_v47, %v1476_v43  ;;  %v1479_v56 = vand.u32 65535, %v7270_v51 }
 0x139   : > { %v5306_v36 = vmul.f32 -2.0, %v654_v45  ;;  %v1694_v62 = vsel %vm5981_vm14, 0, %v5980_v5  ;;  %v1279_v18 = vshrl.u32 %v1278_v39, 23  ;;  %v1481_v6 = vand.u32 65535, %v1477_v1 }
 0x13a   : > { %v1695_v63 = vsub.s32 32, %v1694_v62  ;;  %v1696_v30 = vshll.u32 %v1687_v21, %v1694_v62  ;;  %v1699_v26 = vsub.s32 4294967266, %v1694_v62  ;;  %v1710_v12 = vsel %vm1587_vm11, %v1709_v28, %v7256_v33 }
 0x13b   : > { %v5339_v16 = vmul.f32 1.442695, %v5306_v36  ;;  %v1468_v21 = vsel %vm1464_vm10, %v1452_v7, %v1467_v14  ;;  %v1482_v17 = vshrl.u32 %v1477_v1, 16  ;;  %v1504_v32 = vshrl.u32 %v1473_v35, 16 }
 0x13c   : > { %v1697_v19 = vshrl.u32 %v1679_v4, %v1695_v63  ;;  %v1700_v49 = vadd.s32 127, %v1699_v26  ;;  %v1485_v60 = vmul.u32 %v1481_v6, %v1480_v23  ;;  %v1507_v29 = vmul.u32 %v1503_v8, %v1480_v23 }
 0x13d   : > { %6157 = vpow2.f32 %v5339_v16  ;;  %v1483_v55 = vmul.u32 %v1481_v6, %v1479_v56  ;;  %v1484_v20 = vmul.u32 %v1482_v17, %v1479_v56  ;;  %v1505_v31 = vmul.u32 %v1503_v8, %v1479_v56 }
 0x13e   : > { %v1698_v58 = vor.u32 %v1697_v19, %v1696_v30  ;;  %v1701_v13 = vshll.u32 %v1700_v49, 23  ;;  %v1506_v53 = vmul.u32 %v1504_v32, %v1479_v56  ;;  %v1712_v2 = vsel %vm7302_vm13, 0, %v1710_v12 }
 0x13f   : > { %v1486_v37 = vmul.u32 %v1482_v17, %v1480_v23  ;;  %v1487_v33 = vshll.u32 %v1484_v20, 16  ;;  %v1489_v25 = vshll.u32 %v1485_v60, 16  ;;  %v1508_v61 = vmul.u32 %v1504_v32, %v1480_v23 }
 0x140   : > { %v1702_v22 = vor.u32 4788187, %v1701_v13  ;;  %v1705_v4 = vcvt.s32.f32 %v1698_v58  ;;  %v1509_v7 = vshll.u32 %v1506_v53, 16  ;;  %v1488_v5 = vshrl.u32 %v1484_v20, 16 }
 0x141   : > { %v1490_v15 = vshrl.u32 %v1485_v60, 16  ;;  %v1511_v39 = vshll.u32 %v1507_v29, 16  ;;  %vm1491_vm15 = vc.u32 %v1483_v55, %v1487_v33  ;;  %v1493_v28 = vadd.s32 %v1487_v33, %v1483_v55 }
 0x142   : > { %v1703_v27 = vand.u32 2147483647, %v1702_v22  ;;  %vm1513_vm0 = vc.u32 %v1505_v31, %v1509_v7  ;;  %v1492_v47 = vsel %vm1491_vm15, 1, %v6365_v0  ;;  %v1515_v35 = vadd.s32 %v1509_v7, %v1505_v31 }
 0x143   : > { %v6158_v9 = vpop.eup %6157  ;;  %v1514_v36 = vsel %vm1513_vm0, 1, %v6365_v0  ;;  %v1494_v62 = vadd.s32 %v1492_v47, %v1486_v37  ;;  %vm1495_vm1 = vc.u32 %v1493_v28, %v1489_v25  ;;  %v1510_v8 = vshrl.u32 %v1506_v53, 16 }
 0x144   : > { %v5403_v45 = vmul.f32 %v6158_v9, %v6794_v38  ;;  %v1706_v41 = vmul.f32 %v1705_v4, %v1703_v27  ;;  %v1516_v23 = vadd.s32 %v1514_v36, %v1508_v61  ;;  %v1496_v43 = vsel %vm1495_vm1, 1, %v6365_v0 }
 0x145   : > { %vm1517_vm2 = vc.u32 %v1515_v35, %v1511_v39  ;;  %v1498_v63 = vadd.s32 %v1496_v43, %v1494_v62  ;;  %v5973_v26 = vadd.s32 4294967169, %v1279_v18  ;;  %v1512_v56 = vshrl.u32 %v1507_v29, 16 }
 0x146   : > { %v5435_v10 = vmul.f32 -0.5, %v5403_v45  ;;  %v1707_v14 = vxor.u32 2147483648, %v1706_v41  ;;  %v1518_v30 = vsel %vm1517_vm2, 1, %v6365_v0  ;;  %v7339_v19 = vadd.s32 %v1515_v35, %v1511_v39 }
 0x147   : > { %v1520_v49 = vadd.s32 %v1518_v30, %v1516_v23  ;;  %v1499_v12 = vadd.s32 %v1498_v63, %v1488_v5  ;;  %v1285_v17 = vadd.s32 1, %v5973_v26  ;;  %v1729_v58 = vadd.s32 3, %v1712_v2 }
 0x148   : > { %v5468_v16 = vmul.f32 1.442695, %v5435_v10  ;;  %v1708_v1 = vsel %vm1587_vm11, %v1707_v14, %v1706_v41  ;;  %v1469_v18 = vsel %vm1463_vm12, %v7320_v24, %v1468_v21  ;;  %v1275_v40 = vand.u32 2147483647, %v7277_v57 }
 0x149   : > { %v1711_v6 = vsel %vm7302_vm13, %v7042_v54, %v1708_v1  ;;  %v1521_v13 = vadd.s32 %v1520_v49, %v1510_v8  ;;  %v7347_v60 = vadd.s32 %v1499_v12, %v1490_v15  ;;  %vm1286_vm3 = vcmp.gt.s32.totalorder %v1285_v17, 0 }
 0x14a   : > { %6159 = vpow2.f32 %v5468_v16  ;;  %v1713_v32 = vmul.f32 %v1711_v6, %v1711_v6  ;;  %v1287_v31 = vsel %vm1286_vm3, %v1285_v17, 0  ;;  %v1523_v53 = vmul.u32 %v7270_v51, %v1469_v18 }
 0x14b   : > { %v1522_v20 = vadd.s32 %v1521_v13, %v1512_v56  ;;  %vm1525_vm4 = vc.u32 %v7347_v60, %v7339_v19  ;;  %v1289_v22 = vand.u32 31, %v1287_v31  ;;  %v1730_v34 = vand.u32 3, %v1729_v58 }
 0x14c   : > { %v1714_v29 = vmul.f32 -0.001358992, %v1713_v32  ;;  %v1721_v55 = vmul.f32 -0.00019511016, %v1713_v32  ;;  %v1282_v51 = vand.u32 8388607, %v1275_v40  ;;  %vm1728_vm11 = vweird.f32 %v7042_v54 }
 0x14d   : > { %v1526_v24 = vadd.s32 1, %v1522_v20  ;;  %v7353_v37 = vsub.s32 32, %v1289_v22  ;;  %v7357_v27 = vshrl.u32 %v1287_v31, 5  ;;  %v1292_v5 = vshll.u32 %v6366_v42, %v1289_v22 }
 0x14e   : > { %v1715_v4 = vadd.f32 0.041655596, %v1714_v29  ;;  %v1722_v2 = vadd.f32 0.008332121, %v1721_v55  ;;  %vm1731_vm5 = vcmp.lt.s32.totalorder %v1730_v34, 2  ;;  %v1295_v28 = vshll.u32 %v6367_v44, %v1289_v22 }
 0x14f   : > { %v1527_v7 = vsel %vm1525_vm4, %v1526_v24, %v1522_v20  ;;  %v1298_v41 = vshll.u32 %v6368_v46, %v1289_v22  ;;  %v1293_v47 = vshrl.u32 %v6367_v44, %v7353_v37  ;;  %v1296_v36 = vshrl.u32 %v6368_v46, %v7353_v37 }
 0x150   : > { %v6160_v21 = vpop.eup %6159  ;;  %v1716_v25 = vmul.f32 %v1715_v4, %v1713_v32  ;;  %v1723_v61 = vmul.f32 %v1722_v2, %v1713_v32  ;;  %v1528_v9 = vadd.s32 %v1527_v7, %v1523_v53  ;;  %v1301_v35 = vshll.u32 %v6369_v48, %v1289_v22  ;;  %v194_v53 = vld [vmem:[%s6458_s7 + $0x58] sm:$0xff] }
 0x151   : > { %v5531_v33 = vmul.f32 %v6160_v21, %v5403_v45  ;;  %v1299_v23 = vshrl.u32 %v6369_v48, %v7353_v37  ;;  %v1302_v14 = vshrl.u32 %v6370_v50, %v7353_v37  ;;  %vm1732_vm6 = vcmp.eq.s32.totalorder %v1730_v34, 0 }
 0x152   : > { %v1717_v15 = vadd.f32 -0.4999988, %v1716_v25  ;;  %v1724_v39 = vadd.f32 -0.16666654, %v1723_v61  ;;  %v1529_v45 = vadd.s32 536870912, %v1528_v9  ;;  %v1304_v8 = vshll.u32 %v6370_v50, %v1289_v22 }
 0x153   : > { %5569 = vperm.xlu0 %6134, %v5531_v33   ;;  %v1305_v16 = vshrl.u32 %v6371_v59, %v7353_v37  ;;  %v1283_v26 = vor.u32 8388608, %v1282_v51  ;;  %v1303_v1 = vor.u32 %v1302_v14, %v1301_v35  ;;  %vm1735_vm7 = vcmp.eq.s32.totalorder %v1730_v34, 2 }
 0x154   : > { %v1718_v10 = vmul.f32 %v1717_v15, %v1713_v32  ;;  %v1725_v62 = vmul.f32 %v1724_v39, %v1713_v32  ;;  %v7371_v43 = vshrl.u32 %v1529_v45, 30  ;;  %v1294_v49 = vor.u32 %v1293_v47, %v1292_v5 }
 0x155   : > { %v7377_v12 = vor.u32 %v1296_v36, %v1295_v28  ;;  %v1300_v58 = vor.u32 %v1299_v23, %v1298_v41  ;;  %vm1310_vm8 = vcmp.lt.s32.totalorder %v7357_v27, 4  ;;  %v1306_v13 = vor.u32 %v1305_v16, %v1304_v8 }
 0x156   : > { %v1719_v63 = vadd.f32 1.0, %v1718_v10  ;;  %v1726_v30 = vadd.f32 1.0, %v1725_v62  ;;  %v1531_v56 = vshll.u32 %v7371_v43, 30  ;;  %vm1307_vm9 = vcmp.lt.s32.totalorder %v7357_v27, 1 }
 0x157   : > { %vm1309_vm10 = vcmp.lt.s32.totalorder %v7357_v27, 3  ;;  %v1316_v20 = vsel %vm1310_vm8, %v1303_v1, 920167782  ;;  %v7386_v31 = vshll.u32 %v1283_v26, 8  ;;  %vm1308_vm13 = vcmp.lt.s32.totalorder %v7357_v27, 2 }
 0x158   : > { %v1727_v17 = vmul.f32 %v1726_v30, %v1711_v6  ;;  %v1736_v32 = vxor.u32 2147483648, %v1719_v63  ;;  %v7380_v18 = vsub.s32 %v1528_v9, %v1531_v56  ;;  %v227_v6 = vld [vmem:[%s6465_s10 + $0x58] sm:$0xff]  ;;  %v1315_v2 = vsel %vm1307_vm9, %v1294_v49, %v7377_v12 }
 0x159   : > { %v1317_v24 = vsel %vm1309_vm10, %v1300_v58, %v1316_v20  ;;  %v1319_v21 = vsel %vm1307_vm9, %v7377_v12, %v1300_v58  ;;  %v1320_v25 = vsel %vm1310_vm8, %v1306_v13, 1326507024  ;;  %v259_v61 = vsub.f32 %v194_v53, %v227_v6 }
 0x15a   : > { %v1733_v29 = vxor.u32 2147483648, %v1727_v17  ;;  %v1737_v55 = vsel %vm1735_vm7, %v1736_v32, %v1727_v17  ;;  %vm1533_vm12 = vcmp.lt.s32.totalorder %v7380_v18, 0  ;;  %v1534_v22 = vsub.s32 0, %v7380_v18 }
 0x15b   : > { %v1321_v51 = vsel %vm1309_vm10, %v1303_v1, %v1320_v25  ;;  %v1324_v5 = vand.u32 65535, %v7386_v31  ;;  %v1318_v39 = vsel %vm1308_vm13, %v1315_v2, %v1317_v24  ;;  %v1325_v28 = vshrl.u32 %v7386_v31, 16 }
 0x15c   : > { %v1734_v4 = vsel %vm1732_vm6, %v1719_v63, %v1733_v29  ;;  %v1535_v33 = vsel %vm1533_vm12, %v1534_v22, %v7380_v18  ;;  %v1322_v34 = vsel %vm1308_vm13, %v1319_v21, %v1321_v51  ;;  %v1291_v45 = vshrl.u32 %v6366_v42, %v7353_v37 }
 0x15d   : > { %v1738_v54 = vsel %vm1731_vm5, %v1734_v4, %v1737_v55  ;;  %v1536_v9 = vclz %v1535_v33  ;;  %v1326_v47 = vand.u32 65535, %v1322_v34  ;;  %v1327_v36 = vshrl.u32 %v1322_v34, 16 }
 0x15e   : > { %v1739_v7 = vsel %vm1728_vm11, nan, %v1738_v54  ;;  %v1524_v10 = vadd.s32 %v7339_v19, %v7347_v60  ;;  %v291_v62 = vand.u32 2147483647, %v259_v61  ;;  %vm1432_vm14 = vcmp.lt.s32.totalorder %v7204_v52, 0 }
 0x15f   : > { %v5313_v15 = vmul.f32 -2.0, %v1739_v7  ;;  %v5977_v41 = vadd.s32 4294967294, %v1536_v9  ;;  %v1329_v23 = vmul.u32 %v1327_v36, %v1324_v5  ;;  %v1348_v14 = vand.u32 65535, %v1318_v39 }
 0x160   : > { %v1349_v8 = vshrl.u32 %v1318_v39, 16  ;;  %v1328_v63 = vmul.u32 %v1326_v47, %v1324_v5  ;;  %v1330_v30 = vmul.u32 %v1326_v47, %v1325_v28  ;;  %v1311_v56 = vsel %vm1307_vm9, %v1291_v45, %v1294_v49 }
 0x161   : > { %v5353_v35 = vmul.f32 1.442695, %v5313_v15  ;;  %vm5978_vm15 = vcmp.lt.s32.totalorder %v5977_v41, 0  ;;  %v1554_v19 = vsub.s32 4, %v7371_v43  ;;  %v1312_v60 = vsel %vm1310_vm8, %v1300_v58, 2102212464 }
 0x162   : > { %v1539_v16 = vsel %vm5978_vm15, 0, %v5977_v41  ;;  %v1331_v17 = vmul.u32 %v1327_v36, %v1325_v28  ;;  %v1332_v32 = vshll.u32 %v1329_v23, 16  ;;  %vm7428_vm0 = vcmp.le.f32.partialorder %v1430_v3, 0.7853982 }
 0x163   : > { %6161 = vpow2.f32 %v5353_v35  ;;  %v1540_v26 = vsub.s32 32, %v1539_v16  ;;  %v1541_v37 = vshll.u32 %v7380_v18, %v1539_v16  ;;  %v1544_v1 = vsub.s32 4294967266, %v1539_v16 }
 0x164   : > { %v1334_v18 = vshll.u32 %v1330_v30, 16  ;;  %v1350_v20 = vmul.u32 %v1348_v14, %v1324_v5  ;;  %vm1336_vm1 = vc.u32 %v1328_v63, %v1332_v32  ;;  %v1338_v53 = vadd.s32 %v1332_v32, %v1328_v63 }
 0x165   : > { %v1542_v29 = vshrl.u32 %v1524_v10, %v1540_v26  ;;  %v1545_v55 = vadd.s32 127, %v1544_v1  ;;  %v1351_v49 = vmul.u32 %v1349_v8, %v1324_v5  ;;  %v1352_v6 = vmul.u32 %v1348_v14, %v1325_v28 }
 0x166   : > { %v1333_v2 = vshrl.u32 %v1329_v23, 16  ;;  %v1337_v58 = vsel %vm1336_vm1, 1, %v6365_v0  ;;  %vm1340_vm2 = vc.u32 %v1338_v53, %v1334_v18  ;;  %v1353_v3 = vmul.u32 %v1349_v8, %v1325_v28  ;;  %v226_v53 = vld [vmem:[%s6465_s10 + $0x50] sm:$0xff] }
 0x167   : > { %v1543_v22 = vor.u32 %v1542_v29, %v1541_v37  ;;  %v1546_v4 = vshll.u32 %v1545_v55, 23  ;;  %v1339_v21 = vadd.s32 %v1337_v58, %v1331_v17  ;;  %v1354_v54 = vshll.u32 %v1351_v49, 16 }
 0x168   : > { %v1341_v7 = vsel %vm1340_vm2, 1, %v6365_v0  ;;  %v1555_v9 = vsel %vm1432_vm14, %v1554_v19, %v7371_v43  ;;  %v1356_v5 = vshll.u32 %v1352_v6, 16  ;;  %v1335_v28 = vshrl.u32 %v1330_v30, 16 }
 0x169   : > { %v6162_v24 = vpop.eup %6161  ;;  %v1547_v25 = vor.u32 4788187, %v1546_v4  ;;  %v1550_v61 = vcvt.s32.f32 %v1543_v22  ;;  %v1343_v51 = vadd.s32 %v1341_v7, %v1339_v21  ;;  %vm1358_vm3 = vc.u32 %v1350_v20, %v1354_v54 }
 0x16a   : > { %v5410_v33 = vmul.f32 %v6162_v24, %v6794_v38  ;;  %v1359_v34 = vsel %vm1358_vm3, 1, %v6365_v0  ;;  %v1360_v41 = vadd.s32 %v1354_v54, %v1350_v20  ;;  %v7440_v36 = vmul.f32 %v6472_v11, %v291_v62  ;;  %v193_v20 = vld [vmem:[%s6458_s7 + $0x50] sm:$0xff] }
 0x16b   : > { %v1548_v39 = vand.u32 2147483647, %v1547_v25  ;;  %v1344_v45 = vadd.s32 %v1343_v51, %v1333_v2  ;;  %v1361_v47 = vadd.s32 %v1359_v34, %v1353_v3  ;;  %v1355_v23 = vshrl.u32 %v1351_v49, 16 }
 0x16c   : > { %v5442_v15 = vmul.f32 -0.5, %v5410_v33  ;;  %vm1362_vm4 = vc.u32 %v1360_v41, %v1356_v5  ;;  %v1557_v43 = vsel %vm7428_vm0, 0, %v1555_v9  ;;  %v1313_v14 = vsel %vm1309_vm10, %v7377_v12, %v1312_v60 }
 0x16d   : > { %v1551_v10 = vmul.f32 %v1550_v61, %v1548_v39  ;;  %v1363_v8 = vsel %vm1362_vm4, 1, %v6365_v0  ;;  %v2053_v16 = vand.u32 2139095040, %v7440_v36  ;;  %v1357_v63 = vshrl.u32 %v1352_v6, 16 }
 0x16e   : > { %v5482_v35 = vmul.f32 1.442695, %v5442_v15  ;;  %v1365_v30 = vadd.s32 %v1363_v8, %v1361_v47  ;;  %v7449_v26 = vadd.s32 %v1344_v45, %v1335_v28  ;;  %v7451_v37 = vadd.s32 %v1360_v41, %v1356_v5 }
 0x16f   : > { %v1552_v62 = vxor.u32 2147483648, %v1551_v10  ;;  %v2054_v1 = vshrl.u32 %v2053_v16, 23  ;;  %v1314_v12 = vsel %vm1308_vm13, %v1311_v56, %v1313_v14  ;;  %v1574_v32 = vadd.s32 3, %v1557_v43 }
 0x170   : > { %6163 = vpow2.f32 %v5482_v35  ;;  %v1366_v60 = vadd.s32 %v1365_v30, %v1355_v23  ;;  %v1368_v49 = vmul.u32 %v7386_v31, %v1314_v12  ;;  %vm1370_vm5 = vc.u32 %v7449_v26, %v7451_v37 }
 0x171   : > { %v1553_v19 = vsel %vm1432_vm14, %v1552_v62, %v1551_v10  ;;  %v5988_v29 = vadd.s32 4294967169, %v2054_v1  ;;  %v2050_v6 = vand.u32 2147483647, %v7440_v36  ;;  %v7466_v58 = vand.u32 3, %v1574_v32 }
 0x172   : > { %v1556_v17 = vsel %vm7428_vm0, %v7204_v52, %v1553_v19  ;;  %v1367_v18 = vadd.s32 %v1366_v60, %v1357_v63  ;;  %v258_v24 = vsub.f32 %v193_v20, %v226_v53  ;;  %vm1573_vm9 = vweird.f32 %v7204_v52 }
 0x173   : > { %v1558_v55 = vmul.f32 %v1556_v17, %v1556_v17  ;;  %v2060_v27 = vadd.s32 1, %v5988_v29  ;;  %v2057_v51 = vand.u32 8388607, %v2050_v6  ;;  %vm1577_vm7 = vcmp.eq.s32.totalorder %v7466_v58, 0 }
 0x174   : > { %v1371_v2 = vadd.s32 1, %v1367_v18  ;;  %v290_v39 = vand.u32 2147483647, %v258_v24  ;;  %vm1576_vm8 = vcmp.lt.s32.totalorder %v7466_v58, 2  ;;  %vm1580_vm10 = vcmp.eq.s32.totalorder %v7466_v58, 2 }
 0x175   : > { %v1559_v22 = vmul.f32 -0.001358992, %v1558_v55  ;;  %v1566_v4 = vmul.f32 -0.00019511016, %v1558_v55  ;;  %vm2061_vm6 = vcmp.gt.s32.totalorder %v2060_v27, 0  ;;  %v2058_v12 = vor.u32 8388608, %v2057_v51 }
 0x176   : > { %v6164_v56 = vpop.eup %6163  ;;  %v1372_v54 = vsel %vm1370_vm5, %v1371_v2, %v1367_v18  ;;  %v2062_v25 = vsel %vm2061_vm6, %v2060_v27, 0  ;;  %v7495_v60 = vmul.f32 %v6472_v11, %v290_v39  ;;  %vm1277_vm15 = vcmp.lt.s32.totalorder %v7277_v57, 0 }
 0x177   : > { %v5538_v13 = vmul.f32 %v6164_v56, %v5410_v33  ;;  %v1560_v21 = vadd.f32 0.041655596, %v1559_v22  ;;  %v1567_v3 = vadd.f32 0.008332121, %v1566_v4  ;;  %v1373_v31 = vadd.s32 %v1372_v54, %v1368_v49 }
 0x178   : > { %v2064_v61 = vand.u32 31, %v2062_v25  ;;  %v7491_v63 = vshrl.u32 %v2062_v25, 5  ;;  %v7515_v24 = vshll.u32 %v2058_v12, 8  ;;  %vm7550_vm2 = vcmp.le.f32.partialorder %v1275_v40, 0.7853982 }
 0x179   : > { %5604 = vperm.xlu2 %6136, %v5538_v13   ;;  %v1561_v7 = vmul.f32 %v1560_v21, %v1558_v55  ;;  %v1568_v9 = vmul.f32 %v1567_v3, %v1558_v55  ;;  %v1374_v5 = vadd.s32 536870912, %v1373_v31  ;;  %v1369_v13 = vadd.s32 %v7451_v37, %v7449_v26 }
 0x17a   : > { %v7471_v33 = vsub.s32 32, %v2064_v61  ;;  %v2067_v15 = vshll.u32 %v6366_v42, %v2064_v61  ;;  %v2070_v28 = vshll.u32 %v6367_v44, %v2064_v61  ;;  %v2073_v45 = vshll.u32 %v6368_v46, %v2064_v61 }
 0x17b   : > { %v1562_v34 = vadd.f32 -0.4999988, %v1561_v7  ;;  %v1569_v41 = vadd.f32 -0.16666654, %v1568_v9  ;;  %v7478_v47 = vshrl.u32 %v1374_v5, 30  ;;  %v2076_v23 = vshll.u32 %v6369_v48, %v2064_v61 }
 0x17c   : > { %v2068_v35 = vshrl.u32 %v6367_v44, %v7471_v33  ;;  %v2071_v10 = vshrl.u32 %v6368_v46, %v7471_v33  ;;  %v2074_v8 = vshrl.u32 %v6369_v48, %v7471_v33  ;;  %v2077_v16 = vshrl.u32 %v6370_v50, %v7471_v33 }
 0x17d   : > { %v1563_v43 = vmul.f32 %v1562_v34, %v1558_v55  ;;  %v1570_v14 = vmul.f32 %v1569_v41, %v1558_v55  ;;  %v1376_v62 = vshll.u32 %v7478_v47, 30  ;;  %v2079_v30 = vshll.u32 %v6370_v50, %v2064_v61 }
 0x17e   : > { %v7499_v29 = vor.u32 %v2068_v35, %v2067_v15  ;;  %v7501_v55 = vor.u32 %v2071_v10, %v2070_v28  ;;  %v2080_v18 = vshrl.u32 %v6371_v59, %v7471_v33  ;;  %v2075_v49 = vor.u32 %v2074_v8, %v2073_v45 }
 0x17f   : > { %v1564_v1 = vadd.f32 1.0, %v1563_v43  ;;  %v1571_v19 = vadd.f32 1.0, %v1570_v14  ;;  %v7497_v32 = vsub.s32 %v1373_v31, %v1376_v62  ;;  %v2078_v27 = vor.u32 %v2077_v16, %v2076_v23 }
 0x180   : > { %v2081_v22 = vor.u32 %v2080_v18, %v2079_v30  ;;  %vm2082_vm12 = vcmp.lt.s32.totalorder %v7491_v63, 1  ;;  %vm2085_vm13 = vcmp.lt.s32.totalorder %v7491_v63, 4  ;;  %vm2084_vm14 = vcmp.lt.s32.totalorder %v7491_v63, 3 }
 0x181   : > { %v1572_v20 = vmul.f32 %v1571_v19, %v1556_v17  ;;  %v1581_v53 = vxor.u32 2147483648, %v1564_v1  ;;  %vm1378_vm11 = vcmp.lt.s32.totalorder %v7497_v32, 0  ;;  %v1379_v56 = vsub.s32 0, %v7497_v32 }
 0x182   : > { %v1898_v21 = vand.u32 2139095040, %v7495_v60  ;;  %vm2083_vm0 = vcmp.lt.s32.totalorder %v7491_v63, 2  ;;  %v2090_v26 = vsel %vm2082_vm12, %v7499_v29, %v7501_v55  ;;  %v2091_v25 = vsel %vm2085_vm13, %v2078_v27, 920167782 }
 0x183   : > { %v1578_v4 = vxor.u32 2147483648, %v1572_v20  ;;  %v1582_v2 = vsel %vm1580_vm10, %v1581_v53, %v1572_v20  ;;  %v1380_v17 = vsel %vm1378_vm11, %v1379_v56, %v7497_v32  ;;  %v2094_v31 = vsel %vm2082_vm12, %v7501_v55, %v2075_v49 }
 0x184   : > { %v1381_v54 = vclz %v1380_v17  ;;  %v2095_v61 = vsel %vm2085_vm13, %v2081_v22, 1326507024  ;;  %v2092_v51 = vsel %vm2084_vm14, %v2075_v49, %v2091_v25  ;;  %v2099_v39 = vand.u32 65535, %v7515_v24 }
 0x185   : > { %v1579_v3 = vsel %vm1577_vm7, %v1564_v1, %v1578_v4  ;;  %v2096_v58 = vsel %vm2084_vm14, %v2078_v27, %v2095_v61  ;;  %v2100_v34 = vshrl.u32 %v7515_v24, 16  ;;  %v2093_v52 = vsel %vm2083_vm0, %v2090_v26, %v2092_v51 }
 0x186   : > { %v1583_v37 = vsel %vm1576_vm8, %v1579_v3, %v1582_v2  ;;  %v5974_v9 = vadd.s32 4294967294, %v1381_v54  ;;  %v2097_v15 = vsel %vm2083_vm0, %v2094_v31, %v2096_v58  ;;  %v1399_v10 = vsub.s32 4, %v7478_v47 }
 0x187   : > { %v1584_v7 = vsel %vm1573_vm9, nan, %v1583_v37  ;;  %v2101_v41 = vand.u32 65535, %v2097_v15  ;;  %v2102_v28 = vshrl.u32 %v2097_v15, 16  ;;  %v2123_v23 = vand.u32 65535, %v2093_v52 }
 0x188   : > { %v5312_v5 = vmul.f32 -2.0, %v1584_v7  ;;  %vm5975_vm1 = vcmp.lt.s32.totalorder %v5974_v9, 0  ;;  %v1895_v62 = vand.u32 2147483647, %v7495_v60  ;;  %v2066_v30 = vshrl.u32 %v6366_v42, %v7471_v33 }
 0x189   : > { %v1384_v35 = vsel %vm5975_vm1, 0, %v5974_v9  ;;  %v2103_v1 = vmul.u32 %v2101_v41, %v2099_v39  ;;  %v1899_v19 = vshrl.u32 %v1898_v21, 23  ;;  %v2104_v20 = vmul.u32 %v2102_v28, %v2099_v39 }
 0x18a   : > { %v5351_v45 = vmul.f32 1.442695, %v5312_v5  ;;  %v1385_v14 = vsub.s32 32, %v1384_v35  ;;  %v1386_v8 = vshll.u32 %v7497_v32, %v1384_v35  ;;  %v1389_v16 = vsub.s32 4294967266, %v1384_v35 }
 0x18b   : > { %v2105_v53 = vmul.u32 %v2101_v41, %v2100_v34  ;;  %v1400_v40 = vsel %vm1277_vm15, %v1399_v10, %v7478_v47  ;;  %v2087_v32 = vsel %vm2085_vm13, %v2075_v49, 2102212464  ;;  %v2124_v27 = vshrl.u32 %v2093_v52, 16 }
 0x18c   : > { %6165 = vpow2.f32 %v5351_v45  ;;  %v1387_v12 = vshrl.u32 %v1369_v13, %v1385_v14  ;;  %v1390_v18 = vadd.s32 127, %v1389_v16  ;;  %v2127_v56 = vmul.u32 %v2123_v23, %v2100_v34 }
 0x18d   : > { %v2106_v2 = vmul.u32 %v2102_v28, %v2100_v34  ;;  %v2107_v17 = vshll.u32 %v2104_v20, 16  ;;  %v2108_v33 = vshrl.u32 %v2104_v20, 16  ;;  %v2109_v3 = vshll.u32 %v2105_v53, 16 }
 0x18e   : > { %v1388_v22 = vor.u32 %v1387_v12, %v1386_v8  ;;  %v1391_v4 = vshll.u32 %v1390_v18, 23  ;;  %v2125_v21 = vmul.u32 %v2123_v23, %v2099_v39  ;;  %v2126_v13 = vmul.u32 %v2124_v27, %v2099_v39 }
 0x18f   : > { %vm2111_vm3 = vc.u32 %v2103_v1, %v2107_v17  ;;  %v2113_v37 = vadd.s32 %v2107_v17, %v2103_v1  ;;  %v2128_v31 = vmul.u32 %v2124_v27, %v2100_v34  ;;  %v2131_v49 = vshll.u32 %v2127_v56, 16 }
 0x190   : > { %v1392_v54 = vor.u32 4788187, %v1391_v4  ;;  %v1395_v26 = vcvt.s32.f32 %v1388_v22  ;;  %v2112_v47 = vsel %vm2111_vm3, 1, %v6365_v0  ;;  %v2129_v61 = vshll.u32 %v2126_v13, 16 }
 0x191   : > { %v2114_v51 = vadd.s32 %v2112_v47, %v2106_v2  ;;  %vm2115_vm4 = vc.u32 %v2113_v37, %v2109_v3  ;;  %v1402_v58 = vsel %vm7550_vm2, 0, %v1400_v40  ;;  %v2086_v34 = vsel %vm2082_vm12, %v2066_v30, %v7499_v29 }
 0x192   : > { %v6166_v25 = vpop.eup %6165  ;;  %v1393_v9 = vand.u32 2147483647, %v1392_v54  ;;  %v2116_v5 = vsel %vm2115_vm4, 1, %v6365_v0  ;;  %vm2133_vm5 = vc.u32 %v2125_v21, %v2129_v61  ;;  %v2135_v15 = vadd.s32 %v2129_v61, %v2125_v21 }
 0x193   : > { %v5409_v7 = vmul.f32 %v6166_v25, %v6794_v38  ;;  %v2118_v41 = vadd.s32 %v2116_v5, %v2114_v51  ;;  %v2134_v28 = vsel %vm2133_vm5, 1, %v6365_v0  ;;  %v2110_v45 = vshrl.u32 %v2105_v53, 16 }
 0x194   : > { %v1396_v52 = vmul.f32 %v1395_v26, %v1393_v9  ;;  %v2136_v35 = vadd.s32 %v2134_v28, %v2128_v31  ;;  %vm2137_vm6 = vc.u32 %v2135_v15, %v2131_v49  ;;  %v2130_v8 = vshrl.u32 %v2126_v13, 16 }
 0x195   : > { %v5441_v39 = vmul.f32 -0.5, %v5409_v7  ;;  %v2119_v14 = vadd.s32 %v2118_v41, %v2108_v33  ;;  %v1419_v16 = vadd.s32 3, %v1402_v58  ;;  %v2088_v1 = vsel %vm2084_vm14, %v7501_v55, %v2087_v32 }
 0x196   : > { %v1397_v23 = vxor.u32 2147483648, %v1396_v52  ;;  %v2138_v12 = vsel %vm2137_vm6, 1, %v6365_v0  ;;  %v5985_v18 = vadd.s32 4294967169, %v1899_v19  ;;  %v2132_v29 = vshrl.u32 %v2127_v56, 16 }
 0x197   : > { %v5480_v10 = vmul.f32 1.442695, %v5441_v39  ;;  %v2140_v30 = vadd.s32 %v2138_v12, %v2136_v35  ;;  %v7581_v40 = vadd.s32 %v2119_v14, %v2110_v45  ;;  %v7583_v27 = vadd.s32 %v2135_v15, %v2131_v49  ;;  %v225_v14 = vld [vmem:[%s6465_s10 + $0x48] sm:$0xff] }
 0x198   : > { %v1398_v20 = vsel %vm1277_vm15, %v1397_v23, %v1396_v52  ;;  %v1905_v22 = vadd.s32 1, %v5985_v18  ;;  %v2089_v55 = vsel %vm2083_vm0, %v2086_v34, %v2088_v1  ;;  %v7587_v32 = vand.u32 3, %v1419_v16  ;;  %v192_v23 = vld [vmem:[%s6458_s7 + $0x48] sm:$0xff] }
 0x199   : > { %6167 = vpow2.f32 %v5480_v10  ;;  %v1401_v53 = vsel %vm7550_vm2, %v7277_v57, %v1398_v20  ;;  %v2141_v19 = vadd.s32 %v2140_v30, %v2130_v8  ;;  %v2143_v43 = vmul.u32 %v7515_v24, %v2089_v55 }
 0x19a   : > { %v1403_v4 = vmul.f32 %v1401_v53, %v1401_v53  ;;  %vm1906_vm7 = vcmp.gt.s32.totalorder %v1905_v22, 0  ;;  %vm2145_vm8 = vc.u32 %v7581_v40, %v7583_v27  ;;  %v1902_v3 = vand.u32 8388607, %v1895_v62 }
 0x19b   : > { %v2142_v17 = vadd.s32 %v2141_v19, %v2132_v29  ;;  %v1907_v33 = vsel %vm1906_vm7, %v1905_v22, 0  ;;  %vm1425_vm9 = vcmp.eq.s32.totalorder %v7587_v32, 2  ;;  %vm1422_vm10 = vcmp.eq.s32.totalorder %v7587_v32, 0 }
 0x19c   : > { %v1404_v2 = vmul.f32 -0.001358992, %v1403_v4  ;;  %v1411_v56 = vmul.f32 -0.00019511016, %v1403_v4  ;;  %v1909_v21 = vand.u32 31, %v1907_v33  ;;  %v1903_v49 = vor.u32 8388608, %v1902_v3 }
 0x19d   : > { %v2146_v26 = vadd.s32 1, %v2142_v17  ;;  %vm1421_vm11 = vcmp.lt.s32.totalorder %v7587_v32, 2  ;;  %v7605_v52 = vshrl.u32 %v1907_v33, 5  ;;  %v257_v55 = vsub.f32 %v192_v23, %v225_v14 }
 0x19e   : > { %v1405_v63 = vadd.f32 0.041655596, %v1404_v2  ;;  %v1412_v54 = vadd.f32 0.008332121, %v1411_v56  ;;  %v7594_v25 = vsub.s32 32, %v1909_v21  ;;  %v1912_v9 = vshll.u32 %v6366_v42, %v1909_v21 }
 0x19f   : > { %v6168_v13 = vpop.eup %6167  ;;  %v2147_v61 = vsel %vm2145_vm8, %v2146_v26, %v2142_v17  ;;  %v1915_v5 = vshll.u32 %v6367_v44, %v1909_v21  ;;  %v1918_v41 = vshll.u32 %v6368_v46, %v1909_v21  ;;  %v1921_v28 = vshll.u32 %v6369_v48, %v1909_v21 }
 0x1a0   : > { %v5537_v37 = vmul.f32 %v6168_v13, %v5409_v7  ;;  %v1406_v47 = vmul.f32 %v1405_v63, %v1403_v4  ;;  %v1413_v31 = vmul.f32 %v1412_v54, %v1403_v4  ;;  %v2148_v24 = vadd.s32 %v2147_v61, %v2143_v43 }
 0x1a1   : > { %v1913_v51 = vshrl.u32 %v6367_v44, %v7594_v25  ;;  %v1916_v15 = vshrl.u32 %v6368_v46, %v7594_v25  ;;  %v1919_v35 = vshrl.u32 %v6369_v48, %v7594_v25  ;;  %v1922_v10 = vshrl.u32 %v6370_v50, %v7594_v25 }
 0x1a2   : > { %5599 = vperm.xlu1 %6135, %v5537_v37   ;;  %v1407_v7 = vadd.f32 -0.4999988, %v1406_v47  ;;  %v1414_v58 = vadd.f32 -0.16666654, %v1413_v31  ;;  %v2149_v39 = vadd.s32 536870912, %v2148_v24  ;;  %v1924_v1 = vshll.u32 %v6370_v50, %v1909_v21 }
 0x1a3   : > { %v1914_v16 = vor.u32 %v1913_v51, %v1912_v9  ;;  %v1925_v12 = vshrl.u32 %v6371_v59, %v7594_v25  ;;  %v7620_v29 = vor.u32 %v1916_v15, %v1915_v5  ;;  %v1923_v30 = vor.u32 %v1922_v10, %v1921_v28 }
 0x1a4   : > { %v1408_v34 = vmul.f32 %v1407_v7, %v1403_v4  ;;  %v1415_v45 = vmul.f32 %v1414_v58, %v1403_v4  ;;  %v7615_v8 = vshrl.u32 %v2149_v39, 30  ;;  %vm1927_vm12 = vcmp.lt.s32.totalorder %v7605_v52, 1 }
 0x1a5   : > { %v7624_v4 = vshll.u32 %v1903_v49, 8  ;;  %v1920_v56 = vor.u32 %v1919_v35, %v1918_v41  ;;  %vm1930_vm13 = vcmp.lt.s32.totalorder %v7605_v52, 4  ;;  %v1926_v33 = vor.u32 %v1925_v12, %v1924_v1 }
 0x1a6   : > { %v1409_v18 = vadd.f32 1.0, %v1408_v34  ;;  %v1416_v20 = vadd.f32 1.0, %v1415_v45  ;;  %v2151_v22 = vshll.u32 %v7615_v8, 30  ;;  %vm1928_vm14 = vcmp.lt.s32.totalorder %v7605_v52, 2 }
 0x1a7   : > { %vm1929_vm15 = vcmp.lt.s32.totalorder %v7605_v52, 3  ;;  %v1935_v21 = vsel %vm1927_vm12, %v1914_v16, %v7620_v29  ;;  %vm1418_vm0 = vweird.f32 %v7277_v57  ;;  %v289_v63 = vand.u32 2147483647, %v257_v55 }
 0x1a8   : > { %v1417_v19 = vmul.f32 %v1416_v20, %v1401_v53  ;;  %v1426_v2 = vxor.u32 2147483648, %v1409_v18  ;;  %v2152_v17 = vsub.s32 %v2148_v24, %v2151_v22  ;;  %v1936_v53 = vsel %vm1930_vm13, %v1923_v30, 920167782 }
 0x1a9   : > { %v1937_v26 = vsel %vm1929_vm15, %v1920_v56, %v1936_v53  ;;  %v1939_v37 = vsel %vm1927_vm12, %v7620_v29, %v1920_v56  ;;  %v1944_v47 = vand.u32 65535, %v7624_v4  ;;  %v1940_v24 = vsel %vm1930_vm13, %v1926_v33, 1326507024 }
 0x1aa   : > { %v1423_v43 = vxor.u32 2147483648, %v1417_v19  ;;  %v1427_v3 = vsel %vm1425_vm9, %v1426_v2, %v1417_v19  ;;  %vm2153_vm1 = vcmp.lt.s32.totalorder %v2152_v17, 0  ;;  %v2154_v13 = vsub.s32 0, %v2152_v17 }
 0x1ab   : > { %v1938_v57 = vsel %vm1928_vm14, %v1935_v21, %v1937_v26  ;;  %v1911_v51 = vshrl.u32 %v6366_v42, %v7594_v25  ;;  %v1941_v7 = vsel %vm1929_vm15, %v1923_v30, %v1940_v24  ;;  %v1945_v5 = vshrl.u32 %v7624_v4, 16 }
 0x1ac   : > { %v1424_v54 = vsel %vm1422_vm10, %v1409_v18, %v1423_v43  ;;  %v2155_v61 = vsel %vm2153_vm1, %v2154_v13, %v2152_v17  ;;  %v1942_v32 = vsel %vm1928_vm14, %v1939_v37, %v1941_v7  ;;  %v1969_v28 = vshrl.u32 %v1938_v57, 16 }
 0x1ad   : > { %v1428_v31 = vsel %vm1421_vm11, %v1424_v54, %v1427_v3  ;;  %v2156_v9 = vclz %v2155_v61  ;;  %v1946_v39 = vand.u32 65535, %v1942_v32  ;;  %v1947_v41 = vshrl.u32 %v1942_v32, 16 }
 0x1ae   : > { %v1429_v49 = vsel %vm1418_vm0, nan, %v1428_v31  ;;  %v2144_v45 = vadd.s32 %v7583_v27, %v7581_v40  ;;  %v1968_v35 = vand.u32 65535, %v1938_v57  ;;  %v7661_v25 = vmul.f32 %v6472_v11, %v289_v63 }
 0x1af   : > { %v5311_v58 = vmul.f32 -2.0, %v1429_v49  ;;  %v5989_v15 = vadd.s32 4294967294, %v2156_v9  ;;  %vm2052_vm2 = vcmp.lt.s32.totalorder %v7440_v36, 0  ;;  %v1931_v10 = vsel %vm1927_vm12, %v1911_v51, %v1914_v16 }
 0x1b0   : > { %v1932_v23 = vsel %vm1930_vm13, %v1920_v56, 2102212464  ;;  %v1949_v14 = vmul.u32 %v1947_v41, %v1944_v47  ;;  %v1948_v12 = vmul.u32 %v1946_v39, %v1944_v47  ;;  %v1950_v18 = vmul.u32 %v1946_v39, %v1945_v5 }
 0x1b1   : > { %v5349_v34 = vmul.f32 1.442695, %v5311_v58  ;;  %vm5990_vm3 = vcmp.lt.s32.totalorder %v5989_v15, 0  ;;  %v1971_v30 = vmul.u32 %v1969_v28, %v1944_v47  ;;  %v2174_v22 = vsub.s32 4, %v7615_v8 }
 0x1b2   : > { %v2159_v1 = vsel %vm5990_vm3, 0, %v5989_v15  ;;  %v1951_v55 = vmul.u32 %v1947_v41, %v1945_v5  ;;  %v1952_v19 = vshll.u32 %v1949_v14, 16  ;;  %v1972_v2 = vmul.u32 %v1968_v35, %v1945_v5 }
 0x1b3   : > { %6169 = vpow2.f32 %v5349_v34  ;;  %v2160_v20 = vsub.s32 32, %v2159_v1  ;;  %v2161_v40 = vshll.u32 %v2152_v17, %v2159_v1  ;;  %v2164_v27 = vsub.s32 4294967266, %v2159_v1 }
 0x1b4   : > { %vm7671_vm4 = vcmp.le.f32.partialorder %v2050_v6, 0.7853982  ;;  %v1933_v43 = vsel %vm1929_vm15, %v7620_v29, %v1932_v23  ;;  %v1954_v17 = vshll.u32 %v1950_v18, 16  ;;  %v1953_v3 = vshrl.u32 %v1949_v14, 16 }
 0x1b5   : > { %v2162_v56 = vshrl.u32 %v2144_v45, %v2160_v20  ;;  %v2165_v33 = vadd.s32 127, %v2164_v27  ;;  %vm1956_vm5 = vc.u32 %v1948_v12, %v1952_v19  ;;  %v1958_v21 = vadd.s32 %v1952_v19, %v1948_v12 }
 0x1b6   : > { %v1970_v53 = vmul.u32 %v1968_v35, %v1944_v47  ;;  %v1957_v54 = vsel %vm1956_vm5, 1, %v6365_v0  ;;  %v1974_v26 = vshll.u32 %v1971_v30, 16  ;;  %v1973_v31 = vmul.u32 %v1969_v28, %v1945_v5 }
 0x1b7   : > { %v2163_v13 = vor.u32 %v2162_v56, %v2161_v40  ;;  %v2166_v63 = vshll.u32 %v2165_v33, 23  ;;  %v1959_v37 = vadd.s32 %v1957_v54, %v1951_v55  ;;  %vm1960_vm6 = vc.u32 %v1958_v21, %v1954_v17 }
 0x1b8   : > { %v1976_v61 = vshll.u32 %v1972_v2, 16  ;;  %v1961_v29 = vsel %vm1960_vm6, 1, %v6365_v0  ;;  %v2175_v47 = vsel %vm2052_vm2, %v2174_v22, %v7615_v8  ;;  %vm1978_vm7 = vc.u32 %v1970_v53, %v1974_v26 }
 0x1b9   : > { %v6170_v6 = vpop.eup %6169  ;;  %v2167_v24 = vor.u32 4788187, %v2166_v63  ;;  %v2170_v49 = vcvt.s32.f32 %v2163_v13  ;;  %v1963_v9 = vadd.s32 %v1961_v29, %v1959_v37  ;;  %v1980_v51 = vadd.s32 %v1974_v26, %v1970_v53 }
 0x1ba   : > { %v5408_v57 = vmul.f32 %v6170_v6, %v6794_v38  ;;  %v1955_v32 = vshrl.u32 %v1950_v18, 16  ;;  %v1979_v15 = vsel %vm1978_vm7, 1, %v6365_v0  ;;  %v1975_v39 = vshrl.u32 %v1971_v30, 16 }
 0x1bb   : > { %v2168_v58 = vand.u32 2147483647, %v2167_v24  ;;  %v1964_v5 = vadd.s32 %v1963_v9, %v1953_v3  ;;  %v1981_v41 = vadd.s32 %v1979_v15, %v1973_v31  ;;  %vm1982_vm8 = vc.u32 %v1980_v51, %v1976_v61 }
 0x1bc   : > { %v5440_v7 = vmul.f32 -0.5, %v5408_v57  ;;  %v1983_v45 = vsel %vm1982_vm8, 1, %v6365_v0  ;;  %v1743_v35 = vand.u32 2139095040, %v7661_v25  ;;  %v2177_v8 = vsel %vm7671_vm4, 0, %v2175_v47 }
 0x1bd   : > { %v2171_v34 = vmul.f32 %v2170_v49, %v2168_v58  ;;  %v1977_v23 = vshrl.u32 %v1972_v2, 16  ;;  %v7689_v14 = vadd.s32 %v1980_v51, %v1976_v61  ;;  %v1985_v1 = vadd.s32 %v1983_v45, %v1981_v41 }
 0x1be   : > { %v5478_v28 = vmul.f32 1.442695, %v5440_v7  ;;  %v7691_v18 = vadd.s32 %v1964_v5, %v1955_v32  ;;  %v1744_v20 = vshrl.u32 %v1743_v35, 23  ;;  %v1934_v40 = vsel %vm1928_vm14, %v1931_v10, %v1933_v43  ;;  %v197_v10 = vld [vmem:[%s6458_s7 + $0x70] sm:$0xff] }
 0x1bf   : > { %v2172_v12 = vxor.u32 2147483648, %v2171_v34  ;;  %v1986_v27 = vadd.s32 %v1985_v1, %v1975_v39  ;;  %v1740_v30 = vand.u32 2147483647, %v7661_v25  ;;  %v2194_v55 = vadd.s32 3, %v2177_v8  ;;  %v230_v43 = vld [vmem:[%s6465_s10 + $0x70] sm:$0xff] }
 0x1c0   : > { %6171 = vpow2.f32 %v5478_v28  ;;  %v5982_v19 = vadd.s32 4294967169, %v1744_v20  ;;  %v1988_v17 = vmul.u32 %v7624_v4, %v1934_v40  ;;  %vm1990_vm9 = vc.u32 %v7691_v18, %v7689_v14 }
 0x1c1   : > { %v2173_v22 = vsel %vm2052_vm2, %v2172_v12, %v2171_v34  ;;  %v1987_v56 = vadd.s32 %v1986_v27, %v1977_v23  ;;  %v1747_v21 = vand.u32 8388607, %v1740_v30  ;;  %v7708_v54 = vand.u32 3, %v2194_v55 }
 0x1c2   : > { %v2176_v2 = vsel %vm7671_vm4, %v7440_v36, %v2173_v22  ;;  %v1750_v52 = vadd.s32 1, %v5982_v19  ;;  %v262_v4 = vsub.f32 %v197_v10, %v230_v43  ;;  %vm2193_vm14 = vweird.f32 %v7440_v36 }
 0x1c3   : > { %v2178_v33 = vmul.f32 %v2176_v2, %v2176_v2  ;;  %v1991_v3 = vadd.s32 1, %v1987_v56  ;;  %vm2197_vm11 = vcmp.eq.s32.totalorder %v7708_v54, 0  ;;  %vm2200_vm12 = vcmp.eq.s32.totalorder %v7708_v54, 2 }
 0x1c4   : > { %vm1751_vm10 = vcmp.gt.s32.totalorder %v1750_v52, 0  ;;  %v1748_v9 = vor.u32 8388608, %v1747_v21  ;;  %v294_v7 = vand.u32 2147483647, %v262_v4  ;;  %vm2196_vm13 = vcmp.lt.s32.totalorder %v7708_v54, 2 }
 0x1c5   : > { %v2179_v13 = vmul.f32 -0.001358992, %v2178_v33  ;;  %v2186_v63 = vmul.f32 -0.00019511016, %v2178_v33  ;;  %v1992_v26 = vsel %vm1990_vm9, %v1991_v3, %v1987_v56  ;;  %v1752_v6 = vsel %vm1751_vm10, %v1750_v52, 0 }
 0x1c6   : > { %v6172_v53 = vpop.eup %6171  ;;  %v1993_v61 = vadd.s32 %v1992_v26, %v1988_v17  ;;  %v1754_v24 = vand.u32 31, %v1752_v6  ;;  %v7723_v23 = vshrl.u32 %v1752_v6, 5  ;;  %v7727_v20 = vshll.u32 %v1748_v9, 8 }
 0x1c7   : > { %v5536_v16 = vmul.f32 %v6172_v53, %v5408_v57  ;;  %v2180_v37 = vadd.f32 0.041655596, %v2179_v13  ;;  %v2187_v31 = vadd.f32 0.008332121, %v2186_v63  ;;  %v7734_v21 = vmul.f32 %v6472_v11, %v294_v7 }
 0x1c8   : > { %v1994_v47 = vadd.s32 536870912, %v1993_v61  ;;  %v1755_v51 = vsub.s32 32, %v1754_v24  ;;  %v1757_v15 = vshll.u32 %v6366_v42, %v1754_v24  ;;  %v1760_v39 = vshll.u32 %v6367_v44, %v1754_v24 }
 0x1c9   : > { %5594 = vperm.xlu0 %6134, %v5536_v16   ;;  %v2181_v49 = vmul.f32 %v2180_v37, %v2178_v33  ;;  %v2188_v29 = vmul.f32 %v2187_v31, %v2178_v33  ;;  %v1766_v28 = vshll.u32 %v6369_v48, %v1754_v24  ;;  %v1763_v1 = vshll.u32 %v6368_v46, %v1754_v24 }
 0x1ca   : > { %v7713_v32 = vshrl.u32 %v1994_v47, 30  ;;  %v1758_v5 = vshrl.u32 %v6367_v44, %v1755_v51  ;;  %v1761_v41 = vshrl.u32 %v6368_v46, %v1755_v51  ;;  %v1767_v8 = vshrl.u32 %v6370_v50, %v1755_v51 }
 0x1cb   : > { %v2182_v58 = vadd.f32 -0.4999988, %v2181_v49  ;;  %v2189_v57 = vadd.f32 -0.16666654, %v2188_v29  ;;  %v1764_v12 = vshrl.u32 %v6369_v48, %v1755_v51  ;;  %v1770_v17 = vshrl.u32 %v6371_v59, %v1755_v51 }
 0x1cc   : > { %v1996_v35 = vshll.u32 %v7713_v32, 30  ;;  %v1759_v55 = vor.u32 %v1758_v5, %v1757_v15  ;;  %v1762_v19 = vor.u32 %v1761_v41, %v1760_v39  ;;  %v1768_v56 = vor.u32 %v1767_v8, %v1766_v28 }
 0x1cd   : > { %v2183_v34 = vmul.f32 %v2182_v58, %v2178_v33  ;;  %v2190_v45 = vmul.f32 %v2189_v57, %v2178_v33  ;;  %v1769_v33 = vshll.u32 %v6370_v50, %v1754_v24  ;;  %v1765_v3 = vor.u32 %v1764_v12, %v1763_v1 }
 0x1ce   : > { %v1997_v22 = vsub.s32 %v1993_v61, %v1996_v35  ;;  %vm1772_vm0 = vcmp.lt.s32.totalorder %v7723_v23, 1  ;;  %vm1775_vm1 = vcmp.lt.s32.totalorder %v7723_v23, 4  ;;  %vm1774_vm2 = vcmp.lt.s32.totalorder %v7723_v23, 3 }
 0x1cf   : > { %v2184_v40 = vadd.f32 1.0, %v2183_v34  ;;  %v2191_v27 = vadd.f32 1.0, %v2190_v45  ;;  %vm1897_vm3 = vcmp.lt.s32.totalorder %v7495_v60, 0  ;;  %v1771_v26 = vor.u32 %v1770_v17, %v1769_v33 }
 0x1d0   : > { %vm1998_vm15 = vcmp.lt.s32.totalorder %v1997_v22, 0  ;;  %v1999_v43 = vsub.s32 0, %v1997_v22  ;;  %v1790_v6 = vshrl.u32 %v7727_v20, 16  ;;  %vm1773_vm4 = vcmp.lt.s32.totalorder %v7723_v23, 2 }
 0x1d1   : > { %v2192_v52 = vmul.f32 %v2191_v27, %v2176_v2  ;;  %v2201_v10 = vxor.u32 2147483648, %v2184_v40  ;;  %v1989_v2 = vadd.s32 %v7689_v14, %v7691_v18  ;;  %v1780_v37 = vsel %vm1772_vm0, %v1759_v55, %v1762_v19 }
 0x1d2   : > { %v2000_v63 = vsel %vm1998_vm15, %v1999_v43, %v1997_v22  ;;  %v1781_v31 = vsel %vm1775_vm1, %v1768_v56, 920167782  ;;  %v2518_v18 = vand.u32 2139095040, %v7734_v21  ;;  %vm7759_vm5 = vcmp.le.f32.partialorder %v1895_v62, 0.7853982 }
 0x1d3   : > { %v2198_v53 = vxor.u32 2147483648, %v2192_v52  ;;  %v2202_v13 = vsel %vm2200_vm12, %v2201_v10, %v2192_v52  ;;  %v2001_v16 = vclz %v2000_v63  ;;  %v1782_v14 = vsel %vm1774_vm2, %v1765_v3, %v1781_v31 }
 0x1d4   : > { %v2019_v47 = vsub.s32 4, %v7713_v32  ;;  %v1756_v54 = vshrl.u32 %v6366_v42, %v1755_v51  ;;  %v1784_v9 = vsel %vm1772_vm0, %v1762_v19, %v1765_v3  ;;  %v1783_v58 = vsel %vm1773_vm4, %v1780_v37, %v1782_v14 }
 0x1d5   : > { %v2199_v4 = vsel %vm2197_vm11, %v2184_v40, %v2198_v53  ;;  %v5986_v24 = vadd.s32 4294967294, %v2001_v16  ;;  %v1785_v36 = vsel %vm1775_vm1, %v1771_v26, 1326507024  ;;  %v1777_v62 = vsel %vm1775_vm1, %v1765_v3, 2102212464 }
 0x1d6   : > { %v2203_v61 = vsel %vm2196_vm13, %v2199_v4, %v2202_v13  ;;  %v1786_v15 = vsel %vm1774_vm2, %v1768_v56, %v1785_v36  ;;  %v1813_v5 = vand.u32 65535, %v1783_v58  ;;  %v7777_v34 = vsel %vm1772_vm0, %v1756_v54, %v1759_v55 }
 0x1d7   : > { %v2204_v49 = vsel %vm2193_vm14, nan, %v2203_v61  ;;  %vm5987_vm6 = vcmp.lt.s32.totalorder %v5986_v24, 0  ;;  %v1787_v45 = vsel %vm1773_vm4, %v1784_v9, %v1786_v15  ;;  %v1789_v35 = vand.u32 65535, %v7727_v20 }
 0x1d8   : > { %v5316_v7 = vmul.f32 -2.0, %v2204_v49  ;;  %v2004_v57 = vsel %vm5987_vm6, 0, %v5986_v24  ;;  %v2519_v8 = vshrl.u32 %v2518_v18, 23  ;;  %v1791_v40 = vand.u32 65535, %v1787_v45 }
 0x1d9   : > { %v2005_v39 = vsub.s32 32, %v2004_v57  ;;  %v2006_v41 = vshll.u32 %v1997_v22, %v2004_v57  ;;  %v2009_v28 = vsub.s32 4294967266, %v2004_v57  ;;  %v2020_v27 = vsel %vm1897_vm3, %v2019_v47, %v7713_v32 }
 0x1da   : > { %v5359_v51 = vmul.f32 1.442695, %v5316_v7  ;;  %v1778_v22 = vsel %vm1774_vm2, %v1762_v19, %v1777_v62  ;;  %v1792_v56 = vshrl.u32 %v1787_v45, 16  ;;  %v1814_v55 = vshrl.u32 %v1783_v58, 16 }
 0x1db   : > { %v2007_v1 = vshrl.u32 %v1989_v2, %v2005_v39  ;;  %v2010_v12 = vadd.s32 127, %v2009_v28  ;;  %v1795_v52 = vmul.u32 %v1791_v40, %v1790_v6  ;;  %v1817_v10 = vmul.u32 %v1813_v5, %v1790_v6 }
 0x1dc   : > { %6173 = vpow2.f32 %v5359_v51  ;;  %v1793_v43 = vmul.u32 %v1791_v40, %v1789_v35  ;;  %v1794_v3 = vmul.u32 %v1792_v56, %v1789_v35  ;;  %v1815_v53 = vmul.u32 %v1813_v5, %v1789_v35 }
 0x1dd   : > { %v2008_v33 = vor.u32 %v2007_v1, %v2006_v41  ;;  %v2011_v17 = vshll.u32 %v2010_v12, 23  ;;  %v1816_v13 = vmul.u32 %v1814_v55, %v1789_v35  ;;  %v2022_v16 = vsel %vm7759_vm5, 0, %v2020_v27 }
 0x1de   : > { %v1796_v26 = vmul.u32 %v1792_v56, %v1790_v6  ;;  %v1797_v32 = vshll.u32 %v1794_v3, 16  ;;  %v1799_v4 = vshll.u32 %v1795_v52, 16  ;;  %v1818_v37 = vmul.u32 %v1814_v55, %v1790_v6 }
 0x1df   : > { %v2012_v63 = vor.u32 4788187, %v2011_v17  ;;  %v2015_v2 = vcvt.s32.f32 %v2008_v33  ;;  %v1819_v19 = vshll.u32 %v1816_v13, 16  ;;  %v1798_v24 = vshrl.u32 %v1794_v3, 16 }
 0x1e0   : > { %v1800_v14 = vshrl.u32 %v1795_v52, 16  ;;  %v1821_v18 = vshll.u32 %v1817_v10, 16  ;;  %vm1801_vm7 = vc.u32 %v1793_v43, %v1797_v32  ;;  %v1803_v47 = vadd.s32 %v1797_v32, %v1793_v43 }
 0x1e1   : > { %v2013_v61 = vand.u32 2147483647, %v2012_v63  ;;  %vm1823_vm8 = vc.u32 %v1815_v53, %v1819_v19  ;;  %v1802_v9 = vsel %vm1801_vm7, 1, %v6365_v0  ;;  %v1825_v58 = vadd.s32 %v1819_v19, %v1815_v53 }
 0x1e2   : > { %v6174_v31 = vpop.eup %6173  ;;  %v1824_v7 = vsel %vm1823_vm8, 1, %v6365_v0  ;;  %v1804_v57 = vadd.s32 %v1802_v9, %v1796_v26  ;;  %vm1805_vm9 = vc.u32 %v1803_v47, %v1799_v4  ;;  %v1820_v5 = vshrl.u32 %v1816_v13, 16 }
 0x1e3   : > { %v5413_v49 = vmul.f32 %v6174_v31, %v6794_v38  ;;  %v2016_v54 = vmul.f32 %v2015_v2, %v2013_v61  ;;  %v1826_v6 = vadd.s32 %v1824_v7, %v1818_v37  ;;  %v1806_v15 = vsel %vm1805_vm9, 1, %v6365_v0 }
 0x1e4   : > { %vm1827_vm10 = vc.u32 %v1825_v58, %v1821_v18  ;;  %v1808_v39 = vadd.s32 %v1806_v15, %v1804_v57  ;;  %v5997_v28 = vadd.s32 4294967169, %v2519_v8  ;;  %v1822_v35 = vshrl.u32 %v1817_v10, 16 }
 0x1e5   : > { %v5445_v36 = vmul.f32 -0.5, %v5413_v49  ;;  %v2017_v62 = vxor.u32 2147483648, %v2016_v54  ;;  %v1828_v41 = vsel %vm1827_vm10, 1, %v6365_v0  ;;  %v7796_v1 = vadd.s32 %v1825_v58, %v1821_v18 }
 0x1e6   : > { %v1830_v12 = vadd.s32 %v1828_v41, %v1826_v6  ;;  %v1809_v27 = vadd.s32 %v1808_v39, %v1798_v24  ;;  %v2525_v56 = vadd.s32 1, %v5997_v28  ;;  %v1779_v33 = vsel %vm1773_vm4, %v7777_v34, %v1778_v22 }
 0x1e7   : > { %v5488_v51 = vmul.f32 1.442695, %v5445_v36  ;;  %v2018_v45 = vsel %vm1897_vm3, %v2017_v62, %v2016_v54  ;;  %v2039_v17 = vadd.s32 3, %v2022_v16  ;;  %v1833_v13 = vmul.u32 %v7727_v20, %v1779_v33 }
 0x1e8   : > { %v2021_v40 = vsel %vm7759_vm5, %v7495_v60, %v2018_v45  ;;  %v1831_v8 = vadd.s32 %v1830_v12, %v1820_v5  ;;  %v7804_v52 = vadd.s32 %v1809_v27, %v1800_v14  ;;  %vm2526_vm11 = vcmp.gt.s32.totalorder %v2525_v56, 0 }
 0x1e9   : > { %6175 = vpow2.f32 %v5488_v51  ;;  %v2023_v55 = vmul.f32 %v2021_v40, %v2021_v40  ;;  %v2527_v53 = vsel %vm2526_vm11, %v2525_v56, 0  ;;  %v2515_v29 = vand.u32 2147483647, %v7734_v21 }
 0x1ea   : > { %v1832_v3 = vadd.s32 %v1831_v8, %v1822_v35  ;;  %vm1835_vm12 = vc.u32 %v7804_v52, %v7796_v1  ;;  %v2529_v63 = vand.u32 31, %v2527_v53  ;;  %v2040_v16 = vand.u32 3, %v2039_v17 }
 0x1eb   : > { %v2024_v10 = vmul.f32 -0.001358992, %v2023_v55  ;;  %v2031_v43 = vmul.f32 -0.00019511016, %v2023_v55  ;;  %v2522_v20 = vand.u32 8388607, %v2515_v29  ;;  %vm2038_vm13 = vweird.f32 %v7495_v60 }
 0x1ec   : > { %v1836_v34 = vadd.s32 1, %v1832_v3  ;;  %v7810_v26 = vsub.s32 32, %v2529_v63  ;;  %v7814_v61 = vshrl.u32 %v2527_v53, 5  ;;  %v2532_v24 = vshll.u32 %v6366_v42, %v2529_v63  ;;  %v196_v53 = vld [vmem:[%s6458_s7 + $0x68] sm:$0xff] }
 0x1ed   : > { %v2025_v2 = vadd.f32 0.041655596, %v2024_v10  ;;  %v2032_v23 = vadd.f32 0.008332121, %v2031_v43  ;;  %v2535_v54 = vshll.u32 %v6367_v44, %v2529_v63  ;;  %v2541_v7 = vshll.u32 %v6369_v48, %v2529_v63 }
 0x1ee   : > { %v1837_v19 = vsel %vm1835_vm12, %v1836_v34, %v1832_v3  ;;  %v2533_v47 = vshrl.u32 %v6367_v44, %v7810_v26  ;;  %v2536_v9 = vshrl.u32 %v6368_v46, %v7810_v26  ;;  %v2542_v58 = vshrl.u32 %v6370_v50, %v7810_v26 }
 0x1ef   : > { %v6176_v22 = vpop.eup %6175  ;;  %v2026_v4 = vmul.f32 %v2025_v2, %v2023_v55  ;;  %v2033_v37 = vmul.f32 %v2032_v23, %v2023_v55  ;;  %v1838_v31 = vadd.s32 %v1837_v19, %v1833_v13  ;;  %v2538_v6 = vshll.u32 %v6368_v46, %v2529_v63  ;;  %v229_v13 = vld [vmem:[%s6465_s10 + $0x68] sm:$0xff] }
 0x1f0   : > { %v5541_v32 = vmul.f32 %v6176_v22, %v5413_v49  ;;  %v2539_v62 = vshrl.u32 %v6369_v48, %v7810_v26  ;;  %vm2042_vm14 = vcmp.eq.s32.totalorder %v2040_v16, 0  ;;  %v2544_v5 = vshll.u32 %v6370_v50, %v2529_v63 }
 0x1f1   : > { %v2027_v14 = vadd.f32 -0.4999988, %v2026_v4  ;;  %v2034_v18 = vadd.f32 -0.16666654, %v2033_v37  ;;  %v1839_v49 = vadd.s32 536870912, %v1838_v31  ;;  %v2545_v51 = vshrl.u32 %v6371_v59, %v7810_v26 }
 0x1f2   : > { %5619 = vperm.xlu2 %6136, %v5541_v32   ;;  %vm2045_vm15 = vcmp.eq.s32.totalorder %v2040_v16, 2  ;;  %v2523_v28 = vor.u32 8388608, %v2522_v20  ;;  %v2534_v35 = vor.u32 %v2533_v47, %v2532_v24  ;;  %v7835_v12 = vor.u32 %v2536_v9, %v2535_v54 }
 0x1f3   : > { %v2028_v36 = vmul.f32 %v2027_v14, %v2023_v55  ;;  %v2035_v57 = vmul.f32 %v2034_v18, %v2023_v55  ;;  %v7829_v15 = vshrl.u32 %v1839_v49, 30  ;;  %v2543_v27 = vor.u32 %v2542_v58, %v2541_v7 }
 0x1f4   : > { %v2540_v33 = vor.u32 %v2539_v62, %v2538_v6  ;;  %vm2550_vm0 = vcmp.lt.s32.totalorder %v7814_v61, 4  ;;  %v2546_v17 = vor.u32 %v2545_v51, %v2544_v5  ;;  %vm2547_vm1 = vcmp.lt.s32.totalorder %v7814_v61, 1 }
 0x1f5   : > { %v2029_v39 = vadd.f32 1.0, %v2028_v36  ;;  %v2036_v41 = vadd.f32 1.0, %v2035_v57  ;;  %v1841_v45 = vshll.u32 %v7829_v15, 30  ;;  %vm2549_vm2 = vcmp.lt.s32.totalorder %v7814_v61, 3 }
 0x1f6   : > { %vm2041_vm3 = vcmp.lt.s32.totalorder %v2040_v16, 2  ;;  %v7843_v3 = vshll.u32 %v2523_v28, 8  ;;  %vm2548_vm5 = vcmp.lt.s32.totalorder %v7814_v61, 2  ;;  %v2556_v63 = vsel %vm2550_vm0, %v2543_v27, 920167782 }
 0x1f7   : > { %v2037_v56 = vmul.f32 %v2036_v41, %v2021_v40  ;;  %v2046_v55 = vxor.u32 2147483648, %v2029_v39  ;;  %v7838_v8 = vsub.s32 %v1838_v31, %v1841_v45  ;;  %v2555_v23 = vsel %vm2547_vm1, %v2534_v35, %v7835_v12 }
 0x1f8   : > { %v2557_v34 = vsel %vm2549_vm2, %v2540_v33, %v2556_v63  ;;  %v2559_v22 = vsel %vm2547_vm1, %v7835_v12, %v2540_v33  ;;  %v2560_v37 = vsel %vm2550_vm0, %v2546_v17, 1326507024  ;;  %v261_v19 = vsub.f32 %v196_v53, %v229_v13 }
 0x1f9   : > { %v2043_v10 = vxor.u32 2147483648, %v2037_v56  ;;  %v2047_v43 = vsel %vm2045_vm15, %v2046_v55, %v2037_v56  ;;  %vm1843_vm4 = vcmp.lt.s32.totalorder %v7838_v8, 0  ;;  %v1844_v40 = vsub.s32 0, %v7838_v8 }
 0x1fa   : > { %v2561_v20 = vsel %vm2549_vm2, %v2543_v27, %v2560_v37  ;;  %v2564_v24 = vand.u32 65535, %v7843_v3  ;;  %v2558_v18 = vsel %vm2548_vm5, %v2555_v23, %v2557_v34  ;;  %v2565_v54 = vshrl.u32 %v7843_v3, 16 }
 0x1fb   : > { %v2044_v2 = vsel %vm2042_vm14, %v2029_v39, %v2043_v10  ;;  %v1845_v4 = vsel %vm1843_vm4, %v1844_v40, %v7838_v8  ;;  %v2562_v47 = vsel %vm2548_vm5, %v2559_v22, %v2561_v20  ;;  %v2531_v60 = vshrl.u32 %v6366_v42, %v7810_v26 }
 0x1fc   : > { %v2048_v32 = vsel %vm2041_vm3, %v2044_v2, %v2047_v43  ;;  %v1846_v31 = vclz %v1845_v4  ;;  %v2566_v9 = vand.u32 65535, %v2562_v47  ;;  %v2567_v7 = vshrl.u32 %v2562_v47, 16 }
 0x1fd   : > { %v2049_v16 = vsel %vm2038_vm13, nan, %v2048_v32  ;;  %v1834_v36 = vadd.s32 %v7796_v1, %v7804_v52  ;;  %v293_v57 = vand.u32 2147483647, %v261_v19  ;;  %vm1742_vm6 = vcmp.lt.s32.totalorder %v7661_v25, 0 }
 0x1fe   : > { %v5315_v14 = vmul.f32 -2.0, %v2049_v16  ;;  %v5983_v49 = vadd.s32 4294967294, %v1846_v31  ;;  %v2569_v6 = vmul.u32 %v2567_v7, %v2564_v24  ;;  %v2588_v62 = vand.u32 65535, %v2558_v18 }
 0x1ff   : > { %v2589_v5 = vshrl.u32 %v2558_v18, 16  ;;  %v2568_v39 = vmul.u32 %v2566_v9, %v2564_v24  ;;  %v2570_v41 = vmul.u32 %v2566_v9, %v2565_v54  ;;  %v2551_v27 = vsel %vm2547_vm1, %v2531_v60, %v2534_v35 }
 0x200   : > { %v5357_v58 = vmul.f32 1.442695, %v5315_v14  ;;  %vm5984_vm7 = vcmp.lt.s32.totalorder %v5983_v49, 0  ;;  %v1864_v1 = vsub.s32 4, %v7829_v15  ;;  %v2552_v52 = vsel %vm2550_vm0, %v2540_v33, 2102212464 }
 0x201   : > { %v1849_v51 = vsel %vm5984_vm7, 0, %v5983_v49  ;;  %v2571_v56 = vmul.u32 %v2567_v7, %v2565_v54  ;;  %v2572_v55 = vshll.u32 %v2569_v6, 16  ;;  %vm7887_vm8 = vcmp.le.f32.partialorder %v1740_v30, 0.7853982 }
 0x202   : > { %6177 = vpow2.f32 %v5357_v58  ;;  %v1850_v28 = vsub.s32 32, %v1849_v51  ;;  %v1851_v26 = vshll.u32 %v7838_v8, %v1849_v51  ;;  %v1854_v45 = vsub.s32 4294967266, %v1849_v51 }
 0x203   : > { %v2574_v8 = vshll.u32 %v2570_v41, 16  ;;  %v2590_v53 = vmul.u32 %v2588_v62, %v2564_v24  ;;  %vm2576_vm9 = vc.u32 %v2568_v39, %v2572_v55  ;;  %v2578_v13 = vadd.s32 %v2572_v55, %v2568_v39 }
 0x204   : > { %v1852_v10 = vshrl.u32 %v1834_v36, %v1850_v28  ;;  %v1855_v43 = vadd.s32 127, %v1854_v45  ;;  %v2591_v35 = vmul.u32 %v2589_v5, %v2564_v24  ;;  %v2592_v40 = vmul.u32 %v2588_v62, %v2565_v54 }
 0x205   : > { %v2573_v23 = vshrl.u32 %v2569_v6, 16  ;;  %v2577_v33 = vsel %vm2576_vm9, 1, %v6365_v0  ;;  %vm2580_vm10 = vc.u32 %v2578_v13, %v2574_v8  ;;  %v2593_v30 = vmul.u32 %v2589_v5, %v2565_v54  ;;  %v228_v13 = vld [vmem:[%s6465_s10 + $0x60] sm:$0xff] }
 0x206   : > { %v1853_v63 = vor.u32 %v1852_v10, %v1851_v26  ;;  %v1856_v2 = vshll.u32 %v1855_v43, 23  ;;  %v2579_v22 = vadd.s32 %v2577_v33, %v2571_v56  ;;  %v2594_v32 = vshll.u32 %v2591_v35, 16 }
 0x207   : > { %v2581_v16 = vsel %vm2580_vm10, 1, %v6365_v0  ;;  %v1865_v31 = vsel %vm1742_vm6, %v1864_v1, %v7829_v15  ;;  %v2596_v24 = vshll.u32 %v2592_v40, 16  ;;  %v2575_v54 = vshrl.u32 %v2570_v41, 16 }
 0x208   : > { %v6178_v34 = vpop.eup %6177  ;;  %v1857_v37 = vor.u32 4788187, %v1856_v2  ;;  %v1860_v19 = vcvt.s32.f32 %v1853_v63  ;;  %v2583_v20 = vadd.s32 %v2581_v16, %v2579_v22  ;;  %vm2598_vm11 = vc.u32 %v2590_v53, %v2594_v32 }
 0x209   : > { %v5412_v4 = vmul.f32 %v6178_v34, %v6794_v38  ;;  %v2599_v47 = vsel %vm2598_vm11, 1, %v6365_v0  ;;  %v2600_v49 = vadd.s32 %v2594_v32, %v2590_v53  ;;  %v7899_v7 = vmul.f32 %v6472_v11, %v293_v57  ;;  %v195_v53 = vld [vmem:[%s6458_s7 + $0x60] sm:$0xff] }
 0x20a   : > { %v1858_v18 = vand.u32 2147483647, %v1857_v37  ;;  %v2584_v60 = vadd.s32 %v2583_v20, %v2573_v23  ;;  %v2601_v9 = vadd.s32 %v2599_v47, %v2593_v30  ;;  %v2595_v6 = vshrl.u32 %v2591_v35, 16 }
 0x20b   : > { %v5444_v14 = vmul.f32 -0.5, %v5412_v4  ;;  %vm2602_vm12 = vc.u32 %v2600_v49, %v2596_v24  ;;  %v1867_v15 = vsel %vm7887_vm8, 0, %v1865_v31  ;;  %v2553_v62 = vsel %vm2549_vm2, %v7835_v12, %v2552_v52 }
 0x20c   : > { %v1861_v36 = vmul.f32 %v1860_v19, %v1858_v18  ;;  %v2603_v5 = vsel %vm2602_vm12, 1, %v6365_v0  ;;  %v2363_v51 = vand.u32 2139095040, %v7899_v7  ;;  %v2597_v39 = vshrl.u32 %v2592_v40, 16 }
 0x20d   : > { %v5486_v58 = vmul.f32 1.442695, %v5444_v14  ;;  %v2605_v41 = vadd.s32 %v2603_v5, %v2601_v9  ;;  %v7908_v28 = vadd.s32 %v2584_v60, %v2575_v54  ;;  %v7910_v26 = vadd.s32 %v2600_v49, %v2596_v24 }
 0x20e   : > { %v1862_v57 = vxor.u32 2147483648, %v1861_v36  ;;  %v2364_v45 = vshrl.u32 %v2363_v51, 23  ;;  %v2554_v12 = vsel %vm2548_vm5, %v2551_v27, %v2553_v62  ;;  %v1884_v55 = vadd.s32 3, %v1867_v15 }
 0x20f   : > { %6179 = vpow2.f32 %v5486_v58  ;;  %v2606_v52 = vadd.s32 %v2605_v41, %v2595_v6  ;;  %v2608_v35 = vmul.u32 %v7843_v3, %v2554_v12  ;;  %vm2610_vm13 = vc.u32 %v7908_v28, %v7910_v26 }
 0x210   : > { %v1863_v1 = vsel %vm1742_vm6, %v1862_v57, %v1861_v36  ;;  %v5994_v10 = vadd.s32 4294967169, %v2364_v45  ;;  %v2360_v40 = vand.u32 2147483647, %v7899_v7  ;;  %v7925_v33 = vand.u32 3, %v1884_v55 }
 0x211   : > { %v1866_v56 = vsel %vm7887_vm8, %v7661_v25, %v1863_v1  ;;  %v2607_v8 = vadd.s32 %v2606_v52, %v2597_v39  ;;  %v260_v34 = vsub.f32 %v195_v53, %v228_v13  ;;  %vm1883_vm1 = vweird.f32 %v7661_v25 }
 0x212   : > { %v1868_v43 = vmul.f32 %v1866_v56, %v1866_v56  ;;  %v2370_v61 = vadd.s32 1, %v5994_v10  ;;  %v2367_v20 = vand.u32 8388607, %v2360_v40  ;;  %vm1887_vm15 = vcmp.eq.s32.totalorder %v7925_v33, 0 }
 0x213   : > { %v2611_v23 = vadd.s32 1, %v2607_v8  ;;  %v292_v18 = vand.u32 2147483647, %v260_v34  ;;  %vm1886_vm0 = vcmp.lt.s32.totalorder %v7925_v33, 2  ;;  %vm1890_vm2 = vcmp.eq.s32.totalorder %v7925_v33, 2 }
 0x214   : > { %v1869_v63 = vmul.f32 -0.001358992, %v1868_v43  ;;  %v1876_v2 = vmul.f32 -0.00019511016, %v1868_v43  ;;  %vm2371_vm14 = vcmp.gt.s32.totalorder %v2370_v61, 0  ;;  %v2368_v12 = vor.u32 8388608, %v2367_v20 }
 0x215   : > { %v6180_v27 = vpop.eup %6179  ;;  %v2612_v32 = vsel %vm2610_vm13, %v2611_v23, %v2607_v8  ;;  %v2372_v37 = vsel %vm2371_vm14, %v2370_v61, 0  ;;  %v7954_v52 = vmul.f32 %v6472_v11, %v292_v18  ;;  %vm2517_vm7 = vcmp.lt.s32.totalorder %v7734_v21, 0 }
 0x216   : > { %v5540_v17 = vmul.f32 %v6180_v27, %v5412_v4  ;;  %v1870_v22 = vadd.f32 0.041655596, %v1869_v63  ;;  %v1877_v30 = vadd.f32 0.008332121, %v1876_v2  ;;  %v2613_v3 = vadd.s32 %v2612_v32, %v2608_v35 }
 0x217   : > { %v2374_v19 = vand.u32 31, %v2372_v37  ;;  %v7950_v39 = vshrl.u32 %v2372_v37, 5  ;;  %v7974_v34 = vshll.u32 %v2368_v12, 8  ;;  %vm8009_vm10 = vcmp.le.f32.partialorder %v2515_v29, 0.7853982 }
 0x218   : > { %5614 = vperm.xlu1 %6135, %v5540_v17   ;;  %v1871_v16 = vmul.f32 %v1870_v22, %v1868_v43  ;;  %v1878_v31 = vmul.f32 %v1877_v30, %v1868_v43  ;;  %v2614_v24 = vadd.s32 536870912, %v2613_v3  ;;  %v2609_v17 = vadd.s32 %v7910_v26, %v7908_v28 }
 0x219   : > { %v7930_v4 = vsub.s32 32, %v2374_v19  ;;  %v2377_v14 = vshll.u32 %v6366_v42, %v2374_v19  ;;  %v2380_v54 = vshll.u32 %v6367_v44, %v2374_v19  ;;  %v2383_v60 = vshll.u32 %v6368_v46, %v2374_v19 }
 0x21a   : > { %v1872_v47 = vadd.f32 -0.4999988, %v1871_v16  ;;  %v1879_v49 = vadd.f32 -0.16666654, %v1878_v31  ;;  %v7937_v9 = vshrl.u32 %v2614_v24, 30  ;;  %v2386_v6 = vshll.u32 %v6369_v48, %v2374_v19 }
 0x21b   : > { %v2378_v58 = vshrl.u32 %v6367_v44, %v7930_v4  ;;  %v2381_v36 = vshrl.u32 %v6368_v46, %v7930_v4  ;;  %v2384_v5 = vshrl.u32 %v6369_v48, %v7930_v4  ;;  %v2387_v51 = vshrl.u32 %v6370_v50, %v7930_v4 }
 0x21c   : > { %v1873_v15 = vmul.f32 %v1872_v47, %v1868_v43  ;;  %v1880_v62 = vmul.f32 %v1879_v49, %v1868_v43  ;;  %v2616_v57 = vshll.u32 %v7937_v9, 30  ;;  %v2389_v41 = vshll.u32 %v6370_v50, %v2374_v19 }
 0x21d   : > { %v7958_v10 = vor.u32 %v2378_v58, %v2377_v14  ;;  %v7960_v43 = vor.u32 %v2381_v36, %v2380_v54  ;;  %v2390_v8 = vshrl.u32 %v6371_v59, %v7930_v4  ;;  %v2385_v35 = vor.u32 %v2384_v5, %v2383_v60 }
 0x21e   : > { %v1874_v45 = vadd.f32 1.0, %v1873_v15  ;;  %v1881_v1 = vadd.f32 1.0, %v1880_v62  ;;  %v7956_v55 = vsub.s32 %v2613_v3, %v2616_v57  ;;  %v2388_v61 = vor.u32 %v2387_v51, %v2386_v6 }
 0x21f   : > { %v2391_v63 = vor.u32 %v2390_v8, %v2389_v41  ;;  %vm2392_vm4 = vcmp.lt.s32.totalorder %v7950_v39, 1  ;;  %vm2395_vm5 = vcmp.lt.s32.totalorder %v7950_v39, 4  ;;  %vm2394_vm6 = vcmp.lt.s32.totalorder %v7950_v39, 3 }
 0x220   : > { %v1882_v53 = vmul.f32 %v1881_v1, %v1866_v56  ;;  %v1891_v13 = vxor.u32 2147483648, %v1874_v45  ;;  %vm2618_vm3 = vcmp.lt.s32.totalorder %v7956_v55, 0  ;;  %v2619_v27 = vsub.s32 0, %v7956_v55 }
 0x221   : > { %v2208_v22 = vand.u32 2139095040, %v7954_v52  ;;  %vm2393_vm8 = vcmp.lt.s32.totalorder %v7950_v39, 2  ;;  %v2400_v28 = vsel %vm2392_vm4, %v7958_v10, %v7960_v43  ;;  %v2401_v37 = vsel %vm2395_vm5, %v2388_v61, 920167782 }
 0x222   : > { %v1888_v2 = vxor.u32 2147483648, %v1882_v53  ;;  %v1892_v23 = vsel %vm1890_vm2, %v1891_v13, %v1882_v53  ;;  %v2620_v56 = vsel %vm2618_vm3, %v2619_v27, %v7956_v55  ;;  %v2404_v3 = vsel %vm2392_vm4, %v7960_v43, %v2385_v35 }
 0x223   : > { %v2621_v32 = vclz %v2620_v56  ;;  %v2405_v19 = vsel %vm2395_vm5, %v2391_v63, 1326507024  ;;  %v2402_v20 = vsel %vm2394_vm6, %v2385_v35, %v2401_v37  ;;  %v2409_v18 = vand.u32 65535, %v7974_v34 }
 0x224   : > { %v1889_v30 = vsel %vm1887_vm15, %v1874_v45, %v1888_v2  ;;  %v2406_v33 = vsel %vm2394_vm6, %v2388_v61, %v2405_v19  ;;  %v2410_v47 = vshrl.u32 %v7974_v34, 16  ;;  %v2403_v25 = vsel %vm2393_vm8, %v2400_v28, %v2402_v20 }
 0x225   : > { %v1893_v26 = vsel %vm1886_vm0, %v1889_v30, %v1892_v23  ;;  %v5998_v31 = vadd.s32 4294967294, %v2621_v32  ;;  %v2407_v14 = vsel %vm2393_vm8, %v2404_v3, %v2406_v33  ;;  %v2639_v36 = vsub.s32 4, %v7937_v9 }
 0x226   : > { %v1894_v16 = vsel %vm1883_vm1, nan, %v1893_v26  ;;  %v2411_v49 = vand.u32 65535, %v2407_v14  ;;  %v2412_v54 = vshrl.u32 %v2407_v14, 16  ;;  %v2433_v6 = vand.u32 65535, %v2403_v25 }
 0x227   : > { %v5314_v24 = vmul.f32 -2.0, %v1894_v16  ;;  %vm5999_vm9 = vcmp.lt.s32.totalorder %v5998_v31, 0  ;;  %v2205_v57 = vand.u32 2147483647, %v7954_v52  ;;  %v2376_v41 = vshrl.u32 %v6366_v42, %v7930_v4 }
 0x228   : > { %v2624_v58 = vsel %vm5999_vm9, 0, %v5998_v31  ;;  %v2413_v45 = vmul.u32 %v2411_v49, %v2409_v18  ;;  %v2209_v1 = vshrl.u32 %v2208_v22, 23  ;;  %v2414_v53 = vmul.u32 %v2412_v54, %v2409_v18 }
 0x229   : > { %v5355_v60 = vmul.f32 1.442695, %v5314_v24  ;;  %v2625_v62 = vsub.s32 32, %v2624_v58  ;;  %v2626_v5 = vshll.u32 %v7956_v55, %v2624_v58  ;;  %v2629_v51 = vsub.s32 4294967266, %v2624_v58 }
 0x22a   : > { %v2415_v13 = vmul.u32 %v2411_v49, %v2410_v47  ;;  %v2640_v29 = vsel %vm2517_vm7, %v2639_v36, %v7937_v9  ;;  %v2397_v55 = vsel %vm2395_vm5, %v2385_v35, 2102212464  ;;  %v2434_v61 = vshrl.u32 %v2403_v25, 16 }
 0x22b   : > { %6181 = vpow2.f32 %v5355_v60  ;;  %v2627_v12 = vshrl.u32 %v2609_v17, %v2625_v62  ;;  %v2630_v8 = vadd.s32 127, %v2629_v51  ;;  %v2437_v27 = vmul.u32 %v2433_v6, %v2410_v47 }
 0x22c   : > { %v2416_v23 = vmul.u32 %v2412_v54, %v2410_v47  ;;  %v2417_v56 = vshll.u32 %v2414_v53, 16  ;;  %v2418_v4 = vshrl.u32 %v2414_v53, 16  ;;  %v2419_v30 = vshll.u32 %v2415_v13, 16 }
 0x22d   : > { %v2628_v63 = vor.u32 %v2627_v12, %v2626_v5  ;;  %v2631_v2 = vshll.u32 %v2630_v8, 23  ;;  %v2435_v22 = vmul.u32 %v2433_v6, %v2409_v18  ;;  %v2436_v17 = vmul.u32 %v2434_v61, %v2409_v18 }
 0x22e   : > { %vm2421_vm11 = vc.u32 %v2413_v45, %v2417_v56  ;;  %v2423_v26 = vadd.s32 %v2417_v56, %v2413_v45  ;;  %v2438_v3 = vmul.u32 %v2434_v61, %v2410_v47  ;;  %v2441_v35 = vshll.u32 %v2437_v27, 16 }
 0x22f   : > { %v2632_v32 = vor.u32 4788187, %v2631_v2  ;;  %v2635_v28 = vcvt.s32.f32 %v2628_v63  ;;  %v2422_v9 = vsel %vm2421_vm11, 1, %v6365_v0  ;;  %v2439_v19 = vshll.u32 %v2436_v17, 16 }
 0x230   : > { %v2424_v20 = vadd.s32 %v2422_v9, %v2416_v23  ;;  %vm2425_vm12 = vc.u32 %v2423_v26, %v2419_v30  ;;  %v2642_v33 = vsel %vm8009_vm10, 0, %v2640_v29  ;;  %v2396_v47 = vsel %vm2392_vm4, %v2376_v41, %v7958_v10 }
 0x231   : > { %v6182_v37 = vpop.eup %6181  ;;  %v2633_v31 = vand.u32 2147483647, %v2632_v32  ;;  %v2426_v24 = vsel %vm2425_vm12, 1, %v6365_v0  ;;  %vm2443_vm13 = vc.u32 %v2435_v22, %v2439_v19  ;;  %v2445_v14 = vadd.s32 %v2439_v19, %v2435_v22 }
 0x232   : > { %v5411_v16 = vmul.f32 %v6182_v37, %v6794_v38  ;;  %v2428_v49 = vadd.s32 %v2426_v24, %v2424_v20  ;;  %v2444_v54 = vsel %vm2443_vm13, 1, %v6365_v0  ;;  %v2420_v60 = vshrl.u32 %v2415_v13, 16 }
 0x233   : > { %v2636_v25 = vmul.f32 %v2635_v28, %v2633_v31  ;;  %v2446_v58 = vadd.s32 %v2444_v54, %v2438_v3  ;;  %vm2447_vm14 = vc.u32 %v2445_v14, %v2441_v35  ;;  %v2440_v5 = vshrl.u32 %v2436_v17, 16 }
 0x234   : > { %v5443_v18 = vmul.f32 -0.5, %v5411_v16  ;;  %v2429_v62 = vadd.s32 %v2428_v49, %v2418_v4  ;;  %v2659_v51 = vadd.s32 3, %v2642_v33  ;;  %v2398_v45 = vsel %vm2394_vm6, %v7960_v43, %v2397_v55 }
 0x235   : > { %v2637_v6 = vxor.u32 2147483648, %v2636_v25  ;;  %v2448_v12 = vsel %vm2447_vm14, 1, %v6365_v0  ;;  %v5991_v8 = vadd.s32 4294967169, %v2209_v1  ;;  %v2442_v10 = vshrl.u32 %v2437_v27, 16 }
 0x236   : > { %v5484_v36 = vmul.f32 1.442695, %v5443_v18  ;;  %v2450_v41 = vadd.s32 %v2448_v12, %v2446_v58  ;;  %v8040_v29 = vadd.s32 %v2429_v62, %v2420_v60  ;;  %v8042_v61 = vadd.s32 %v2445_v14, %v2441_v35  ;;  %v233_v62 = vld [vmem:[%s6465_s10 + $0x88] sm:$0xff] }
 0x237   : > { %v2638_v53 = vsel %vm2517_vm7, %v2637_v6, %v2636_v25  ;;  %v2215_v63 = vadd.s32 1, %v5991_v8  ;;  %v2399_v43 = vsel %vm2393_vm8, %v2396_v47, %v2398_v45  ;;  %v8046_v55 = vand.u32 3, %v2659_v51  ;;  %v200_v6 = vld [vmem:[%s6458_s7 + $0x88] sm:$0xff] }
 0x238   : > { %6183 = vpow2.f32 %v5484_v36  ;;  %v2641_v13 = vsel %vm8009_vm10, %v7734_v21, %v2638_v53  ;;  %v2451_v1 = vadd.s32 %v2450_v41, %v2440_v5  ;;  %v2453_v15 = vmul.u32 %v7974_v34, %v2399_v43 }
 0x239   : > { %v2643_v2 = vmul.f32 %v2641_v13, %v2641_v13  ;;  %vm2216_vm15 = vcmp.gt.s32.totalorder %v2215_v63, 0  ;;  %vm2455_vm0 = vc.u32 %v8040_v29, %v8042_v61  ;;  %v2212_v30 = vand.u32 8388607, %v2205_v57 }
 0x23a   : > { %v2452_v56 = vadd.s32 %v2451_v1, %v2442_v10  ;;  %v2217_v4 = vsel %vm2216_vm15, %v2215_v63, 0  ;;  %vm2665_vm1 = vcmp.eq.s32.totalorder %v8046_v55, 2  ;;  %vm2662_vm2 = vcmp.eq.s32.totalorder %v8046_v55, 0 }
 0x23b   : > { %v2644_v23 = vmul.f32 -0.001358992, %v2643_v2  ;;  %v2651_v27 = vmul.f32 -0.00019511016, %v2643_v2  ;;  %v2219_v22 = vand.u32 31, %v2217_v4  ;;  %v2213_v35 = vor.u32 8388608, %v2212_v30 }
 0x23c   : > { %v2456_v28 = vadd.s32 1, %v2452_v56  ;;  %vm2661_vm3 = vcmp.lt.s32.totalorder %v8046_v55, 2  ;;  %v8064_v25 = vshrl.u32 %v2217_v4, 5  ;;  %v265_v43 = vsub.f32 %v200_v6, %v233_v62 }
 0x23d   : > { %v2645_v39 = vadd.f32 0.041655596, %v2644_v23  ;;  %v2652_v32 = vadd.f32 0.008332121, %v2651_v27  ;;  %v8053_v37 = vsub.s32 32, %v2219_v22  ;;  %v2222_v31 = vshll.u32 %v6366_v42, %v2219_v22 }
 0x23e   : > { %v6184_v17 = vpop.eup %6183  ;;  %v2457_v19 = vsel %vm2455_vm0, %v2456_v28, %v2452_v56  ;;  %v2225_v24 = vshll.u32 %v6367_v44, %v2219_v22  ;;  %v2228_v49 = vshll.u32 %v6368_v46, %v2219_v22  ;;  %v2231_v54 = vshll.u32 %v6369_v48, %v2219_v22 }
 0x23f   : > { %v5539_v26 = vmul.f32 %v6184_v17, %v5411_v16  ;;  %v2646_v9 = vmul.f32 %v2645_v39, %v2643_v2  ;;  %v2653_v3 = vmul.f32 %v2652_v32, %v2643_v2  ;;  %v2458_v34 = vadd.s32 %v2457_v19, %v2453_v15 }
 0x240   : > { %v2223_v20 = vshrl.u32 %v6367_v44, %v8053_v37  ;;  %v2226_v14 = vshrl.u32 %v6368_v46, %v8053_v37  ;;  %v2229_v58 = vshrl.u32 %v6369_v48, %v8053_v37  ;;  %v2232_v36 = vshrl.u32 %v6370_v50, %v8053_v37 }
 0x241   : > { %5609 = vperm.xlu0 %6134, %v5539_v26   ;;  %v2647_v16 = vadd.f32 -0.4999988, %v2646_v9  ;;  %v2654_v33 = vadd.f32 -0.16666654, %v2653_v3  ;;  %v2459_v18 = vadd.s32 536870912, %v2458_v34  ;;  %v2234_v45 = vshll.u32 %v6370_v50, %v2219_v22 }
 0x242   : > { %v2224_v51 = vor.u32 %v2223_v20, %v2222_v31  ;;  %v2235_v12 = vshrl.u32 %v6371_v59, %v8053_v37  ;;  %v8079_v10 = vor.u32 %v2226_v14, %v2225_v24  ;;  %v2233_v41 = vor.u32 %v2232_v36, %v2231_v54 }
 0x243   : > { %v2648_v47 = vmul.f32 %v2647_v16, %v2643_v2  ;;  %v2655_v60 = vmul.f32 %v2654_v33, %v2643_v2  ;;  %v8074_v5 = vshrl.u32 %v2459_v18, 30  ;;  %vm2237_vm4 = vcmp.lt.s32.totalorder %v8064_v25, 1 }
 0x244   : > { %v8083_v2 = vshll.u32 %v2213_v35, 8  ;;  %v2230_v27 = vor.u32 %v2229_v58, %v2228_v49  ;;  %vm2240_vm5 = vcmp.lt.s32.totalorder %v8064_v25, 4  ;;  %v2236_v4 = vor.u32 %v2235_v12, %v2234_v45 }
 0x245   : > { %v2649_v8 = vadd.f32 1.0, %v2648_v47  ;;  %v2656_v53 = vadd.f32 1.0, %v2655_v60  ;;  %v2461_v63 = vshll.u32 %v8074_v5, 30  ;;  %vm2238_vm6 = vcmp.lt.s32.totalorder %v8064_v25, 2 }
 0x246   : > { %vm2239_vm7 = vcmp.lt.s32.totalorder %v8064_v25, 3  ;;  %v2245_v22 = vsel %vm2237_vm4, %v2224_v51, %v8079_v10  ;;  %vm2658_vm8 = vweird.f32 %v7734_v21  ;;  %v297_v39 = vand.u32 2147483647, %v265_v43 }
 0x247   : > { %v2657_v1 = vmul.f32 %v2656_v53, %v2641_v13  ;;  %v2666_v23 = vxor.u32 2147483648, %v2649_v8  ;;  %v2462_v56 = vsub.s32 %v2458_v34, %v2461_v63  ;;  %v2246_v13 = vsel %vm2240_vm5, %v2233_v41, 920167782 }
 0x248   : > { %v2247_v28 = vsel %vm2239_vm7, %v2230_v27, %v2246_v13  ;;  %v2249_v26 = vsel %vm2237_vm4, %v8079_v10, %v2230_v27  ;;  %v2254_v9 = vand.u32 65535, %v8083_v2  ;;  %v2250_v34 = vsel %vm2240_vm5, %v2236_v4, 1326507024 }
 0x249   : > { %v2663_v15 = vxor.u32 2147483648, %v2657_v1  ;;  %v2667_v30 = vsel %vm2665_vm1, %v2666_v23, %v2657_v1  ;;  %vm2463_vm9 = vcmp.lt.s32.totalorder %v2462_v56, 0  ;;  %v2464_v17 = vsub.s32 0, %v2462_v56 }
 0x24a   : > { %v2248_v21 = vsel %vm2238_vm6, %v2245_v22, %v2247_v28  ;;  %v2221_v20 = vshrl.u32 %v6366_v42, %v8053_v37  ;;  %v2251_v16 = vsel %vm2239_vm7, %v2233_v41, %v2250_v34  ;;  %v2255_v24 = vshrl.u32 %v8083_v2, 16 }
 0x24b   : > { %v2664_v32 = vsel %vm2662_vm2, %v2649_v8, %v2663_v15  ;;  %v2465_v19 = vsel %vm2463_vm9, %v2464_v17, %v2462_v56  ;;  %v2252_v55 = vsel %vm2238_vm6, %v2249_v26, %v2251_v16  ;;  %v2279_v54 = vshrl.u32 %v2248_v21, 16 }
 0x24c   : > { %v2668_v3 = vsel %vm2661_vm3, %v2664_v32, %v2667_v30  ;;  %v2466_v31 = vclz %v2465_v19  ;;  %v2256_v18 = vand.u32 65535, %v2252_v55  ;;  %v2257_v49 = vshrl.u32 %v2252_v55, 16 }
 0x24d   : > { %v2669_v35 = vsel %vm2658_vm8, nan, %v2668_v3  ;;  %v2454_v60 = vadd.s32 %v8042_v61, %v8040_v29  ;;  %v2278_v58 = vand.u32 65535, %v2248_v21  ;;  %v8120_v37 = vmul.f32 %v6472_v11, %v297_v39 }
 0x24e   : > { %v5319_v33 = vmul.f32 -2.0, %v2669_v35  ;;  %v5995_v14 = vadd.s32 4294967294, %v2466_v31  ;;  %vm2362_vm10 = vcmp.lt.s32.totalorder %v7899_v7, 0  ;;  %v2241_v36 = vsel %vm2237_vm4, %v2221_v20, %v2224_v51 }
 0x24f   : > { %v2242_v6 = vsel %vm2240_vm5, %v2230_v27, 2102212464  ;;  %v2259_v62 = vmul.u32 %v2257_v49, %v2254_v9  ;;  %v2258_v12 = vmul.u32 %v2256_v18, %v2254_v9  ;;  %v2260_v8 = vmul.u32 %v2256_v18, %v2255_v24 }
 0x250   : > { %v5365_v47 = vmul.f32 1.442695, %v5319_v33  ;;  %vm5996_vm11 = vcmp.lt.s32.totalorder %v5995_v14, 0  ;;  %v2281_v41 = vmul.u32 %v2279_v54, %v2254_v9  ;;  %v2484_v63 = vsub.s32 4, %v8074_v5 }
 0x251   : > { %v2469_v45 = vsel %vm5996_vm11, 0, %v5995_v14  ;;  %v2261_v43 = vmul.u32 %v2257_v49, %v2255_v24  ;;  %v2262_v1 = vshll.u32 %v2259_v62, 16  ;;  %v2282_v23 = vmul.u32 %v2278_v58, %v2255_v24 }
 0x252   : > { %6185 = vpow2.f32 %v5365_v47  ;;  %v2470_v53 = vsub.s32 32, %v2469_v45  ;;  %v2471_v29 = vshll.u32 %v2462_v56, %v2469_v45  ;;  %v2474_v61 = vsub.s32 4294967266, %v2469_v45 }
 0x253   : > { %vm8130_vm12 = vcmp.le.f32.partialorder %v2360_v40, 0.7853982  ;;  %v2243_v15 = vsel %vm2239_vm7, %v8079_v10, %v2242_v6  ;;  %v2264_v56 = vshll.u32 %v2260_v8, 16  ;;  %v2263_v30 = vshrl.u32 %v2259_v62, 16 }
 0x254   : > { %v2472_v27 = vshrl.u32 %v2454_v60, %v2470_v53  ;;  %v2475_v4 = vadd.s32 127, %v2474_v61  ;;  %vm2266_vm13 = vc.u32 %v2258_v12, %v2262_v1  ;;  %v2268_v22 = vadd.s32 %v2262_v1, %v2258_v12 }
 0x255   : > { %v2280_v13 = vmul.u32 %v2278_v58, %v2254_v9  ;;  %v2267_v32 = vsel %vm2266_vm13, 1, %v6365_v0  ;;  %v2284_v28 = vshll.u32 %v2281_v41, 16  ;;  %v2283_v3 = vmul.u32 %v2279_v54, %v2255_v24 }
 0x256   : > { %v2473_v17 = vor.u32 %v2472_v27, %v2471_v29  ;;  %v2476_v39 = vshll.u32 %v2475_v4, 23  ;;  %v2269_v26 = vadd.s32 %v2267_v32, %v2261_v43  ;;  %vm2270_vm14 = vc.u32 %v2268_v22, %v2264_v56 }
 0x257   : > { %v2286_v19 = vshll.u32 %v2282_v23, 16  ;;  %v2271_v10 = vsel %vm2270_vm14, 1, %v6365_v0  ;;  %v2485_v9 = vsel %vm2362_vm10, %v2484_v63, %v8074_v5  ;;  %vm2288_vm15 = vc.u32 %v2280_v13, %v2284_v28 }
 0x258   : > { %v6186_v40 = vpop.eup %6185  ;;  %v2477_v34 = vor.u32 4788187, %v2476_v39  ;;  %v2480_v35 = vcvt.s32.f32 %v2473_v17  ;;  %v2273_v31 = vadd.s32 %v2271_v10, %v2269_v26  ;;  %v2290_v20 = vadd.s32 %v2284_v28, %v2280_v13 }
 0x259   : > { %v5416_v21 = vmul.f32 %v6186_v40, %v6794_v38  ;;  %v2265_v55 = vshrl.u32 %v2260_v8, 16  ;;  %v2289_v14 = vsel %vm2288_vm15, 1, %v6365_v0  ;;  %v2285_v18 = vshrl.u32 %v2281_v41, 16 }
 0x25a   : > { %v2478_v33 = vand.u32 2147483647, %v2477_v34  ;;  %v2274_v24 = vadd.s32 %v2273_v31, %v2263_v30  ;;  %v2291_v49 = vadd.s32 %v2289_v14, %v2283_v3  ;;  %vm2292_vm0 = vc.u32 %v2290_v20, %v2286_v19 }
 0x25b   : > { %v5448_v16 = vmul.f32 -0.5, %v5416_v21  ;;  %v2293_v60 = vsel %vm2292_vm0, 1, %v6365_v0  ;;  %v2983_v58 = vand.u32 2139095040, %v8120_v37  ;;  %v2487_v5 = vsel %vm8130_vm12, 0, %v2485_v9 }
 0x25c   : > { %v2481_v47 = vmul.f32 %v2480_v35, %v2478_v33  ;;  %v2287_v6 = vshrl.u32 %v2282_v23, 16  ;;  %v8148_v62 = vadd.s32 %v2290_v20, %v2286_v19  ;;  %v2295_v45 = vadd.s32 %v2293_v60, %v2291_v49 }
 0x25d   : > { %v5494_v54 = vmul.f32 1.442695, %v5448_v16  ;;  %v8150_v8 = vadd.s32 %v2274_v24, %v2265_v55  ;;  %v2984_v53 = vshrl.u32 %v2983_v58, 23  ;;  %v2244_v29 = vsel %vm2238_vm6, %v2241_v36, %v2243_v15  ;;  %v199_v36 = vld [vmem:[%s6458_s7 + $0x80] sm:$0xff] }
 0x25e   : > { %v2482_v12 = vxor.u32 2147483648, %v2481_v47  ;;  %v2296_v61 = vadd.s32 %v2295_v45, %v2285_v18  ;;  %v2980_v41 = vand.u32 2147483647, %v8120_v37  ;;  %v2504_v43 = vadd.s32 3, %v2487_v5  ;;  %v232_v15 = vld [vmem:[%s6465_s10 + $0x80] sm:$0xff] }
 0x25f   : > { %6187 = vpow2.f32 %v5494_v54  ;;  %v6006_v1 = vadd.s32 4294967169, %v2984_v53  ;;  %v2298_v56 = vmul.u32 %v8083_v2, %v2244_v29  ;;  %vm2300_vm1 = vc.u32 %v8150_v8, %v8148_v62 }
 0x260   : > { %v2483_v63 = vsel %vm2362_vm10, %v2482_v12, %v2481_v47  ;;  %v2297_v27 = vadd.s32 %v2296_v61, %v2287_v6  ;;  %v2987_v22 = vand.u32 8388607, %v2980_v41  ;;  %v8167_v32 = vand.u32 3, %v2504_v43 }
 0x261   : > { %v2486_v23 = vsel %vm8130_vm12, %v7899_v7, %v2483_v63  ;;  %v2990_v25 = vadd.s32 1, %v6006_v1  ;;  %v264_v2 = vsub.f32 %v199_v36, %v232_v15  ;;  %vm2503_vm6 = vweird.f32 %v7899_v7 }
 0x262   : > { %v2488_v4 = vmul.f32 %v2486_v23, %v2486_v23  ;;  %v2301_v30 = vadd.s32 1, %v2297_v27  ;;  %vm2507_vm3 = vcmp.eq.s32.totalorder %v8167_v32, 0  ;;  %vm2510_vm4 = vcmp.eq.s32.totalorder %v8167_v32, 2 }
 0x263   : > { %vm2991_vm2 = vcmp.gt.s32.totalorder %v2990_v25, 0  ;;  %v2988_v31 = vor.u32 8388608, %v2987_v22  ;;  %v296_v16 = vand.u32 2147483647, %v264_v2  ;;  %vm2506_vm5 = vcmp.lt.s32.totalorder %v8167_v32, 2 }
 0x264   : > { %v2489_v17 = vmul.f32 -0.001358992, %v2488_v4  ;;  %v2496_v39 = vmul.f32 -0.00019511016, %v2488_v4  ;;  %v2302_v28 = vsel %vm2300_vm1, %v2301_v30, %v2297_v27  ;;  %v2992_v40 = vsel %vm2991_vm2, %v2990_v25, 0 }
 0x265   : > { %v6188_v13 = vpop.eup %6187  ;;  %v2303_v19 = vadd.s32 %v2302_v28, %v2298_v56  ;;  %v2994_v34 = vand.u32 31, %v2992_v40  ;;  %v8182_v6 = vshrl.u32 %v2992_v40, 5  ;;  %v8186_v53 = vshll.u32 %v2988_v31, 8 }
 0x266   : > { %v5544_v51 = vmul.f32 %v6188_v13, %v5416_v21  ;;  %v2490_v26 = vadd.f32 0.041655596, %v2489_v17  ;;  %v2497_v3 = vadd.f32 0.008332121, %v2496_v39  ;;  %v8193_v22 = vmul.f32 %v6472_v11, %v296_v16 }
 0x267   : > { %v2304_v9 = vadd.s32 536870912, %v2303_v19  ;;  %v2995_v20 = vsub.s32 32, %v2994_v34  ;;  %v2997_v14 = vshll.u32 %v6366_v42, %v2994_v34  ;;  %v3000_v18 = vshll.u32 %v6367_v44, %v2994_v34 }
 0x268   : > { %5634 = vperm.xlu2 %6136, %v5544_v51   ;;  %v2491_v35 = vmul.f32 %v2490_v26, %v2488_v4  ;;  %v2498_v10 = vmul.f32 %v2497_v3, %v2488_v4  ;;  %v3006_v54 = vshll.u32 %v6369_v48, %v2994_v34  ;;  %v3003_v45 = vshll.u32 %v6368_v46, %v2994_v34 }
 0x269   : > { %v8172_v55 = vshrl.u32 %v2304_v9, 30  ;;  %v2998_v24 = vshrl.u32 %v6367_v44, %v2995_v20  ;;  %v3001_v49 = vshrl.u32 %v6368_v46, %v2995_v20  ;;  %v3007_v5 = vshrl.u32 %v6370_v50, %v2995_v20 }
 0x26a   : > { %v2492_v33 = vadd.f32 -0.4999988, %v2491_v35  ;;  %v2499_v21 = vadd.f32 -0.16666654, %v2498_v10  ;;  %v3004_v12 = vshrl.u32 %v6369_v48, %v2995_v20  ;;  %v3010_v56 = vshrl.u32 %v6371_v59, %v2995_v20 }
 0x26b   : > { %v2306_v58 = vshll.u32 %v8172_v55, 30  ;;  %v2999_v43 = vor.u32 %v2998_v24, %v2997_v14  ;;  %v3002_v1 = vor.u32 %v3001_v49, %v3000_v18  ;;  %v3008_v27 = vor.u32 %v3007_v5, %v3006_v54 }
 0x26c   : > { %v2493_v47 = vmul.f32 %v2492_v33, %v2488_v4  ;;  %v2500_v60 = vmul.f32 %v2499_v21, %v2488_v4  ;;  %v3009_v4 = vshll.u32 %v6370_v50, %v2994_v34  ;;  %v3005_v30 = vor.u32 %v3004_v12, %v3003_v45 }
 0x26d   : > { %v2307_v63 = vsub.s32 %v2303_v19, %v2306_v58  ;;  %vm3012_vm8 = vcmp.lt.s32.totalorder %v8182_v6, 1  ;;  %vm3015_vm9 = vcmp.lt.s32.totalorder %v8182_v6, 4  ;;  %vm3014_vm10 = vcmp.lt.s32.totalorder %v8182_v6, 3 }
 0x26e   : > { %v2494_v29 = vadd.f32 1.0, %v2493_v47  ;;  %v2501_v61 = vadd.f32 1.0, %v2500_v60  ;;  %vm2207_vm11 = vcmp.lt.s32.totalorder %v7954_v52, 0  ;;  %v3011_v28 = vor.u32 %v3010_v56, %v3009_v4 }
 0x26f   : > { %vm2308_vm7 = vcmp.lt.s32.totalorder %v2307_v63, 0  ;;  %v2309_v15 = vsub.s32 0, %v2307_v63  ;;  %v3030_v40 = vshrl.u32 %v8186_v53, 16  ;;  %vm3013_vm12 = vcmp.lt.s32.totalorder %v8182_v6, 2 }
 0x270   : > { %v2502_v25 = vmul.f32 %v2501_v61, %v2486_v23  ;;  %v2511_v36 = vxor.u32 2147483648, %v2494_v29  ;;  %v2299_v23 = vadd.s32 %v8148_v62, %v8150_v8  ;;  %v3020_v26 = vsel %vm3012_vm8, %v2999_v43, %v3002_v1 }
 0x271   : > { %v2310_v39 = vsel %vm2308_vm7, %v2309_v15, %v2307_v63  ;;  %v3021_v3 = vsel %vm3015_vm9, %v3008_v27, 920167782  ;;  %v2828_v8 = vand.u32 2139095040, %v8193_v22  ;;  %vm8218_vm13 = vcmp.le.f32.partialorder %v2205_v57, 0.7853982 }
 0x272   : > { %v2508_v13 = vxor.u32 2147483648, %v2502_v25  ;;  %v2512_v17 = vsel %vm2510_vm4, %v2511_v36, %v2502_v25  ;;  %v2311_v51 = vclz %v2310_v39  ;;  %v3022_v62 = vsel %vm3014_vm10, %v3005_v30, %v3021_v3 }
 0x273   : > { %v2329_v9 = vsub.s32 4, %v8172_v55  ;;  %v2996_v32 = vshrl.u32 %v6366_v42, %v2995_v20  ;;  %v3024_v31 = vsel %vm3012_vm8, %v3002_v1, %v3005_v30  ;;  %v3023_v33 = vsel %vm3013_vm12, %v3020_v26, %v3022_v62 }
 0x274   : > { %v2509_v2 = vsel %vm2507_vm3, %v2494_v29, %v2508_v13  ;;  %v5992_v34 = vadd.s32 4294967294, %v2311_v51  ;;  %v3025_v7 = vsel %vm3015_vm9, %v3011_v28, 1326507024  ;;  %v3017_v57 = vsel %vm3015_vm9, %v3005_v30, 2102212464 }
 0x275   : > { %v2513_v19 = vsel %vm2506_vm5, %v2509_v2, %v2512_v17  ;;  %v3026_v14 = vsel %vm3014_vm10, %v3008_v27, %v3025_v7  ;;  %v3053_v24 = vand.u32 65535, %v3023_v33  ;;  %v8236_v47 = vsel %vm3012_vm8, %v2996_v32, %v2999_v43 }
 0x276   : > { %v2514_v35 = vsel %vm2503_vm6, nan, %v2513_v19  ;;  %vm5993_vm14 = vcmp.lt.s32.totalorder %v5992_v34, 0  ;;  %v3027_v60 = vsel %vm3013_vm12, %v3024_v31, %v3026_v14  ;;  %v3029_v58 = vand.u32 65535, %v8186_v53 }
 0x277   : > { %v5318_v16 = vmul.f32 -2.0, %v2514_v35  ;;  %v2314_v21 = vsel %vm5993_vm14, 0, %v5992_v34  ;;  %v2829_v5 = vshrl.u32 %v2828_v8, 23  ;;  %v3031_v29 = vand.u32 65535, %v3027_v60 }
 0x278   : > { %v2315_v18 = vsub.s32 32, %v2314_v21  ;;  %v2316_v49 = vshll.u32 %v2307_v63, %v2314_v21  ;;  %v2319_v54 = vsub.s32 4294967266, %v2314_v21  ;;  %v2330_v61 = vsel %vm2207_vm11, %v2329_v9, %v8172_v55 }
 0x279   : > { %v5363_v20 = vmul.f32 1.442695, %v5318_v16  ;;  %v3018_v63 = vsel %vm3014_vm10, %v3002_v1, %v3017_v57  ;;  %v3032_v27 = vshrl.u32 %v3027_v60, 16  ;;  %v3054_v43 = vshrl.u32 %v3023_v33, 16 }
 0x27a   : > { %v2317_v45 = vshrl.u32 %v2299_v23, %v2315_v18  ;;  %v2320_v12 = vadd.s32 127, %v2319_v54  ;;  %v3035_v25 = vmul.u32 %v3031_v29, %v3030_v40  ;;  %v3057_v36 = vmul.u32 %v3053_v24, %v3030_v40 }
 0x27b   : > { %6189 = vpow2.f32 %v5363_v20  ;;  %v3033_v15 = vmul.u32 %v3031_v29, %v3029_v58  ;;  %v3034_v30 = vmul.u32 %v3032_v27, %v3029_v58  ;;  %v3055_v13 = vmul.u32 %v3053_v24, %v3029_v58 }
 0x27c   : > { %v2318_v4 = vor.u32 %v2317_v45, %v2316_v49  ;;  %v2321_v56 = vshll.u32 %v2320_v12, 23  ;;  %v3056_v17 = vmul.u32 %v3054_v43, %v3029_v58  ;;  %v2332_v51 = vsel %vm8218_vm13, 0, %v2330_v61 }
 0x27d   : > { %v3036_v28 = vmul.u32 %v3032_v27, %v3030_v40  ;;  %v3037_v55 = vshll.u32 %v3034_v30, 16  ;;  %v3039_v2 = vshll.u32 %v3035_v25, 16  ;;  %v3058_v26 = vmul.u32 %v3054_v43, %v3030_v40 }
 0x27e   : > { %v2322_v39 = vor.u32 4788187, %v2321_v56  ;;  %v2325_v23 = vcvt.s32.f32 %v2318_v4  ;;  %v3059_v1 = vshll.u32 %v3056_v17, 16  ;;  %v3038_v34 = vshrl.u32 %v3034_v30, 16 }
 0x27f   : > { %v3040_v62 = vshrl.u32 %v3035_v25, 16  ;;  %v3061_v8 = vshll.u32 %v3057_v36, 16  ;;  %vm3041_vm15 = vc.u32 %v3033_v15, %v3037_v55  ;;  %v3043_v9 = vadd.s32 %v3037_v55, %v3033_v15 }
 0x280   : > { %v2323_v19 = vand.u32 2147483647, %v2322_v39  ;;  %vm3063_vm0 = vc.u32 %v3055_v13, %v3059_v1  ;;  %v3042_v31 = vsel %vm3041_vm15, 1, %v6365_v0  ;;  %v3065_v33 = vadd.s32 %v3059_v1, %v3055_v13 }
 0x281   : > { %v6190_v3 = vpop.eup %6189  ;;  %v3064_v16 = vsel %vm3063_vm0, 1, %v6365_v0  ;;  %v3044_v21 = vadd.s32 %v3042_v31, %v3036_v28  ;;  %vm3045_vm1 = vc.u32 %v3043_v9, %v3039_v2  ;;  %v3060_v24 = vshrl.u32 %v3056_v17, 16 }
 0x282   : > { %v5415_v35 = vmul.f32 %v6190_v3, %v6794_v38  ;;  %v2326_v32 = vmul.f32 %v2325_v23, %v2323_v19  ;;  %v3066_v40 = vadd.s32 %v3064_v16, %v3058_v26  ;;  %v3046_v14 = vsel %vm3045_vm1, 1, %v6365_v0 }
 0x283   : > { %vm3067_vm2 = vc.u32 %v3065_v33, %v3061_v8  ;;  %v3048_v18 = vadd.s32 %v3046_v14, %v3044_v21  ;;  %v6003_v54 = vadd.s32 4294967169, %v2829_v5  ;;  %v3062_v58 = vshrl.u32 %v3057_v36, 16 }
 0x284   : > { %v5447_v7 = vmul.f32 -0.5, %v5415_v35  ;;  %v2327_v57 = vxor.u32 2147483648, %v2326_v32  ;;  %v3068_v49 = vsel %vm3067_vm2, 1, %v6365_v0  ;;  %v8255_v45 = vadd.s32 %v3065_v33, %v3061_v8 }
 0x285   : > { %v3070_v12 = vadd.s32 %v3068_v49, %v3066_v40  ;;  %v3049_v61 = vadd.s32 %v3048_v18, %v3038_v34  ;;  %v2835_v27 = vadd.s32 1, %v6003_v54  ;;  %v2349_v4 = vadd.s32 3, %v2332_v51 }
 0x286   : > { %v5492_v20 = vmul.f32 1.442695, %v5447_v7  ;;  %v2328_v60 = vsel %vm2207_vm11, %v2327_v57, %v2326_v32  ;;  %v3019_v5 = vsel %vm3013_vm12, %v8236_v47, %v3018_v63  ;;  %v2825_v10 = vand.u32 2147483647, %v8193_v22 }
 0x287   : > { %v2331_v29 = vsel %vm8218_vm13, %v7954_v52, %v2328_v60  ;;  %v3071_v56 = vadd.s32 %v3070_v12, %v3060_v24  ;;  %v8263_v25 = vadd.s32 %v3049_v61, %v3040_v62  ;;  %vm2836_vm3 = vcmp.gt.s32.totalorder %v2835_v27, 0 }
 0x288   : > { %6191 = vpow2.f32 %v5492_v20  ;;  %v2333_v43 = vmul.f32 %v2331_v29, %v2331_v29  ;;  %v2837_v13 = vsel %vm2836_vm3, %v2835_v27, 0  ;;  %v3073_v17 = vmul.u32 %v8186_v53, %v3019_v5 }
 0x289   : > { %v3072_v30 = vadd.s32 %v3071_v56, %v3062_v58  ;;  %vm3075_vm4 = vc.u32 %v8263_v25, %v8255_v45  ;;  %v2839_v39 = vand.u32 31, %v2837_v13  ;;  %v2350_v6 = vand.u32 3, %v2349_v4 }
 0x28a   : > { %v2334_v36 = vmul.f32 -0.001358992, %v2333_v43  ;;  %v2341_v15 = vmul.f32 -0.00019511016, %v2333_v43  ;;  %v2832_v53 = vand.u32 8388607, %v2825_v10  ;;  %vm2348_vm11 = vweird.f32 %v7954_v52 }
 0x28b   : > { %v3076_v47 = vadd.s32 1, %v3072_v30  ;;  %v8269_v28 = vsub.s32 32, %v2839_v39  ;;  %v8273_v19 = vshrl.u32 %v2837_v13, 5  ;;  %v2842_v34 = vshll.u32 %v6366_v42, %v2839_v39 }
 0x28c   : > { %v2335_v23 = vadd.f32 0.041655596, %v2334_v36  ;;  %v2342_v51 = vadd.f32 0.008332121, %v2341_v15  ;;  %vm2351_vm5 = vcmp.lt.s32.totalorder %v2350_v6, 2  ;;  %v2845_v9 = vshll.u32 %v6367_v44, %v2839_v39 }
 0x28d   : > { %v3077_v1 = vsel %vm3075_vm4, %v3076_v47, %v3072_v30  ;;  %v2848_v32 = vshll.u32 %v6368_v46, %v2839_v39  ;;  %v2843_v31 = vshrl.u32 %v6367_v44, %v8269_v28  ;;  %v2846_v16 = vshrl.u32 %v6368_v46, %v8269_v28 }
 0x28e   : > { %v6192_v63 = vpop.eup %6191  ;;  %v2336_v2 = vmul.f32 %v2335_v23, %v2333_v43  ;;  %v2343_v26 = vmul.f32 %v2342_v51, %v2333_v43  ;;  %v3078_v3 = vadd.s32 %v3077_v1, %v3073_v17  ;;  %v2851_v33 = vshll.u32 %v6369_v48, %v2839_v39  ;;  %v198_v17 = vld [vmem:[%s6458_s7 + $0x78] sm:$0xff] }
 0x28f   : > { %v5543_v55 = vmul.f32 %v6192_v63, %v5415_v35  ;;  %v2849_v40 = vshrl.u32 %v6369_v48, %v8269_v28  ;;  %v2852_v57 = vshrl.u32 %v6370_v50, %v8269_v28  ;;  %vm2352_vm6 = vcmp.eq.s32.totalorder %v2350_v6, 0 }
 0x290   : > { %v2337_v62 = vadd.f32 -0.4999988, %v2336_v2  ;;  %v2344_v8 = vadd.f32 -0.16666654, %v2343_v26  ;;  %v3079_v35 = vadd.s32 536870912, %v3078_v3  ;;  %v2854_v24 = vshll.u32 %v6370_v50, %v2839_v39 }
 0x291   : > { %5629 = vperm.xlu1 %6135, %v5543_v55   ;;  %v2855_v20 = vshrl.u32 %v6371_v59, %v8269_v28  ;;  %v2833_v54 = vor.u32 8388608, %v2832_v53  ;;  %v2853_v60 = vor.u32 %v2852_v57, %v2851_v33  ;;  %vm2355_vm7 = vcmp.eq.s32.totalorder %v2350_v6, 2 }
 0x292   : > { %v2338_v7 = vmul.f32 %v2337_v62, %v2333_v43  ;;  %v2345_v21 = vmul.f32 %v2344_v8, %v2333_v43  ;;  %v8287_v14 = vshrl.u32 %v3079_v35, 30  ;;  %v2844_v12 = vor.u32 %v2843_v31, %v2842_v34 }
 0x293   : > { %v8293_v61 = vor.u32 %v2846_v16, %v2845_v9  ;;  %v2850_v4 = vor.u32 %v2849_v40, %v2848_v32  ;;  %vm2860_vm8 = vcmp.lt.s32.totalorder %v8273_v19, 4  ;;  %v2856_v56 = vor.u32 %v2855_v20, %v2854_v24 }
 0x294   : > { %v2339_v18 = vadd.f32 1.0, %v2338_v7  ;;  %v2346_v49 = vadd.f32 1.0, %v2345_v21  ;;  %v3081_v58 = vshll.u32 %v8287_v14, 30  ;;  %vm2857_vm9 = vcmp.lt.s32.totalorder %v8273_v19, 1 }
 0x295   : > { %vm2859_vm10 = vcmp.lt.s32.totalorder %v8273_v19, 3  ;;  %v2866_v30 = vsel %vm2860_vm8, %v2853_v60, 920167782  ;;  %v8302_v13 = vshll.u32 %v2833_v54, 8  ;;  %vm2858_vm13 = vcmp.lt.s32.totalorder %v8273_v19, 2 }
 0x296   : > { %v2347_v27 = vmul.f32 %v2346_v49, %v2331_v29  ;;  %v2356_v43 = vxor.u32 2147483648, %v2339_v18  ;;  %v8296_v5 = vsub.s32 %v3078_v3, %v3081_v58  ;;  %v231_v29 = vld [vmem:[%s6465_s10 + $0x78] sm:$0xff]  ;;  %v2865_v51 = vsel %vm2857_vm9, %v2844_v12, %v8293_v61 }
 0x297   : > { %v2867_v47 = vsel %vm2859_vm10, %v2850_v4, %v2866_v30  ;;  %v2869_v63 = vsel %vm2857_vm9, %v8293_v61, %v2850_v4  ;;  %v2870_v2 = vsel %vm2860_vm8, %v2856_v56, 1326507024  ;;  %v263_v26 = vsub.f32 %v198_v17, %v231_v29 }
 0x298   : > { %v2353_v36 = vxor.u32 2147483648, %v2347_v27  ;;  %v2357_v15 = vsel %vm2355_vm7, %v2356_v43, %v2347_v27  ;;  %vm3083_vm12 = vcmp.lt.s32.totalorder %v8296_v5, 0  ;;  %v3084_v39 = vsub.s32 0, %v8296_v5 }
 0x299   : > { %v2871_v53 = vsel %vm2859_vm10, %v2853_v60, %v2870_v2  ;;  %v2874_v34 = vand.u32 65535, %v8302_v13  ;;  %v2868_v8 = vsel %vm2858_vm13, %v2865_v51, %v2867_v47  ;;  %v2875_v9 = vshrl.u32 %v8302_v13, 16 }
 0x29a   : > { %v2354_v23 = vsel %vm2352_vm6, %v2339_v18, %v2353_v36  ;;  %v3085_v55 = vsel %vm3083_vm12, %v3084_v39, %v8296_v5  ;;  %v2872_v6 = vsel %vm2858_vm13, %v2869_v63, %v2871_v53  ;;  %v2841_v35 = vshrl.u32 %v6366_v42, %v8269_v28 }
 0x29b   : > { %v2358_v52 = vsel %vm2351_vm5, %v2354_v23, %v2357_v15  ;;  %v3086_v3 = vclz %v3085_v55  ;;  %v2876_v31 = vand.u32 65535, %v2872_v6  ;;  %v2877_v16 = vshrl.u32 %v2872_v6, 16 }
 0x29c   : > { %v2359_v1 = vsel %vm2348_vm11, nan, %v2358_v52  ;;  %v3074_v7 = vadd.s32 %v8255_v45, %v8263_v25  ;;  %v295_v21 = vand.u32 2147483647, %v263_v26  ;;  %vm2982_vm14 = vcmp.lt.s32.totalorder %v8120_v37, 0 }
 0x29d   : > { %v5317_v62 = vmul.f32 -2.0, %v2359_v1  ;;  %v6007_v32 = vadd.s32 4294967294, %v3086_v3  ;;  %v2879_v40 = vmul.u32 %v2877_v16, %v2874_v34  ;;  %v2898_v57 = vand.u32 65535, %v2868_v8 }
 0x29e   : > { %v2899_v24 = vshrl.u32 %v2868_v8, 16  ;;  %v2878_v18 = vmul.u32 %v2876_v31, %v2874_v34  ;;  %v2880_v49 = vmul.u32 %v2876_v31, %v2875_v9  ;;  %v2861_v58 = vsel %vm2857_vm9, %v2841_v35, %v2844_v12 }
 0x29f   : > { %v5361_v33 = vmul.f32 1.442695, %v5317_v62  ;;  %vm6008_vm15 = vcmp.lt.s32.totalorder %v6007_v32, 0  ;;  %v3104_v45 = vsub.s32 4, %v8287_v14  ;;  %v2862_v25 = vsel %vm2860_vm8, %v2850_v4, 2102212464 }
 0x2a0   : > { %v3089_v20 = vsel %vm6008_vm15, 0, %v6007_v32  ;;  %v2881_v27 = vmul.u32 %v2877_v16, %v2875_v9  ;;  %v2882_v43 = vshll.u32 %v2879_v40, 16  ;;  %vm8344_vm0 = vcmp.le.f32.partialorder %v2980_v41, 0.7853982 }
 0x2a1   : > { %6193 = vpow2.f32 %v5361_v33  ;;  %v3090_v54 = vsub.s32 32, %v3089_v20  ;;  %v3091_v28 = vshll.u32 %v8296_v5, %v3089_v20  ;;  %v3094_v60 = vsub.s32 4294967266, %v3089_v20 }
 0x2a2   : > { %v2884_v5 = vshll.u32 %v2880_v49, 16  ;;  %v2900_v30 = vmul.u32 %v2898_v57, %v2874_v34  ;;  %vm2886_vm1 = vc.u32 %v2878_v18, %v2882_v43  ;;  %v2888_v17 = vadd.s32 %v2882_v43, %v2878_v18 }
 0x2a3   : > { %v3092_v36 = vshrl.u32 %v3074_v7, %v3090_v54  ;;  %v3095_v15 = vadd.s32 127, %v3094_v60  ;;  %v2901_v12 = vmul.u32 %v2899_v24, %v2874_v34  ;;  %v2902_v29 = vmul.u32 %v2898_v57, %v2875_v9 }
 0x2a4   : > { %v2883_v51 = vshrl.u32 %v2879_v40, 16  ;;  %v2887_v4 = vsel %vm2886_vm1, 1, %v6365_v0  ;;  %vm2890_vm2 = vc.u32 %v2888_v17, %v2884_v5  ;;  %v2903_v41 = vmul.u32 %v2899_v24, %v2875_v9  ;;  %v236_v17 = vld [vmem:[%s6465_s10 + $0xa0] sm:$0xff] }
 0x2a5   : > { %v3093_v39 = vor.u32 %v3092_v36, %v3091_v28  ;;  %v3096_v23 = vshll.u32 %v3095_v15, 23  ;;  %v2889_v63 = vadd.s32 %v2887_v4, %v2881_v27  ;;  %v2904_v52 = vshll.u32 %v2901_v12, 16 }
 0x2a6   : > { %v2891_v1 = vsel %vm2890_vm2, 1, %v6365_v0  ;;  %v3105_v3 = vsel %vm2982_vm14, %v3104_v45, %v8287_v14  ;;  %v2906_v34 = vshll.u32 %v2902_v29, 16  ;;  %v2885_v9 = vshrl.u32 %v2880_v49, 16 }
 0x2a7   : > { %v6194_v47 = vpop.eup %6193  ;;  %v3097_v2 = vor.u32 4788187, %v3096_v23  ;;  %v3100_v26 = vcvt.s32.f32 %v3093_v39  ;;  %v2893_v53 = vadd.s32 %v2891_v1, %v2889_v63  ;;  %vm2908_vm3 = vc.u32 %v2900_v30, %v2904_v52 }
 0x2a8   : > { %v5414_v55 = vmul.f32 %v6194_v47, %v6794_v38  ;;  %v2909_v6 = vsel %vm2908_vm3, 1, %v6365_v0  ;;  %v2910_v32 = vadd.s32 %v2904_v52, %v2900_v30  ;;  %v8356_v16 = vmul.f32 %v6472_v11, %v295_v21  ;;  %v203_v30 = vld [vmem:[%s6458_s7 + $0xa0] sm:$0xff] }
 0x2a9   : > { %v3098_v8 = vand.u32 2147483647, %v3097_v2  ;;  %v2894_v35 = vadd.s32 %v2893_v53, %v2883_v51  ;;  %v2911_v31 = vadd.s32 %v2909_v6, %v2903_v41  ;;  %v2905_v40 = vshrl.u32 %v2901_v12, 16 }
 0x2aa   : > { %v5446_v62 = vmul.f32 -0.5, %v5414_v55  ;;  %vm2912_vm4 = vc.u32 %v2910_v32, %v2906_v34  ;;  %v3107_v14 = vsel %vm8344_vm0, 0, %v3105_v3  ;;  %v2863_v57 = vsel %vm2859_vm10, %v8293_v61, %v2862_v25 }
 0x2ab   : > { %v3101_v7 = vmul.f32 %v3100_v26, %v3098_v8  ;;  %v2913_v24 = vsel %vm2912_vm4, 1, %v6365_v0  ;;  %v2673_v20 = vand.u32 2139095040, %v8356_v16  ;;  %v2907_v18 = vshrl.u32 %v2902_v29, 16 }
 0x2ac   : > { %v5490_v33 = vmul.f32 1.442695, %v5446_v62  ;;  %v2915_v49 = vadd.s32 %v2913_v24, %v2911_v31  ;;  %v8365_v54 = vadd.s32 %v2894_v35, %v2885_v9  ;;  %v8367_v28 = vadd.s32 %v2910_v32, %v2906_v34 }
 0x2ad   : > { %v3102_v21 = vxor.u32 2147483648, %v3101_v7  ;;  %v2674_v60 = vshrl.u32 %v2673_v20, 23  ;;  %v2864_v61 = vsel %vm2858_vm13, %v2861_v58, %v2863_v57  ;;  %v3124_v43 = vadd.s32 3, %v3107_v14 }
 0x2ae   : > { %6195 = vpow2.f32 %v5490_v33  ;;  %v2916_v25 = vadd.s32 %v2915_v49, %v2905_v40  ;;  %v2918_v12 = vmul.u32 %v8302_v13, %v2864_v61  ;;  %vm2920_vm5 = vc.u32 %v8365_v54, %v8367_v28 }
 0x2af   : > { %v3103_v45 = vsel %vm2982_vm14, %v3102_v21, %v3101_v7  ;;  %v6000_v36 = vadd.s32 4294967169, %v2674_v60  ;;  %v2670_v29 = vand.u32 2147483647, %v8356_v16  ;;  %v8382_v4 = vand.u32 3, %v3124_v43 }
 0x2b0   : > { %v3106_v27 = vsel %vm8344_vm0, %v8120_v37, %v3103_v45  ;;  %v2917_v5 = vadd.s32 %v2916_v25, %v2907_v18  ;;  %v268_v47 = vsub.f32 %v203_v30, %v236_v17  ;;  %vm3123_vm9 = vweird.f32 %v8120_v37 }
 0x2b1   : > { %v3108_v15 = vmul.f32 %v3106_v27, %v3106_v27  ;;  %v2680_v19 = vadd.s32 1, %v6000_v36  ;;  %v2677_v53 = vand.u32 8388607, %v2670_v29  ;;  %vm3127_vm7 = vcmp.eq.s32.totalorder %v8382_v4, 0 }
 0x2b2   : > { %v2921_v51 = vadd.s32 1, %v2917_v5  ;;  %v300_v8 = vand.u32 2147483647, %v268_v47  ;;  %vm3126_vm8 = vcmp.lt.s32.totalorder %v8382_v4, 2  ;;  %vm3130_vm10 = vcmp.eq.s32.totalorder %v8382_v4, 2 }
 0x2b3   : > { %v3109_v39 = vmul.f32 -0.001358992, %v3108_v15  ;;  %v3116_v23 = vmul.f32 -0.00019511016, %v3108_v15  ;;  %vm2681_vm6 = vcmp.gt.s32.totalorder %v2680_v19, 0  ;;  %v2678_v61 = vor.u32 8388608, %v2677_v53 }
 0x2b4   : > { %v6196_v58 = vpop.eup %6195  ;;  %v2922_v52 = vsel %vm2920_vm5, %v2921_v51, %v2917_v5  ;;  %v2682_v2 = vsel %vm2681_vm6, %v2680_v19, 0  ;;  %v8411_v25 = vmul.f32 %v6472_v11, %v300_v8  ;;  %vm2827_vm15 = vcmp.lt.s32.totalorder %v8193_v22, 0 }
 0x2b5   : > { %v5542_v56 = vmul.f32 %v6196_v58, %v5414_v55  ;;  %v3110_v63 = vadd.f32 0.041655596, %v3109_v39  ;;  %v3117_v41 = vadd.f32 0.008332121, %v3116_v23  ;;  %v2923_v13 = vadd.s32 %v2922_v52, %v2918_v12 }
 0x2b6   : > { %v2684_v26 = vand.u32 31, %v2682_v2  ;;  %v8407_v18 = vshrl.u32 %v2682_v2, 5  ;;  %v8431_v47 = vshll.u32 %v2678_v61, 8  ;;  %vm8466_vm2 = vcmp.le.f32.partialorder %v2825_v10, 0.7853982 }
 0x2b7   : > { %5624 = vperm.xlu0 %6134, %v5542_v56   ;;  %v3111_v1 = vmul.f32 %v3110_v63, %v3108_v15  ;;  %v3118_v3 = vmul.f32 %v3117_v41, %v3108_v15  ;;  %v2924_v34 = vadd.s32 536870912, %v2923_v13  ;;  %v2919_v56 = vadd.s32 %v8367_v28, %v8365_v54 }
 0x2b8   : > { %v8387_v55 = vsub.s32 32, %v2684_v26  ;;  %v2687_v62 = vshll.u32 %v6366_v42, %v2684_v26  ;;  %v2690_v9 = vshll.u32 %v6367_v44, %v2684_v26  ;;  %v2693_v35 = vshll.u32 %v6368_v46, %v2684_v26 }
 0x2b9   : > { %v3112_v6 = vadd.f32 -0.4999988, %v3111_v1  ;;  %v3119_v32 = vadd.f32 -0.16666654, %v3118_v3  ;;  %v8394_v31 = vshrl.u32 %v2924_v34, 30  ;;  %v2696_v40 = vshll.u32 %v6369_v48, %v2684_v26 }
 0x2ba   : > { %v2688_v33 = vshrl.u32 %v6367_v44, %v8387_v55  ;;  %v2691_v7 = vshrl.u32 %v6368_v46, %v8387_v55  ;;  %v2694_v24 = vshrl.u32 %v6369_v48, %v8387_v55  ;;  %v2697_v20 = vshrl.u32 %v6370_v50, %v8387_v55 }
 0x2bb   : > { %v3113_v14 = vmul.f32 %v3112_v6, %v3108_v15  ;;  %v3120_v57 = vmul.f32 %v3119_v32, %v3108_v15  ;;  %v2926_v21 = vshll.u32 %v8394_v31, 30  ;;  %v2699_v49 = vshll.u32 %v6370_v50, %v2684_v26 }
 0x2bc   : > { %v8415_v36 = vor.u32 %v2688_v33, %v2687_v62  ;;  %v8417_v15 = vor.u32 %v2691_v7, %v2690_v9  ;;  %v2700_v5 = vshrl.u32 %v6371_v59, %v8387_v55  ;;  %v2695_v12 = vor.u32 %v2694_v24, %v2693_v35 }
 0x2bd   : > { %v3114_v60 = vadd.f32 1.0, %v3113_v14  ;;  %v3121_v45 = vadd.f32 1.0, %v3120_v57  ;;  %v8413_v43 = vsub.s32 %v2923_v13, %v2926_v21  ;;  %v2698_v19 = vor.u32 %v2697_v20, %v2696_v40 }
 0x2be   : > { %v2701_v39 = vor.u32 %v2700_v5, %v2699_v49  ;;  %vm2702_vm12 = vcmp.lt.s32.totalorder %v8407_v18, 1  ;;  %vm2705_vm13 = vcmp.lt.s32.totalorder %v8407_v18, 4  ;;  %vm2704_vm14 = vcmp.lt.s32.totalorder %v8407_v18, 3 }
 0x2bf   : > { %v3122_v30 = vmul.f32 %v3121_v45, %v3106_v27  ;;  %v3131_v17 = vxor.u32 2147483648, %v3114_v60  ;;  %vm2928_vm11 = vcmp.lt.s32.totalorder %v8413_v43, 0  ;;  %v2929_v58 = vsub.s32 0, %v8413_v43 }
 0x2c0   : > { %v3448_v63 = vand.u32 2139095040, %v8411_v25  ;;  %vm2703_vm0 = vcmp.lt.s32.totalorder %v8407_v18, 2  ;;  %v2710_v54 = vsel %vm2702_vm12, %v8415_v36, %v8417_v15  ;;  %v2711_v2 = vsel %vm2705_vm13, %v2698_v19, 920167782 }
 0x2c1   : > { %v3128_v23 = vxor.u32 2147483648, %v3122_v30  ;;  %v3132_v51 = vsel %vm3130_vm10, %v3131_v17, %v3122_v30  ;;  %v2930_v27 = vsel %vm2928_vm11, %v2929_v58, %v8413_v43  ;;  %v2714_v13 = vsel %vm2702_vm12, %v8417_v15, %v2695_v12 }
 0x2c2   : > { %v2931_v52 = vclz %v2930_v27  ;;  %v2715_v26 = vsel %vm2705_vm13, %v2701_v39, 1326507024  ;;  %v2712_v53 = vsel %vm2704_vm14, %v2695_v12, %v2711_v2  ;;  %v2719_v8 = vand.u32 65535, %v8431_v47 }
 0x2c3   : > { %v3129_v41 = vsel %vm3127_vm7, %v3114_v60, %v3128_v23  ;;  %v2716_v4 = vsel %vm2704_vm14, %v2698_v19, %v2715_v26  ;;  %v2720_v6 = vshrl.u32 %v8431_v47, 16  ;;  %v2713_v37 = vsel %vm2703_vm0, %v2710_v54, %v2712_v53 }
 0x2c4   : > { %v3133_v28 = vsel %vm3126_vm8, %v3129_v41, %v3132_v51  ;;  %v6004_v3 = vadd.s32 4294967294, %v2931_v52  ;;  %v2717_v62 = vsel %vm2703_vm0, %v2714_v13, %v2716_v4  ;;  %v2949_v7 = vsub.s32 4, %v8394_v31 }
 0x2c5   : > { %v3134_v1 = vsel %vm3123_vm9, nan, %v3133_v28  ;;  %v2721_v32 = vand.u32 65535, %v2717_v62  ;;  %v2722_v9 = vshrl.u32 %v2717_v62, 16  ;;  %v2743_v40 = vand.u32 65535, %v2713_v37 }
 0x2c6   : > { %v5322_v34 = vmul.f32 -2.0, %v3134_v1  ;;  %vm6005_vm1 = vcmp.lt.s32.totalorder %v6004_v3, 0  ;;  %v3445_v21 = vand.u32 2147483647, %v8411_v25  ;;  %v2686_v49 = vshrl.u32 %v6366_v42, %v8387_v55 }
 0x2c7   : > { %v2934_v33 = vsel %vm6005_vm1, 0, %v6004_v3  ;;  %v2723_v60 = vmul.u32 %v2721_v32, %v2719_v8  ;;  %v3449_v45 = vshrl.u32 %v3448_v63, 23  ;;  %v2724_v30 = vmul.u32 %v2722_v9, %v2719_v8 }
 0x2c8   : > { %v5371_v35 = vmul.f32 1.442695, %v5322_v34  ;;  %v2935_v57 = vsub.s32 32, %v2934_v33  ;;  %v2936_v24 = vshll.u32 %v8413_v43, %v2934_v33  ;;  %v2939_v20 = vsub.s32 4294967266, %v2934_v33 }
 0x2c9   : > { %v2725_v17 = vmul.u32 %v2721_v32, %v2720_v6  ;;  %v2950_v10 = vsel %vm2827_vm15, %v2949_v7, %v8394_v31  ;;  %v2707_v43 = vsel %vm2705_vm13, %v2695_v12, 2102212464  ;;  %v2744_v19 = vshrl.u32 %v2713_v37, 16 }
 0x2ca   : > { %6197 = vpow2.f32 %v5371_v35  ;;  %v2937_v61 = vshrl.u32 %v2919_v56, %v2935_v57  ;;  %v2940_v5 = vadd.s32 127, %v2939_v20  ;;  %v2747_v58 = vmul.u32 %v2743_v40, %v2720_v6 }
 0x2cb   : > { %v2726_v51 = vmul.u32 %v2722_v9, %v2720_v6  ;;  %v2727_v27 = vshll.u32 %v2724_v30, 16  ;;  %v2728_v55 = vshrl.u32 %v2724_v30, 16  ;;  %v2729_v41 = vshll.u32 %v2725_v17, 16 }
 0x2cc   : > { %v2938_v39 = vor.u32 %v2937_v61, %v2936_v24  ;;  %v2941_v23 = vshll.u32 %v2940_v5, 23  ;;  %v2745_v63 = vmul.u32 %v2743_v40, %v2719_v8  ;;  %v2746_v56 = vmul.u32 %v2744_v19, %v2719_v8 }
 0x2cd   : > { %vm2731_vm3 = vc.u32 %v2723_v60, %v2727_v27  ;;  %v2733_v28 = vadd.s32 %v2727_v27, %v2723_v60  ;;  %v2748_v13 = vmul.u32 %v2744_v19, %v2720_v6  ;;  %v2751_v12 = vshll.u32 %v2747_v58, 16 }
 0x2ce   : > { %v2942_v52 = vor.u32 4788187, %v2941_v23  ;;  %v2945_v54 = vcvt.s32.f32 %v2938_v39  ;;  %v2732_v31 = vsel %vm2731_vm3, 1, %v6365_v0  ;;  %v2749_v26 = vshll.u32 %v2746_v56, 16 }
 0x2cf   : > { %v2734_v53 = vadd.s32 %v2732_v31, %v2726_v51  ;;  %vm2735_vm4 = vc.u32 %v2733_v28, %v2729_v41  ;;  %v2952_v4 = vsel %vm8466_vm2, 0, %v2950_v10  ;;  %v2706_v6 = vsel %vm2702_vm12, %v2686_v49, %v8415_v36 }
 0x2d0   : > { %v6198_v2 = vpop.eup %6197  ;;  %v2943_v3 = vand.u32 2147483647, %v2942_v52  ;;  %v2736_v34 = vsel %vm2735_vm4, 1, %v6365_v0  ;;  %vm2753_vm5 = vc.u32 %v2745_v63, %v2749_v26  ;;  %v2755_v62 = vadd.s32 %v2749_v26, %v2745_v63 }
 0x2d1   : > { %v5419_v1 = vmul.f32 %v6198_v2, %v6794_v38  ;;  %v2738_v32 = vadd.s32 %v2736_v34, %v2734_v53  ;;  %v2754_v9 = vsel %vm2753_vm5, 1, %v6365_v0  ;;  %v2730_v35 = vshrl.u32 %v2725_v17, 16 }
 0x2d2   : > { %v2946_v37 = vmul.f32 %v2945_v54, %v2943_v3  ;;  %v2756_v33 = vadd.s32 %v2754_v9, %v2748_v13  ;;  %vm2757_vm6 = vc.u32 %v2755_v62, %v2751_v12  ;;  %v2750_v24 = vshrl.u32 %v2746_v56, 16 }
 0x2d3   : > { %v5451_v8 = vmul.f32 -0.5, %v5419_v1  ;;  %v2739_v57 = vadd.s32 %v2738_v32, %v2728_v55  ;;  %v2969_v20 = vadd.s32 3, %v2952_v4  ;;  %v2708_v60 = vsel %vm2704_vm14, %v8417_v15, %v2707_v43 }
 0x2d4   : > { %v2947_v40 = vxor.u32 2147483648, %v2946_v37  ;;  %v2758_v61 = vsel %vm2757_vm6, 1, %v6365_v0  ;;  %v6015_v5 = vadd.s32 4294967169, %v3449_v45  ;;  %v2752_v36 = vshrl.u32 %v2747_v58, 16 }
 0x2d5   : > { %v5500_v7 = vmul.f32 1.442695, %v5451_v8  ;;  %v2760_v49 = vadd.s32 %v2758_v61, %v2756_v33  ;;  %v8497_v10 = vadd.s32 %v2739_v57, %v2730_v35  ;;  %v8499_v19 = vadd.s32 %v2755_v62, %v2751_v12  ;;  %v202_v8 = vld [vmem:[%s6458_s7 + $0x98] sm:$0xff] }
 0x2d6   : > { %v2948_v30 = vsel %vm2827_vm15, %v2947_v40, %v2946_v37  ;;  %v3455_v39 = vadd.s32 1, %v6015_v5  ;;  %v2709_v15 = vsel %vm2703_vm0, %v2706_v6, %v2708_v60  ;;  %v8503_v43 = vand.u32 3, %v2969_v20  ;;  %v235_v37 = vld [vmem:[%s6465_s10 + $0x98] sm:$0xff] }
 0x2d7   : > { %6199 = vpow2.f32 %v5500_v7  ;;  %v2951_v17 = vsel %vm8466_vm2, %v8193_v22, %v2948_v30  ;;  %v2761_v45 = vadd.s32 %v2760_v49, %v2750_v24  ;;  %v2763_v14 = vmul.u32 %v8431_v47, %v2709_v15 }
 0x2d8   : > { %v2953_v23 = vmul.f32 %v2951_v17, %v2951_v17  ;;  %vm3456_vm7 = vcmp.gt.s32.totalorder %v3455_v39, 0  ;;  %vm2765_vm8 = vc.u32 %v8497_v10, %v8499_v19  ;;  %v3452_v41 = vand.u32 8388607, %v3445_v21 }
 0x2d9   : > { %v2762_v27 = vadd.s32 %v2761_v45, %v2752_v36  ;;  %v3457_v55 = vsel %vm3456_vm7, %v3455_v39, 0  ;;  %vm2975_vm9 = vcmp.eq.s32.totalorder %v8503_v43, 2  ;;  %vm2971_vm10 = vcmp.lt.s32.totalorder %v8503_v43, 2 }
 0x2da   : > { %v2954_v51 = vmul.f32 -0.001358992, %v2953_v23  ;;  %v2961_v58 = vmul.f32 -0.00019511016, %v2953_v23  ;;  %v3459_v63 = vand.u32 31, %v3457_v55  ;;  %v3453_v12 = vor.u32 8388608, %v3452_v41 }
 0x2db   : > { %v2766_v54 = vadd.s32 1, %v2762_v27  ;;  %vm2968_vm11 = vweird.f32 %v8193_v22  ;;  %v8523_v9 = vshrl.u32 %v3457_v55, 5  ;;  %v267_v61 = vsub.f32 %v202_v8, %v235_v37 }
 0x2dc   : > { %v2955_v18 = vadd.f32 0.041655596, %v2954_v51  ;;  %v2962_v52 = vadd.f32 0.008332121, %v2961_v58  ;;  %v8510_v2 = vsub.s32 32, %v3459_v63  ;;  %v3462_v3 = vshll.u32 %v6366_v42, %v3459_v63 }
 0x2dd   : > { %v6200_v56 = vpop.eup %6199  ;;  %v2767_v47 = vsel %vm2765_vm8, %v2766_v54, %v2762_v27  ;;  %v3465_v53 = vshll.u32 %v6367_v44, %v3459_v63  ;;  %v3471_v6 = vshll.u32 %v6369_v48, %v3459_v63  ;;  %v3468_v40 = vshll.u32 %v6368_v46, %v3459_v63 }
 0x2de   : > { %v5547_v28 = vmul.f32 %v6200_v56, %v5419_v1  ;;  %v2956_v31 = vmul.f32 %v2955_v18, %v2953_v23  ;;  %v2963_v13 = vmul.f32 %v2962_v52, %v2953_v23  ;;  %v2768_v26 = vadd.s32 %v2767_v47, %v2763_v14 }
 0x2df   : > { %v3463_v1 = vshrl.u32 %v6367_v44, %v8510_v2  ;;  %v3466_v62 = vshrl.u32 %v6368_v46, %v8510_v2  ;;  %v3472_v35 = vshrl.u32 %v6370_v50, %v8510_v2  ;;  %v3469_v57 = vshrl.u32 %v6369_v48, %v8510_v2 }
 0x2e0   : > { %5649 = vperm.xlu2 %6136, %v5547_v28   ;;  %v2957_v4 = vadd.f32 -0.4999988, %v2956_v31  ;;  %v2964_v34 = vadd.f32 -0.16666654, %v2963_v13  ;;  %v2769_v32 = vadd.s32 536870912, %v2768_v26  ;;  %v3474_v20 = vshll.u32 %v6370_v50, %v3459_v63 }
 0x2e1   : > { %v3475_v60 = vshrl.u32 %v6371_v59, %v8510_v2  ;;  %v3464_v36 = vor.u32 %v3463_v1, %v3462_v3  ;;  %v8536_v49 = vor.u32 %v3466_v62, %v3465_v53  ;;  %vm3477_vm12 = vcmp.lt.s32.totalorder %v8523_v9, 1 }
 0x2e2   : > { %v2958_v33 = vmul.f32 %v2957_v4, %v2953_v23  ;;  %v2965_v7 = vmul.f32 %v2964_v34, %v2953_v23  ;;  %v8531_v24 = vshrl.u32 %v2769_v32, 30  ;;  %v3473_v23 = vor.u32 %v3472_v35, %v3471_v6 }
 0x2e3   : > { %v8540_v15 = vshll.u32 %v3453_v12, 8  ;;  %v3470_v58 = vor.u32 %v3469_v57, %v3468_v40  ;;  %vm3480_vm13 = vcmp.lt.s32.totalorder %v8523_v9, 4  ;;  %vm2972_vm14 = vcmp.eq.s32.totalorder %v8503_v43, 0 }
 0x2e4   : > { %v2959_v5 = vadd.f32 1.0, %v2958_v33  ;;  %v2966_v30 = vadd.f32 1.0, %v2965_v7  ;;  %v2771_v39 = vshll.u32 %v8531_v24, 30  ;;  %v3476_v55 = vor.u32 %v3475_v60, %v3474_v20 }
 0x2e5   : > { %vm3479_vm15 = vcmp.lt.s32.totalorder %v8523_v9, 3  ;;  %vm3478_vm0 = vcmp.lt.s32.totalorder %v8523_v9, 2  ;;  %v3486_v56 = vsel %vm3480_vm13, %v3473_v23, 920167782  ;;  %v299_v18 = vand.u32 2147483647, %v267_v61 }
 0x2e6   : > { %v2967_v45 = vmul.f32 %v2966_v30, %v2951_v17  ;;  %v2976_v51 = vxor.u32 2147483648, %v2959_v5  ;;  %v2772_v27 = vsub.s32 %v2768_v26, %v2771_v39  ;;  %v3485_v17 = vsel %vm3477_vm12, %v3464_v36, %v8536_v49 }
 0x2e7   : > { %v3487_v54 = vsel %vm3479_vm15, %v3470_v58, %v3486_v56  ;;  %v3489_v28 = vsel %vm3477_vm12, %v8536_v49, %v3470_v58  ;;  %v3494_v31 = vand.u32 65535, %v8540_v15  ;;  %v3490_v12 = vsel %vm3480_vm13, %v3476_v55, 1326507024 }
 0x2e8   : > { %v2973_v14 = vxor.u32 2147483648, %v2967_v45  ;;  %v2977_v41 = vsel %vm2975_vm9, %v2976_v51, %v2967_v45  ;;  %vm2773_vm1 = vcmp.lt.s32.totalorder %v2772_v27, 0  ;;  %v2774_v63 = vsub.s32 0, %v2772_v27 }
 0x2e9   : > { %v3488_v26 = vsel %vm3478_vm0, %v3485_v17, %v3487_v54  ;;  %v3461_v4 = vshrl.u32 %v6366_v42, %v8510_v2  ;;  %v3491_v34 = vsel %vm3479_vm15, %v3473_v23, %v3490_v12  ;;  %v3495_v62 = vshrl.u32 %v8540_v15, 16 }
 0x2ea   : > { %v2974_v52 = vsel %vm2972_vm14, %v2959_v5, %v2973_v14  ;;  %v2775_v47 = vsel %vm2773_vm1, %v2774_v63, %v2772_v27  ;;  %v3492_v43 = vsel %vm3478_vm0, %v3489_v28, %v3491_v34  ;;  %v3519_v6 = vshrl.u32 %v3488_v26, 16 }
 0x2eb   : > { %v2978_v13 = vsel %vm2971_vm10, %v2974_v52, %v2977_v41  ;;  %v2776_v53 = vclz %v2775_v47  ;;  %v3496_v37 = vand.u32 65535, %v3492_v43  ;;  %v3497_v32 = vshrl.u32 %v3492_v43, 16 }
 0x2ec   : > { %v2979_v3 = vsel %vm2968_vm11, nan, %v2978_v13  ;;  %v2764_v22 = vadd.s32 %v8499_v19, %v8497_v10  ;;  %v3518_v33 = vand.u32 65535, %v3488_v26  ;;  %v8577_v2 = vmul.f32 %v6472_v11, %v299_v18 }
 0x2ed   : > { %v5321_v1 = vmul.f32 -2.0, %v2979_v3  ;;  %v6001_v8 = vadd.s32 4294967294, %v2776_v53  ;;  %vm2672_vm2 = vcmp.lt.s32.totalorder %v8356_v16, 0  ;;  %v3481_v7 = vsel %vm3477_vm12, %v3461_v4, %v3464_v36 }
 0x2ee   : > { %v3482_v40 = vsel %vm3480_vm13, %v3470_v58, 2102212464  ;;  %v3499_v57 = vmul.u32 %v3497_v32, %v3494_v31  ;;  %v3498_v60 = vmul.u32 %v3496_v37, %v3494_v31  ;;  %v3500_v61 = vmul.u32 %v3496_v37, %v3495_v62 }
 0x2ef   : > { %v5369_v35 = vmul.f32 1.442695, %v5321_v1  ;;  %vm6002_vm3 = vcmp.lt.s32.totalorder %v6001_v8, 0  ;;  %v3521_v30 = vmul.u32 %v3519_v6, %v3494_v31  ;;  %v2794_v39 = vsub.s32 4, %v8531_v24 }
 0x2f0   : > { %v2779_v20 = vsel %vm6002_vm3, 0, %v6001_v8  ;;  %v3501_v23 = vmul.u32 %v3497_v32, %v3495_v62  ;;  %v3502_v45 = vshll.u32 %v3499_v57, 16  ;;  %v3522_v51 = vmul.u32 %v3518_v33, %v3495_v62 }
 0x2f1   : > { %6201 = vpow2.f32 %v5369_v35  ;;  %v2780_v5 = vsub.s32 32, %v2779_v20  ;;  %v2781_v10 = vshll.u32 %v2772_v27, %v2779_v20  ;;  %v2784_v19 = vsub.s32 4294967266, %v2779_v20 }
 0x2f2   : > { %vm8587_vm4 = vcmp.le.f32.partialorder %v2670_v29, 0.7853982  ;;  %v3483_v14 = vsel %vm3479_vm15, %v8536_v49, %v3482_v40  ;;  %v3504_v27 = vshll.u32 %v3500_v61, 16  ;;  %v3503_v41 = vshrl.u32 %v3499_v57, 16 }
 0x2f3   : > { %v2782_v58 = vshrl.u32 %v2764_v22, %v2780_v5  ;;  %v2785_v55 = vadd.s32 127, %v2784_v19  ;;  %vm3506_vm5 = vc.u32 %v3498_v60, %v3502_v45  ;;  %v3508_v17 = vadd.s32 %v3502_v45, %v3498_v60 }
 0x2f4   : > { %v3520_v63 = vmul.u32 %v3518_v33, %v3494_v31  ;;  %v3507_v52 = vsel %vm3506_vm5, 1, %v6365_v0  ;;  %v3524_v54 = vshll.u32 %v3521_v30, 16  ;;  %v3523_v13 = vmul.u32 %v3519_v6, %v3495_v62 }
 0x2f5   : > { %v2783_v56 = vor.u32 %v2782_v58, %v2781_v10  ;;  %v2786_v18 = vshll.u32 %v2785_v55, 23  ;;  %v3509_v28 = vadd.s32 %v3507_v52, %v3501_v23  ;;  %vm3510_vm6 = vc.u32 %v3508_v17, %v3504_v27 }
 0x2f6   : > { %v3526_v47 = vshll.u32 %v3522_v51, 16  ;;  %v3511_v49 = vsel %vm3510_vm6, 1, %v6365_v0  ;;  %v2795_v31 = vsel %vm2672_vm2, %v2794_v39, %v8531_v24  ;;  %vm3528_vm7 = vc.u32 %v3520_v63, %v3524_v54 }
 0x2f7   : > { %v6202_v29 = vpop.eup %6201  ;;  %v2787_v12 = vor.u32 4788187, %v2786_v18  ;;  %v2790_v3 = vcvt.s32.f32 %v2783_v56  ;;  %v3513_v53 = vadd.s32 %v3511_v49, %v3509_v28  ;;  %v3530_v4 = vadd.s32 %v3524_v54, %v3520_v63 }
 0x2f8   : > { %v5418_v26 = vmul.f32 %v6202_v29, %v6794_v38  ;;  %v3505_v43 = vshrl.u32 %v3500_v61, 16  ;;  %v3529_v8 = vsel %vm3528_vm7, 1, %v6365_v0  ;;  %v3525_v37 = vshrl.u32 %v3521_v30, 16 }
 0x2f9   : > { %v2788_v1 = vand.u32 2147483647, %v2787_v12  ;;  %v3514_v62 = vadd.s32 %v3513_v53, %v3503_v41  ;;  %v3531_v32 = vadd.s32 %v3529_v8, %v3523_v13  ;;  %vm3532_vm8 = vc.u32 %v3530_v4, %v3526_v47 }
 0x2fa   : > { %v5450_v34 = vmul.f32 -0.5, %v5418_v26  ;;  %v3533_v22 = vsel %vm3532_vm8, 1, %v6365_v0  ;;  %v3293_v33 = vand.u32 2139095040, %v8577_v2  ;;  %v2797_v24 = vsel %vm8587_vm4, 0, %v2795_v31 }
 0x2fb   : > { %v2791_v35 = vmul.f32 %v2790_v3, %v2788_v1  ;;  %v3527_v40 = vshrl.u32 %v3522_v51, 16  ;;  %v8605_v57 = vadd.s32 %v3530_v4, %v3526_v47  ;;  %v3535_v20 = vadd.s32 %v3533_v22, %v3531_v32 }
 0x2fc   : > { %v5498_v6 = vmul.f32 1.442695, %v5450_v34  ;;  %v8607_v61 = vadd.s32 %v3514_v62, %v3505_v43  ;;  %v3294_v5 = vshrl.u32 %v3293_v33, 23  ;;  %v3484_v10 = vsel %vm3478_vm0, %v3481_v7, %v3483_v14  ;;  %v201_v7 = vld [vmem:[%s6458_s7 + $0x90] sm:$0xff] }
 0x2fd   : > { %v2792_v60 = vxor.u32 2147483648, %v2791_v35  ;;  %v3536_v19 = vadd.s32 %v3535_v20, %v3525_v37  ;;  %v3290_v30 = vand.u32 2147483647, %v8577_v2  ;;  %v2814_v23 = vadd.s32 3, %v2797_v24  ;;  %v234_v14 = vld [vmem:[%s6465_s10 + $0x90] sm:$0xff] }
 0x2fe   : > { %6203 = vpow2.f32 %v5498_v6  ;;  %v6012_v45 = vadd.s32 4294967169, %v3294_v5  ;;  %v3538_v27 = vmul.u32 %v8540_v15, %v3484_v10  ;;  %vm3540_vm9 = vc.u32 %v8607_v61, %v8605_v57 }
 0x2ff   : > { %v2793_v39 = vsel %vm2672_vm2, %v2792_v60, %v2791_v35  ;;  %v3537_v58 = vadd.s32 %v3536_v19, %v3527_v40  ;;  %v3297_v17 = vand.u32 8388607, %v3290_v30  ;;  %v8624_v52 = vand.u32 3, %v2814_v23 }
 0x300   : > { %v2796_v51 = vsel %vm8587_vm4, %v8356_v16, %v2793_v39  ;;  %v3300_v9 = vadd.s32 1, %v6012_v45  ;;  %v266_v15 = vsub.f32 %v201_v7, %v234_v14  ;;  %vm2813_vm14 = vweird.f32 %v8356_v16 }
 0x301   : > { %v2798_v55 = vmul.f32 %v2796_v51, %v2796_v51  ;;  %v3541_v41 = vadd.s32 1, %v3537_v58  ;;  %vm2817_vm11 = vcmp.eq.s32.totalorder %v8624_v52, 0  ;;  %vm2820_vm12 = vcmp.eq.s32.totalorder %v8624_v52, 2 }
 0x302   : > { %vm3301_vm10 = vcmp.gt.s32.totalorder %v3300_v9, 0  ;;  %v3298_v53 = vor.u32 8388608, %v3297_v17  ;;  %v298_v34 = vand.u32 2147483647, %v266_v15  ;;  %vm2816_vm13 = vcmp.lt.s32.totalorder %v8624_v52, 2 }
 0x303   : > { %v2799_v56 = vmul.f32 -0.001358992, %v2798_v55  ;;  %v2806_v18 = vmul.f32 -0.00019511016, %v2798_v55  ;;  %v3542_v54 = vsel %vm3540_vm9, %v3541_v41, %v3537_v58  ;;  %v3302_v29 = vsel %vm3301_vm10, %v3300_v9, 0 }
 0x304   : > { %v6204_v63 = vpop.eup %6203  ;;  %v3543_v47 = vadd.s32 %v3542_v54, %v3538_v27  ;;  %v3304_v12 = vand.u32 31, %v3302_v29  ;;  %v8639_v40 = vshrl.u32 %v3302_v29, 5  ;;  %v8643_v5 = vshll.u32 %v3298_v53, 8 }
 0x305   : > { %v5546_v36 = vmul.f32 %v6204_v63, %v5418_v26  ;;  %v2800_v28 = vadd.f32 0.041655596, %v2799_v56  ;;  %v2807_v13 = vadd.f32 0.008332121, %v2806_v18  ;;  %v8650_v17 = vmul.f32 %v6472_v11, %v298_v34 }
 0x306   : > { %v3544_v31 = vadd.s32 536870912, %v3543_v47  ;;  %v3305_v4 = vsub.s32 32, %v3304_v12  ;;  %v3307_v8 = vshll.u32 %v6366_v42, %v3304_v12  ;;  %v3310_v37 = vshll.u32 %v6367_v44, %v3304_v12 }
 0x307   : > { %5644 = vperm.xlu1 %6135, %v5546_v36   ;;  %v2801_v3 = vmul.f32 %v2800_v28, %v2798_v55  ;;  %v2808_v49 = vmul.f32 %v2807_v13, %v2798_v55  ;;  %v3316_v6 = vshll.u32 %v6369_v48, %v3304_v12  ;;  %v3313_v20 = vshll.u32 %v6368_v46, %v3304_v12 }
 0x308   : > { %v8629_v43 = vshrl.u32 %v3544_v31, 30  ;;  %v3308_v62 = vshrl.u32 %v6367_v44, %v3305_v4  ;;  %v3311_v32 = vshrl.u32 %v6368_v46, %v3305_v4  ;;  %v3317_v24 = vshrl.u32 %v6370_v50, %v3305_v4 }
 0x309   : > { %v2802_v1 = vadd.f32 -0.4999988, %v2801_v3  ;;  %v2809_v26 = vadd.f32 -0.16666654, %v2808_v49  ;;  %v3314_v60 = vshrl.u32 %v6369_v48, %v3305_v4  ;;  %v3320_v27 = vshrl.u32 %v6371_v59, %v3305_v4 }
 0x30a   : > { %v3546_v33 = vshll.u32 %v8629_v43, 30  ;;  %v3309_v23 = vor.u32 %v3308_v62, %v3307_v8  ;;  %v3312_v45 = vor.u32 %v3311_v32, %v3310_v37  ;;  %v3318_v58 = vor.u32 %v3317_v24, %v3316_v6 }
 0x30b   : > { %v2803_v35 = vmul.f32 %v2802_v1, %v2798_v55  ;;  %v2810_v22 = vmul.f32 %v2809_v26, %v2798_v55  ;;  %v3319_v55 = vshll.u32 %v6370_v50, %v3304_v12  ;;  %v3315_v41 = vor.u32 %v3314_v60, %v3313_v20 }
 0x30c   : > { %v3547_v39 = vsub.s32 %v3543_v47, %v3546_v33  ;;  %vm3322_vm0 = vcmp.lt.s32.totalorder %v8639_v40, 1  ;;  %vm3325_vm1 = vcmp.lt.s32.totalorder %v8639_v40, 4  ;;  %vm3324_vm2 = vcmp.lt.s32.totalorder %v8639_v40, 3 }
 0x30d   : > { %v2804_v10 = vadd.f32 1.0, %v2803_v35  ;;  %v2811_v19 = vadd.f32 1.0, %v2810_v22  ;;  %vm3447_vm3 = vcmp.lt.s32.totalorder %v8411_v25, 0  ;;  %v3321_v54 = vor.u32 %v3320_v27, %v3319_v55 }
 0x30e   : > { %vm3548_vm15 = vcmp.lt.s32.totalorder %v3547_v39, 0  ;;  %v3549_v14 = vsub.s32 0, %v3547_v39  ;;  %v3340_v29 = vshrl.u32 %v8643_v5, 16  ;;  %vm3323_vm4 = vcmp.lt.s32.totalorder %v8639_v40, 2 }
 0x30f   : > { %v2812_v9 = vmul.f32 %v2811_v19, %v2796_v51  ;;  %v2821_v7 = vxor.u32 2147483648, %v2804_v10  ;;  %v3539_v51 = vadd.s32 %v8605_v57, %v8607_v61  ;;  %v3330_v28 = vsel %vm3322_vm0, %v3309_v23, %v3312_v45 }
 0x310   : > { %v3550_v18 = vsel %vm3548_vm15, %v3549_v14, %v3547_v39  ;;  %v3331_v13 = vsel %vm3325_vm1, %v3318_v58, 920167782  ;;  %v3138_v61 = vand.u32 2139095040, %v8650_v17  ;;  %vm8675_vm5 = vcmp.le.f32.partialorder %v3445_v21, 0.7853982 }
 0x311   : > { %v2818_v63 = vxor.u32 2147483648, %v2812_v9  ;;  %v2822_v56 = vsel %vm2820_vm12, %v2821_v7, %v2812_v9  ;;  %v3551_v36 = vclz %v3550_v18  ;;  %v3332_v57 = vsel %vm3324_vm2, %v3315_v41, %v3331_v13 }
 0x312   : > { %v3569_v31 = vsub.s32 4, %v8629_v43  ;;  %v3306_v52 = vshrl.u32 %v6366_v42, %v3305_v4  ;;  %v3334_v53 = vsel %vm3322_vm0, %v3312_v45, %v3315_v41  ;;  %v3333_v1 = vsel %vm3323_vm4, %v3330_v28, %v3332_v57 }
 0x313   : > { %v2819_v15 = vsel %vm2817_vm11, %v2804_v10, %v2818_v63  ;;  %v6016_v12 = vadd.s32 4294967294, %v3551_v36  ;;  %v3335_v16 = vsel %vm3325_vm1, %v3321_v54, 1326507024  ;;  %v3327_v21 = vsel %vm3325_vm1, %v3315_v41, 2102212464 }
 0x314   : > { %v2823_v47 = vsel %vm2816_vm13, %v2819_v15, %v2822_v56  ;;  %v3336_v8 = vsel %vm3324_vm2, %v3318_v58, %v3335_v16  ;;  %v3363_v62 = vand.u32 65535, %v3333_v1  ;;  %v8693_v35 = vsel %vm3322_vm0, %v3306_v52, %v3309_v23 }
 0x315   : > { %v2824_v3 = vsel %vm2813_vm14, nan, %v2823_v47  ;;  %vm6017_vm6 = vcmp.lt.s32.totalorder %v6016_v12, 0  ;;  %v3337_v22 = vsel %vm3323_vm4, %v3334_v53, %v3336_v8  ;;  %v3339_v33 = vand.u32 65535, %v8643_v5 }
 0x316   : > { %v5320_v34 = vmul.f32 -2.0, %v2824_v3  ;;  %v3554_v26 = vsel %vm6017_vm6, 0, %v6016_v12  ;;  %v3139_v24 = vshrl.u32 %v3138_v61, 23  ;;  %v3341_v10 = vand.u32 65535, %v3337_v22 }
 0x317   : > { %v3555_v37 = vsub.s32 32, %v3554_v26  ;;  %v3556_v32 = vshll.u32 %v3547_v39, %v3554_v26  ;;  %v3559_v6 = vsub.s32 4294967266, %v3554_v26  ;;  %v3570_v19 = vsel %vm3447_vm3, %v3569_v31, %v8629_v43 }
 0x318   : > { %v5367_v4 = vmul.f32 1.442695, %v5320_v34  ;;  %v3328_v39 = vsel %vm3324_vm2, %v3312_v45, %v3327_v21  ;;  %v3342_v58 = vshrl.u32 %v3337_v22, 16  ;;  %v3364_v23 = vshrl.u32 %v3333_v1, 16 }
 0x319   : > { %v3557_v20 = vshrl.u32 %v3539_v51, %v3555_v37  ;;  %v3560_v60 = vadd.s32 127, %v3559_v6  ;;  %v3345_v9 = vmul.u32 %v3341_v10, %v3340_v29  ;;  %v3367_v7 = vmul.u32 %v3363_v62, %v3340_v29 }
 0x31a   : > { %6205 = vpow2.f32 %v5367_v4  ;;  %v3343_v14 = vmul.u32 %v3341_v10, %v3339_v33  ;;  %v3344_v41 = vmul.u32 %v3342_v58, %v3339_v33  ;;  %v3365_v63 = vmul.u32 %v3363_v62, %v3339_v33 }
 0x31b   : > { %v3558_v55 = vor.u32 %v3557_v20, %v3556_v32  ;;  %v3561_v27 = vshll.u32 %v3560_v60, 23  ;;  %v3366_v56 = vmul.u32 %v3364_v23, %v3339_v33  ;;  %v3572_v36 = vsel %vm8675_vm5, 0, %v3570_v19 }
 0x31c   : > { %v3346_v54 = vmul.u32 %v3342_v58, %v3340_v29  ;;  %v3347_v43 = vshll.u32 %v3344_v41, 16  ;;  %v3349_v15 = vshll.u32 %v3345_v9, 16  ;;  %v3368_v28 = vmul.u32 %v3364_v23, %v3340_v29 }
 0x31d   : > { %v3562_v18 = vor.u32 4788187, %v3561_v27  ;;  %v3565_v51 = vcvt.s32.f32 %v3558_v55  ;;  %v3369_v45 = vshll.u32 %v3366_v56, 16  ;;  %v3348_v12 = vshrl.u32 %v3344_v41, 16 }
 0x31e   : > { %v3350_v57 = vshrl.u32 %v3345_v9, 16  ;;  %v3371_v61 = vshll.u32 %v3367_v7, 16  ;;  %vm3351_vm7 = vc.u32 %v3343_v14, %v3347_v43  ;;  %v3353_v31 = vadd.s32 %v3347_v43, %v3343_v14 }
 0x31f   : > { %v3563_v47 = vand.u32 2147483647, %v3562_v18  ;;  %vm3373_vm8 = vc.u32 %v3365_v63, %v3369_v45  ;;  %v3352_v53 = vsel %vm3351_vm7, 1, %v6365_v0  ;;  %v3375_v1 = vadd.s32 %v3369_v45, %v3365_v63 }
 0x320   : > { %v6206_v13 = vpop.eup %6205  ;;  %v3374_v34 = vsel %vm3373_vm8, 1, %v6365_v0  ;;  %v3354_v26 = vadd.s32 %v3352_v53, %v3346_v54  ;;  %vm3355_vm9 = vc.u32 %v3353_v31, %v3349_v15  ;;  %v3370_v62 = vshrl.u32 %v3366_v56, 16 }
 0x321   : > { %v5417_v3 = vmul.f32 %v6206_v13, %v6794_v38  ;;  %v3566_v52 = vmul.f32 %v3565_v51, %v3563_v47  ;;  %v3376_v29 = vadd.s32 %v3374_v34, %v3368_v28  ;;  %v3356_v8 = vsel %vm3355_vm9, 1, %v6365_v0 }
 0x322   : > { %vm3377_vm10 = vc.u32 %v3375_v1, %v3371_v61  ;;  %v3358_v37 = vadd.s32 %v3356_v8, %v3354_v26  ;;  %v6009_v6 = vadd.s32 4294967169, %v3139_v24  ;;  %v3372_v33 = vshrl.u32 %v3367_v7, 16 }
 0x323   : > { %v5449_v16 = vmul.f32 -0.5, %v5417_v3  ;;  %v3567_v21 = vxor.u32 2147483648, %v3566_v52  ;;  %v3378_v32 = vsel %vm3377_vm10, 1, %v6365_v0  ;;  %v8712_v20 = vadd.s32 %v3375_v1, %v3371_v61 }
 0x324   : > { %v3380_v60 = vadd.s32 %v3378_v32, %v3376_v29  ;;  %v3359_v19 = vadd.s32 %v3358_v37, %v3348_v12  ;;  %v3145_v58 = vadd.s32 1, %v6009_v6  ;;  %v3589_v55 = vadd.s32 3, %v3572_v36 }
 0x325   : > { %v5496_v4 = vmul.f32 1.442695, %v5449_v16  ;;  %v3568_v22 = vsel %vm3447_vm3, %v3567_v21, %v3566_v52  ;;  %v3329_v24 = vsel %vm3323_vm4, %v8693_v35, %v3328_v39  ;;  %v3135_v49 = vand.u32 2147483647, %v8650_v17 }
 0x326   : > { %v3571_v10 = vsel %vm8675_vm5, %v8411_v25, %v3568_v22  ;;  %v3381_v27 = vadd.s32 %v3380_v60, %v3370_v62  ;;  %v8720_v9 = vadd.s32 %v3359_v19, %v3350_v57  ;;  %vm3146_vm11 = vcmp.gt.s32.totalorder %v3145_v58, 0 }
 0x327   : > { %6207 = vpow2.f32 %v5496_v4  ;;  %v3573_v23 = vmul.f32 %v3571_v10, %v3571_v10  ;;  %v3147_v63 = vsel %vm3146_vm11, %v3145_v58, 0  ;;  %v3383_v56 = vmul.u32 %v8643_v5, %v3329_v24 }
 0x328   : > { %v3382_v41 = vadd.s32 %v3381_v27, %v3372_v33  ;;  %vm3385_vm12 = vc.u32 %v8720_v9, %v8712_v20  ;;  %v3149_v18 = vand.u32 31, %v3147_v63  ;;  %v3590_v40 = vand.u32 3, %v3589_v55 }
 0x329   : > { %v3574_v7 = vmul.f32 -0.001358992, %v3573_v23  ;;  %v3581_v14 = vmul.f32 -0.00019511016, %v3573_v23  ;;  %v3142_v5 = vand.u32 8388607, %v3135_v49  ;;  %vm3588_vm3 = vweird.f32 %v8411_v25 }
 0x32a   : > { %v3386_v35 = vadd.s32 1, %v3382_v41  ;;  %v8726_v54 = vsub.s32 32, %v3149_v18  ;;  %v8730_v47 = vshrl.u32 %v3147_v63, 5  ;;  %v3152_v12 = vshll.u32 %v6366_v42, %v3149_v18 }
 0x32b   : > { %v3575_v51 = vadd.f32 0.041655596, %v3574_v7  ;;  %v3582_v36 = vadd.f32 0.008332121, %v3581_v14  ;;  %vm3591_vm13 = vcmp.lt.s32.totalorder %v3590_v40, 2  ;;  %v3155_v31 = vshll.u32 %v6367_v44, %v3149_v18 }
 0x32c   : > { %v3387_v45 = vsel %vm3385_vm12, %v3386_v35, %v3382_v41  ;;  %v3158_v52 = vshll.u32 %v6368_v46, %v3149_v18  ;;  %v3153_v53 = vshrl.u32 %v6367_v44, %v8726_v54  ;;  %v3156_v34 = vshrl.u32 %v6368_v46, %v8726_v54 }
 0x32d   : > { %v6208_v39 = vpop.eup %6207  ;;  %v3576_v15 = vmul.f32 %v3575_v51, %v3573_v23  ;;  %v3583_v28 = vmul.f32 %v3582_v36, %v3573_v23  ;;  %v3388_v13 = vadd.s32 %v3387_v45, %v3383_v56  ;;  %v3161_v1 = vshll.u32 %v6369_v48, %v3149_v18  ;;  %v206_v56 = vld [vmem:[%s6458_s7 + $0xb8] sm:$0xff] }
 0x32e   : > { %v5545_v43 = vmul.f32 %v6208_v39, %v5417_v3  ;;  %v3159_v29 = vshrl.u32 %v6369_v48, %v8726_v54  ;;  %v3162_v21 = vshrl.u32 %v6370_v50, %v8726_v54  ;;  %vm3592_vm14 = vcmp.eq.s32.totalorder %v3590_v40, 0 }
 0x32f   : > { %v3577_v57 = vadd.f32 -0.4999988, %v3576_v15  ;;  %v3584_v61 = vadd.f32 -0.16666654, %v3583_v28  ;;  %v3389_v3 = vadd.s32 536870912, %v3388_v13  ;;  %v3164_v62 = vshll.u32 %v6370_v50, %v3149_v18 }
 0x330   : > { %5639 = vperm.xlu0 %6134, %v5545_v43   ;;  %v3165_v4 = vshrl.u32 %v6371_v59, %v8726_v54  ;;  %v3143_v6 = vor.u32 8388608, %v3142_v5  ;;  %v3163_v22 = vor.u32 %v3162_v21, %v3161_v1  ;;  %vm3595_vm15 = vcmp.eq.s32.totalorder %v3590_v40, 2 }
 0x331   : > { %v3578_v16 = vmul.f32 %v3577_v57, %v3573_v23  ;;  %v3585_v26 = vmul.f32 %v3584_v61, %v3573_v23  ;;  %v8744_v8 = vshrl.u32 %v3389_v3, 30  ;;  %v3154_v60 = vor.u32 %v3153_v53, %v3152_v12 }
 0x332   : > { %v8750_v19 = vor.u32 %v3156_v34, %v3155_v31  ;;  %v3160_v55 = vor.u32 %v3159_v29, %v3158_v52  ;;  %vm3170_vm0 = vcmp.lt.s32.totalorder %v8730_v47, 4  ;;  %v3166_v27 = vor.u32 %v3165_v4, %v3164_v62 }
 0x333   : > { %v3579_v37 = vadd.f32 1.0, %v3578_v16  ;;  %v3586_v32 = vadd.f32 1.0, %v3585_v26  ;;  %v3391_v33 = vshll.u32 %v8744_v8, 30  ;;  %vm3167_vm1 = vcmp.lt.s32.totalorder %v8730_v47, 1 }
 0x334   : > { %vm3169_vm2 = vcmp.lt.s32.totalorder %v8730_v47, 3  ;;  %v3176_v41 = vsel %vm3170_vm0, %v3163_v22, 920167782  ;;  %v8759_v63 = vshll.u32 %v3143_v6, 8  ;;  %vm3168_vm5 = vcmp.lt.s32.totalorder %v8730_v47, 2 }
 0x335   : > { %v3587_v58 = vmul.f32 %v3586_v32, %v3571_v10  ;;  %v3596_v23 = vxor.u32 2147483648, %v3579_v37  ;;  %v8753_v24 = vsub.s32 %v3388_v13, %v3391_v33  ;;  %v239_v10 = vld [vmem:[%s6465_s10 + $0xb8] sm:$0xff]  ;;  %v3175_v36 = vsel %vm3167_vm1, %v3154_v60, %v8750_v19 }
 0x336   : > { %v3177_v35 = vsel %vm3169_vm2, %v3160_v55, %v3176_v41  ;;  %v3179_v39 = vsel %vm3167_vm1, %v8750_v19, %v3160_v55  ;;  %v3180_v15 = vsel %vm3170_vm0, %v3166_v27, 1326507024  ;;  %v271_v28 = vsub.f32 %v206_v56, %v239_v10 }
 0x337   : > { %v3593_v7 = vxor.u32 2147483648, %v3587_v58  ;;  %v3597_v14 = vsel %vm3595_vm15, %v3596_v23, %v3587_v58  ;;  %vm3393_vm4 = vcmp.lt.s32.totalorder %v8753_v24, 0  ;;  %v3394_v18 = vsub.s32 0, %v8753_v24 }
 0x338   : > { %v3181_v5 = vsel %vm3169_vm2, %v3163_v22, %v3180_v15  ;;  %v3184_v12 = vand.u32 65535, %v8759_v63  ;;  %v3178_v61 = vsel %vm3168_vm5, %v3175_v36, %v3177_v35  ;;  %v3185_v31 = vshrl.u32 %v8759_v63, 16 }
 0x339   : > { %v3594_v51 = vsel %vm3592_vm14, %v3579_v37, %v3593_v7  ;;  %v3395_v43 = vsel %vm3393_vm4, %v3394_v18, %v8753_v24  ;;  %v3182_v40 = vsel %vm3168_vm5, %v3179_v39, %v3181_v5  ;;  %v3151_v3 = vshrl.u32 %v6366_v42, %v8726_v54 }
 0x33a   : > { %v3598_v25 = vsel %vm3591_vm13, %v3594_v51, %v3597_v14  ;;  %v3396_v13 = vclz %v3395_v43  ;;  %v3186_v53 = vand.u32 65535, %v3182_v40  ;;  %v3187_v34 = vshrl.u32 %v3182_v40, 16 }
 0x33b   : > { %v3599_v45 = vsel %vm3588_vm3, nan, %v3598_v25  ;;  %v3384_v16 = vadd.s32 %v8712_v20, %v8720_v9  ;;  %v303_v26 = vand.u32 2147483647, %v271_v28  ;;  %vm3292_vm6 = vcmp.lt.s32.totalorder %v8577_v2, 0 }
 0x33c   : > { %v5325_v57 = vmul.f32 -2.0, %v3599_v45  ;;  %v6013_v52 = vadd.s32 4294967294, %v3396_v13  ;;  %v3189_v29 = vmul.u32 %v3187_v34, %v3184_v12  ;;  %v3208_v21 = vand.u32 65535, %v3178_v61 }
 0x33d   : > { %v3209_v62 = vshrl.u32 %v3178_v61, 16  ;;  %v3188_v37 = vmul.u32 %v3186_v53, %v3184_v12  ;;  %v3190_v32 = vmul.u32 %v3186_v53, %v3185_v31  ;;  %v3171_v33 = vsel %vm3167_vm1, %v3151_v3, %v3154_v60 }
 0x33e   : > { %v5377_v1 = vmul.f32 1.442695, %v5325_v57  ;;  %vm6014_vm7 = vcmp.lt.s32.totalorder %v6013_v52, 0  ;;  %v3414_v20 = vsub.s32 4, %v8744_v8  ;;  %v3172_v9 = vsel %vm3170_vm0, %v3160_v55, 2102212464 }
 0x33f   : > { %v3399_v4 = vsel %vm6014_vm7, 0, %v6013_v52  ;;  %v3191_v58 = vmul.u32 %v3187_v34, %v3185_v31  ;;  %v3192_v23 = vshll.u32 %v3189_v29, 16  ;;  %vm8801_vm8 = vcmp.le.f32.partialorder %v3290_v30, 0.7853982 }
 0x340   : > { %6209 = vpow2.f32 %v5377_v1  ;;  %v3400_v6 = vsub.s32 32, %v3399_v4  ;;  %v3401_v54 = vshll.u32 %v8753_v24, %v3399_v4  ;;  %v3404_v22 = vsub.s32 4294967266, %v3399_v4 }
 0x341   : > { %v3194_v24 = vshll.u32 %v3190_v32, 16  ;;  %v3210_v41 = vmul.u32 %v3208_v21, %v3184_v12  ;;  %vm3196_vm9 = vc.u32 %v3188_v37, %v3192_v23  ;;  %v3198_v56 = vadd.s32 %v3192_v23, %v3188_v37 }
 0x342   : > { %v3402_v7 = vshrl.u32 %v3384_v16, %v3400_v6  ;;  %v3405_v14 = vadd.s32 127, %v3404_v22  ;;  %v3211_v60 = vmul.u32 %v3209_v62, %v3184_v12  ;;  %v3212_v10 = vmul.u32 %v3208_v21, %v3185_v31 }
 0x343   : > { %v3193_v36 = vshrl.u32 %v3189_v29, 16  ;;  %v3197_v55 = vsel %vm3196_vm9, 1, %v6365_v0  ;;  %vm3200_vm10 = vc.u32 %v3198_v56, %v3194_v24  ;;  %v3213_v30 = vmul.u32 %v3209_v62, %v3185_v31  ;;  %v238_v56 = vld [vmem:[%s6465_s10 + $0xb0] sm:$0xff] }
 0x344   : > { %v3403_v18 = vor.u32 %v3402_v7, %v3401_v54  ;;  %v3406_v51 = vshll.u32 %v3405_v14, 23  ;;  %v3199_v39 = vadd.s32 %v3197_v55, %v3191_v58  ;;  %v3214_v25 = vshll.u32 %v3211_v60, 16 }
 0x345   : > { %v3201_v45 = vsel %vm3200_vm10, 1, %v6365_v0  ;;  %v3415_v13 = vsel %vm3292_vm6, %v3414_v20, %v8744_v8  ;;  %v3216_v12 = vshll.u32 %v3212_v10, 16  ;;  %v3195_v31 = vshrl.u32 %v3190_v32, 16 }
 0x346   : > { %v6210_v35 = vpop.eup %6209  ;;  %v3407_v15 = vor.u32 4788187, %v3406_v51  ;;  %v3410_v28 = vcvt.s32.f32 %v3403_v18  ;;  %v3203_v5 = vadd.s32 %v3201_v45, %v3199_v39  ;;  %vm3218_vm11 = vc.u32 %v3210_v41, %v3214_v25 }
 0x347   : > { %v5422_v43 = vmul.f32 %v6210_v35, %v6794_v38  ;;  %v3219_v40 = vsel %vm3218_vm11, 1, %v6365_v0  ;;  %v3220_v52 = vadd.s32 %v3214_v25, %v3210_v41  ;;  %v8813_v34 = vmul.f32 %v6472_v11, %v303_v26  ;;  %v205_v41 = vld [vmem:[%s6458_s7 + $0xb0] sm:$0xff] }
 0x348   : > { %v3408_v61 = vand.u32 2147483647, %v3407_v15  ;;  %v3204_v3 = vadd.s32 %v3203_v5, %v3193_v36  ;;  %v3221_v53 = vadd.s32 %v3219_v40, %v3213_v30  ;;  %v3215_v29 = vshrl.u32 %v3211_v60, 16 }
 0x349   : > { %v5454_v57 = vmul.f32 -0.5, %v5422_v43  ;;  %vm3222_vm12 = vc.u32 %v3220_v52, %v3216_v12  ;;  %v3417_v8 = vsel %vm8801_vm8, 0, %v3415_v13  ;;  %v3173_v21 = vsel %vm3169_vm2, %v8750_v19, %v3172_v9 }
 0x34a   : > { %v3411_v16 = vmul.f32 %v3410_v28, %v3408_v61  ;;  %v3223_v62 = vsel %vm3222_vm12, 1, %v6365_v0  ;;  %v3913_v4 = vand.u32 2139095040, %v8813_v34  ;;  %v3217_v37 = vshrl.u32 %v3212_v10, 16 }
 0x34b   : > { %v5506_v1 = vmul.f32 1.442695, %v5454_v57  ;;  %v3225_v32 = vadd.s32 %v3223_v62, %v3221_v53  ;;  %v8822_v6 = vadd.s32 %v3204_v3, %v3195_v31  ;;  %v8824_v54 = vadd.s32 %v3220_v52, %v3216_v12 }
 0x34c   : > { %v3412_v26 = vxor.u32 2147483648, %v3411_v16  ;;  %v3914_v22 = vshrl.u32 %v3913_v4, 23  ;;  %v3174_v19 = vsel %vm3168_vm5, %v3171_v33, %v3173_v21  ;;  %v3434_v23 = vadd.s32 3, %v3417_v8 }
 0x34d   : > { %6211 = vpow2.f32 %v5506_v1  ;;  %v3226_v9 = vadd.s32 %v3225_v32, %v3215_v29  ;;  %v3228_v60 = vmul.u32 %v8759_v63, %v3174_v19  ;;  %vm3230_vm13 = vc.u32 %v8822_v6, %v8824_v54 }
 0x34e   : > { %v3413_v20 = vsel %vm3292_vm6, %v3412_v26, %v3411_v16  ;;  %v6024_v7 = vadd.s32 4294967169, %v3914_v22  ;;  %v3910_v10 = vand.u32 2147483647, %v8813_v34  ;;  %v8839_v55 = vand.u32 3, %v3434_v23 }
 0x34f   : > { %v3416_v58 = vsel %vm8801_vm8, %v8577_v2, %v3413_v20  ;;  %v3227_v24 = vadd.s32 %v3226_v9, %v3217_v37  ;;  %v270_v35 = vsub.f32 %v205_v41, %v238_v56  ;;  %vm3433_vm1 = vweird.f32 %v8577_v2 }
 0x350   : > { %v3418_v14 = vmul.f32 %v3416_v58, %v3416_v58  ;;  %v3920_v47 = vadd.s32 1, %v6024_v7  ;;  %v3917_v5 = vand.u32 8388607, %v3910_v10  ;;  %vm3437_vm15 = vcmp.eq.s32.totalorder %v8839_v55, 0 }
 0x351   : > { %v3231_v36 = vadd.s32 1, %v3227_v24  ;;  %v302_v61 = vand.u32 2147483647, %v270_v35  ;;  %vm3436_vm0 = vcmp.lt.s32.totalorder %v8839_v55, 2  ;;  %vm3440_vm2 = vcmp.eq.s32.totalorder %v8839_v55, 2 }
 0x352   : > { %v3419_v18 = vmul.f32 -0.001358992, %v3418_v14  ;;  %v3426_v51 = vmul.f32 -0.00019511016, %v3418_v14  ;;  %vm3921_vm14 = vcmp.gt.s32.totalorder %v3920_v47, 0  ;;  %v3918_v19 = vor.u32 8388608, %v3917_v5 }
 0x353   : > { %v6212_v33 = vpop.eup %6211  ;;  %v3232_v25 = vsel %vm3230_vm13, %v3231_v36, %v3227_v24  ;;  %v3922_v15 = vsel %vm3921_vm14, %v3920_v47, 0  ;;  %v8868_v9 = vmul.f32 %v6472_v11, %v302_v61  ;;  %vm3137_vm7 = vcmp.lt.s32.totalorder %v8650_v17, 0 }
 0x354   : > { %v5550_v27 = vmul.f32 %v6212_v33, %v5422_v43  ;;  %v3420_v39 = vadd.f32 0.041655596, %v3419_v18  ;;  %v3427_v30 = vadd.f32 0.008332121, %v3426_v51  ;;  %v3233_v63 = vadd.s32 %v3232_v25, %v3228_v60 }
 0x355   : > { %v3924_v28 = vand.u32 31, %v3922_v15  ;;  %v8864_v37 = vshrl.u32 %v3922_v15, 5  ;;  %v8888_v35 = vshll.u32 %v3918_v19, 8  ;;  %vm8923_vm10 = vcmp.le.f32.partialorder %v3135_v49, 0.7853982 }
 0x356   : > { %5664 = vperm.xlu2 %6136, %v5550_v27   ;;  %v3421_v45 = vmul.f32 %v3420_v39, %v3418_v14  ;;  %v3428_v13 = vmul.f32 %v3427_v30, %v3418_v14  ;;  %v3234_v12 = vadd.s32 536870912, %v3233_v63  ;;  %v3229_v27 = vadd.s32 %v8824_v54, %v8822_v6 }
 0x357   : > { %v8844_v43 = vsub.s32 32, %v3924_v28  ;;  %v3927_v57 = vshll.u32 %v6366_v42, %v3924_v28  ;;  %v3930_v31 = vshll.u32 %v6367_v44, %v3924_v28  ;;  %v3933_v3 = vshll.u32 %v6368_v46, %v3924_v28 }
 0x358   : > { %v3422_v40 = vadd.f32 -0.4999988, %v3421_v45  ;;  %v3429_v52 = vadd.f32 -0.16666654, %v3428_v13  ;;  %v8851_v53 = vshrl.u32 %v3234_v12, 30  ;;  %v3936_v29 = vshll.u32 %v6369_v48, %v3924_v28 }
 0x359   : > { %v3928_v1 = vshrl.u32 %v6367_v44, %v8844_v43  ;;  %v3931_v16 = vshrl.u32 %v6368_v46, %v8844_v43  ;;  %v3934_v62 = vshrl.u32 %v6369_v48, %v8844_v43  ;;  %v3937_v4 = vshrl.u32 %v6370_v50, %v8844_v43 }
 0x35a   : > { %v3423_v8 = vmul.f32 %v3422_v40, %v3418_v14  ;;  %v3430_v21 = vmul.f32 %v3429_v52, %v3418_v14  ;;  %v3236_v26 = vshll.u32 %v8851_v53, 30  ;;  %v3939_v32 = vshll.u32 %v6370_v50, %v3924_v28 }
 0x35b   : > { %v8872_v7 = vor.u32 %v3928_v1, %v3927_v57  ;;  %v8874_v14 = vor.u32 %v3931_v16, %v3930_v31  ;;  %v3940_v24 = vshrl.u32 %v6371_v59, %v8844_v43  ;;  %v3935_v60 = vor.u32 %v3934_v62, %v3933_v3 }
 0x35c   : > { %v3424_v22 = vadd.f32 1.0, %v3423_v8  ;;  %v3431_v20 = vadd.f32 1.0, %v3430_v21  ;;  %v8870_v23 = vsub.s32 %v3233_v63, %v3236_v26  ;;  %v3938_v47 = vor.u32 %v3937_v4, %v3936_v29 }
 0x35d   : > { %v3941_v18 = vor.u32 %v3940_v24, %v3939_v32  ;;  %vm3942_vm4 = vcmp.lt.s32.totalorder %v8864_v37, 1  ;;  %vm3945_vm5 = vcmp.lt.s32.totalorder %v8864_v37, 4  ;;  %vm3944_vm6 = vcmp.lt.s32.totalorder %v8864_v37, 3 }
 0x35e   : > { %v3432_v41 = vmul.f32 %v3431_v20, %v3416_v58  ;;  %v3441_v56 = vxor.u32 2147483648, %v3424_v22  ;;  %vm3238_vm3 = vcmp.lt.s32.totalorder %v8870_v23, 0  ;;  %v3239_v33 = vsub.s32 0, %v8870_v23 }
 0x35f   : > { %v3758_v39 = vand.u32 2139095040, %v8868_v9  ;;  %vm3943_vm8 = vcmp.lt.s32.totalorder %v8864_v37, 2  ;;  %v3950_v6 = vsel %vm3942_vm4, %v8872_v7, %v8874_v14  ;;  %v3951_v15 = vsel %vm3945_vm5, %v3938_v47, 920167782 }
 0x360   : > { %v3438_v51 = vxor.u32 2147483648, %v3432_v41  ;;  %v3442_v36 = vsel %vm3440_vm2, %v3441_v56, %v3432_v41  ;;  %v3240_v58 = vsel %vm3238_vm3, %v3239_v33, %v8870_v23  ;;  %v3954_v63 = vsel %vm3942_vm4, %v8874_v14, %v3935_v60 }
 0x361   : > { %v3241_v25 = vclz %v3240_v58  ;;  %v3955_v28 = vsel %vm3945_vm5, %v3941_v18, 1326507024  ;;  %v3952_v5 = vsel %vm3944_vm6, %v3935_v60, %v3951_v15  ;;  %v3959_v61 = vand.u32 65535, %v8888_v35 }
 0x362   : > { %v3439_v30 = vsel %vm3437_vm15, %v3424_v22, %v3438_v51  ;;  %v3956_v55 = vsel %vm3944_vm6, %v3938_v47, %v3955_v28  ;;  %v3960_v40 = vshrl.u32 %v8888_v35, 16  ;;  %v3953_v2 = vsel %vm3943_vm8, %v3950_v6, %v3952_v5 }
 0x363   : > { %v3443_v54 = vsel %vm3436_vm0, %v3439_v30, %v3442_v36  ;;  %v6010_v13 = vadd.s32 4294967294, %v3241_v25  ;;  %v3957_v57 = vsel %vm3943_vm8, %v3954_v63, %v3956_v55  ;;  %v3259_v16 = vsub.s32 4, %v8851_v53 }
 0x364   : > { %v3444_v45 = vsel %vm3433_vm1, nan, %v3443_v54  ;;  %v3961_v52 = vand.u32 65535, %v3957_v57  ;;  %v3962_v31 = vshrl.u32 %v3957_v57, 16  ;;  %v3983_v29 = vand.u32 65535, %v3953_v2 }
 0x365   : > { %v5324_v12 = vmul.f32 -2.0, %v3444_v45  ;;  %vm6011_vm9 = vcmp.lt.s32.totalorder %v6010_v13, 0  ;;  %v3755_v26 = vand.u32 2147483647, %v8868_v9  ;;  %v3926_v32 = vshrl.u32 %v6366_v42, %v8844_v43 }
 0x366   : > { %v3244_v1 = vsel %vm6011_vm9, 0, %v6010_v13  ;;  %v3963_v22 = vmul.u32 %v3961_v52, %v3959_v61  ;;  %v3759_v20 = vshrl.u32 %v3758_v39, 23  ;;  %v3964_v41 = vmul.u32 %v3962_v31, %v3959_v61 }
 0x367   : > { %v5375_v3 = vmul.f32 1.442695, %v5324_v12  ;;  %v3245_v21 = vsub.s32 32, %v3244_v1  ;;  %v3246_v62 = vshll.u32 %v8870_v23, %v3244_v1  ;;  %v3249_v4 = vsub.s32 4294967266, %v3244_v1 }
 0x368   : > { %v3965_v56 = vmul.u32 %v3961_v52, %v3960_v40  ;;  %v3260_v49 = vsel %vm3137_vm7, %v3259_v16, %v8851_v53  ;;  %v3947_v23 = vsel %vm3945_vm5, %v3935_v60, 2102212464  ;;  %v3984_v47 = vshrl.u32 %v3953_v2, 16 }
 0x369   : > { %6213 = vpow2.f32 %v5375_v3  ;;  %v3247_v19 = vshrl.u32 %v3229_v27, %v3245_v21  ;;  %v3250_v24 = vadd.s32 127, %v3249_v4  ;;  %v3987_v33 = vmul.u32 %v3983_v29, %v3960_v40 }
 0x36a   : > { %v3966_v36 = vmul.u32 %v3962_v31, %v3960_v40  ;;  %v3967_v58 = vshll.u32 %v3964_v41, 16  ;;  %v3968_v43 = vshrl.u32 %v3964_v41, 16  ;;  %v3969_v30 = vshll.u32 %v3965_v56, 16 }
 0x36b   : > { %v3248_v18 = vor.u32 %v3247_v19, %v3246_v62  ;;  %v3251_v51 = vshll.u32 %v3250_v24, 23  ;;  %v3985_v39 = vmul.u32 %v3983_v29, %v3959_v61  ;;  %v3986_v27 = vmul.u32 %v3984_v47, %v3959_v61 }
 0x36c   : > { %vm3971_vm11 = vc.u32 %v3963_v22, %v3967_v58  ;;  %v3973_v54 = vadd.s32 %v3967_v58, %v3963_v22  ;;  %v3988_v63 = vmul.u32 %v3984_v47, %v3960_v40  ;;  %v3991_v60 = vshll.u32 %v3987_v33, 16 }
 0x36d   : > { %v3252_v25 = vor.u32 4788187, %v3251_v51  ;;  %v3255_v6 = vcvt.s32.f32 %v3248_v18  ;;  %v3972_v53 = vsel %vm3971_vm11, 1, %v6365_v0  ;;  %v3989_v28 = vshll.u32 %v3986_v27, 16 }
 0x36e   : > { %v3974_v5 = vadd.s32 %v3972_v53, %v3966_v36  ;;  %vm3975_vm12 = vc.u32 %v3973_v54, %v3969_v30  ;;  %v3262_v55 = vsel %vm8923_vm10, 0, %v3260_v49  ;;  %v3946_v40 = vsel %vm3942_vm4, %v3926_v32, %v8872_v7 }
 0x36f   : > { %v6214_v15 = vpop.eup %6213  ;;  %v3253_v13 = vand.u32 2147483647, %v3252_v25  ;;  %v3976_v12 = vsel %vm3975_vm12, 1, %v6365_v0  ;;  %vm3993_vm13 = vc.u32 %v3985_v39, %v3989_v28  ;;  %v3995_v57 = vadd.s32 %v3989_v28, %v3985_v39 }
 0x370   : > { %v5421_v45 = vmul.f32 %v6214_v15, %v6794_v38  ;;  %v3978_v52 = vadd.s32 %v3976_v12, %v3974_v5  ;;  %v3994_v31 = vsel %vm3993_vm13, 1, %v6365_v0  ;;  %v3970_v3 = vshrl.u32 %v3965_v56, 16 }
 0x371   : > { %v3256_v2 = vmul.f32 %v3255_v6, %v3253_v13  ;;  %v3996_v1 = vadd.s32 %v3994_v31, %v3988_v63  ;;  %vm3997_vm14 = vc.u32 %v3995_v57, %v3991_v60  ;;  %v3990_v62 = vshrl.u32 %v3986_v27, 16 }
 0x372   : > { %v5453_v61 = vmul.f32 -0.5, %v5421_v45  ;;  %v3979_v21 = vadd.s32 %v3978_v52, %v3968_v43  ;;  %v3279_v4 = vadd.s32 3, %v3262_v55  ;;  %v3948_v22 = vsel %vm3944_vm6, %v8874_v14, %v3947_v23 }
 0x373   : > { %v3257_v29 = vxor.u32 2147483648, %v3256_v2  ;;  %v3998_v19 = vsel %vm3997_vm14, 1, %v6365_v0  ;;  %v6021_v24 = vadd.s32 4294967169, %v3759_v20  ;;  %v3992_v7 = vshrl.u32 %v3987_v33, 16 }
 0x374   : > { %v5504_v16 = vmul.f32 1.442695, %v5453_v61  ;;  %v4000_v32 = vadd.s32 %v3998_v19, %v3996_v1  ;;  %v8954_v49 = vadd.s32 %v3979_v21, %v3970_v3  ;;  %v8956_v47 = vadd.s32 %v3995_v57, %v3991_v60  ;;  %v237_v21 = vld [vmem:[%s6465_s10 + $0xa8] sm:$0xff] }
 0x375   : > { %v3258_v41 = vsel %vm3137_vm7, %v3257_v29, %v3256_v2  ;;  %v3765_v18 = vadd.s32 1, %v6021_v24  ;;  %v3949_v14 = vsel %vm3943_vm8, %v3946_v40, %v3948_v22  ;;  %v8960_v23 = vand.u32 3, %v3279_v4  ;;  %v204_v29 = vld [vmem:[%s6458_s7 + $0xa8] sm:$0xff] }
 0x376   : > { %6215 = vpow2.f32 %v5504_v16  ;;  %v3261_v56 = vsel %vm8923_vm10, %v8650_v17, %v3258_v41  ;;  %v4001_v20 = vadd.s32 %v4000_v32, %v3990_v62  ;;  %v4003_v8 = vmul.u32 %v8888_v35, %v3949_v14 }
 0x377   : > { %v3263_v51 = vmul.f32 %v3261_v56, %v3261_v56  ;;  %vm3766_vm15 = vcmp.gt.s32.totalorder %v3765_v18, 0  ;;  %vm4005_vm0 = vc.u32 %v8954_v49, %v8956_v47  ;;  %v3762_v30 = vand.u32 8388607, %v3755_v26 }
 0x378   : > { %v4002_v58 = vadd.s32 %v4001_v20, %v3992_v7  ;;  %v3767_v43 = vsel %vm3766_vm15, %v3765_v18, 0  ;;  %vm3285_vm1 = vcmp.eq.s32.totalorder %v8960_v23, 2  ;;  %vm3282_vm2 = vcmp.eq.s32.totalorder %v8960_v23, 0 }
 0x379   : > { %v3264_v36 = vmul.f32 -0.001358992, %v3263_v51  ;;  %v3271_v33 = vmul.f32 -0.00019511016, %v3263_v51  ;;  %v3769_v39 = vand.u32 31, %v3767_v43  ;;  %v3763_v60 = vor.u32 8388608, %v3762_v30 }
 0x37a   : > { %v4006_v6 = vadd.s32 1, %v4002_v58  ;;  %vm3281_vm3 = vcmp.lt.s32.totalorder %v8960_v23, 2  ;;  %v8978_v2 = vshrl.u32 %v3767_v43, 5  ;;  %v269_v14 = vsub.f32 %v204_v29, %v237_v21 }
 0x37b   : > { %v3265_v37 = vadd.f32 0.041655596, %v3264_v36  ;;  %v3272_v25 = vadd.f32 0.008332121, %v3271_v33  ;;  %v8967_v15 = vsub.s32 32, %v3769_v39  ;;  %v3772_v13 = vshll.u32 %v6366_v42, %v3769_v39 }
 0x37c   : > { %v6216_v27 = vpop.eup %6215  ;;  %v4007_v28 = vsel %vm4005_vm0, %v4006_v6, %v4002_v58  ;;  %v3775_v12 = vshll.u32 %v6367_v44, %v3769_v39  ;;  %v3778_v52 = vshll.u32 %v6368_v46, %v3769_v39  ;;  %v3781_v31 = vshll.u32 %v6369_v48, %v3769_v39 }
 0x37d   : > { %v5549_v54 = vmul.f32 %v6216_v27, %v5421_v45  ;;  %v3266_v53 = vmul.f32 %v3265_v37, %v3263_v51  ;;  %v3273_v63 = vmul.f32 %v3272_v25, %v3263_v51  ;;  %v4008_v35 = vadd.s32 %v4007_v28, %v4003_v8 }
 0x37e   : > { %v3773_v5 = vshrl.u32 %v6367_v44, %v8967_v15  ;;  %v3776_v57 = vshrl.u32 %v6368_v46, %v8967_v15  ;;  %v3779_v1 = vshrl.u32 %v6369_v48, %v8967_v15  ;;  %v3782_v16 = vshrl.u32 %v6370_v50, %v8967_v15 }
 0x37f   : > { %5659 = vperm.xlu1 %6135, %v5549_v54   ;;  %v3267_v45 = vadd.f32 -0.4999988, %v3266_v53  ;;  %v3274_v55 = vadd.f32 -0.16666654, %v3273_v63  ;;  %v4009_v61 = vadd.s32 536870912, %v4008_v35  ;;  %v3784_v22 = vshll.u32 %v6370_v50, %v3769_v39 }
 0x380   : > { %v3774_v4 = vor.u32 %v3773_v5, %v3772_v13  ;;  %v3785_v19 = vshrl.u32 %v6371_v59, %v8967_v15  ;;  %v8993_v7 = vor.u32 %v3776_v57, %v3775_v12  ;;  %v3783_v32 = vor.u32 %v3782_v16, %v3781_v31 }
 0x381   : > { %v3268_v40 = vmul.f32 %v3267_v45, %v3263_v51  ;;  %v3275_v3 = vmul.f32 %v3274_v55, %v3263_v51  ;;  %v8988_v62 = vshrl.u32 %v4009_v61, 30  ;;  %vm3787_vm4 = vcmp.lt.s32.totalorder %v8978_v2, 1 }
 0x382   : > { %v8997_v51 = vshll.u32 %v3763_v60, 8  ;;  %v3780_v33 = vor.u32 %v3779_v1, %v3778_v52  ;;  %vm3790_vm5 = vcmp.lt.s32.totalorder %v8978_v2, 4  ;;  %v3786_v43 = vor.u32 %v3785_v19, %v3784_v22 }
 0x383   : > { %v3269_v24 = vadd.f32 1.0, %v3268_v40  ;;  %v3276_v41 = vadd.f32 1.0, %v3275_v3  ;;  %v4011_v18 = vshll.u32 %v8988_v62, 30  ;;  %vm3788_vm6 = vcmp.lt.s32.totalorder %v8978_v2, 2 }
 0x384   : > { %vm3789_vm7 = vcmp.lt.s32.totalorder %v8978_v2, 3  ;;  %v3795_v39 = vsel %vm3787_vm4, %v3774_v4, %v8993_v7  ;;  %vm3278_vm8 = vweird.f32 %v8650_v17  ;;  %v301_v37 = vand.u32 2147483647, %v269_v14 }
 0x385   : > { %v3277_v20 = vmul.f32 %v3276_v41, %v3261_v56  ;;  %v3286_v36 = vxor.u32 2147483648, %v3269_v24  ;;  %v4012_v58 = vsub.s32 %v4008_v35, %v4011_v18  ;;  %v3796_v56 = vsel %vm3790_vm5, %v3783_v32, 920167782 }
 0x386   : > { %v3797_v6 = vsel %vm3789_vm7, %v3780_v33, %v3796_v56  ;;  %v3799_v54 = vsel %vm3787_vm4, %v8993_v7, %v3780_v33  ;;  %v3804_v53 = vand.u32 65535, %v8997_v51  ;;  %v3800_v35 = vsel %vm3790_vm5, %v3786_v43, 1326507024 }
 0x387   : > { %v3283_v8 = vxor.u32 2147483648, %v3277_v20  ;;  %v3287_v30 = vsel %vm3285_vm1, %v3286_v36, %v3277_v20  ;;  %vm4013_vm9 = vcmp.lt.s32.totalorder %v4012_v58, 0  ;;  %v4014_v27 = vsub.s32 0, %v4012_v58 }
 0x388   : > { %v3798_v17 = vsel %vm3788_vm6, %v3795_v39, %v3797_v6  ;;  %v3771_v5 = vshrl.u32 %v6366_v42, %v8967_v15  ;;  %v3801_v45 = vsel %vm3789_vm7, %v3783_v32, %v3800_v35  ;;  %v3805_v12 = vshrl.u32 %v8997_v51, 16 }
 0x389   : > { %v3284_v25 = vsel %vm3282_vm2, %v3269_v24, %v3283_v8  ;;  %v4015_v28 = vsel %vm4013_vm9, %v4014_v27, %v4012_v58  ;;  %v3802_v23 = vsel %vm3788_vm6, %v3799_v54, %v3801_v45  ;;  %v3829_v31 = vshrl.u32 %v3798_v17, 16 }
 0x38a   : > { %v3288_v63 = vsel %vm3281_vm3, %v3284_v25, %v3287_v30  ;;  %v4016_v13 = vclz %v4015_v28  ;;  %v3806_v61 = vand.u32 65535, %v3802_v23  ;;  %v3807_v52 = vshrl.u32 %v3802_v23, 16 }
 0x38b   : > { %v3289_v60 = vsel %vm3278_vm8, nan, %v3288_v63  ;;  %v4004_v3 = vadd.s32 %v8956_v47, %v8954_v49  ;;  %v3828_v1 = vand.u32 65535, %v3798_v17  ;;  %v9034_v15 = vmul.f32 %v6472_v11, %v301_v37 }
 0x38c   : > { %v5323_v55 = vmul.f32 -2.0, %v3289_v60  ;;  %v6025_v57 = vadd.s32 4294967294, %v4016_v13  ;;  %vm3912_vm10 = vcmp.lt.s32.totalorder %v8813_v34, 0  ;;  %v3791_v16 = vsel %vm3787_vm4, %v3771_v5, %v3774_v4 }
 0x38d   : > { %v3792_v29 = vsel %vm3790_vm5, %v3780_v33, 2102212464  ;;  %v3809_v21 = vmul.u32 %v3807_v52, %v3804_v53  ;;  %v3808_v19 = vmul.u32 %v3806_v61, %v3804_v53  ;;  %v3810_v24 = vmul.u32 %v3806_v61, %v3805_v12 }
 0x38e   : > { %v5373_v40 = vmul.f32 1.442695, %v5323_v55  ;;  %vm6026_vm11 = vcmp.lt.s32.totalorder %v6025_v57, 0  ;;  %v3831_v32 = vmul.u32 %v3829_v31, %v3804_v53  ;;  %v4034_v18 = vsub.s32 4, %v8988_v62 }
 0x38f   : > { %v4019_v22 = vsel %vm6026_vm11, 0, %v6025_v57  ;;  %v3811_v14 = vmul.u32 %v3807_v52, %v3805_v12  ;;  %v3812_v20 = vshll.u32 %v3809_v21, 16  ;;  %v3832_v36 = vmul.u32 %v3828_v1, %v3805_v12 }
 0x390   : > { %6217 = vpow2.f32 %v5373_v40  ;;  %v4020_v41 = vsub.s32 32, %v4019_v22  ;;  %v4021_v49 = vshll.u32 %v4012_v58, %v4019_v22  ;;  %v4024_v47 = vsub.s32 4294967266, %v4019_v22 }
 0x391   : > { %vm9044_vm12 = vcmp.le.f32.partialorder %v3910_v10, 0.7853982  ;;  %v3793_v8 = vsel %vm3789_vm7, %v8993_v7, %v3792_v29  ;;  %v3814_v58 = vshll.u32 %v3810_v24, 16  ;;  %v3813_v30 = vshrl.u32 %v3809_v21, 16 }
 0x392   : > { %v4022_v33 = vshrl.u32 %v4004_v3, %v4020_v41  ;;  %v4025_v43 = vadd.s32 127, %v4024_v47  ;;  %vm3816_vm13 = vc.u32 %v3808_v19, %v3812_v20  ;;  %v3818_v39 = vadd.s32 %v3812_v20, %v3808_v19 }
 0x393   : > { %v3830_v56 = vmul.u32 %v3828_v1, %v3804_v53  ;;  %v3817_v25 = vsel %vm3816_vm13, 1, %v6365_v0  ;;  %v3834_v6 = vshll.u32 %v3831_v32, 16  ;;  %v3833_v63 = vmul.u32 %v3829_v31, %v3805_v12 }
 0x394   : > { %v4023_v27 = vor.u32 %v4022_v33, %v4021_v49  ;;  %v4026_v37 = vshll.u32 %v4025_v43, 23  ;;  %v3819_v54 = vadd.s32 %v3817_v25, %v3811_v14  ;;  %vm3820_vm14 = vc.u32 %v3818_v39, %v3814_v58 }
 0x395   : > { %v3836_v28 = vshll.u32 %v3832_v36, 16  ;;  %v3821_v7 = vsel %vm3820_vm14, 1, %v6365_v0  ;;  %v4035_v53 = vsel %vm3912_vm10, %v4034_v18, %v8988_v62  ;;  %vm3838_vm15 = vc.u32 %v3830_v56, %v3834_v6 }
 0x396   : > { %v6218_v10 = vpop.eup %6217  ;;  %v4027_v35 = vor.u32 4788187, %v4026_v37  ;;  %v4030_v60 = vcvt.s32.f32 %v4023_v27  ;;  %v3823_v13 = vadd.s32 %v3821_v7, %v3819_v54  ;;  %v3840_v5 = vadd.s32 %v3834_v6, %v3830_v56 }
 0x397   : > { %v5420_v17 = vmul.f32 %v6218_v10, %v6794_v38  ;;  %v3815_v23 = vshrl.u32 %v3810_v24, 16  ;;  %v3839_v57 = vsel %vm3838_vm15, 1, %v6365_v0  ;;  %v3835_v61 = vshrl.u32 %v3831_v32, 16 }
 0x398   : > { %v4028_v55 = vand.u32 2147483647, %v4027_v35  ;;  %v3824_v12 = vadd.s32 %v3823_v13, %v3813_v30  ;;  %v3841_v52 = vadd.s32 %v3839_v57, %v3833_v63  ;;  %vm3842_vm0 = vc.u32 %v3840_v5, %v3836_v28 }
 0x399   : > { %v5452_v45 = vmul.f32 -0.5, %v5420_v17  ;;  %v3843_v3 = vsel %vm3842_vm0, 1, %v6365_v0  ;;  %v3603_v1 = vand.u32 2139095040, %v9034_v15  ;;  %v4037_v62 = vsel %vm9044_vm12, 0, %v4035_v53 }
 0x39a   : > { %v4031_v40 = vmul.f32 %v4030_v60, %v4028_v55  ;;  %v3837_v29 = vshrl.u32 %v3832_v36, 16  ;;  %v9062_v21 = vadd.s32 %v3840_v5, %v3836_v28  ;;  %v3845_v22 = vadd.s32 %v3843_v3, %v3841_v52 }
 0x39b   : > { %v5502_v31 = vmul.f32 1.442695, %v5452_v45  ;;  %v9064_v24 = vadd.s32 %v3824_v12, %v3815_v23  ;;  %v3604_v41 = vshrl.u32 %v3603_v1, 23  ;;  %v3794_v49 = vsel %vm3788_vm6, %v3791_v16, %v3793_v8  ;;  %v209_v16 = vld [vmem:[%s6458_s7 + $0xd0] sm:$0xff] }
 0x39c   : > { %v4032_v19 = vxor.u32 2147483648, %v4031_v40  ;;  %v3846_v47 = vadd.s32 %v3845_v22, %v3835_v61  ;;  %v3600_v32 = vand.u32 2147483647, %v9034_v15  ;;  %v4054_v14 = vadd.s32 3, %v4037_v62  ;;  %v242_v8 = vld [vmem:[%s6465_s10 + $0xd0] sm:$0xff] }
 0x39d   : > { %6219 = vpow2.f32 %v5502_v31  ;;  %v6018_v20 = vadd.s32 4294967169, %v3604_v41  ;;  %v3848_v58 = vmul.u32 %v8997_v51, %v3794_v49  ;;  %vm3850_vm1 = vc.u32 %v9064_v24, %v9062_v21 }
 0x39e   : > { %v4033_v18 = vsel %vm3912_vm10, %v4032_v19, %v4031_v40  ;;  %v3847_v33 = vadd.s32 %v3846_v47, %v3837_v29  ;;  %v3607_v39 = vand.u32 8388607, %v3600_v32  ;;  %v9081_v25 = vand.u32 3, %v4054_v14 }
 0x39f   : > { %v4036_v36 = vsel %vm9044_vm12, %v8813_v34, %v4033_v18  ;;  %v3610_v2 = vadd.s32 1, %v6018_v20  ;;  %v274_v51 = vsub.f32 %v209_v16, %v242_v8  ;;  %vm4053_vm6 = vweird.f32 %v8813_v34 }
 0x3a0   : > { %v4038_v43 = vmul.f32 %v4036_v36, %v4036_v36  ;;  %v3851_v30 = vadd.s32 1, %v3847_v33  ;;  %vm4057_vm3 = vcmp.eq.s32.totalorder %v9081_v25, 0  ;;  %vm4060_vm4 = vcmp.eq.s32.totalorder %v9081_v25, 2 }
 0x3a1   : > { %vm3611_vm2 = vcmp.gt.s32.totalorder %v3610_v2, 0  ;;  %v3608_v13 = vor.u32 8388608, %v3607_v39  ;;  %v306_v45 = vand.u32 2147483647, %v274_v51  ;;  %vm4056_vm5 = vcmp.lt.s32.totalorder %v9081_v25, 2 }
 0x3a2   : > { %v4039_v27 = vmul.f32 -0.001358992, %v4038_v43  ;;  %v4046_v37 = vmul.f32 -0.00019511016, %v4038_v43  ;;  %v3852_v6 = vsel %vm3850_vm1, %v3851_v30, %v3847_v33  ;;  %v3612_v10 = vsel %vm3611_vm2, %v3610_v2, 0 }
 0x3a3   : > { %v6220_v56 = vpop.eup %6219  ;;  %v3853_v28 = vadd.s32 %v3852_v6, %v3848_v58  ;;  %v3614_v35 = vand.u32 31, %v3612_v10  ;;  %v9096_v29 = vshrl.u32 %v3612_v10, 5  ;;  %v9100_v41 = vshll.u32 %v3608_v13, 8 }
 0x3a4   : > { %v5548_v4 = vmul.f32 %v6220_v56, %v5420_v17  ;;  %v4040_v54 = vadd.f32 0.041655596, %v4039_v27  ;;  %v4047_v63 = vadd.f32 0.008332121, %v4046_v37  ;;  %v9107_v39 = vmul.f32 %v6472_v11, %v306_v45 }
 0x3a5   : > { %v3854_v53 = vadd.s32 536870912, %v3853_v28  ;;  %v3615_v5 = vsub.s32 32, %v3614_v35  ;;  %v3617_v57 = vshll.u32 %v6366_v42, %v3614_v35  ;;  %v3620_v61 = vshll.u32 %v6367_v44, %v3614_v35 }
 0x3a6   : > { %5654 = vperm.xlu0 %6134, %v5548_v4   ;;  %v4041_v60 = vmul.f32 %v4040_v54, %v4038_v43  ;;  %v4048_v7 = vmul.f32 %v4047_v63, %v4038_v43  ;;  %v3626_v31 = vshll.u32 %v6369_v48, %v3614_v35  ;;  %v3623_v22 = vshll.u32 %v6368_v46, %v3614_v35 }
 0x3a7   : > { %v9086_v23 = vshrl.u32 %v3854_v53, 30  ;;  %v3618_v12 = vshrl.u32 %v6367_v44, %v3615_v5  ;;  %v3621_v52 = vshrl.u32 %v6368_v46, %v3615_v5  ;;  %v3627_v62 = vshrl.u32 %v6370_v50, %v3615_v5 }
 0x3a8   : > { %v4042_v55 = vadd.f32 -0.4999988, %v4041_v60  ;;  %v4049_v17 = vadd.f32 -0.16666654, %v4048_v7  ;;  %v3624_v19 = vshrl.u32 %v6369_v48, %v3615_v5  ;;  %v3630_v58 = vshrl.u32 %v6371_v59, %v3615_v5 }
 0x3a9   : > { %v3856_v1 = vshll.u32 %v9086_v23, 30  ;;  %v3619_v14 = vor.u32 %v3618_v12, %v3617_v57  ;;  %v3622_v20 = vor.u32 %v3621_v52, %v3620_v61  ;;  %v3628_v33 = vor.u32 %v3627_v62, %v3626_v31 }
 0x3aa   : > { %v4043_v40 = vmul.f32 %v4042_v55, %v4038_v43  ;;  %v4050_v3 = vmul.f32 %v4049_v17, %v4038_v43  ;;  %v3629_v43 = vshll.u32 %v6370_v50, %v3614_v35  ;;  %v3625_v30 = vor.u32 %v3624_v19, %v3623_v22 }
 0x3ab   : > { %v3857_v18 = vsub.s32 %v3853_v28, %v3856_v1  ;;  %vm3632_vm8 = vcmp.lt.s32.totalorder %v9096_v29, 1  ;;  %vm3635_vm9 = vcmp.lt.s32.totalorder %v9096_v29, 4  ;;  %vm3634_vm10 = vcmp.lt.s32.totalorder %v9096_v29, 3 }
 0x3ac   : > { %v4044_v49 = vadd.f32 1.0, %v4043_v40  ;;  %v4051_v47 = vadd.f32 1.0, %v4050_v3  ;;  %vm3757_vm11 = vcmp.lt.s32.totalorder %v8868_v9, 0  ;;  %v3631_v6 = vor.u32 %v3630_v58, %v3629_v43 }
 0x3ad   : > { %vm3858_vm7 = vcmp.lt.s32.totalorder %v3857_v18, 0  ;;  %v3859_v8 = vsub.s32 0, %v3857_v18  ;;  %v3650_v10 = vshrl.u32 %v9100_v41, 16  ;;  %vm3633_vm12 = vcmp.lt.s32.totalorder %v9096_v29, 2 }
 0x3ae   : > { %v4052_v2 = vmul.f32 %v4051_v47, %v4036_v36  ;;  %v4061_v16 = vxor.u32 2147483648, %v4044_v49  ;;  %v3849_v36 = vadd.s32 %v9062_v21, %v9064_v24  ;;  %v3640_v54 = vsel %vm3632_vm8, %v3619_v14, %v3622_v20 }
 0x3af   : > { %v3860_v37 = vsel %vm3858_vm7, %v3859_v8, %v3857_v18  ;;  %v3641_v63 = vsel %vm3635_vm9, %v3628_v33, 920167782  ;;  %v4378_v24 = vand.u32 2139095040, %v9107_v39  ;;  %vm9132_vm13 = vcmp.le.f32.partialorder %v3755_v26, 0.7853982 }
 0x3b0   : > { %v4058_v56 = vxor.u32 2147483648, %v4052_v2  ;;  %v4062_v27 = vsel %vm4060_vm4, %v4061_v16, %v4052_v2  ;;  %v3861_v4 = vclz %v3860_v37  ;;  %v3642_v21 = vsel %vm3634_vm10, %v3625_v30, %v3641_v63 }
 0x3b1   : > { %v3879_v53 = vsub.s32 4, %v9086_v23  ;;  %v3616_v25 = vshrl.u32 %v6366_v42, %v3615_v5  ;;  %v3644_v13 = vsel %vm3632_vm8, %v3622_v20, %v3625_v30  ;;  %v3643_v55 = vsel %vm3633_vm12, %v3640_v54, %v3642_v21 }
 0x3b2   : > { %v4059_v51 = vsel %vm4057_vm3, %v4044_v49, %v4058_v56  ;;  %v6022_v35 = vadd.s32 4294967294, %v3861_v4  ;;  %v3645_v34 = vsel %vm3635_vm9, %v3631_v6, 1326507024  ;;  %v3637_v26 = vsel %vm3635_vm9, %v3625_v30, 2102212464 }
 0x3b3   : > { %v4063_v28 = vsel %vm4056_vm5, %v4059_v51, %v4062_v27  ;;  %v3646_v57 = vsel %vm3634_vm10, %v3628_v33, %v3645_v34  ;;  %v3673_v12 = vand.u32 65535, %v3643_v55  ;;  %v9150_v40 = vsel %vm3632_vm8, %v3616_v25, %v3619_v14 }
 0x3b4   : > { %v4064_v60 = vsel %vm4053_vm6, nan, %v4063_v28  ;;  %vm6023_vm14 = vcmp.lt.s32.totalorder %v6022_v35, 0  ;;  %v3647_v3 = vsel %vm3633_vm12, %v3644_v13, %v3646_v57  ;;  %v3649_v1 = vand.u32 65535, %v9100_v41 }
 0x3b5   : > { %v5328_v45 = vmul.f32 -2.0, %v4064_v60  ;;  %v3864_v17 = vsel %vm6023_vm14, 0, %v6022_v35  ;;  %v4379_v62 = vshrl.u32 %v4378_v24, 23  ;;  %v3651_v49 = vand.u32 65535, %v3647_v3 }
 0x3b6   : > { %v3865_v61 = vsub.s32 32, %v3864_v17  ;;  %v3866_v52 = vshll.u32 %v3857_v18, %v3864_v17  ;;  %v3869_v31 = vsub.s32 4294967266, %v3864_v17  ;;  %v3880_v47 = vsel %vm3757_vm11, %v3879_v53, %v9086_v23 }
 0x3b7   : > { %v5383_v5 = vmul.f32 1.442695, %v5328_v45  ;;  %v3638_v18 = vsel %vm3634_vm10, %v3622_v20, %v3637_v26  ;;  %v3652_v33 = vshrl.u32 %v3647_v3, 16  ;;  %v3674_v14 = vshrl.u32 %v3643_v55, 16 }
 0x3b8   : > { %v3867_v22 = vshrl.u32 %v3849_v36, %v3865_v61  ;;  %v3870_v19 = vadd.s32 127, %v3869_v31  ;;  %v3655_v2 = vmul.u32 %v3651_v49, %v3650_v10  ;;  %v3677_v16 = vmul.u32 %v3673_v12, %v3650_v10 }
 0x3b9   : > { %6221 = vpow2.f32 %v5383_v5  ;;  %v3653_v8 = vmul.u32 %v3651_v49, %v3649_v1  ;;  %v3654_v30 = vmul.u32 %v3652_v33, %v3649_v1  ;;  %v3675_v56 = vmul.u32 %v3673_v12, %v3649_v1 }
 0x3ba   : > { %v3868_v43 = vor.u32 %v3867_v22, %v3866_v52  ;;  %v3871_v58 = vshll.u32 %v3870_v19, 23  ;;  %v3676_v27 = vmul.u32 %v3674_v14, %v3649_v1  ;;  %v3882_v4 = vsel %vm9132_vm13, 0, %v3880_v47 }
 0x3bb   : > { %v3656_v6 = vmul.u32 %v3652_v33, %v3650_v10  ;;  %v3657_v23 = vshll.u32 %v3654_v30, 16  ;;  %v3659_v51 = vshll.u32 %v3655_v2, 16  ;;  %v3678_v54 = vmul.u32 %v3674_v14, %v3650_v10 }
 0x3bc   : > { %v3872_v37 = vor.u32 4788187, %v3871_v58  ;;  %v3875_v36 = vcvt.s32.f32 %v3868_v43  ;;  %v3679_v20 = vshll.u32 %v3676_v27, 16  ;;  %v3658_v35 = vshrl.u32 %v3654_v30, 16 }
 0x3bd   : > { %v3660_v21 = vshrl.u32 %v3655_v2, 16  ;;  %v3681_v24 = vshll.u32 %v3677_v16, 16  ;;  %vm3661_vm15 = vc.u32 %v3653_v8, %v3657_v23  ;;  %v3663_v53 = vadd.s32 %v3657_v23, %v3653_v8 }
 0x3be   : > { %v3873_v28 = vand.u32 2147483647, %v3872_v37  ;;  %vm3683_vm0 = vc.u32 %v3675_v56, %v3679_v20  ;;  %v3662_v13 = vsel %vm3661_vm15, 1, %v6365_v0  ;;  %v3685_v55 = vadd.s32 %v3679_v20, %v3675_v56 }
 0x3bf   : > { %v6222_v63 = vpop.eup %6221  ;;  %v3684_v45 = vsel %vm3683_vm0, 1, %v6365_v0  ;;  %v3664_v17 = vadd.s32 %v3662_v13, %v3656_v6  ;;  %vm3665_vm1 = vc.u32 %v3663_v53, %v3659_v51  ;;  %v3680_v12 = vshrl.u32 %v3676_v27, 16 }
 0x3c0   : > { %v5425_v60 = vmul.f32 %v6222_v63, %v6794_v38  ;;  %v3876_v25 = vmul.f32 %v3875_v36, %v3873_v28  ;;  %v3686_v10 = vadd.s32 %v3684_v45, %v3678_v54  ;;  %v3666_v57 = vsel %vm3665_vm1, 1, %v6365_v0 }
 0x3c1   : > { %vm3687_vm2 = vc.u32 %v3685_v55, %v3681_v24  ;;  %v3668_v61 = vadd.s32 %v3666_v57, %v3664_v17  ;;  %v6033_v31 = vadd.s32 4294967169, %v4379_v62  ;;  %v3682_v1 = vshrl.u32 %v3677_v16, 16 }
 0x3c2   : > { %v5457_v34 = vmul.f32 -0.5, %v5425_v60  ;;  %v3877_v26 = vxor.u32 2147483648, %v3876_v25  ;;  %v3688_v52 = vsel %vm3687_vm2, 1, %v6365_v0  ;;  %v9169_v22 = vadd.s32 %v3685_v55, %v3681_v24 }
 0x3c3   : > { %v3690_v19 = vadd.s32 %v3688_v52, %v3686_v10  ;;  %v3669_v47 = vadd.s32 %v3668_v61, %v3658_v35  ;;  %v4385_v33 = vadd.s32 1, %v6033_v31  ;;  %v3639_v43 = vsel %vm3633_vm12, %v9150_v40, %v3638_v18 }
 0x3c4   : > { %v5512_v5 = vmul.f32 1.442695, %v5457_v34  ;;  %v3878_v3 = vsel %vm3757_vm11, %v3877_v26, %v3876_v25  ;;  %v3899_v58 = vadd.s32 3, %v3882_v4  ;;  %v3693_v27 = vmul.u32 %v9100_v41, %v3639_v43 }
 0x3c5   : > { %v3881_v49 = vsel %vm9132_vm13, %v8868_v9, %v3878_v3  ;;  %v3691_v62 = vadd.s32 %v3690_v19, %v3680_v12  ;;  %v9177_v2 = vadd.s32 %v3669_v47, %v3660_v21  ;;  %vm4386_vm3 = vcmp.gt.s32.totalorder %v4385_v33, 0 }
 0x3c6   : > { %6223 = vpow2.f32 %v5512_v5  ;;  %v3883_v14 = vmul.f32 %v3881_v49, %v3881_v49  ;;  %v4387_v56 = vsel %vm4386_vm3, %v4385_v33, 0  ;;  %v4375_v7 = vand.u32 2147483647, %v9107_v39 }
 0x3c7   : > { %v3692_v30 = vadd.s32 %v3691_v62, %v3682_v1  ;;  %vm3695_vm4 = vc.u32 %v9177_v2, %v9169_v22  ;;  %v4389_v37 = vand.u32 31, %v4387_v56  ;;  %v3900_v4 = vand.u32 3, %v3899_v58 }
 0x3c8   : > { %v3884_v16 = vmul.f32 -0.001358992, %v3883_v14  ;;  %v3891_v8 = vmul.f32 -0.00019511016, %v3883_v14  ;;  %v4382_v41 = vand.u32 8388607, %v4375_v7  ;;  %vm3898_vm5 = vweird.f32 %v8868_v9 }
 0x3c9   : > { %v3696_v40 = vadd.s32 1, %v3692_v30  ;;  %v9183_v6 = vsub.s32 32, %v4389_v37  ;;  %v9187_v28 = vshrl.u32 %v4387_v56, 5  ;;  %v4392_v35 = vshll.u32 %v6366_v42, %v4389_v37  ;;  %v208_v56 = vld [vmem:[%s6458_s7 + $0xc8] sm:$0xff] }
 0x3ca   : > { %v3885_v36 = vadd.f32 0.041655596, %v3884_v16  ;;  %v3892_v29 = vadd.f32 0.008332121, %v3891_v8  ;;  %v4395_v25 = vshll.u32 %v6367_v44, %v4389_v37  ;;  %v4401_v45 = vshll.u32 %v6369_v48, %v4389_v37 }
 0x3cb   : > { %v3697_v20 = vsel %vm3695_vm4, %v3696_v40, %v3692_v30  ;;  %v4393_v53 = vshrl.u32 %v6367_v44, %v9183_v6  ;;  %v4396_v13 = vshrl.u32 %v6368_v46, %v9183_v6  ;;  %v4402_v55 = vshrl.u32 %v6370_v50, %v9183_v6 }
 0x3cc   : > { %v6224_v18 = vpop.eup %6223  ;;  %v3886_v51 = vmul.f32 %v3885_v36, %v3883_v14  ;;  %v3893_v54 = vmul.f32 %v3892_v29, %v3883_v14  ;;  %v3698_v63 = vadd.s32 %v3697_v20, %v3693_v27  ;;  %v4398_v10 = vshll.u32 %v6368_v46, %v4389_v37  ;;  %v241_v27 = vld [vmem:[%s6465_s10 + $0xc8] sm:$0xff] }
 0x3cd   : > { %v5553_v23 = vmul.f32 %v6224_v18, %v5425_v60  ;;  %v4399_v26 = vshrl.u32 %v6369_v48, %v9183_v6  ;;  %vm3902_vm6 = vcmp.eq.s32.totalorder %v3900_v4, 0  ;;  %v4404_v12 = vshll.u32 %v6370_v50, %v4389_v37 }
 0x3ce   : > { %v3887_v21 = vadd.f32 -0.4999988, %v3886_v51  ;;  %v3894_v24 = vadd.f32 -0.16666654, %v3893_v54  ;;  %v3699_v60 = vadd.s32 536870912, %v3698_v63  ;;  %v4405_v5 = vshrl.u32 %v6371_v59, %v9183_v6 }
 0x3cf   : > { %5679 = vperm.xlu2 %6136, %v5553_v23   ;;  %vm3905_vm7 = vcmp.eq.s32.totalorder %v3900_v4, 2  ;;  %v4383_v31 = vor.u32 8388608, %v4382_v41  ;;  %v4394_v1 = vor.u32 %v4393_v53, %v4392_v35  ;;  %v9208_v19 = vor.u32 %v4396_v13, %v4395_v25 }
 0x3d0   : > { %v3888_v34 = vmul.f32 %v3887_v21, %v3883_v14  ;;  %v3895_v17 = vmul.f32 %v3894_v24, %v3883_v14  ;;  %v9202_v57 = vshrl.u32 %v3699_v60, 30  ;;  %v4403_v47 = vor.u32 %v4402_v55, %v4401_v45 }
 0x3d1   : > { %v4400_v43 = vor.u32 %v4399_v26, %v4398_v10  ;;  %vm4410_vm8 = vcmp.lt.s32.totalorder %v9187_v28, 4  ;;  %v4406_v58 = vor.u32 %v4405_v5, %v4404_v12  ;;  %vm4407_vm9 = vcmp.lt.s32.totalorder %v9187_v28, 1 }
 0x3d2   : > { %v3889_v61 = vadd.f32 1.0, %v3888_v34  ;;  %v3896_v52 = vadd.f32 1.0, %v3895_v17  ;;  %v3701_v3 = vshll.u32 %v9202_v57, 30  ;;  %vm4409_vm10 = vcmp.lt.s32.totalorder %v9187_v28, 3 }
 0x3d3   : > { %vm3901_vm11 = vcmp.lt.s32.totalorder %v3900_v4, 2  ;;  %v9216_v30 = vshll.u32 %v4383_v31, 8  ;;  %vm4408_vm13 = vcmp.lt.s32.totalorder %v9187_v28, 2  ;;  %v4416_v37 = vsel %vm4410_vm8, %v4403_v47, 920167782 }
 0x3d4   : > { %v3897_v33 = vmul.f32 %v3896_v52, %v3881_v49  ;;  %v3906_v14 = vxor.u32 2147483648, %v3889_v61  ;;  %v9211_v62 = vsub.s32 %v3698_v63, %v3701_v3  ;;  %v4415_v29 = vsel %vm4407_vm9, %v4394_v1, %v9208_v19 }
 0x3d5   : > { %v4417_v40 = vsel %vm4409_vm10, %v4400_v43, %v4416_v37  ;;  %v4419_v18 = vsel %vm4407_vm9, %v9208_v19, %v4400_v43  ;;  %v4420_v54 = vsel %vm4410_vm8, %v4406_v58, 1326507024  ;;  %v273_v20 = vsub.f32 %v208_v56, %v241_v27 }
 0x3d6   : > { %v3903_v16 = vxor.u32 2147483648, %v3897_v33  ;;  %v3907_v8 = vsel %vm3905_vm7, %v3906_v14, %v3897_v33  ;;  %vm3703_vm12 = vcmp.lt.s32.totalorder %v9211_v62, 0  ;;  %v3704_v49 = vsub.s32 0, %v9211_v62 }
 0x3d7   : > { %v4421_v41 = vsel %vm4409_vm10, %v4403_v47, %v4420_v54  ;;  %v4424_v35 = vand.u32 65535, %v9216_v30  ;;  %v4418_v24 = vsel %vm4408_vm13, %v4415_v29, %v4417_v40  ;;  %v4425_v25 = vshrl.u32 %v9216_v30, 16 }
 0x3d8   : > { %v3904_v36 = vsel %vm3902_vm6, %v3889_v61, %v3903_v16  ;;  %v3705_v51 = vsel %vm3703_vm12, %v3704_v49, %v9211_v62  ;;  %v4422_v53 = vsel %vm4408_vm13, %v4419_v18, %v4421_v41  ;;  %v4391_v9 = vshrl.u32 %v6366_v42, %v9183_v6 }
 0x3d9   : > { %v3908_v23 = vsel %vm3901_vm11, %v3904_v36, %v3907_v8  ;;  %v3706_v63 = vclz %v3705_v51  ;;  %v4426_v13 = vand.u32 65535, %v4422_v53  ;;  %v4427_v45 = vshrl.u32 %v4422_v53, 16 }
 0x3da   : > { %v3909_v4 = vsel %vm3898_vm5, nan, %v3908_v23  ;;  %v3694_v34 = vadd.s32 %v9169_v22, %v9177_v2  ;;  %v305_v17 = vand.u32 2147483647, %v273_v20  ;;  %vm3602_vm14 = vcmp.lt.s32.totalorder %v9034_v15, 0 }
 0x3db   : > { %v5327_v21 = vmul.f32 -2.0, %v3909_v4  ;;  %v6019_v60 = vadd.s32 4294967294, %v3706_v63  ;;  %v4429_v10 = vmul.u32 %v4427_v45, %v4424_v35  ;;  %v4448_v26 = vand.u32 65535, %v4418_v24 }
 0x3dc   : > { %v4449_v12 = vshrl.u32 %v4418_v24, 16  ;;  %v4428_v61 = vmul.u32 %v4426_v13, %v4424_v35  ;;  %v4430_v52 = vmul.u32 %v4426_v13, %v4425_v25  ;;  %v4411_v47 = vsel %vm4407_vm9, %v4391_v9, %v4394_v1 }
 0x3dd   : > { %v5381_v55 = vmul.f32 1.442695, %v5327_v21  ;;  %vm6020_vm15 = vcmp.lt.s32.totalorder %v6019_v60, 0  ;;  %v3724_v22 = vsub.s32 4, %v9202_v57  ;;  %v4412_v2 = vsel %vm4410_vm8, %v4400_v43, 2102212464 }
 0x3de   : > { %v3709_v5 = vsel %vm6020_vm15, 0, %v6019_v60  ;;  %v4431_v33 = vmul.u32 %v4427_v45, %v4425_v25  ;;  %v4432_v14 = vshll.u32 %v4429_v10, 16  ;;  %vm9260_vm0 = vcmp.le.f32.partialorder %v3600_v32, 0.7853982 }
 0x3df   : > { %6225 = vpow2.f32 %v5381_v55  ;;  %v3710_v31 = vsub.s32 32, %v3709_v5  ;;  %v3711_v6 = vshll.u32 %v9211_v62, %v3709_v5  ;;  %v3714_v3 = vsub.s32 4294967266, %v3709_v5 }
 0x3e0   : > { %v4434_v62 = vshll.u32 %v4430_v52, 16  ;;  %v4450_v56 = vmul.u32 %v4448_v26, %v4424_v35  ;;  %vm4436_vm1 = vc.u32 %v4428_v61, %v4432_v14  ;;  %v4438_v27 = vadd.s32 %v4432_v14, %v4428_v61 }
 0x3e1   : > { %v3712_v16 = vshrl.u32 %v3694_v34, %v3710_v31  ;;  %v3715_v8 = vadd.s32 127, %v3714_v3  ;;  %v4451_v1 = vmul.u32 %v4449_v12, %v4424_v35  ;;  %v4452_v49 = vmul.u32 %v4448_v26, %v4425_v25 }
 0x3e2   : > { %v4433_v29 = vshrl.u32 %v4429_v10, 16  ;;  %v4437_v43 = vsel %vm4436_vm1, 1, %v6365_v0  ;;  %vm4440_vm2 = vc.u32 %v4438_v27, %v4434_v62  ;;  %v4453_v32 = vmul.u32 %v4449_v12, %v4425_v25  ;;  %v240_v27 = vld [vmem:[%s6465_s10 + $0xc0] sm:$0xff] }
 0x3e3   : > { %v3713_v37 = vor.u32 %v3712_v16, %v3711_v6  ;;  %v3716_v36 = vshll.u32 %v3715_v8, 23  ;;  %v4439_v18 = vadd.s32 %v4437_v43, %v4431_v33  ;;  %v4454_v23 = vshll.u32 %v4451_v1, 16 }
 0x3e4   : > { %v4441_v4 = vsel %vm4440_vm2, 1, %v6365_v0  ;;  %v3725_v63 = vsel %vm3602_vm14, %v3724_v22, %v9202_v57  ;;  %v4456_v35 = vshll.u32 %v4452_v49, 16  ;;  %v4435_v25 = vshrl.u32 %v4430_v52, 16 }
 0x3e5   : > { %v6226_v40 = vpop.eup %6225  ;;  %v3717_v54 = vor.u32 4788187, %v3716_v36  ;;  %v3720_v20 = vcvt.s32.f32 %v3713_v37  ;;  %v4443_v41 = vadd.s32 %v4441_v4, %v4439_v18  ;;  %vm4458_vm3 = vc.u32 %v4450_v56, %v4454_v23 }
 0x3e6   : > { %v5424_v51 = vmul.f32 %v6226_v40, %v6794_v38  ;;  %v4459_v53 = vsel %vm4458_vm3, 1, %v6365_v0  ;;  %v4460_v60 = vadd.s32 %v4454_v23, %v4450_v56  ;;  %v9272_v45 = vmul.f32 %v6472_v11, %v305_v17  ;;  %v207_v56 = vld [vmem:[%s6458_s7 + $0xc0] sm:$0xff] }
 0x3e7   : > { %v3718_v24 = vand.u32 2147483647, %v3717_v54  ;;  %v4444_v9 = vadd.s32 %v4443_v41, %v4433_v29  ;;  %v4461_v13 = vadd.s32 %v4459_v53, %v4453_v32  ;;  %v4455_v10 = vshrl.u32 %v4451_v1, 16 }
 0x3e8   : > { %v5456_v21 = vmul.f32 -0.5, %v5424_v51  ;;  %vm4462_vm4 = vc.u32 %v4460_v60, %v4456_v35  ;;  %v3727_v57 = vsel %vm9260_vm0, 0, %v3725_v63  ;;  %v4413_v26 = vsel %vm4409_vm10, %v9208_v19, %v4412_v2 }
 0x3e9   : > { %v3721_v34 = vmul.f32 %v3720_v20, %v3718_v24  ;;  %v4463_v12 = vsel %vm4462_vm4, 1, %v6365_v0  ;;  %v4223_v5 = vand.u32 2139095040, %v9272_v45  ;;  %v4457_v61 = vshrl.u32 %v4452_v49, 16 }
 0x3ea   : > { %v5510_v55 = vmul.f32 1.442695, %v5456_v21  ;;  %v4465_v52 = vadd.s32 %v4463_v12, %v4461_v13  ;;  %v9281_v31 = vadd.s32 %v4444_v9, %v4435_v25  ;;  %v9283_v6 = vadd.s32 %v4460_v60, %v4456_v35 }
 0x3eb   : > { %v3722_v17 = vxor.u32 2147483648, %v3721_v34  ;;  %v4224_v3 = vshrl.u32 %v4223_v5, 23  ;;  %v4414_v19 = vsel %vm4408_vm13, %v4411_v47, %v4413_v26  ;;  %v3744_v14 = vadd.s32 3, %v3727_v57 }
 0x3ec   : > { %6227 = vpow2.f32 %v5510_v55  ;;  %v4466_v2 = vadd.s32 %v4465_v52, %v4455_v10  ;;  %v4468_v1 = vmul.u32 %v9216_v30, %v4414_v19  ;;  %vm4470_vm5 = vc.u32 %v9281_v31, %v9283_v6 }
 0x3ed   : > { %v3723_v22 = vsel %vm3602_vm14, %v3722_v17, %v3721_v34  ;;  %v6030_v16 = vadd.s32 4294967169, %v4224_v3  ;;  %v4220_v49 = vand.u32 2147483647, %v9272_v45  ;;  %v9298_v43 = vand.u32 3, %v3744_v14 }
 0x3ee   : > { %v3726_v33 = vsel %vm9260_vm0, %v9034_v15, %v3723_v22  ;;  %v4467_v62 = vadd.s32 %v4466_v2, %v4457_v61  ;;  %v272_v40 = vsub.f32 %v207_v56, %v240_v27  ;;  %vm3743_vm9 = vweird.f32 %v9034_v15 }
 0x3ef   : > { %v3728_v8 = vmul.f32 %v3726_v33, %v3726_v33  ;;  %v4230_v28 = vadd.s32 1, %v6030_v16  ;;  %v4227_v41 = vand.u32 8388607, %v4220_v49  ;;  %vm3747_vm7 = vcmp.eq.s32.totalorder %v9298_v43, 0 }
 0x3f0   : > { %v4471_v29 = vadd.s32 1, %v4467_v62  ;;  %v304_v24 = vand.u32 2147483647, %v272_v40  ;;  %vm3746_vm8 = vcmp.lt.s32.totalorder %v9298_v43, 2  ;;  %vm3750_vm10 = vcmp.eq.s32.totalorder %v9298_v43, 2 }
 0x3f1   : > { %v3729_v37 = vmul.f32 -0.001358992, %v3728_v8  ;;  %v3736_v36 = vmul.f32 -0.00019511016, %v3728_v8  ;;  %vm4231_vm6 = vcmp.gt.s32.totalorder %v4230_v28, 0  ;;  %v4228_v19 = vor.u32 8388608, %v4227_v41 }
 0x3f2   : > { %v6228_v47 = vpop.eup %6227  ;;  %v4472_v23 = vsel %vm4470_vm5, %v4471_v29, %v4467_v62  ;;  %v4232_v54 = vsel %vm4231_vm6, %v4230_v28, 0  ;;  %v9327_v2 = vmul.f32 %v6472_v11, %v304_v24  ;;  %vm4377_vm15 = vcmp.lt.s32.totalorder %v9107_v39, 0 }
 0x3f3   : > { %v5552_v58 = vmul.f32 %v6228_v47, %v5424_v51  ;;  %v3730_v18 = vadd.f32 0.041655596, %v3729_v37  ;;  %v3737_v32 = vadd.f32 0.008332121, %v3736_v36  ;;  %v4473_v30 = vadd.s32 %v4472_v23, %v4468_v1 }
 0x3f4   : > { %v4234_v20 = vand.u32 31, %v4232_v54  ;;  %v9323_v61 = vshrl.u32 %v4232_v54, 5  ;;  %v9347_v40 = vshll.u32 %v4228_v19, 8  ;;  %vm9382_vm2 = vcmp.le.f32.partialorder %v4375_v7, 0.7853982 }
 0x3f5   : > { %5674 = vperm.xlu1 %6135, %v5552_v58   ;;  %v3731_v4 = vmul.f32 %v3730_v18, %v3728_v8  ;;  %v3738_v63 = vmul.f32 %v3737_v32, %v3728_v8  ;;  %v4474_v35 = vadd.s32 536870912, %v4473_v30  ;;  %v4469_v58 = vadd.s32 %v9283_v6, %v9281_v31 }
 0x3f6   : > { %v9303_v51 = vsub.s32 32, %v4234_v20  ;;  %v4237_v21 = vshll.u32 %v6366_v42, %v4234_v20  ;;  %v4240_v25 = vshll.u32 %v6367_v44, %v4234_v20  ;;  %v4243_v9 = vshll.u32 %v6368_v46, %v4234_v20 }
 0x3f7   : > { %v3732_v53 = vadd.f32 -0.4999988, %v3731_v4  ;;  %v3739_v60 = vadd.f32 -0.16666654, %v3738_v63  ;;  %v9310_v13 = vshrl.u32 %v4474_v35, 30  ;;  %v4246_v10 = vshll.u32 %v6369_v48, %v4234_v20 }
 0x3f8   : > { %v4238_v55 = vshrl.u32 %v6367_v44, %v9303_v51  ;;  %v4241_v34 = vshrl.u32 %v6368_v46, %v9303_v51  ;;  %v4244_v12 = vshrl.u32 %v6369_v48, %v9303_v51  ;;  %v4247_v5 = vshrl.u32 %v6370_v50, %v9303_v51 }
 0x3f9   : > { %v3733_v57 = vmul.f32 %v3732_v53, %v3728_v8  ;;  %v3740_v26 = vmul.f32 %v3739_v60, %v3728_v8  ;;  %v4476_v17 = vshll.u32 %v9310_v13, 30  ;;  %v4249_v52 = vshll.u32 %v6370_v50, %v4234_v20 }
 0x3fa   : > { %v9331_v16 = vor.u32 %v4238_v55, %v4237_v21  ;;  %v9333_v8 = vor.u32 %v4241_v34, %v4240_v25  ;;  %v4250_v62 = vshrl.u32 %v6371_v59, %v9303_v51  ;;  %v4245_v1 = vor.u32 %v4244_v12, %v4243_v9 }
 0x3fb   : > { %v3734_v3 = vadd.f32 1.0, %v3733_v57  ;;  %v3741_v22 = vadd.f32 1.0, %v3740_v26  ;;  %v9329_v14 = vsub.s32 %v4473_v30, %v4476_v17  ;;  %v4248_v28 = vor.u32 %v4247_v5, %v4246_v10 }
 0x3fc   : > { %v4251_v37 = vor.u32 %v4250_v62, %v4249_v52  ;;  %vm4252_vm12 = vcmp.lt.s32.totalorder %v9323_v61, 1  ;;  %vm4255_vm13 = vcmp.lt.s32.totalorder %v9323_v61, 4  ;;  %vm4254_vm14 = vcmp.lt.s32.totalorder %v9323_v61, 3 }
 0x3fd   : > { %v3742_v56 = vmul.f32 %v3741_v22, %v3726_v33  ;;  %v3751_v27 = vxor.u32 2147483648, %v3734_v3  ;;  %vm4478_vm11 = vcmp.lt.s32.totalorder %v9329_v14, 0  ;;  %v4479_v47 = vsub.s32 0, %v9329_v14 }
 0x3fe   : > { %v4068_v18 = vand.u32 2139095040, %v9327_v2  ;;  %vm4253_vm0 = vcmp.lt.s32.totalorder %v9323_v61, 2  ;;  %v4260_v31 = vsel %vm4252_vm12, %v9331_v16, %v9333_v8  ;;  %v4261_v54 = vsel %vm4255_vm13, %v4248_v28, 920167782 }
 0x3ff   : > { %v3748_v36 = vxor.u32 2147483648, %v3742_v56  ;;  %v3752_v29 = vsel %vm3750_vm10, %v3751_v27, %v3742_v56  ;;  %v4480_v33 = vsel %vm4478_vm11, %v4479_v47, %v9329_v14  ;;  %v4264_v30 = vsel %vm4252_vm12, %v9333_v8, %v4245_v1 }
 0x400   : > { %v4481_v23 = vclz %v4480_v33  ;;  %v4265_v20 = vsel %vm4255_vm13, %v4251_v37, 1326507024  ;;  %v4262_v41 = vsel %vm4254_vm14, %v4245_v1, %v4261_v54  ;;  %v4269_v24 = vand.u32 65535, %v9347_v40 }
 0x401   : > { %v3749_v32 = vsel %vm3747_vm7, %v3734_v3, %v3748_v36  ;;  %v4266_v43 = vsel %vm4254_vm14, %v4248_v28, %v4265_v20  ;;  %v4270_v53 = vshrl.u32 %v9347_v40, 16  ;;  %v4263_v15 = vsel %vm4253_vm0, %v4260_v31, %v4262_v41 }
 0x402   : > { %v3753_v6 = vsel %vm3746_vm8, %v3749_v32, %v3752_v29  ;;  %v6034_v63 = vadd.s32 4294967294, %v4481_v23  ;;  %v4267_v21 = vsel %vm4253_vm0, %v4264_v30, %v4266_v43  ;;  %v4499_v34 = vsub.s32 4, %v9310_v13 }
 0x403   : > { %v3754_v4 = vsel %vm3743_vm9, nan, %v3753_v6  ;;  %v4271_v60 = vand.u32 65535, %v4267_v21  ;;  %v4272_v25 = vshrl.u32 %v4267_v21, 16  ;;  %v4293_v10 = vand.u32 65535, %v4263_v15 }
 0x404   : > { %v5326_v35 = vmul.f32 -2.0, %v3754_v4  ;;  %vm6035_vm1 = vcmp.lt.s32.totalorder %v6034_v63, 0  ;;  %v4065_v17 = vand.u32 2147483647, %v9327_v2  ;;  %v4236_v52 = vshrl.u32 %v6366_v42, %v9303_v51 }
 0x405   : > { %v4484_v55 = vsel %vm6035_vm1, 0, %v6034_v63  ;;  %v4273_v3 = vmul.u32 %v4271_v60, %v4269_v24  ;;  %v4069_v22 = vshrl.u32 %v4068_v18, 23  ;;  %v4274_v56 = vmul.u32 %v4272_v25, %v4269_v24 }
 0x406   : > { %v5379_v9 = vmul.f32 1.442695, %v5326_v35  ;;  %v4485_v26 = vsub.s32 32, %v4484_v55  ;;  %v4486_v12 = vshll.u32 %v9329_v14, %v4484_v55  ;;  %v4489_v5 = vsub.s32 4294967266, %v4484_v55 }
 0x407   : > { %v4275_v27 = vmul.u32 %v4271_v60, %v4270_v53  ;;  %v4500_v7 = vsel %vm4377_vm15, %v4499_v34, %v9310_v13  ;;  %v4257_v14 = vsel %vm4255_vm13, %v4245_v1, 2102212464  ;;  %v4294_v28 = vshrl.u32 %v4263_v15, 16 }
 0x408   : > { %6229 = vpow2.f32 %v5379_v9  ;;  %v4487_v19 = vshrl.u32 %v4469_v58, %v4485_v26  ;;  %v4490_v62 = vadd.s32 127, %v4489_v5  ;;  %v4297_v47 = vmul.u32 %v4293_v10, %v4270_v53 }
 0x409   : > { %v4276_v29 = vmul.u32 %v4272_v25, %v4270_v53  ;;  %v4277_v33 = vshll.u32 %v4274_v56, 16  ;;  %v4278_v51 = vshrl.u32 %v4274_v56, 16  ;;  %v4279_v32 = vshll.u32 %v4275_v27, 16 }
 0x40a   : > { %v4488_v37 = vor.u32 %v4487_v19, %v4486_v12  ;;  %v4491_v36 = vshll.u32 %v4490_v62, 23  ;;  %v4295_v18 = vmul.u32 %v4293_v10, %v4269_v24  ;;  %v4296_v58 = vmul.u32 %v4294_v28, %v4269_v24 }
 0x40b   : > { %vm4281_vm3 = vc.u32 %v4273_v3, %v4277_v33  ;;  %v4283_v6 = vadd.s32 %v4277_v33, %v4273_v3  ;;  %v4298_v30 = vmul.u32 %v4294_v28, %v4270_v53  ;;  %v4301_v1 = vshll.u32 %v4297_v47, 16 }
 0x40c   : > { %v4492_v23 = vor.u32 4788187, %v4491_v36  ;;  %v4495_v31 = vcvt.s32.f32 %v4488_v37  ;;  %v4282_v13 = vsel %vm4281_vm3, 1, %v6365_v0  ;;  %v4299_v20 = vshll.u32 %v4296_v58, 16 }
 0x40d   : > { %v4284_v41 = vadd.s32 %v4282_v13, %v4276_v29  ;;  %vm4285_vm4 = vc.u32 %v4283_v6, %v4279_v32  ;;  %v4502_v43 = vsel %vm9382_vm2, 0, %v4500_v7  ;;  %v4256_v53 = vsel %vm4252_vm12, %v4236_v52, %v9331_v16 }
 0x40e   : > { %v6230_v54 = vpop.eup %6229  ;;  %v4493_v63 = vand.u32 2147483647, %v4492_v23  ;;  %v4286_v35 = vsel %vm4285_vm4, 1, %v6365_v0  ;;  %vm4303_vm5 = vc.u32 %v4295_v18, %v4299_v20  ;;  %v4305_v21 = vadd.s32 %v4299_v20, %v4295_v18 }
 0x40f   : > { %v5423_v4 = vmul.f32 %v6230_v54, %v6794_v38  ;;  %v4288_v60 = vadd.s32 %v4286_v35, %v4284_v41  ;;  %v4304_v25 = vsel %vm4303_vm5, 1, %v6365_v0  ;;  %v4280_v9 = vshrl.u32 %v4275_v27, 16 }
 0x410   : > { %v4496_v15 = vmul.f32 %v4495_v31, %v4493_v63  ;;  %v4306_v55 = vadd.s32 %v4304_v25, %v4298_v30  ;;  %vm4307_vm6 = vc.u32 %v4305_v21, %v4301_v1  ;;  %v4300_v12 = vshrl.u32 %v4296_v58, 16 }
 0x411   : > { %v5455_v24 = vmul.f32 -0.5, %v5423_v4  ;;  %v4289_v26 = vadd.s32 %v4288_v60, %v4278_v51  ;;  %v4519_v5 = vadd.s32 3, %v4502_v43  ;;  %v4258_v3 = vsel %vm4254_vm14, %v9333_v8, %v4257_v14 }
 0x412   : > { %v4497_v10 = vxor.u32 2147483648, %v4496_v15  ;;  %v4308_v19 = vsel %vm4307_vm6, 1, %v6365_v0  ;;  %v6027_v62 = vadd.s32 4294967169, %v4069_v22  ;;  %v4302_v16 = vshrl.u32 %v4297_v47, 16 }
 0x413   : > { %v5508_v34 = vmul.f32 1.442695, %v5455_v24  ;;  %v4310_v52 = vadd.s32 %v4308_v19, %v4306_v55  ;;  %v9413_v7 = vadd.s32 %v4289_v26, %v4280_v9  ;;  %v9415_v28 = vadd.s32 %v4305_v21, %v4301_v1  ;;  %v245_v26 = vld [vmem:[%s6465_s10 + $0xe8] sm:$0xff] }
 0x414   : > { %v4498_v56 = vsel %vm4377_vm15, %v4497_v10, %v4496_v15  ;;  %v4075_v37 = vadd.s32 1, %v6027_v62  ;;  %v4259_v8 = vsel %vm4253_vm0, %v4256_v53, %v4258_v3  ;;  %v9419_v14 = vand.u32 3, %v4519_v5  ;;  %v212_v10 = vld [vmem:[%s6458_s7 + $0xe8] sm:$0xff] }
 0x415   : > { %6231 = vpow2.f32 %v5508_v34  ;;  %v4501_v27 = vsel %vm9382_vm2, %v9107_v39, %v4498_v56  ;;  %v4311_v22 = vadd.s32 %v4310_v52, %v4300_v12  ;;  %v4313_v57 = vmul.u32 %v9347_v40, %v4259_v8 }
 0x416   : > { %v4503_v36 = vmul.f32 %v4501_v27, %v4501_v27  ;;  %vm4076_vm7 = vcmp.gt.s32.totalorder %v4075_v37, 0  ;;  %vm4315_vm8 = vc.u32 %v9413_v7, %v9415_v28  ;;  %v4072_v32 = vand.u32 8388607, %v4065_v17 }
 0x417   : > { %v4312_v33 = vadd.s32 %v4311_v22, %v4302_v16  ;;  %v4077_v51 = vsel %vm4076_vm7, %v4075_v37, 0  ;;  %vm4525_vm9 = vcmp.eq.s32.totalorder %v9419_v14, 2  ;;  %vm4522_vm10 = vcmp.eq.s32.totalorder %v9419_v14, 0 }
 0x418   : > { %v4504_v29 = vmul.f32 -0.001358992, %v4503_v36  ;;  %v4511_v47 = vmul.f32 -0.00019511016, %v4503_v36  ;;  %v4079_v18 = vand.u32 31, %v4077_v51  ;;  %v4073_v1 = vor.u32 8388608, %v4072_v32 }
 0x419   : > { %v4316_v31 = vadd.s32 1, %v4312_v33  ;;  %vm4521_vm11 = vcmp.lt.s32.totalorder %v9419_v14, 2  ;;  %v9437_v15 = vshrl.u32 %v4077_v51, 5  ;;  %v277_v8 = vsub.f32 %v212_v10, %v245_v26 }
 0x41a   : > { %v4505_v61 = vadd.f32 0.041655596, %v4504_v29  ;;  %v4512_v23 = vadd.f32 0.008332121, %v4511_v47  ;;  %v9426_v54 = vsub.s32 32, %v4079_v18  ;;  %v4082_v63 = vshll.u32 %v6366_v42, %v4079_v18 }
 0x41b   : > { %v6232_v58 = vpop.eup %6231  ;;  %v4317_v20 = vsel %vm4315_vm8, %v4316_v31, %v4312_v33  ;;  %v4085_v35 = vshll.u32 %v6367_v44, %v4079_v18  ;;  %v4088_v60 = vshll.u32 %v6368_v46, %v4079_v18  ;;  %v4091_v25 = vshll.u32 %v6369_v48, %v4079_v18 }
 0x41c   : > { %v5551_v6 = vmul.f32 %v6232_v58, %v5423_v4  ;;  %v4506_v13 = vmul.f32 %v4505_v61, %v4503_v36  ;;  %v4513_v30 = vmul.f32 %v4512_v23, %v4503_v36  ;;  %v4318_v40 = vadd.s32 %v4317_v20, %v4313_v57 }
 0x41d   : > { %v4083_v41 = vshrl.u32 %v6367_v44, %v9426_v54  ;;  %v4086_v21 = vshrl.u32 %v6368_v46, %v9426_v54  ;;  %v4089_v55 = vshrl.u32 %v6369_v48, %v9426_v54  ;;  %v4092_v34 = vshrl.u32 %v6370_v50, %v9426_v54 }
 0x41e   : > { %5669 = vperm.xlu0 %6134, %v5551_v6   ;;  %v4507_v4 = vadd.f32 -0.4999988, %v4506_v13  ;;  %v4514_v43 = vadd.f32 -0.16666654, %v4513_v30  ;;  %v4319_v24 = vadd.s32 536870912, %v4318_v40  ;;  %v4094_v3 = vshll.u32 %v6370_v50, %v4079_v18 }
 0x41f   : > { %v4084_v5 = vor.u32 %v4083_v41, %v4082_v63  ;;  %v4095_v19 = vshrl.u32 %v6371_v59, %v9426_v54  ;;  %v9452_v16 = vor.u32 %v4086_v21, %v4085_v35  ;;  %v4093_v52 = vor.u32 %v4092_v34, %v4091_v25 }
 0x420   : > { %v4508_v53 = vmul.f32 %v4507_v4, %v4503_v36  ;;  %v4515_v9 = vmul.f32 %v4514_v43, %v4503_v36  ;;  %v9447_v12 = vshrl.u32 %v4319_v24, 30  ;;  %vm4097_vm12 = vcmp.lt.s32.totalorder %v9437_v15, 1 }
 0x421   : > { %v9456_v36 = vshll.u32 %v4073_v1, 8  ;;  %v4090_v47 = vor.u32 %v4089_v55, %v4088_v60  ;;  %vm4100_vm13 = vcmp.lt.s32.totalorder %v9437_v15, 4  ;;  %v4096_v51 = vor.u32 %v4095_v19, %v4094_v3 }
 0x422   : > { %v4509_v62 = vadd.f32 1.0, %v4508_v53  ;;  %v4516_v56 = vadd.f32 1.0, %v4515_v9  ;;  %v4321_v37 = vshll.u32 %v9447_v12, 30  ;;  %vm4098_vm14 = vcmp.lt.s32.totalorder %v9437_v15, 2 }
 0x423   : > { %vm4099_vm15 = vcmp.lt.s32.totalorder %v9437_v15, 3  ;;  %v4105_v18 = vsel %vm4097_vm12, %v4084_v5, %v9452_v16  ;;  %vm4518_vm0 = vweird.f32 %v9107_v39  ;;  %v309_v61 = vand.u32 2147483647, %v277_v8 }
 0x424   : > { %v4517_v22 = vmul.f32 %v4516_v56, %v4501_v27  ;;  %v4526_v29 = vxor.u32 2147483648, %v4509_v62  ;;  %v4322_v33 = vsub.s32 %v4318_v40, %v4321_v37  ;;  %v4106_v27 = vsel %vm4100_vm13, %v4093_v52, 920167782 }
 0x425   : > { %v4107_v31 = vsel %vm4099_vm15, %v4090_v47, %v4106_v27  ;;  %v4109_v6 = vsel %vm4097_vm12, %v9452_v16, %v4090_v47  ;;  %v4114_v13 = vand.u32 65535, %v9456_v36  ;;  %v4110_v40 = vsel %vm4100_vm13, %v4096_v51, 1326507024 }
 0x426   : > { %v4523_v57 = vxor.u32 2147483648, %v4517_v22  ;;  %v4527_v32 = vsel %vm4525_vm9, %v4526_v29, %v4517_v22  ;;  %vm4323_vm1 = vcmp.lt.s32.totalorder %v4322_v33, 0  ;;  %v4324_v58 = vsub.s32 0, %v4322_v33 }
 0x427   : > { %v4108_v39 = vsel %vm4098_vm14, %v4105_v18, %v4107_v31  ;;  %v4081_v41 = vshrl.u32 %v6366_v42, %v9426_v54  ;;  %v4111_v4 = vsel %vm4099_vm15, %v4093_v52, %v4110_v40  ;;  %v4115_v35 = vshrl.u32 %v9456_v36, 16 }
 0x428   : > { %v4524_v23 = vsel %vm4522_vm10, %v4509_v62, %v4523_v57  ;;  %v4325_v20 = vsel %vm4323_vm1, %v4324_v58, %v4322_v33  ;;  %v4112_v14 = vsel %vm4098_vm14, %v4109_v6, %v4111_v4  ;;  %v4139_v25 = vshrl.u32 %v4108_v39, 16 }
 0x429   : > { %v4528_v30 = vsel %vm4521_vm11, %v4524_v23, %v4527_v32  ;;  %v4326_v63 = vclz %v4325_v20  ;;  %v4116_v24 = vand.u32 65535, %v4112_v14  ;;  %v4117_v60 = vshrl.u32 %v4112_v14, 16 }
 0x42a   : > { %v4529_v1 = vsel %vm4518_vm0, nan, %v4528_v30  ;;  %v4314_v9 = vadd.s32 %v9415_v28, %v9413_v7  ;;  %v4138_v55 = vand.u32 65535, %v4108_v39  ;;  %v9493_v54 = vmul.f32 %v6472_v11, %v309_v61 }
 0x42b   : > { %v5331_v43 = vmul.f32 -2.0, %v4529_v1  ;;  %v6031_v21 = vadd.s32 4294967294, %v4326_v63  ;;  %vm4222_vm2 = vcmp.lt.s32.totalorder %v9272_v45, 0  ;;  %v4101_v34 = vsel %vm4097_vm12, %v4081_v41, %v4084_v5 }
 0x42c   : > { %v4102_v10 = vsel %vm4100_vm13, %v4090_v47, 2102212464  ;;  %v4119_v26 = vmul.u32 %v4117_v60, %v4114_v13  ;;  %v4118_v19 = vmul.u32 %v4116_v24, %v4114_v13  ;;  %v4120_v62 = vmul.u32 %v4116_v24, %v4115_v35 }
 0x42d   : > { %v5389_v53 = vmul.f32 1.442695, %v5331_v43  ;;  %vm6032_vm3 = vcmp.lt.s32.totalorder %v6031_v21, 0  ;;  %v4141_v52 = vmul.u32 %v4139_v25, %v4114_v13  ;;  %v4344_v37 = vsub.s32 4, %v9447_v12 }
 0x42e   : > { %v4329_v3 = vsel %vm6032_vm3, 0, %v6031_v21  ;;  %v4121_v8 = vmul.u32 %v4117_v60, %v4115_v35  ;;  %v4122_v22 = vshll.u32 %v4119_v26, 16  ;;  %v4142_v29 = vmul.u32 %v4138_v55, %v4115_v35 }
 0x42f   : > { %6233 = vpow2.f32 %v5389_v53  ;;  %v4330_v56 = vsub.s32 32, %v4329_v3  ;;  %v4331_v7 = vshll.u32 %v4322_v33, %v4329_v3  ;;  %v4334_v28 = vsub.s32 4294967266, %v4329_v3 }
 0x430   : > { %vm9503_vm4 = vcmp.le.f32.partialorder %v4220_v49, 0.7853982  ;;  %v4103_v57 = vsel %vm4099_vm15, %v9452_v16, %v4102_v10  ;;  %v4124_v33 = vshll.u32 %v4120_v62, 16  ;;  %v4123_v32 = vshrl.u32 %v4119_v26, 16 }
 0x431   : > { %v4332_v47 = vshrl.u32 %v4314_v9, %v4330_v56  ;;  %v4335_v51 = vadd.s32 127, %v4334_v28  ;;  %vm4126_vm5 = vc.u32 %v4118_v19, %v4122_v22  ;;  %v4128_v18 = vadd.s32 %v4122_v22, %v4118_v19 }
 0x432   : > { %v4140_v27 = vmul.u32 %v4138_v55, %v4114_v13  ;;  %v4127_v23 = vsel %vm4126_vm5, 1, %v6365_v0  ;;  %v4144_v31 = vshll.u32 %v4141_v52, 16  ;;  %v4143_v30 = vmul.u32 %v4139_v25, %v4115_v35 }
 0x433   : > { %v4333_v58 = vor.u32 %v4332_v47, %v4331_v7  ;;  %v4336_v61 = vshll.u32 %v4335_v51, 23  ;;  %v4129_v6 = vadd.s32 %v4127_v23, %v4121_v8  ;;  %vm4130_vm6 = vc.u32 %v4128_v18, %v4124_v33 }
 0x434   : > { %v4146_v20 = vshll.u32 %v4142_v29, 16  ;;  %v4131_v16 = vsel %vm4130_vm6, 1, %v6365_v0  ;;  %v4345_v13 = vsel %vm4222_vm2, %v4344_v37, %v9447_v12  ;;  %vm4148_vm7 = vc.u32 %v4140_v27, %v4144_v31 }
 0x435   : > { %v6234_v49 = vpop.eup %6233  ;;  %v4337_v40 = vor.u32 4788187, %v4336_v61  ;;  %v4340_v1 = vcvt.s32.f32 %v4333_v58  ;;  %v4133_v63 = vadd.s32 %v4131_v16, %v4129_v6  ;;  %v4150_v41 = vadd.s32 %v4144_v31, %v4140_v27 }
 0x436   : > { %v5428_v39 = vmul.f32 %v6234_v49, %v6794_v38  ;;  %v4125_v14 = vshrl.u32 %v4120_v62, 16  ;;  %v4149_v21 = vsel %vm4148_vm7, 1, %v6365_v0  ;;  %v4145_v24 = vshrl.u32 %v4141_v52, 16 }
 0x437   : > { %v4338_v43 = vand.u32 2147483647, %v4337_v40  ;;  %v4134_v35 = vadd.s32 %v4133_v63, %v4123_v32  ;;  %v4151_v60 = vadd.s32 %v4149_v21, %v4143_v30  ;;  %vm4152_vm8 = vc.u32 %v4150_v41, %v4146_v20 }
 0x438   : > { %v5460_v4 = vmul.f32 -0.5, %v5428_v39  ;;  %v4153_v9 = vsel %vm4152_vm8, 1, %v6365_v0  ;;  %v4843_v55 = vand.u32 2139095040, %v9493_v54  ;;  %v4347_v12 = vsel %vm9503_vm4, 0, %v4345_v13 }
 0x439   : > { %v4341_v53 = vmul.f32 %v4340_v1, %v4338_v43  ;;  %v4147_v10 = vshrl.u32 %v4142_v29, 16  ;;  %v9521_v26 = vadd.s32 %v4150_v41, %v4146_v20  ;;  %v4155_v3 = vadd.s32 %v4153_v9, %v4151_v60 }
 0x43a   : > { %v5518_v25 = vmul.f32 1.442695, %v5460_v4  ;;  %v9523_v62 = vadd.s32 %v4134_v35, %v4125_v14  ;;  %v4844_v56 = vshrl.u32 %v4843_v55, 23  ;;  %v4104_v7 = vsel %vm4098_vm14, %v4101_v34, %v4103_v57  ;;  %v211_v34 = vld [vmem:[%s6458_s7 + $0xe0] sm:$0xff] }
 0x43b   : > { %v4342_v19 = vxor.u32 2147483648, %v4341_v53  ;;  %v4156_v28 = vadd.s32 %v4155_v3, %v4145_v24  ;;  %v4840_v52 = vand.u32 2147483647, %v9493_v54  ;;  %v4364_v8 = vadd.s32 3, %v4347_v12  ;;  %v244_v57 = vld [vmem:[%s6465_s10 + $0xe0] sm:$0xff] }
 0x43c   : > { %6235 = vpow2.f32 %v5518_v25  ;;  %v6042_v22 = vadd.s32 4294967169, %v4844_v56  ;;  %v4158_v33 = vmul.u32 %v9456_v36, %v4104_v7  ;;  %vm4160_vm9 = vc.u32 %v9523_v62, %v9521_v26 }
 0x43d   : > { %v4343_v37 = vsel %vm4222_vm2, %v4342_v19, %v4341_v53  ;;  %v4157_v47 = vadd.s32 %v4156_v28, %v4147_v10  ;;  %v4847_v18 = vand.u32 8388607, %v4840_v52  ;;  %v9540_v23 = vand.u32 3, %v4364_v8 }
 0x43e   : > { %v4346_v29 = vsel %vm9503_vm4, %v9272_v45, %v4343_v37  ;;  %v4850_v15 = vadd.s32 1, %v6042_v22  ;;  %v276_v36 = vsub.f32 %v211_v34, %v244_v57  ;;  %vm4363_vm14 = vweird.f32 %v9272_v45 }
 0x43f   : > { %v4348_v51 = vmul.f32 %v4346_v29, %v4346_v29  ;;  %v4161_v32 = vadd.s32 1, %v4157_v47  ;;  %vm4367_vm11 = vcmp.eq.s32.totalorder %v9540_v23, 0  ;;  %vm4370_vm12 = vcmp.eq.s32.totalorder %v9540_v23, 2 }
 0x440   : > { %vm4851_vm10 = vcmp.gt.s32.totalorder %v4850_v15, 0  ;;  %v4848_v63 = vor.u32 8388608, %v4847_v18  ;;  %v308_v4 = vand.u32 2147483647, %v276_v36  ;;  %vm4366_vm13 = vcmp.lt.s32.totalorder %v9540_v23, 2 }
 0x441   : > { %v4349_v58 = vmul.f32 -0.001358992, %v4348_v51  ;;  %v4356_v61 = vmul.f32 -0.00019511016, %v4348_v51  ;;  %v4162_v31 = vsel %vm4160_vm9, %v4161_v32, %v4157_v47  ;;  %v4852_v49 = vsel %vm4851_vm10, %v4850_v15, 0 }
 0x442   : > { %v6236_v27 = vpop.eup %6235  ;;  %v4163_v20 = vadd.s32 %v4162_v31, %v4158_v33  ;;  %v4854_v40 = vand.u32 31, %v4852_v49  ;;  %v9555_v10 = vshrl.u32 %v4852_v49, 5  ;;  %v9559_v56 = vshll.u32 %v4848_v63, 8 }
 0x443   : > { %v5556_v5 = vmul.f32 %v6236_v27, %v5428_v39  ;;  %v4350_v6 = vadd.f32 0.041655596, %v4349_v58  ;;  %v4357_v30 = vadd.f32 0.008332121, %v4356_v61  ;;  %v9566_v18 = vmul.f32 %v6472_v11, %v308_v4 }
 0x444   : > { %v4164_v13 = vadd.s32 536870912, %v4163_v20  ;;  %v4855_v41 = vsub.s32 32, %v4854_v40  ;;  %v4857_v21 = vshll.u32 %v6366_v42, %v4854_v40  ;;  %v4860_v24 = vshll.u32 %v6367_v44, %v4854_v40 }
 0x445   : > { %5694 = vperm.xlu2 %6136, %v5556_v5   ;;  %v4351_v1 = vmul.f32 %v4350_v6, %v4348_v51  ;;  %v4358_v16 = vmul.f32 %v4357_v30, %v4348_v51  ;;  %v4866_v25 = vshll.u32 %v6369_v48, %v4854_v40  ;;  %v4863_v3 = vshll.u32 %v6368_v46, %v4854_v40 }
 0x446   : > { %v9545_v14 = vshrl.u32 %v4164_v13, 30  ;;  %v4858_v35 = vshrl.u32 %v6367_v44, %v4855_v41  ;;  %v4861_v60 = vshrl.u32 %v6368_v46, %v4855_v41  ;;  %v4867_v12 = vshrl.u32 %v6370_v50, %v4855_v41 }
 0x447   : > { %v4352_v43 = vadd.f32 -0.4999988, %v4351_v1  ;;  %v4359_v39 = vadd.f32 -0.16666654, %v4358_v16  ;;  %v4864_v19 = vshrl.u32 %v6369_v48, %v4855_v41  ;;  %v4870_v33 = vshrl.u32 %v6371_v59, %v4855_v41 }
 0x448   : > { %v4166_v55 = vshll.u32 %v9545_v14, 30  ;;  %v4859_v8 = vor.u32 %v4858_v35, %v4857_v21  ;;  %v4862_v22 = vor.u32 %v4861_v60, %v4860_v24  ;;  %v4868_v47 = vor.u32 %v4867_v12, %v4866_v25 }
 0x449   : > { %v4353_v53 = vmul.f32 %v4352_v43, %v4348_v51  ;;  %v4360_v9 = vmul.f32 %v4359_v39, %v4348_v51  ;;  %v4869_v51 = vshll.u32 %v6370_v50, %v4854_v40  ;;  %v4865_v32 = vor.u32 %v4864_v19, %v4863_v3 }
 0x44a   : > { %v4167_v37 = vsub.s32 %v4163_v20, %v4166_v55  ;;  %vm4872_vm0 = vcmp.lt.s32.totalorder %v9555_v10, 1  ;;  %vm4875_vm1 = vcmp.lt.s32.totalorder %v9555_v10, 4  ;;  %vm4874_vm2 = vcmp.lt.s32.totalorder %v9555_v10, 3 }
 0x44b   : > { %v4354_v7 = vadd.f32 1.0, %v4353_v53  ;;  %v4361_v28 = vadd.f32 1.0, %v4360_v9  ;;  %vm4067_vm3 = vcmp.lt.s32.totalorder %v9327_v2, 0  ;;  %v4871_v31 = vor.u32 %v4870_v33, %v4869_v51 }
 0x44c   : > { %vm4168_vm15 = vcmp.lt.s32.totalorder %v4167_v37, 0  ;;  %v4169_v57 = vsub.s32 0, %v4167_v37  ;;  %v4890_v49 = vshrl.u32 %v9559_v56, 16  ;;  %vm4873_vm4 = vcmp.lt.s32.totalorder %v9555_v10, 2 }
 0x44d   : > { %v4362_v15 = vmul.f32 %v4361_v28, %v4346_v29  ;;  %v4371_v34 = vxor.u32 2147483648, %v4354_v7  ;;  %v4159_v29 = vadd.s32 %v9521_v26, %v9523_v62  ;;  %v4880_v6 = vsel %vm4872_vm0, %v4859_v8, %v4862_v22 }
 0x44e   : > { %v4170_v61 = vsel %vm4168_vm15, %v4169_v57, %v4167_v37  ;;  %v4881_v30 = vsel %vm4875_vm1, %v4868_v47, 920167782  ;;  %v4688_v62 = vand.u32 2139095040, %v9566_v18  ;;  %vm9591_vm5 = vcmp.le.f32.partialorder %v4065_v17, 0.7853982 }
 0x44f   : > { %v4368_v27 = vxor.u32 2147483648, %v4362_v15  ;;  %v4372_v58 = vsel %vm4370_vm12, %v4371_v34, %v4362_v15  ;;  %v4171_v5 = vclz %v4170_v61  ;;  %v4882_v26 = vsel %vm4874_vm2, %v4865_v32, %v4881_v30 }
 0x450   : > { %v4189_v13 = vsub.s32 4, %v9545_v14  ;;  %v4856_v23 = vshrl.u32 %v6366_v42, %v4855_v41  ;;  %v4884_v63 = vsel %vm4872_vm0, %v4862_v22, %v4865_v32  ;;  %v4883_v43 = vsel %vm4873_vm4, %v4880_v6, %v4882_v26 }
 0x451   : > { %v4369_v36 = vsel %vm4367_vm11, %v4354_v7, %v4368_v27  ;;  %v6028_v40 = vadd.s32 4294967294, %v4171_v5  ;;  %v4885_v45 = vsel %vm4875_vm1, %v4871_v31, 1326507024  ;;  %v4877_v17 = vsel %vm4875_vm1, %v4865_v32, 2102212464 }
 0x452   : > { %v4373_v20 = vsel %vm4366_vm13, %v4369_v36, %v4372_v58  ;;  %v4886_v21 = vsel %vm4874_vm2, %v4868_v47, %v4885_v45  ;;  %v4913_v35 = vand.u32 65535, %v4883_v43  ;;  %v9609_v53 = vsel %vm4872_vm0, %v4856_v23, %v4859_v8 }
 0x453   : > { %v4374_v1 = vsel %vm4363_vm14, nan, %v4373_v20  ;;  %vm6029_vm6 = vcmp.lt.s32.totalorder %v6028_v40, 0  ;;  %v4887_v9 = vsel %vm4873_vm4, %v4884_v63, %v4886_v21  ;;  %v4889_v55 = vand.u32 65535, %v9559_v56 }
 0x454   : > { %v5330_v4 = vmul.f32 -2.0, %v4374_v1  ;;  %v4174_v39 = vsel %vm6029_vm6, 0, %v6028_v40  ;;  %v4689_v12 = vshrl.u32 %v4688_v62, 23  ;;  %v4891_v7 = vand.u32 65535, %v4887_v9 }
 0x455   : > { %v4175_v24 = vsub.s32 32, %v4174_v39  ;;  %v4176_v60 = vshll.u32 %v4167_v37, %v4174_v39  ;;  %v4179_v25 = vsub.s32 4294967266, %v4174_v39  ;;  %v4190_v28 = vsel %vm4067_vm3, %v4189_v13, %v9545_v14 }
 0x456   : > { %v5387_v41 = vmul.f32 1.442695, %v5330_v4  ;;  %v4878_v37 = vsel %vm4874_vm2, %v4862_v22, %v4877_v17  ;;  %v4892_v47 = vshrl.u32 %v4887_v9, 16  ;;  %v4914_v8 = vshrl.u32 %v4883_v43, 16 }
 0x457   : > { %v4177_v3 = vshrl.u32 %v4159_v29, %v4175_v24  ;;  %v4180_v19 = vadd.s32 127, %v4179_v25  ;;  %v4895_v15 = vmul.u32 %v4891_v7, %v4890_v49  ;;  %v4917_v34 = vmul.u32 %v4913_v35, %v4890_v49 }
 0x458   : > { %6237 = vpow2.f32 %v5387_v41  ;;  %v4893_v57 = vmul.u32 %v4891_v7, %v4889_v55  ;;  %v4894_v32 = vmul.u32 %v4892_v47, %v4889_v55  ;;  %v4915_v27 = vmul.u32 %v4913_v35, %v4889_v55 }
 0x459   : > { %v4178_v51 = vor.u32 %v4177_v3, %v4176_v60  ;;  %v4181_v33 = vshll.u32 %v4180_v19, 23  ;;  %v4916_v58 = vmul.u32 %v4914_v8, %v4889_v55  ;;  %v4192_v5 = vsel %vm9591_vm5, 0, %v4190_v28 }
 0x45a   : > { %v4896_v31 = vmul.u32 %v4892_v47, %v4890_v49  ;;  %v4897_v14 = vshll.u32 %v4894_v32, 16  ;;  %v4899_v36 = vshll.u32 %v4895_v15, 16  ;;  %v4918_v6 = vmul.u32 %v4914_v8, %v4890_v49 }
 0x45b   : > { %v4182_v61 = vor.u32 4788187, %v4181_v33  ;;  %v4185_v29 = vcvt.s32.f32 %v4178_v51  ;;  %v4919_v22 = vshll.u32 %v4916_v58, 16  ;;  %v4898_v40 = vshrl.u32 %v4894_v32, 16 }
 0x45c   : > { %v4900_v26 = vshrl.u32 %v4895_v15, 16  ;;  %v4921_v62 = vshll.u32 %v4917_v34, 16  ;;  %vm4901_vm7 = vc.u32 %v4893_v57, %v4897_v14  ;;  %v4903_v13 = vadd.s32 %v4897_v14, %v4893_v57 }
 0x45d   : > { %v4183_v20 = vand.u32 2147483647, %v4182_v61  ;;  %vm4923_vm8 = vc.u32 %v4915_v27, %v4919_v22  ;;  %v4902_v63 = vsel %vm4901_vm7, 1, %v6365_v0  ;;  %v4925_v43 = vadd.s32 %v4919_v22, %v4915_v27 }
 0x45e   : > { %v6238_v30 = vpop.eup %6237  ;;  %v4924_v4 = vsel %vm4923_vm8, 1, %v6365_v0  ;;  %v4904_v39 = vadd.s32 %v4902_v63, %v4896_v31  ;;  %vm4905_vm9 = vc.u32 %v4903_v13, %v4899_v36  ;;  %v4920_v35 = vshrl.u32 %v4916_v58, 16 }
 0x45f   : > { %v5427_v1 = vmul.f32 %v6238_v30, %v6794_v38  ;;  %v4186_v23 = vmul.f32 %v4185_v29, %v4183_v20  ;;  %v4926_v49 = vadd.s32 %v4924_v4, %v4918_v6  ;;  %v4906_v21 = vsel %vm4905_vm9, 1, %v6365_v0 }
 0x460   : > { %vm4927_vm10 = vc.u32 %v4925_v43, %v4921_v62  ;;  %v4908_v24 = vadd.s32 %v4906_v21, %v4904_v39  ;;  %v6039_v25 = vadd.s32 4294967169, %v4689_v12  ;;  %v4922_v55 = vshrl.u32 %v4917_v34, 16 }
 0x461   : > { %v5459_v45 = vmul.f32 -0.5, %v5427_v1  ;;  %v4187_v17 = vxor.u32 2147483648, %v4186_v23  ;;  %v4928_v60 = vsel %vm4927_vm10, 1, %v6365_v0  ;;  %v9628_v3 = vadd.s32 %v4925_v43, %v4921_v62 }
 0x462   : > { %v4930_v19 = vadd.s32 %v4928_v60, %v4926_v49  ;;  %v4909_v28 = vadd.s32 %v4908_v24, %v4898_v40  ;;  %v4695_v47 = vadd.s32 1, %v6039_v25  ;;  %v4209_v51 = vadd.s32 3, %v4192_v5 }
 0x463   : > { %v5516_v41 = vmul.f32 1.442695, %v5459_v45  ;;  %v4188_v9 = vsel %vm4067_vm3, %v4187_v17, %v4186_v23  ;;  %v4879_v12 = vsel %vm4873_vm4, %v9609_v53, %v4878_v37  ;;  %v4685_v16 = vand.u32 2147483647, %v9566_v18 }
 0x464   : > { %v4191_v7 = vsel %vm9591_vm5, %v9327_v2, %v4188_v9  ;;  %v4931_v33 = vadd.s32 %v4930_v19, %v4920_v35  ;;  %v9636_v15 = vadd.s32 %v4909_v28, %v4900_v26  ;;  %vm4696_vm11 = vcmp.gt.s32.totalorder %v4695_v47, 0 }
 0x465   : > { %6239 = vpow2.f32 %v5516_v41  ;;  %v4193_v8 = vmul.f32 %v4191_v7, %v4191_v7  ;;  %v4697_v27 = vsel %vm4696_vm11, %v4695_v47, 0  ;;  %v4933_v58 = vmul.u32 %v9559_v56, %v4879_v12 }
 0x466   : > { %v4932_v32 = vadd.s32 %v4931_v33, %v4922_v55  ;;  %vm4935_vm12 = vc.u32 %v9636_v15, %v9628_v3  ;;  %v4699_v61 = vand.u32 31, %v4697_v27  ;;  %v4210_v10 = vand.u32 3, %v4209_v51 }
 0x467   : > { %v4194_v34 = vmul.f32 -0.001358992, %v4193_v8  ;;  %v4201_v57 = vmul.f32 -0.00019511016, %v4193_v8  ;;  %v4692_v56 = vand.u32 8388607, %v4685_v16  ;;  %vm4208_vm3 = vweird.f32 %v9327_v2 }
 0x468   : > { %v4936_v53 = vadd.s32 1, %v4932_v32  ;;  %v9642_v31 = vsub.s32 32, %v4699_v61  ;;  %v9646_v20 = vshrl.u32 %v4697_v27, 5  ;;  %v4702_v40 = vshll.u32 %v6366_v42, %v4699_v61 }
 0x469   : > { %v4195_v29 = vadd.f32 0.041655596, %v4194_v34  ;;  %v4202_v5 = vadd.f32 0.008332121, %v4201_v57  ;;  %vm4211_vm13 = vcmp.lt.s32.totalorder %v4210_v10, 2  ;;  %v4705_v13 = vshll.u32 %v6367_v44, %v4699_v61 }
 0x46a   : > { %v4937_v22 = vsel %vm4935_vm12, %v4936_v53, %v4932_v32  ;;  %v4708_v23 = vshll.u32 %v6368_v46, %v4699_v61  ;;  %v4703_v63 = vshrl.u32 %v6367_v44, %v9642_v31  ;;  %v4706_v4 = vshrl.u32 %v6368_v46, %v9642_v31 }
 0x46b   : > { %v6240_v37 = vpop.eup %6239  ;;  %v4196_v36 = vmul.f32 %v4195_v29, %v4193_v8  ;;  %v4203_v6 = vmul.f32 %v4202_v5, %v4193_v8  ;;  %v4938_v30 = vadd.s32 %v4937_v22, %v4933_v58  ;;  %v4711_v43 = vshll.u32 %v6369_v48, %v4699_v61  ;;  %v210_v58 = vld [vmem:[%s6458_s7 + $0xd8] sm:$0xff] }
 0x46c   : > { %v5555_v14 = vmul.f32 %v6240_v37, %v5427_v1  ;;  %v4709_v49 = vshrl.u32 %v6369_v48, %v9642_v31  ;;  %v4712_v17 = vshrl.u32 %v6370_v50, %v9642_v31  ;;  %vm4212_vm14 = vcmp.eq.s32.totalorder %v4210_v10, 0 }
 0x46d   : > { %v4197_v26 = vadd.f32 -0.4999988, %v4196_v36  ;;  %v4204_v62 = vadd.f32 -0.16666654, %v4203_v6  ;;  %v4939_v1 = vadd.s32 536870912, %v4938_v30  ;;  %v4714_v35 = vshll.u32 %v6370_v50, %v4699_v61 }
 0x46e   : > { %5689 = vperm.xlu1 %6135, %v5555_v14   ;;  %v4715_v41 = vshrl.u32 %v6371_v59, %v9642_v31  ;;  %v4693_v25 = vor.u32 8388608, %v4692_v56  ;;  %v4713_v9 = vor.u32 %v4712_v17, %v4711_v43  ;;  %vm4215_vm15 = vcmp.eq.s32.totalorder %v4210_v10, 2 }
 0x46f   : > { %v4198_v45 = vmul.f32 %v4197_v26, %v4193_v8  ;;  %v4205_v39 = vmul.f32 %v4204_v62, %v4193_v8  ;;  %v9660_v21 = vshrl.u32 %v4939_v1, 30  ;;  %v4704_v19 = vor.u32 %v4703_v63, %v4702_v40 }
 0x470   : > { %v9666_v28 = vor.u32 %v4706_v4, %v4705_v13  ;;  %v4710_v51 = vor.u32 %v4709_v49, %v4708_v23  ;;  %vm4720_vm0 = vcmp.lt.s32.totalorder %v9646_v20, 4  ;;  %v4716_v33 = vor.u32 %v4715_v41, %v4714_v35 }
 0x471   : > { %v4199_v24 = vadd.f32 1.0, %v4198_v45  ;;  %v4206_v60 = vadd.f32 1.0, %v4205_v39  ;;  %v4941_v55 = vshll.u32 %v9660_v21, 30  ;;  %vm4717_vm1 = vcmp.lt.s32.totalorder %v9646_v20, 1 }
 0x472   : > { %vm4719_vm2 = vcmp.lt.s32.totalorder %v9646_v20, 3  ;;  %v4726_v32 = vsel %vm4720_vm0, %v4713_v9, 920167782  ;;  %v9675_v27 = vshll.u32 %v4693_v25, 8  ;;  %vm4718_vm5 = vcmp.lt.s32.totalorder %v9646_v20, 2 }
 0x473   : > { %v4207_v47 = vmul.f32 %v4206_v60, %v4191_v7  ;;  %v4216_v8 = vxor.u32 2147483648, %v4199_v24  ;;  %v9669_v12 = vsub.s32 %v4938_v30, %v4941_v55  ;;  %v243_v7 = vld [vmem:[%s6465_s10 + $0xd8] sm:$0xff]  ;;  %v4725_v5 = vsel %vm4717_vm1, %v4704_v19, %v9666_v28 }
 0x474   : > { %v4727_v53 = vsel %vm4719_vm2, %v4710_v51, %v4726_v32  ;;  %v4729_v37 = vsel %vm4717_vm1, %v9666_v28, %v4710_v51  ;;  %v4730_v36 = vsel %vm4720_vm0, %v4716_v33, 1326507024  ;;  %v275_v6 = vsub.f32 %v210_v58, %v243_v7 }
 0x475   : > { %v4213_v34 = vxor.u32 2147483648, %v4207_v47  ;;  %v4217_v57 = vsel %vm4215_vm15, %v4216_v8, %v4207_v47  ;;  %vm4943_vm4 = vcmp.lt.s32.totalorder %v9669_v12, 0  ;;  %v4944_v61 = vsub.s32 0, %v9669_v12 }
 0x476   : > { %v4731_v56 = vsel %vm4719_vm2, %v4713_v9, %v4730_v36  ;;  %v4734_v40 = vand.u32 65535, %v9675_v27  ;;  %v4728_v62 = vsel %vm4718_vm5, %v4725_v5, %v4727_v53  ;;  %v4735_v13 = vshrl.u32 %v9675_v27, 16 }
 0x477   : > { %v4214_v29 = vsel %vm4212_vm14, %v4199_v24, %v4213_v34  ;;  %v4945_v14 = vsel %vm4943_vm4, %v4944_v61, %v9669_v12  ;;  %v4732_v10 = vsel %vm4718_vm5, %v4729_v37, %v4731_v56  ;;  %v4701_v1 = vshrl.u32 %v6366_v42, %v9642_v31 }
 0x478   : > { %v4218_v2 = vsel %vm4211_vm13, %v4214_v29, %v4217_v57  ;;  %v4946_v30 = vclz %v4945_v14  ;;  %v4736_v63 = vand.u32 65535, %v4732_v10  ;;  %v4737_v4 = vshrl.u32 %v4732_v10, 16 }
 0x479   : > { %v4219_v22 = vsel %vm4208_vm3, nan, %v4218_v2  ;;  %v4934_v45 = vadd.s32 %v9628_v3, %v9636_v15  ;;  %v307_v39 = vand.u32 2147483647, %v275_v6  ;;  %vm4842_vm6 = vcmp.lt.s32.totalorder %v9493_v54, 0 }
 0x47a   : > { %v5329_v26 = vmul.f32 -2.0, %v4219_v22  ;;  %v6043_v23 = vadd.s32 4294967294, %v4946_v30  ;;  %v4739_v49 = vmul.u32 %v4737_v4, %v4734_v40  ;;  %v4758_v17 = vand.u32 65535, %v4728_v62 }
 0x47b   : > { %v4759_v35 = vshrl.u32 %v4728_v62, 16  ;;  %v4738_v24 = vmul.u32 %v4736_v63, %v4734_v40  ;;  %v4740_v60 = vmul.u32 %v4736_v63, %v4735_v13  ;;  %v4721_v55 = vsel %vm4717_vm1, %v4701_v1, %v4704_v19 }
 0x47c   : > { %v5385_v43 = vmul.f32 1.442695, %v5329_v26  ;;  %vm6044_vm7 = vcmp.lt.s32.totalorder %v6043_v23, 0  ;;  %v4964_v3 = vsub.s32 4, %v9660_v21  ;;  %v4722_v15 = vsel %vm4720_vm0, %v4710_v51, 2102212464 }
 0x47d   : > { %v4949_v41 = vsel %vm6044_vm7, 0, %v6043_v23  ;;  %v4741_v47 = vmul.u32 %v4737_v4, %v4735_v13  ;;  %v4742_v8 = vshll.u32 %v4739_v49, 16  ;;  %vm9717_vm8 = vcmp.le.f32.partialorder %v4840_v52, 0.7853982 }
 0x47e   : > { %6241 = vpow2.f32 %v5385_v43  ;;  %v4950_v25 = vsub.s32 32, %v4949_v41  ;;  %v4951_v31 = vshll.u32 %v9669_v12, %v4949_v41  ;;  %v4954_v9 = vsub.s32 4294967266, %v4949_v41 }
 0x47f   : > { %v4744_v12 = vshll.u32 %v4740_v60, 16  ;;  %v4760_v32 = vmul.u32 %v4758_v17, %v4734_v40  ;;  %vm4746_vm9 = vc.u32 %v4738_v24, %v4742_v8  ;;  %v4748_v58 = vadd.s32 %v4742_v8, %v4738_v24 }
 0x480   : > { %v4952_v34 = vshrl.u32 %v4934_v45, %v4950_v25  ;;  %v4955_v57 = vadd.s32 127, %v4954_v9  ;;  %v4761_v19 = vmul.u32 %v4759_v35, %v4734_v40  ;;  %v4762_v7 = vmul.u32 %v4758_v17, %v4735_v13 }
 0x481   : > { %v4743_v5 = vshrl.u32 %v4739_v49, 16  ;;  %v4747_v51 = vsel %vm4746_vm9, 1, %v6365_v0  ;;  %vm4750_vm10 = vc.u32 %v4748_v58, %v4744_v12  ;;  %v4763_v52 = vmul.u32 %v4759_v35, %v4735_v13  ;;  %v247_v58 = vld [vmem:[%s6465_s10 + $0xf8] sm:$0xff] }
 0x482   : > { %v4953_v61 = vor.u32 %v4952_v34, %v4951_v31  ;;  %v4956_v29 = vshll.u32 %v4955_v57, 23  ;;  %v4749_v37 = vadd.s32 %v4747_v51, %v4741_v47  ;;  %v4764_v2 = vshll.u32 %v4761_v19, 16 }
 0x483   : > { %v4751_v22 = vsel %vm4750_vm10, 1, %v6365_v0  ;;  %v4965_v30 = vsel %vm4842_vm6, %v4964_v3, %v9660_v21  ;;  %v4766_v40 = vshll.u32 %v4762_v7, 16  ;;  %v4745_v13 = vshrl.u32 %v4740_v60, 16 }
 0x484   : > { %v6242_v53 = vpop.eup %6241  ;;  %v4957_v36 = vor.u32 4788187, %v4956_v29  ;;  %v4960_v6 = vcvt.s32.f32 %v4953_v61  ;;  %v4753_v56 = vadd.s32 %v4751_v22, %v4749_v37  ;;  %vm4768_vm11 = vc.u32 %v4760_v32, %v4764_v2 }
 0x485   : > { %v5426_v14 = vmul.f32 %v6242_v53, %v6794_v38  ;;  %v4769_v10 = vsel %vm4768_vm11, 1, %v6365_v0  ;;  %v4770_v23 = vadd.s32 %v4764_v2, %v4760_v32  ;;  %v9729_v4 = vmul.f32 %v6472_v11, %v307_v39  ;;  %v214_v32 = vld [vmem:[%s6458_s7 + $0xf8] sm:$0xff] }
 0x486   : > { %v4958_v62 = vand.u32 2147483647, %v4957_v36  ;;  %v4754_v1 = vadd.s32 %v4753_v56, %v4743_v5  ;;  %v4771_v63 = vadd.s32 %v4769_v10, %v4763_v52  ;;  %v4765_v49 = vshrl.u32 %v4761_v19, 16 }
 0x487   : > { %v5458_v26 = vmul.f32 -0.5, %v5426_v14  ;;  %vm4772_vm12 = vc.u32 %v4770_v23, %v4766_v40  ;;  %v4967_v21 = vsel %vm9717_vm8, 0, %v4965_v30  ;;  %v4723_v17 = vsel %vm4719_vm2, %v9666_v28, %v4722_v15 }
 0x488   : > { %v4961_v45 = vmul.f32 %v4960_v6, %v4958_v62  ;;  %v4773_v35 = vsel %vm4772_vm12, 1, %v6365_v0  ;;  %v4533_v41 = vand.u32 2139095040, %v9729_v4  ;;  %v4767_v24 = vshrl.u32 %v4762_v7, 16 }
 0x489   : > { %v5514_v43 = vmul.f32 1.442695, %v5458_v26  ;;  %v4775_v60 = vadd.s32 %v4773_v35, %v4771_v63  ;;  %v9738_v25 = vadd.s32 %v4754_v1, %v4745_v13  ;;  %v9740_v31 = vadd.s32 %v4770_v23, %v4766_v40 }
 0x48a   : > { %v4962_v39 = vxor.u32 2147483648, %v4961_v45  ;;  %v4534_v9 = vshrl.u32 %v4533_v41, 23  ;;  %v4724_v28 = vsel %vm4718_vm5, %v4721_v55, %v4723_v17  ;;  %v4984_v8 = vadd.s32 3, %v4967_v21 }
 0x48b   : > { %6243 = vpow2.f32 %v5514_v43  ;;  %v4776_v15 = vadd.s32 %v4775_v60, %v4765_v49  ;;  %v4778_v19 = vmul.u32 %v9675_v27, %v4724_v28  ;;  %vm4780_vm13 = vc.u32 %v9738_v25, %v9740_v31 }
 0x48c   : > { %v4963_v3 = vsel %vm4842_vm6, %v4962_v39, %v4961_v45  ;;  %v6036_v34 = vadd.s32 4294967169, %v4534_v9  ;;  %v4530_v7 = vand.u32 2147483647, %v9729_v4  ;;  %v9755_v51 = vand.u32 3, %v4984_v8 }
 0x48d   : > { %v4966_v47 = vsel %vm9717_vm8, %v9493_v54, %v4963_v3  ;;  %v4777_v12 = vadd.s32 %v4776_v15, %v4767_v24  ;;  %v279_v53 = vsub.f32 %v214_v32, %v247_v58  ;;  %vm4983_vm1 = vweird.f32 %v9493_v54 }
 0x48e   : > { %v4968_v57 = vmul.f32 %v4966_v47, %v4966_v47  ;;  %v4540_v20 = vadd.s32 1, %v6036_v34  ;;  %v4537_v56 = vand.u32 8388607, %v4530_v7  ;;  %vm4987_vm15 = vcmp.eq.s32.totalorder %v9755_v51, 0 }
 0x48f   : > { %v4781_v5 = vadd.s32 1, %v4777_v12  ;;  %v311_v62 = vand.u32 2147483647, %v279_v53  ;;  %vm4986_vm0 = vcmp.lt.s32.totalorder %v9755_v51, 2  ;;  %vm4990_vm2 = vcmp.eq.s32.totalorder %v9755_v51, 2 }
 0x490   : > { %v4969_v61 = vmul.f32 -0.001358992, %v4968_v57  ;;  %v4976_v29 = vmul.f32 -0.00019511016, %v4968_v57  ;;  %vm4541_vm14 = vcmp.gt.s32.totalorder %v4540_v20, 0  ;;  %v4538_v28 = vor.u32 8388608, %v4537_v56 }
 0x491   : > { %v6244_v55 = vpop.eup %6243  ;;  %v4782_v2 = vsel %vm4780_vm13, %v4781_v5, %v4777_v12  ;;  %v4542_v36 = vsel %vm4541_vm14, %v4540_v20, 0  ;;  %v9784_v15 = vmul.f32 %v6472_v11, %v311_v62  ;;  %vm4687_vm7 = vcmp.lt.s32.totalorder %v9566_v18, 0 }
 0x492   : > { %v5554_v33 = vmul.f32 %v6244_v55, %v5426_v14  ;;  %v4970_v37 = vadd.f32 0.041655596, %v4969_v61  ;;  %v4977_v52 = vadd.f32 0.008332121, %v4976_v29  ;;  %v4783_v27 = vadd.s32 %v4782_v2, %v4778_v19 }
 0x493   : > { %v4544_v6 = vand.u32 31, %v4542_v36  ;;  %v9780_v24 = vshrl.u32 %v4542_v36, 5  ;;  %v9804_v53 = vshll.u32 %v4538_v28, 8  ;;  %vm9839_vm10 = vcmp.le.f32.partialorder %v4685_v16, 0.7853982 }
 0x494   : > { %5684 = vperm.xlu0 %6134, %v5554_v33   ;;  %v4971_v22 = vmul.f32 %v4970_v37, %v4968_v57  ;;  %v4978_v30 = vmul.f32 %v4977_v52, %v4968_v57  ;;  %v4784_v40 = vadd.s32 536870912, %v4783_v27  ;;  %v4779_v33 = vadd.s32 %v9740_v31, %v9738_v25 }
 0x495   : > { %v9760_v14 = vsub.s32 32, %v4544_v6  ;;  %v4547_v26 = vshll.u32 %v6366_v42, %v4544_v6  ;;  %v4550_v13 = vshll.u32 %v6367_v44, %v4544_v6  ;;  %v4553_v1 = vshll.u32 %v6368_v46, %v4544_v6 }
 0x496   : > { %v4972_v10 = vadd.f32 -0.4999988, %v4971_v22  ;;  %v4979_v23 = vadd.f32 -0.16666654, %v4978_v30  ;;  %v9767_v63 = vshrl.u32 %v4784_v40, 30  ;;  %v4556_v49 = vshll.u32 %v6369_v48, %v4544_v6 }
 0x497   : > { %v4548_v43 = vshrl.u32 %v6367_v44, %v9760_v14  ;;  %v4551_v45 = vshrl.u32 %v6368_v46, %v9760_v14  ;;  %v4554_v35 = vshrl.u32 %v6369_v48, %v9760_v14  ;;  %v4557_v41 = vshrl.u32 %v6370_v50, %v9760_v14 }
 0x498   : > { %v4973_v21 = vmul.f32 %v4972_v10, %v4968_v57  ;;  %v4980_v17 = vmul.f32 %v4979_v23, %v4968_v57  ;;  %v4786_v39 = vshll.u32 %v9767_v63, 30  ;;  %v4559_v60 = vshll.u32 %v6370_v50, %v4544_v6 }
 0x499   : > { %v9788_v34 = vor.u32 %v4548_v43, %v4547_v26  ;;  %v9790_v57 = vor.u32 %v4551_v45, %v4550_v13  ;;  %v4560_v12 = vshrl.u32 %v6371_v59, %v9760_v14  ;;  %v4555_v19 = vor.u32 %v4554_v35, %v4553_v1 }
 0x49a   : > { %v4974_v9 = vadd.f32 1.0, %v4973_v21  ;;  %v4981_v3 = vadd.f32 1.0, %v4980_v17  ;;  %v9786_v8 = vsub.s32 %v4783_v27, %v4786_v39  ;;  %v4558_v20 = vor.u32 %v4557_v41, %v4556_v49 }
 0x49b   : > { %v4561_v61 = vor.u32 %v4560_v12, %v4559_v60  ;;  %vm4562_vm4 = vcmp.lt.s32.totalorder %v9780_v24, 1  ;;  %vm4565_vm5 = vcmp.lt.s32.totalorder %v9780_v24, 4  ;;  %vm4564_vm6 = vcmp.lt.s32.totalorder %v9780_v24, 3 }
 0x49c   : > { %v4982_v32 = vmul.f32 %v4981_v3, %v4966_v47  ;;  %v4991_v58 = vxor.u32 2147483648, %v4974_v9  ;;  %vm4788_vm3 = vcmp.lt.s32.totalorder %v9786_v8, 0  ;;  %v4789_v55 = vsub.s32 0, %v9786_v8 }
 0x49d   : > { %v5153_v37 = vand.u32 2139095040, %v9784_v15  ;;  %vm4563_vm8 = vcmp.lt.s32.totalorder %v9780_v24, 2  ;;  %v4570_v25 = vsel %vm4562_vm4, %v9788_v34, %v9790_v57  ;;  %v4571_v36 = vsel %vm4565_vm5, %v4558_v20, 920167782 }
 0x49e   : > { %v4988_v29 = vxor.u32 2147483648, %v4982_v32  ;;  %v4992_v5 = vsel %vm4990_vm2, %v4991_v58, %v4982_v32  ;;  %v4790_v47 = vsel %vm4788_vm3, %v4789_v55, %v9786_v8  ;;  %v4574_v27 = vsel %vm4562_vm4, %v9790_v57, %v4555_v19 }
 0x49f   : > { %v4791_v2 = vclz %v4790_v47  ;;  %v4575_v6 = vsel %vm4565_vm5, %v4561_v61, 1326507024  ;;  %v4572_v56 = vsel %vm4564_vm6, %v4555_v19, %v4571_v36  ;;  %v4579_v62 = vand.u32 65535, %v9804_v53 }
 0x4a0   : > { %v4989_v52 = vsel %vm4987_vm15, %v4974_v9, %v4988_v29  ;;  %v4576_v51 = vsel %vm4564_vm6, %v4558_v20, %v4575_v6  ;;  %v4580_v10 = vshrl.u32 %v9804_v53, 16  ;;  %v4573_v54 = vsel %vm4563_vm8, %v4570_v25, %v4572_v56 }
 0x4a1   : > { %v4993_v31 = vsel %vm4986_vm0, %v4989_v52, %v4992_v5  ;;  %v6040_v30 = vadd.s32 4294967294, %v4791_v2  ;;  %v4577_v26 = vsel %vm4563_vm8, %v4574_v27, %v4576_v51  ;;  %v4809_v45 = vsub.s32 4, %v9767_v63 }
 0x4a2   : > { %v4994_v22 = vsel %vm4983_vm1, nan, %v4993_v31  ;;  %v4581_v23 = vand.u32 65535, %v4577_v26  ;;  %v4582_v13 = vshrl.u32 %v4577_v26, 16  ;;  %v4603_v49 = vand.u32 65535, %v4573_v54 }
 0x4a3   : > { %v5334_v40 = vmul.f32 -2.0, %v4994_v22  ;;  %vm6041_vm9 = vcmp.lt.s32.totalorder %v6040_v30, 0  ;;  %v5150_v39 = vand.u32 2147483647, %v9784_v15  ;;  %v4546_v60 = vshrl.u32 %v6366_v42, %v9760_v14 }
 0x4a4   : > { %v4794_v43 = vsel %vm6041_vm9, 0, %v6040_v30  ;;  %v4583_v9 = vmul.u32 %v4581_v23, %v4579_v62  ;;  %v5154_v3 = vshrl.u32 %v5153_v37, 23  ;;  %v4584_v32 = vmul.u32 %v4582_v13, %v4579_v62 }
 0x4a5   : > { %v5395_v1 = vmul.f32 1.442695, %v5334_v40  ;;  %v4795_v17 = vsub.s32 32, %v4794_v43  ;;  %v4796_v35 = vshll.u32 %v9786_v8, %v4794_v43  ;;  %v4799_v41 = vsub.s32 4294967266, %v4794_v43 }
 0x4a6   : > { %v4585_v58 = vmul.u32 %v4581_v23, %v4580_v10  ;;  %v4810_v16 = vsel %vm4687_vm7, %v4809_v45, %v9767_v63  ;;  %v4567_v8 = vsel %vm4565_vm5, %v4555_v19, 2102212464  ;;  %v4604_v20 = vshrl.u32 %v4573_v54, 16 }
 0x4a7   : > { %6245 = vpow2.f32 %v5395_v1  ;;  %v4797_v28 = vshrl.u32 %v4779_v33, %v4795_v17  ;;  %v4800_v12 = vadd.s32 127, %v4799_v41  ;;  %v4607_v55 = vmul.u32 %v4603_v49, %v4580_v10 }
 0x4a8   : > { %v4586_v5 = vmul.u32 %v4582_v13, %v4580_v10  ;;  %v4587_v47 = vshll.u32 %v4584_v32, 16  ;;  %v4588_v14 = vshrl.u32 %v4584_v32, 16  ;;  %v4589_v52 = vshll.u32 %v4585_v58, 16 }
 0x4a9   : > { %v4798_v61 = vor.u32 %v4797_v28, %v4796_v35  ;;  %v4801_v29 = vshll.u32 %v4800_v12, 23  ;;  %v4605_v37 = vmul.u32 %v4603_v49, %v4579_v62  ;;  %v4606_v33 = vmul.u32 %v4604_v20, %v4579_v62 }
 0x4aa   : > { %vm4591_vm11 = vc.u32 %v4583_v9, %v4587_v47  ;;  %v4593_v31 = vadd.s32 %v4587_v47, %v4583_v9  ;;  %v4608_v27 = vmul.u32 %v4604_v20, %v4580_v10  ;;  %v4611_v19 = vshll.u32 %v4607_v55, 16 }
 0x4ab   : > { %v4802_v2 = vor.u32 4788187, %v4801_v29  ;;  %v4805_v25 = vcvt.s32.f32 %v4798_v61  ;;  %v4592_v63 = vsel %vm4591_vm11, 1, %v6365_v0  ;;  %v4609_v6 = vshll.u32 %v4606_v33, 16 }
 0x4ac   : > { %v4594_v56 = vadd.s32 %v4592_v63, %v4586_v5  ;;  %vm4595_vm12 = vc.u32 %v4593_v31, %v4589_v52  ;;  %v4812_v51 = vsel %vm9839_vm10, 0, %v4810_v16  ;;  %v4566_v10 = vsel %vm4562_vm4, %v4546_v60, %v9788_v34 }
 0x4ad   : > { %v6246_v36 = vpop.eup %6245  ;;  %v4803_v30 = vand.u32 2147483647, %v4802_v2  ;;  %v4596_v40 = vsel %vm4595_vm12, 1, %v6365_v0  ;;  %vm4613_vm13 = vc.u32 %v4605_v37, %v4609_v6  ;;  %v4615_v26 = vadd.s32 %v4609_v6, %v4605_v37 }
 0x4ae   : > { %v5431_v22 = vmul.f32 %v6246_v36, %v6794_v38  ;;  %v4598_v23 = vadd.s32 %v4596_v40, %v4594_v56  ;;  %v4614_v13 = vsel %vm4613_vm13, 1, %v6365_v0  ;;  %v4590_v1 = vshrl.u32 %v4585_v58, 16 }
 0x4af   : > { %v4806_v54 = vmul.f32 %v4805_v25, %v4803_v30  ;;  %v4616_v43 = vadd.s32 %v4614_v13, %v4608_v27  ;;  %vm4617_vm14 = vc.u32 %v4615_v26, %v4611_v19  ;;  %v4610_v35 = vshrl.u32 %v4606_v33, 16 }
 0x4b0   : > { %v5463_v62 = vmul.f32 -0.5, %v5431_v22  ;;  %v4599_v17 = vadd.s32 %v4598_v23, %v4588_v14  ;;  %v4829_v41 = vadd.s32 3, %v4812_v51  ;;  %v4568_v9 = vsel %vm4564_vm6, %v9790_v57, %v4567_v8 }
 0x4b1   : > { %v4807_v49 = vxor.u32 2147483648, %v4806_v54  ;;  %v4618_v28 = vsel %vm4617_vm14, 1, %v6365_v0  ;;  %v6048_v12 = vadd.s32 4294967169, %v5154_v3  ;;  %v4612_v34 = vshrl.u32 %v4607_v55, 16 }
 0x4b2   : > { %v5524_v45 = vmul.f32 1.442695, %v5463_v62  ;;  %v4620_v60 = vadd.s32 %v4618_v28, %v4616_v43  ;;  %v9870_v16 = vadd.s32 %v4599_v17, %v4590_v1  ;;  %v9872_v20 = vadd.s32 %v4615_v26, %v4611_v19  ;;  %v213_v62 = vld [vmem:[%s6458_s7 + $0xf0] sm:$0xff] }
 0x4b3   : > { %v4808_v32 = vsel %vm4687_vm7, %v4807_v49, %v4806_v54  ;;  %v5160_v61 = vadd.s32 1, %v6048_v12  ;;  %v4569_v57 = vsel %vm4563_vm8, %v4566_v10, %v4568_v9  ;;  %v9876_v8 = vand.u32 3, %v4829_v41  ;;  %v246_v54 = vld [vmem:[%s6465_s10 + $0xf0] sm:$0xff] }
 0x4b4   : > { %6247 = vpow2.f32 %v5524_v45  ;;  %v4811_v58 = vsel %vm9839_vm10, %v9566_v18, %v4808_v32  ;;  %v4621_v3 = vadd.s32 %v4620_v60, %v4610_v35  ;;  %v4623_v21 = vmul.u32 %v9804_v53, %v4569_v57 }
 0x4b5   : > { %v4813_v29 = vmul.f32 %v4811_v58, %v4811_v58  ;;  %vm5161_vm15 = vcmp.gt.s32.totalorder %v5160_v61, 0  ;;  %vm4625_vm0 = vc.u32 %v9870_v16, %v9872_v20  ;;  %v5157_v52 = vand.u32 8388607, %v5150_v39 }
 0x4b6   : > { %v4622_v47 = vadd.s32 %v4621_v3, %v4612_v34  ;;  %v5162_v14 = vsel %vm5161_vm15, %v5160_v61, 0  ;;  %vm4835_vm1 = vcmp.eq.s32.totalorder %v9876_v8, 2  ;;  %vm4831_vm2 = vcmp.lt.s32.totalorder %v9876_v8, 2 }
 0x4b7   : > { %v4814_v5 = vmul.f32 -0.001358992, %v4813_v29  ;;  %v4821_v55 = vmul.f32 -0.00019511016, %v4813_v29  ;;  %v5164_v37 = vand.u32 31, %v5162_v14  ;;  %v5158_v19 = vor.u32 8388608, %v5157_v52 }
 0x4b8   : > { %v4626_v25 = vadd.s32 1, %v4622_v47  ;;  %vm4828_vm3 = vweird.f32 %v9566_v18  ;;  %v9896_v13 = vshrl.u32 %v5162_v14, 5  ;;  %v278_v28 = vsub.f32 %v213_v62, %v246_v54 }
 0x4b9   : > { %v4815_v24 = vadd.f32 0.041655596, %v4814_v5  ;;  %v4822_v2 = vadd.f32 0.008332121, %v4821_v55  ;;  %v9883_v36 = vsub.s32 32, %v5164_v37  ;;  %v5167_v30 = vshll.u32 %v6366_v42, %v5164_v37 }
 0x4ba   : > { %v6248_v33 = vpop.eup %6247  ;;  %v4627_v53 = vsel %vm4625_vm0, %v4626_v25, %v4622_v47  ;;  %v5170_v56 = vshll.u32 %v6367_v44, %v5164_v37  ;;  %v5176_v10 = vshll.u32 %v6369_v48, %v5164_v37  ;;  %v5173_v49 = vshll.u32 %v6368_v46, %v5164_v37 }
 0x4bb   : > { %v5559_v31 = vmul.f32 %v6248_v33, %v5431_v22  ;;  %v4816_v63 = vmul.f32 %v4815_v24, %v4813_v29  ;;  %v4823_v27 = vmul.f32 %v4822_v2, %v4813_v29  ;;  %v4628_v6 = vadd.s32 %v4627_v53, %v4623_v21 }
 0x4bc   : > { %v5168_v22 = vshrl.u32 %v6367_v44, %v9883_v36  ;;  %v5171_v26 = vshrl.u32 %v6368_v46, %v9883_v36  ;;  %v5177_v1 = vshrl.u32 %v6370_v50, %v9883_v36  ;;  %v5174_v17 = vshrl.u32 %v6369_v48, %v9883_v36 }
 0x4bd   : > { %5709 = vperm.xlu2 %6136, %v5559_v31   ;;  %v4817_v51 = vadd.f32 -0.4999988, %v4816_v63  ;;  %v4824_v40 = vadd.f32 -0.16666654, %v4823_v27  ;;  %v4629_v23 = vadd.s32 536870912, %v4628_v6  ;;  %v5179_v41 = vshll.u32 %v6370_v50, %v5164_v37 }
 0x4be   : > { %v5180_v9 = vshrl.u32 %v6371_v59, %v9883_v36  ;;  %v5169_v34 = vor.u32 %v5168_v22, %v5167_v30  ;;  %v9909_v60 = vor.u32 %v5171_v26, %v5170_v56  ;;  %vm5182_vm4 = vcmp.lt.s32.totalorder %v9896_v13, 1 }
 0x4bf   : > { %v4818_v43 = vmul.f32 %v4817_v51, %v4813_v29  ;;  %v4825_v45 = vmul.f32 %v4824_v40, %v4813_v29  ;;  %v9904_v35 = vshrl.u32 %v4629_v23, 30  ;;  %v5178_v29 = vor.u32 %v5177_v1, %v5176_v10 }
 0x4c0   : > { %v9913_v57 = vshll.u32 %v5158_v19, 8  ;;  %v5175_v55 = vor.u32 %v5174_v17, %v5173_v49  ;;  %vm5185_vm5 = vcmp.lt.s32.totalorder %v9896_v13, 4  ;;  %vm4832_vm6 = vcmp.eq.s32.totalorder %v9876_v8, 0 }
 0x4c1   : > { %v4819_v12 = vadd.f32 1.0, %v4818_v43  ;;  %v4826_v32 = vadd.f32 1.0, %v4825_v45  ;;  %v4631_v61 = vshll.u32 %v9904_v35, 30  ;;  %v5181_v14 = vor.u32 %v5180_v9, %v5179_v41 }
 0x4c2   : > { %vm5184_vm7 = vcmp.lt.s32.totalorder %v9896_v13, 3  ;;  %vm5183_vm8 = vcmp.lt.s32.totalorder %v9896_v13, 2  ;;  %v5191_v33 = vsel %vm5185_vm5, %v5178_v29, 920167782  ;;  %v310_v24 = vand.u32 2147483647, %v278_v28 }
 0x4c3   : > { %v4827_v3 = vmul.f32 %v4826_v32, %v4811_v58  ;;  %v4836_v5 = vxor.u32 2147483648, %v4819_v12  ;;  %v4632_v47 = vsub.s32 %v4628_v6, %v4631_v61  ;;  %v5190_v58 = vsel %vm5182_vm4, %v5169_v34, %v9909_v60 }
 0x4c4   : > { %v5192_v25 = vsel %vm5184_vm7, %v5175_v55, %v5191_v33  ;;  %v5194_v31 = vsel %vm5182_vm4, %v9909_v60, %v5175_v55  ;;  %v5199_v63 = vand.u32 65535, %v9913_v57  ;;  %v5195_v19 = vsel %vm5185_vm5, %v5181_v14, 1326507024 }
 0x4c5   : > { %v4833_v21 = vxor.u32 2147483648, %v4827_v3  ;;  %v4837_v52 = vsel %vm4835_vm1, %v4836_v5, %v4827_v3  ;;  %vm4633_vm9 = vcmp.lt.s32.totalorder %v4632_v47, 0  ;;  %v4634_v37 = vsub.s32 0, %v4632_v47 }
 0x4c6   : > { %v5193_v6 = vsel %vm5183_vm8, %v5190_v58, %v5192_v25  ;;  %v5166_v51 = vshrl.u32 %v6366_v42, %v9883_v36  ;;  %v5196_v40 = vsel %vm5184_vm7, %v5178_v29, %v5195_v19  ;;  %v5200_v26 = vshrl.u32 %v9913_v57, 16 }
 0x4c7   : > { %v4834_v2 = vsel %vm4832_vm6, %v4819_v12, %v4833_v21  ;;  %v4635_v53 = vsel %vm4633_vm9, %v4634_v37, %v4632_v47  ;;  %v5197_v8 = vsel %vm5183_vm8, %v5194_v31, %v5196_v40  ;;  %v5224_v10 = vshrl.u32 %v5193_v6, 16 }
 0x4c8   : > { %v4838_v27 = vsel %vm4831_vm2, %v4834_v2, %v4837_v52  ;;  %v4636_v56 = vclz %v4635_v53  ;;  %v5201_v54 = vand.u32 65535, %v5197_v8  ;;  %v5202_v23 = vshrl.u32 %v5197_v8, 16 }
 0x4c9   : > { %v4839_v30 = vsel %vm4828_vm3, nan, %v4838_v27  ;;  %v4624_v18 = vadd.s32 %v9872_v20, %v9870_v16  ;;  %v5223_v43 = vand.u32 65535, %v5193_v6  ;;  %v9950_v36 = vmul.f32 %v6472_v11, %v310_v24 }
 0x4ca   : > { %v5333_v22 = vmul.f32 -2.0, %v4839_v30  ;;  %v6037_v62 = vadd.s32 4294967294, %v4636_v56  ;;  %vm4532_vm10 = vcmp.lt.s32.totalorder %v9729_v4, 0  ;;  %v5186_v45 = vsel %vm5182_vm4, %v5166_v51, %v5169_v34 }
 0x4cb   : > { %v5187_v49 = vsel %vm5185_vm5, %v5175_v55, 2102212464  ;;  %v5204_v17 = vmul.u32 %v5202_v23, %v5199_v63  ;;  %v5203_v9 = vmul.u32 %v5201_v54, %v5199_v63  ;;  %v5205_v28 = vmul.u32 %v5201_v54, %v5200_v26 }
 0x4cc   : > { %v5393_v1 = vmul.f32 1.442695, %v5333_v22  ;;  %vm6038_vm11 = vcmp.lt.s32.totalorder %v6037_v62, 0  ;;  %v5226_v32 = vmul.u32 %v5224_v10, %v5199_v63  ;;  %v4654_v11 = vsub.s32 4, %v9904_v35 }
 0x4cd   : > { %v4639_v41 = vsel %vm6038_vm11, 0, %v6037_v62  ;;  %v5206_v61 = vmul.u32 %v5202_v23, %v5200_v26  ;;  %v5207_v29 = vshll.u32 %v5204_v17, 16  ;;  %v5227_v3 = vmul.u32 %v5223_v43, %v5200_v26 }
 0x4ce   : > { %6249 = vpow2.f32 %v5393_v1  ;;  %v4640_v12 = vsub.s32 32, %v4639_v41  ;;  %v4641_v16 = vshll.u32 %v4632_v47, %v4639_v41  ;;  %v4644_v20 = vsub.s32 4294967266, %v4639_v41 }
 0x4cf   : > { %vm9960_vm12 = vcmp.le.f32.partialorder %v4530_v7, 0.7853982  ;;  %v5188_v14 = vsel %vm5184_vm7, %v9909_v60, %v5187_v49  ;;  %v5209_v47 = vshll.u32 %v5205_v28, 16  ;;  %v5208_v21 = vshrl.u32 %v5204_v17, 16 }
 0x4d0   : > { %v4642_v5 = vshrl.u32 %v4624_v18, %v4640_v12  ;;  %v4645_v55 = vadd.s32 127, %v4644_v20  ;;  %vm5211_vm13 = vc.u32 %v5203_v9, %v5207_v29  ;;  %v5213_v52 = vadd.s32 %v5207_v29, %v5203_v9 }
 0x4d1   : > { %v5225_v58 = vmul.u32 %v5223_v43, %v5199_v63  ;;  %v5212_v24 = vsel %vm5211_vm13, 1, %v6365_v0  ;;  %v5229_v2 = vshll.u32 %v5226_v32, 16  ;;  %v5228_v31 = vmul.u32 %v5224_v10, %v5200_v26 }
 0x4d2   : > { %v4643_v37 = vor.u32 %v4642_v5, %v4641_v16  ;;  %v4646_v33 = vshll.u32 %v4645_v55, 23  ;;  %v5214_v25 = vadd.s32 %v5212_v24, %v5206_v61  ;;  %vm5215_vm14 = vc.u32 %v5213_v52, %v5209_v47 }
 0x4d3   : > { %v5231_v27 = vshll.u32 %v5227_v3, 16  ;;  %v5216_v60 = vsel %vm5215_vm14, 1, %v6365_v0  ;;  %v4655_v63 = vsel %vm4532_vm10, %v4654_v11, %v9904_v35  ;;  %vm5233_vm15 = vc.u32 %v5225_v58, %v5229_v2 }
 0x4d4   : > { %v6250_v7 = vpop.eup %6249  ;;  %v4647_v6 = vor.u32 4788187, %v4646_v33  ;;  %v4650_v19 = vcvt.s32.f32 %v4643_v37  ;;  %v5218_v30 = vadd.s32 %v5216_v60, %v5214_v25  ;;  %v5235_v56 = vadd.s32 %v5229_v2, %v5225_v58 }
 0x4d5   : > { %v5430_v53 = vmul.f32 %v6250_v7, %v6794_v38  ;;  %v5210_v22 = vshrl.u32 %v5205_v28, 16  ;;  %v5234_v8 = vsel %vm5233_vm15, 1, %v6365_v0  ;;  %v5230_v62 = vshrl.u32 %v5226_v32, 16 }
 0x4d6   : > { %v4648_v40 = vand.u32 2147483647, %v4647_v6  ;;  %v5219_v26 = vadd.s32 %v5218_v30, %v5208_v21  ;;  %v5236_v54 = vadd.s32 %v5234_v8, %v5228_v31  ;;  %vm5237_vm0 = vc.u32 %v5235_v56, %v5231_v27 }
 0x4d7   : > { %v5462_v51 = vmul.f32 -0.5, %v5430_v53  ;;  %v5238_v1 = vsel %vm5237_vm0, 1, %v6365_v0  ;;  %v4998_v18 = vand.u32 2139095040, %v9950_v36  ;;  %v4657_v35 = vsel %vm9960_vm12, 0, %v4655_v63 }
 0x4d8   : > { %v4651_v10 = vmul.f32 %v4650_v19, %v4648_v40  ;;  %v5232_v43 = vshrl.u32 %v5227_v3, 16  ;;  %v9978_v49 = vadd.s32 %v5235_v56, %v5231_v27  ;;  %v5240_v17 = vadd.s32 %v5238_v1, %v5236_v54 }
 0x4d9   : > { %v5522_v23 = vmul.f32 1.442695, %v5462_v51  ;;  %v9980_v9 = vadd.s32 %v5219_v26, %v5210_v22  ;;  %v4999_v28 = vshrl.u32 %v4998_v18, 23  ;;  %v5189_v12 = vsel %vm5183_vm8, %v5186_v45, %v5188_v14 }
 0x4da   : > { %v4652_v41 = vxor.u32 2147483648, %v4651_v10  ;;  %v5241_v16 = vadd.s32 %v5240_v17, %v5230_v62  ;;  %v4674_v61 = vadd.s32 3, %v4657_v35  ;;  %v5243_v5 = vmul.u32 %v9913_v57, %v5189_v12 }
 0x4db   : > { %6251 = vpow2.f32 %v5522_v23  ;;  %v6045_v32 = vadd.s32 4294967169, %v4999_v28  ;;  %vm5245_vm1 = vc.u32 %v9980_v9, %v9978_v49  ;;  %v4995_v31 = vand.u32 2147483647, %v9950_v36 }
 0x4dc   : > { %v4653_v20 = vsel %vm4532_vm10, %v4652_v41, %v4651_v10  ;;  %v5242_v29 = vadd.s32 %v5241_v16, %v5232_v43  ;;  %v4675_v52 = vand.u32 3, %v4674_v61  ;;  %vm4673_vm10 = vweird.f32 %v9729_v4 }
 0x4dd   : > { %v4656_v11 = vsel %vm9960_vm12, %v9729_v4, %v4653_v20  ;;  %v5005_v55 = vadd.s32 1, %v6045_v32  ;;  %v5002_v62 = vand.u32 8388607, %v4995_v31  ;;  %vm5152_vm13 = vcmp.lt.s32.totalorder %v9784_v15, 0 }
 0x4de   : > { %v4658_v3 = vmul.f32 %v4656_v11, %v4656_v11  ;;  %v5246_v13 = vadd.s32 1, %v5242_v29  ;;  %vm4677_vm3 = vcmp.eq.s32.totalorder %v4675_v52, 0  ;;  %vm4680_vm4 = vcmp.eq.s32.totalorder %v4675_v52, 2 }
 0x4df   : > { %vm5006_vm2 = vcmp.gt.s32.totalorder %v5005_v55, 0  ;;  %vm4676_vm5 = vcmp.lt.s32.totalorder %v4675_v52, 2  ;;  %v5003_v20 = vor.u32 8388608, %v5002_v62  ;;  %vm10062_vm14 = vcmp.le.f32.partialorder %v5150_v39, 0.7853982 }
 0x4e0   : > { %v4659_v14 = vmul.f32 -0.001358992, %v4658_v3  ;;  %v4666_v47 = vmul.f32 -0.00019511016, %v4658_v3  ;;  %v5247_v58 = vsel %vm5245_vm1, %v5246_v13, %v5242_v29  ;;  %v5007_v37 = vsel %vm5006_vm2, %v5005_v55, 0 }
 0x4e1   : > { %v6252_v45 = vpop.eup %6251  ;;  %v5248_v24 = vadd.s32 %v5247_v58, %v5243_v5  ;;  %v5009_v2 = vand.u32 31, %v5007_v37  ;;  %v10009_v54 = vshrl.u32 %v5007_v37, 5 }
 0x4e2   : > { %v5558_v21 = vmul.f32 %v6252_v45, %v5430_v53  ;;  %v4660_v34 = vadd.f32 0.041655596, %v4659_v14  ;;  %v4667_v33 = vadd.f32 0.008332121, %v4666_v47  ;;  %v5244_v14 = vadd.s32 %v9978_v49, %v9980_v9 }
 0x4e3   : > { %v5249_v25 = vadd.s32 536870912, %v5248_v24  ;;  %v9993_v27 = vsub.s32 32, %v5009_v2  ;;  %v5012_v60 = vshll.u32 %v6366_v42, %v5009_v2  ;;  %v5015_v30 = vshll.u32 %v6367_v44, %v5009_v2 }
 0x4e4   : > { %5704 = vperm.xlu1 %6135, %v5558_v21   ;;  %v4661_v7 = vmul.f32 %v4660_v34, %v4658_v3  ;;  %v4668_v57 = vmul.f32 %v4667_v33, %v4658_v3  ;;  %v5021_v51 = vshll.u32 %v6369_v48, %v5009_v2  ;;  %v5018_v23 = vshll.u32 %v6368_v46, %v5009_v2 }
 0x4e5   : > { %v9995_v53 = vshrl.u32 %v5249_v25, 30  ;;  %v5013_v63 = vshrl.u32 %v6367_v44, %v9993_v27  ;;  %v5016_v56 = vshrl.u32 %v6368_v46, %v9993_v27  ;;  %v5022_v26 = vshrl.u32 %v6370_v50, %v9993_v27 }
 0x4e6   : > { %v4662_v6 = vadd.f32 -0.4999988, %v4661_v7  ;;  %v4669_v19 = vadd.f32 -0.16666654, %v4668_v57  ;;  %v5019_v44 = vshrl.u32 %v6369_v48, %v9993_v27  ;;  %v5024_v41 = vshll.u32 %v6370_v50, %v5009_v2 }
 0x4e7   : > { %v5251_v8 = vshll.u32 %v9995_v53, 30  ;;  %v10014_v35 = vor.u32 %v5013_v63, %v5012_v60  ;;  %v10016_v43 = vor.u32 %v5016_v56, %v5015_v30  ;;  %v5023_v17 = vor.u32 %v5022_v26, %v5021_v51 }
 0x4e8   : > { %v4663_v40 = vmul.f32 %v4662_v6, %v4658_v3  ;;  %v4670_v22 = vmul.f32 %v4669_v19, %v4658_v3  ;;  %v5025_v28 = vshrl.u32 %v6371_v59, %v9993_v27  ;;  %v5020_v32 = vor.u32 %v5019_v44, %v5018_v23 }
 0x4e9   : > { %v5252_v18 = vsub.s32 %v5248_v24, %v5251_v8  ;;  %vm5027_vm7 = vcmp.lt.s32.totalorder %v10009_v54, 1  ;;  %vm5030_vm8 = vcmp.lt.s32.totalorder %v10009_v54, 4  ;;  %vm5029_vm9 = vcmp.lt.s32.totalorder %v10009_v54, 3 }
 0x4ea   : > { %v4664_v10 = vadd.f32 1.0, %v4663_v40  ;;  %v4671_v1 = vadd.f32 1.0, %v4670_v22  ;;  %v5026_v59 = vor.u32 %v5025_v28, %v5024_v41  ;;  %vm5028_vm11 = vcmp.lt.s32.totalorder %v10009_v54, 2 }
 0x4eb   : > { %vm5253_vm6 = vcmp.lt.s32.totalorder %v5252_v18, 0  ;;  %v5254_v46 = vsub.s32 0, %v5252_v18  ;;  %v5035_v3 = vsel %vm5027_vm7, %v10014_v35, %v10016_v43  ;;  %v5036_v5 = vsel %vm5030_vm8, %v5023_v17, 920167782 }
 0x4ec   : > { %v4672_v12 = vmul.f32 %v4671_v1, %v4656_v11  ;;  %v4681_v16 = vxor.u32 2147483648, %v4664_v10  ;;  %v5037_v4 = vsel %vm5029_vm9, %v5020_v32, %v5036_v5  ;;  %v5039_v47 = vsel %vm5027_vm7, %v10016_v43, %v5020_v32 }
 0x4ed   : > { %v5255_v29 = vsel %vm5253_vm6, %v5254_v46, %v5252_v18  ;;  %v10042_v21 = vshll.u32 %v5003_v20, 8  ;;  %v5038_v52 = vsel %vm5028_vm11, %v5035_v3, %v5037_v4  ;;  %v5040_v37 = vsel %vm5030_vm8, %v5026_v59, 1326507024 }
 0x4ee   : > { %v4678_v48 = vxor.u32 2147483648, %v4672_v12  ;;  %v4682_v61 = vsel %vm4680_vm4, %v4681_v16, %v4672_v12  ;;  %v5256_v50 = vclz %v5255_v29  ;;  %v5041_v33 = vsel %vm5029_vm9, %v5023_v17, %v5040_v37 }
 0x4ef   : > { %v5045_v49 = vshrl.u32 %v10042_v21, 16  ;;  %v5068_v9 = vand.u32 65535, %v5038_v52  ;;  %v5011_v25 = vshrl.u32 %v6366_v42, %v9993_v27  ;;  %v5042_v6 = vsel %vm5028_vm11, %v5039_v47, %v5041_v33 }
 0x4f0   : > { %v4679_v11 = vsel %vm4677_vm3, %v4664_v10, %v4678_v48  ;;  %v6049_v13 = vadd.s32 4294967294, %v5256_v50  ;;  %v5044_v19 = vand.u32 65535, %v10042_v21  ;;  %v5046_v30 = vand.u32 65535, %v5042_v6 }
 0x4f1   : > { %v4683_v55 = vsel %vm4676_vm5, %v4679_v11, %v4682_v61  ;;  %v5274_v56 = vsub.s32 4, %v9995_v53  ;;  %v5032_v51 = vsel %vm5030_vm8, %v5020_v32, 2102212464  ;;  %v5047_v40 = vshrl.u32 %v5042_v6, 16 }
 0x4f2   : > { %v4684_v45 = vsel %vm4673_vm10, nan, %v4683_v55  ;;  %vm6050_vm12 = vcmp.lt.s32.totalorder %v6049_v13, 0  ;;  %v5069_v22 = vshrl.u32 %v5038_v52, 16  ;;  %v5050_v26 = vmul.u32 %v5046_v30, %v5045_v49 }
 0x4f3   : > { %v5332_v58 = vmul.f32 -2.0, %v4684_v45  ;;  %v5259_v34 = vsel %vm6050_vm12, 0, %v6049_v13  ;;  %v5072_v62 = vmul.u32 %v5068_v9, %v5045_v49  ;;  %v5048_v23 = vmul.u32 %v5046_v30, %v5044_v19 }
 0x4f4   : > { %v5260_v2 = vsub.s32 32, %v5259_v34  ;;  %v5261_v7 = vshll.u32 %v5252_v18, %v5259_v34  ;;  %v5264_v57 = vsub.s32 4294967266, %v5259_v34  ;;  %v5049_v44 = vmul.u32 %v5047_v40, %v5044_v19 }
 0x4f5   : > { %v5391_v24 = vmul.f32 1.442695, %v5332_v58  ;;  %v5070_v10 = vmul.u32 %v5068_v9, %v5044_v19  ;;  %v5071_v1 = vmul.u32 %v5069_v22, %v5044_v19  ;;  %v5031_v41 = vsel %vm5027_vm7, %v5011_v25, %v10014_v35 }
 0x4f6   : > { %v5262_v60 = vshrl.u32 %v5244_v14, %v5260_v2  ;;  %v5265_v63 = vadd.s32 127, %v5264_v57  ;;  %v5051_v28 = vmul.u32 %v5047_v40, %v5045_v49  ;;  %v5052_v12 = vshll.u32 %v5049_v44, 16 }
 0x4f7   : > { %6253 = vpow2.f32 %v5391_v24  ;;  %v5054_v39 = vshll.u32 %v5050_v26, 16  ;;  %v5073_v16 = vmul.u32 %v5069_v22, %v5045_v49  ;;  %v5074_v46 = vshll.u32 %v5071_v1, 16 }
 0x4f8   : > { %v5263_v27 = vor.u32 %v5262_v60, %v5261_v7  ;;  %v5266_v8 = vshll.u32 %v5265_v63, 23  ;;  %v5033_v48 = vsel %vm5029_vm9, %v10016_v43, %v5032_v51  ;;  %v5053_v61 = vshrl.u32 %v5049_v44, 16 }
 0x4f9   : > { %v5076_v29 = vshll.u32 %v5072_v62, 16  ;;  %vm5056_vm15 = vc.u32 %v5048_v23, %v5052_v12  ;;  %v5058_v59 = vadd.s32 %v5052_v12, %v5048_v23  ;;  %vm5078_vm0 = vc.u32 %v5070_v10, %v5074_v46 }
 0x4fa   : > { %v5267_v18 = vor.u32 4788187, %v5266_v8  ;;  %v5270_v17 = vcvt.s32.f32 %v5263_v27  ;;  %v5057_v35 = vsel %vm5056_vm15, 1, %v6365_v0  ;;  %v5079_v3 = vsel %vm5078_vm0, 1, %v6365_v0 }
 0x4fb   : > { %v5080_v5 = vadd.s32 %v5074_v46, %v5070_v10  ;;  %v5059_v13 = vadd.s32 %v5057_v35, %v5051_v28  ;;  %vm5060_vm1 = vc.u32 %v5058_v59, %v5054_v39  ;;  %v5081_v4 = vadd.s32 %v5079_v3, %v5073_v16 }
 0x4fc   : > { %v5268_v32 = vand.u32 2147483647, %v5267_v18  ;;  %v5061_v43 = vsel %vm5060_vm1, 1, %v6365_v0  ;;  %v5075_v14 = vshrl.u32 %v5071_v1, 16  ;;  %v5055_v58 = vshrl.u32 %v5050_v26, 16 }
 0x4fd   : > { %v6254_v20 = vpop.eup %6253  ;;  %vm5082_vm2 = vc.u32 %v5080_v5, %v5076_v29  ;;  %v5063_v52 = vadd.s32 %v5061_v43, %v5059_v13  ;;  %v5275_v33 = vsel %vm5152_vm13, %v5274_v56, %v9995_v53  ;;  %v5077_v49 = vshrl.u32 %v5072_v62, 16 }
 0x4fe   : > { %v5429_v50 = vmul.f32 %v6254_v20, %v6794_v38  ;;  %v5271_v11 = vmul.f32 %v5270_v17, %v5268_v32  ;;  %v5083_v37 = vsel %vm5082_vm2, 1, %v6365_v0  ;;  %v5084_v7 = vadd.s32 %v5080_v5, %v5076_v29 }
 0x4ff   : > { %v5085_v9 = vadd.s32 %v5083_v37, %v5081_v4  ;;  %v5064_v2 = vadd.s32 %v5063_v52, %v5053_v61  ;;  %v5034_v0 = vsel %vm5028_vm11, %v5031_v41, %v5033_v48  ;;  %v5277_v19 = vsel %vm10062_vm14, 0, %v5275_v33 }
 0x500   : > { %v5461_v55 = vmul.f32 -0.5, %v5429_v50  ;;  %v5272_v45 = vxor.u32 2147483648, %v5271_v11  ;;  %v5088_v30 = vmul.u32 %v10042_v21, %v5034_v0  ;;  %v5294_v27 = vadd.s32 3, %v5277_v19 }
 0x501   : > { %v5086_v25 = vadd.s32 %v5085_v9, %v5075_v14  ;;  %v5065_v6 = vadd.s32 %v5064_v2, %v5055_v58  ;;  %vm5293_vm7 = vweird.f32 %v9784_v15  ;;  %vm4997_vm10 = vcmp.lt.s32.totalorder %v9950_v36, 0 }
 0x502   : > { %v5520_v47 = vmul.f32 1.442695, %v5461_v55  ;;  %v5273_v34 = vsel %vm5152_vm13, %v5272_v45, %v5271_v11  ;;  %v5295_v10 = vand.u32 3, %v5294_v27  ;;  %vm4996_vm11 = vcmp.le.f32.partialorder %v4995_v31, 0.7853982 }
 0x503   : > { %v5276_v24 = vsel %vm10062_vm14, %v9784_v15, %v5273_v34  ;;  %v5087_v63 = vadd.s32 %v5086_v25, %v5077_v49  ;;  %vm5090_vm3 = vc.u32 %v5065_v6, %v5084_v7  ;;  %v5089_v55 = vadd.s32 %v5084_v7, %v5065_v6 }
 0x504   : > { %6255 = vpow2.f32 %v5520_v47  ;;  %v5278_v57 = vmul.f32 %v5276_v24, %v5276_v24  ;;  %vm5300_vm4 = vcmp.eq.s32.totalorder %v5295_v10, 2  ;;  %vm5297_vm5 = vcmp.eq.s32.totalorder %v5295_v10, 0 }
 0x505   : > { %v5091_v40 = vadd.s32 1, %v5087_v63  ;;  %vm5296_vm6 = vcmp.lt.s32.totalorder %v5295_v10, 2  ;;  %vm5138_vm15 = vweird.f32 %v9950_v36 }
 0x506   : > { %v5279_v60 = vmul.f32 -0.001358992, %v5278_v57  ;;  %v5286_v53 = vmul.f32 -0.00019511016, %v5278_v57 }
 0x507   : > { %v5092_v62 = vsel %vm5090_vm3, %v5091_v40, %v5087_v63 }
 0x508   : > { %v5280_v56 = vadd.f32 0.041655596, %v5279_v60  ;;  %v5287_v51 = vadd.f32 0.008332121, %v5286_v53  ;;  %v5093_v23 = vadd.s32 %v5092_v62, %v5088_v30 }
 0x50a   : > { %v6256_v22 = vpop.eup %6255  ;;  %v5281_v26 = vmul.f32 %v5280_v56, %v5278_v57  ;;  %v5288_v54 = vmul.f32 %v5287_v51, %v5278_v57  ;;  %v5094_v1 = vadd.s32 536870912, %v5093_v23 }
 0x50b   : > { %v5557_v8 = vmul.f32 %v6256_v22, %v5429_v50 }
 0x50c   : > { %v5282_v44 = vadd.f32 -0.4999988, %v5281_v26  ;;  %v5289_v42 = vadd.f32 -0.16666654, %v5288_v54  ;;  %v5095_v41 = vshrl.u32 %v5094_v1, 30 }
 0x50d   : > { %5699 = vperm.xlu0 %6134, %v5557_v8  }
 0x50e   : > { %v5283_v18 = vmul.f32 %v5282_v44, %v5278_v57  ;;  %v5290_v17 = vmul.f32 %v5289_v42, %v5278_v57  ;;  %v5096_v12 = vshll.u32 %v5095_v41, 30  ;;  %v5119_v7 = vsub.s32 4, %v5095_v41 }
 0x510   : > { %v5284_v21 = vadd.f32 1.0, %v5283_v18  ;;  %v5291_v28 = vadd.f32 1.0, %v5290_v17  ;;  %v5097_v46 = vsub.s32 %v5093_v23, %v5096_v12  ;;  %v5120_v25 = vsel %vm4997_vm10, %v5119_v7, %v5095_v41  ;;  %v5575_v18 = vpop.permute.xlu1 %5574 }
 0x511   : > { %v5122_v53 = vsel %vm4996_vm11, 0, %v5120_v25  ;;  %5730 = vst [vmem:[%s10099_s21 + $0x40] sm:$0xff] %v5575_v18 }
 0x512   : > { %v5292_v39 = vmul.f32 %v5291_v28, %v5276_v24  ;;  %v5301_v16 = vxor.u32 2147483648, %v5284_v21  ;;  %vm5098_vm8 = vcmp.lt.s32.totalorder %v5097_v46, 0  ;;  %v5099_v48 = vsub.s32 0, %v5097_v46  ;;  %5731 = vst [vmem:[%s10099_s21 + $0x48] sm:$0xff] %v5575_v18 }
 0x513   : > { %v5139_v22 = vadd.s32 3, %v5122_v53  ;;  %5732 = vst [vmem:[%s10099_s21 + $0x50] sm:$0xff] %v5575_v18 }
 0x514   : > { %v5298_v20 = vxor.u32 2147483648, %v5292_v39  ;;  %v5302_v32 = vsel %vm5300_vm4, %v5301_v16, %v5292_v39  ;;  %v5100_v50 = vsel %vm5098_vm8, %v5099_v48, %v5097_v46  ;;  %5733 = vst [vmem:[%s10099_s21 + $0x58] sm:$0xff] %v5575_v18 }
 0x515   : > { %v5101_v11 = vclz %v5100_v50  ;;  %v5140_v54 = vand.u32 3, %v5139_v22 }
 0x516   : > { %v5299_v61 = vsel %vm5297_vm5, %v5284_v21, %v5298_v20  ;;  %v5565_v21 = vpop.permute.xlu0 %5564 }
 0x517   : > { %v5303_v29 = vsel %vm5296_vm6, %v5299_v61, %v5302_v32  ;;  %v6046_v3 = vadd.s32 4294967294, %v5101_v11  ;;  %vm5145_vm12 = vcmp.eq.s32.totalorder %v5140_v54, 2  ;;  %vm5142_vm13 = vcmp.eq.s32.totalorder %v5140_v54, 0  ;;  %5722 = vst [vmem:[%s10099_s21] sm:$0xff] %v5565_v21  ;;  %v5585_v32 = vpop.permute.xlu2 %5584 }
 0x518   : > { %v5304_v59 = vsel %vm5293_vm7, nan, %v5303_v29  ;;  %vm5141_vm14 = vcmp.lt.s32.totalorder %v5140_v54, 2  ;;  %5723 = vst [vmem:[%s10099_s21 + $0x8] sm:$0xff] %v5565_v21 }
 0x519   : > { %v5336_v35 = vmul.f32 -2.0, %v5304_v59  ;;  %vm6047_vm9 = vcmp.lt.s32.totalorder %v6046_v3, 0  ;;  %5724 = vst [vmem:[%s10099_s21 + $0x10] sm:$0xff] %v5565_v21 }
 0x51a   : > { %v5104_v13 = vsel %vm6047_vm9, 0, %v6046_v3  ;;  %5725 = vst [vmem:[%s10099_s21 + $0x18] sm:$0xff] %v5565_v21 }
 0x51b   : > { %v5399_v5 = vmul.f32 1.442695, %v5336_v35  ;;  %v5105_v4 = vsub.s32 32, %v5104_v13  ;;  %v5106_v45 = vshll.u32 %v5097_v46, %v5104_v13  ;;  %v5109_v43 = vsub.s32 4294967266, %v5104_v13  ;;  %5738 = vst [vmem:[%s10099_s21 + $0x80] sm:$0xff] %v5585_v32 }
 0x51c   : > { %5739 = vst [vmem:[%s10099_s21 + $0x88] sm:$0xff] %v5585_v32 }
 0x51d   : > { %6257 = vpow2.f32 %v5399_v5  ;;  %v5107_v14 = vshrl.u32 %v5089_v55, %v5105_v4  ;;  %v5110_v47 = vadd.s32 127, %v5109_v43  ;;  %5740 = vst [vmem:[%s10099_s21 + $0x90] sm:$0xff] %v5585_v32 }
 0x51e   : > { %v5570_v20 = vpop.permute.xlu0 %5569  ;;  %5741 = vst [vmem:[%s10099_s21 + $0x98] sm:$0xff] %v5585_v32 }
 0x51f   : > { %v5108_v15 = vor.u32 %v5107_v14, %v5106_v45  ;;  %v5111_v58 = vshll.u32 %v5110_v47, 23  ;;  %5726 = vst [vmem:[%s10099_s21 + $0x20] sm:$0xff] %v5570_v20  ;;  %v5590_v50 = vpop.permute.xlu2 %5589 }
 0x520   : > { %5727 = vst [vmem:[%s10099_s21 + $0x28] sm:$0xff] %v5570_v20 }
 0x521   : > { %v5112_v34 = vor.u32 4788187, %v5111_v58  ;;  %v5115_v33 = vcvt.s32.f32 %v5108_v15  ;;  %5728 = vst [vmem:[%s10099_s21 + $0x30] sm:$0xff] %v5570_v20 }
 0x522   : > { %5729 = vst [vmem:[%s10099_s21 + $0x38] sm:$0xff] %v5570_v20 }
 0x523   : > { %v6258_v52 = vpop.eup %6257  ;;  %v5113_v9 = vand.u32 2147483647, %v5112_v34  ;;  %5742 = vst [vmem:[%s10099_s21 + $0xa0] sm:$0xff] %v5590_v50 }
 0x524   : > { %v5433_v37 = vmul.f32 %v6258_v52, %v6794_v38  ;;  %5743 = vst [vmem:[%s10099_s21 + $0xa8] sm:$0xff] %v5590_v50 }
 0x525   : > { %v5116_v2 = vmul.f32 %v5115_v33, %v5113_v9  ;;  %5744 = vst [vmem:[%s10099_s21 + $0xb0] sm:$0xff] %v5590_v50 }
 0x526   : > { %v5465_v49 = vmul.f32 -0.5, %v5433_v37  ;;  %v5595_v11 = vpop.permute.xlu0 %5594  ;;  %5745 = vst [vmem:[%s10099_s21 + $0xb8] sm:$0xff] %v5590_v50 }
 0x527   : > { %v5117_v57 = vxor.u32 2147483648, %v5116_v2  ;;  %5746 = vst [vmem:[%s10099_s21 + $0xc0] sm:$0xff] %v5595_v11  ;;  %v5605_v5 = vpop.permute.xlu2 %5604 }
 0x528   : > { %v5528_v24 = vmul.f32 1.442695, %v5465_v49  ;;  %5747 = vst [vmem:[%s10099_s21 + $0xc8] sm:$0xff] %v5595_v11 }
 0x529   : > { %v5118_v0 = vsel %vm4997_vm10, %v5117_v57, %v5116_v2  ;;  %5748 = vst [vmem:[%s10099_s21 + $0xd0] sm:$0xff] %v5595_v11 }
 0x52a   : > { %6259 = vpow2.f32 %v5528_v24  ;;  %v5121_v6 = vsel %vm4996_vm11, %v9950_v36, %v5118_v0  ;;  %v5580_v36 = vpop.permute.xlu1 %5579  ;;  %5749 = vst [vmem:[%s10099_s21 + $0xd8] sm:$0xff] %v5595_v11 }
 0x52b   : > { %v5123_v19 = vmul.f32 %v5121_v6, %v5121_v6  ;;  %5734 = vst [vmem:[%s10099_s21 + $0x60] sm:$0xff] %v5580_v36 }
 0x52c   : > { %5735 = vst [vmem:[%s10099_s21 + $0x68] sm:$0xff] %v5580_v36 }
 0x52d   : > { %v5124_v63 = vmul.f32 -0.001358992, %v5123_v19  ;;  %v5131_v30 = vmul.f32 -0.00019511016, %v5123_v19  ;;  %5736 = vst [vmem:[%s10099_s21 + $0x70] sm:$0xff] %v5580_v36 }
 0x52e   : > { %5737 = vst [vmem:[%s10099_s21 + $0x78] sm:$0xff] %v5580_v36  ;;  %v5610_v55 = vpop.permute.xlu0 %5609 }
 0x52f   : > { %v5125_v51 = vadd.f32 0.041655596, %v5124_v63  ;;  %v5132_v40 = vadd.f32 0.008332121, %v5131_v30  ;;  %5754 = vst [vmem:[%s10099_s21 + $0x100] sm:$0xff] %v5605_v5  ;;  %v5620_v4 = vpop.permute.xlu2 %5619 }
 0x530   : > { %v6260_v60 = vpop.eup %6259  ;;  %5755 = vst [vmem:[%s10099_s21 + $0x108] sm:$0xff] %v5605_v5 }
 0x531   : > { %v5561_v56 = vmul.f32 %v6260_v60, %v5433_v37  ;;  %v5126_v27 = vmul.f32 %v5125_v51, %v5123_v19  ;;  %v5133_v8 = vmul.f32 %v5132_v40, %v5123_v19  ;;  %5756 = vst [vmem:[%s10099_s21 + $0x110] sm:$0xff] %v5605_v5 }
 0x532   : > { %5757 = vst [vmem:[%s10099_s21 + $0x118] sm:$0xff] %v5605_v5 }
 0x533   : > { %5719 = vperm.xlu1 %6135, %v5561_v56   ;;  %v5127_v31 = vadd.f32 -0.4999988, %v5126_v27  ;;  %v5134_v26 = vadd.f32 -0.16666654, %v5133_v8  ;;  %5758 = vst [vmem:[%s10099_s21 + $0x120] sm:$0xff] %v5610_v55 }
 0x534   : > { %5759 = vst [vmem:[%s10099_s21 + $0x128] sm:$0xff] %v5610_v55 }
 0x535   : > { %v5128_v62 = vmul.f32 %v5127_v31, %v5123_v19  ;;  %v5135_v23 = vmul.f32 %v5134_v26, %v5123_v19  ;;  %5760 = vst [vmem:[%s10099_s21 + $0x130] sm:$0xff] %v5610_v55 }
 0x536   : > { %5761 = vst [vmem:[%s10099_s21 + $0x138] sm:$0xff] %v5610_v55  ;;  %v5625_v45 = vpop.permute.xlu0 %5624 }
 0x537   : > { %v5129_v44 = vadd.f32 1.0, %v5128_v62  ;;  %v5136_v42 = vadd.f32 1.0, %v5135_v23  ;;  %5766 = vst [vmem:[%s10099_s21 + $0x160] sm:$0xff] %v5620_v4  ;;  %v5635_v14 = vpop.permute.xlu2 %5634 }
 0x538   : > { %5767 = vst [vmem:[%s10099_s21 + $0x168] sm:$0xff] %v5620_v4 }
 0x539   : > { %v5137_v10 = vmul.f32 %v5136_v42, %v5121_v6  ;;  %v5146_v1 = vxor.u32 2147483648, %v5129_v44  ;;  %5768 = vst [vmem:[%s10099_s21 + $0x170] sm:$0xff] %v5620_v4 }
 0x53a   : > { %5769 = vst [vmem:[%s10099_s21 + $0x178] sm:$0xff] %v5620_v4 }
 0x53b   : > { %v5143_v17 = vxor.u32 2147483648, %v5137_v10  ;;  %v5147_v41 = vsel %vm5145_vm12, %v5146_v1, %v5137_v10  ;;  %5770 = vst [vmem:[%s10099_s21 + $0x180] sm:$0xff] %v5625_v45 }
 0x53c   : > { %5771 = vst [vmem:[%s10099_s21 + $0x188] sm:$0xff] %v5625_v45 }
 0x53d   : > { %v5144_v28 = vsel %vm5142_vm13, %v5129_v44, %v5143_v17  ;;  %5772 = vst [vmem:[%s10099_s21 + $0x190] sm:$0xff] %v5625_v45 }
 0x53e   : > { %v5148_v12 = vsel %vm5141_vm14, %v5144_v28, %v5147_v41  ;;  %5773 = vst [vmem:[%s10099_s21 + $0x198] sm:$0xff] %v5625_v45  ;;  %v5640_v47 = vpop.permute.xlu0 %5639 }
 0x53f   : > { %v5149_v39 = vsel %vm5138_vm15, nan, %v5148_v12  ;;  %5778 = vst [vmem:[%s10099_s21 + $0x1c0] sm:$0xff] %v5635_v14  ;;  %v5650_v58 = vpop.permute.xlu2 %5649 }
 0x540   : > { %v5335_v16 = vmul.f32 -2.0, %v5149_v39  ;;  %5779 = vst [vmem:[%s10099_s21 + $0x1c8] sm:$0xff] %v5635_v14 }
 0x541   : > { %5780 = vst [vmem:[%s10099_s21 + $0x1d0] sm:$0xff] %v5635_v14 }
 0x542   : > { %v5397_v46 = vmul.f32 1.442695, %v5335_v16  ;;  %5781 = vst [vmem:[%s10099_s21 + $0x1d8] sm:$0xff] %v5635_v14 }
 0x543   : > { %5782 = vst [vmem:[%s10099_s21 + $0x1e0] sm:$0xff] %v5640_v47 }
 0x544   : > { %6261 = vpow2.f32 %v5397_v46  ;;  %5783 = vst [vmem:[%s10099_s21 + $0x1e8] sm:$0xff] %v5640_v47 }
 0x545   : > { %5784 = vst [vmem:[%s10099_s21 + $0x1f0] sm:$0xff] %v5640_v47 }
 0x546   : > { %5785 = vst [vmem:[%s10099_s21 + $0x1f8] sm:$0xff] %v5640_v47  ;;  %v5655_v52 = vpop.permute.xlu0 %5654 }
 0x547   : > { %5790 = vst [vmem:[%s10099_s21 + $0x220] sm:$0xff] %v5650_v58  ;;  %v5665_v34 = vpop.permute.xlu2 %5664 }
 0x548   : > { %5791 = vst [vmem:[%s10099_s21 + $0x228] sm:$0xff] %v5650_v58 }
 0x549   : > { %5792 = vst [vmem:[%s10099_s21 + $0x230] sm:$0xff] %v5650_v58 }
 0x54a   : > { %v6262_v48 = vpop.eup %6261  ;;  %5793 = vst [vmem:[%s10099_s21 + $0x238] sm:$0xff] %v5650_v58 }
 0x54b   : > { %v5432_v61 = vmul.f32 %v6262_v48, %v6794_v38  ;;  %v5600_v38 = vpop.permute.xlu1 %5599  ;;  %5794 = vst [vmem:[%s10099_s21 + $0x240] sm:$0xff] %v5655_v52 }
 0x54c   : > { %5750 = vst [vmem:[%s10099_s21 + $0xe0] sm:$0xff] %v5600_v38 }
 0x54d   : > { %v5464_v29 = vmul.f32 -0.5, %v5432_v61  ;;  %5751 = vst [vmem:[%s10099_s21 + $0xe8] sm:$0xff] %v5600_v38 }
 0x54e   : > { %5752 = vst [vmem:[%s10099_s21 + $0xf0] sm:$0xff] %v5600_v38  ;;  %v5670_v33 = vpop.permute.xlu0 %5669 }
 0x54f   : > { %v5526_v59 = vmul.f32 1.442695, %v5464_v29  ;;  %5753 = vst [vmem:[%s10099_s21 + $0xf8] sm:$0xff] %v5600_v38  ;;  %v5680_v9 = vpop.permute.xlu2 %5679 }
 0x550   : > { %5795 = vst [vmem:[%s10099_s21 + $0x248] sm:$0xff] %v5655_v52 }
 0x551   : > { %6263 = vpow2.f32 %v5526_v59  ;;  %5796 = vst [vmem:[%s10099_s21 + $0x250] sm:$0xff] %v5655_v52 }
 0x552   : > { %5797 = vst [vmem:[%s10099_s21 + $0x258] sm:$0xff] %v5655_v52 }
 0x553   : > { %v5615_v13 = vpop.permute.xlu1 %5614  ;;  %5802 = vst [vmem:[%s10099_s21 + $0x280] sm:$0xff] %v5665_v34 }
 0x554   : > { %5762 = vst [vmem:[%s10099_s21 + $0x140] sm:$0xff] %v5615_v13 }
 0x555   : > { %5763 = vst [vmem:[%s10099_s21 + $0x148] sm:$0xff] %v5615_v13 }
 0x556   : > { %5764 = vst [vmem:[%s10099_s21 + $0x150] sm:$0xff] %v5615_v13  ;;  %v5685_v24 = vpop.permute.xlu0 %5684 }
 0x557   : > { %v6264_v35 = vpop.eup %6263  ;;  %5765 = vst [vmem:[%s10099_s21 + $0x158] sm:$0xff] %v5615_v13  ;;  %v5695_v7 = vpop.permute.xlu2 %5694 }
 0x558   : > { %v5560_v3 = vmul.f32 %v6264_v35, %v5432_v61  ;;  %5803 = vst [vmem:[%s10099_s21 + $0x288] sm:$0xff] %v5665_v34 }
 0x559   : > { %5804 = vst [vmem:[%s10099_s21 + $0x290] sm:$0xff] %v5665_v34 }
 0x55a   : > { %5714 = vperm.xlu0 %6134, %v5560_v3   ;;  %5805 = vst [vmem:[%s10099_s21 + $0x298] sm:$0xff] %v5665_v34 }
 0x55b   : > { %v5630_v43 = vpop.permute.xlu1 %5629  ;;  %5806 = vst [vmem:[%s10099_s21 + $0x2a0] sm:$0xff] %v5670_v33 }
 0x55c   : > { %5774 = vst [vmem:[%s10099_s21 + $0x1a0] sm:$0xff] %v5630_v43 }
 0x55d   : > { %5775 = vst [vmem:[%s10099_s21 + $0x1a8] sm:$0xff] %v5630_v43 }
 0x55e   : > { %5776 = vst [vmem:[%s10099_s21 + $0x1b0] sm:$0xff] %v5630_v43 }
 0x55f   : > { %5777 = vst [vmem:[%s10099_s21 + $0x1b8] sm:$0xff] %v5630_v43  ;;  %v5710_v25 = vpop.permute.xlu2 %5709 }
 0x560   : > { %5807 = vst [vmem:[%s10099_s21 + $0x2a8] sm:$0xff] %v5670_v33 }
 0x561   : > { %5808 = vst [vmem:[%s10099_s21 + $0x2b0] sm:$0xff] %v5670_v33 }
 0x562   : > { %5809 = vst [vmem:[%s10099_s21 + $0x2b8] sm:$0xff] %v5670_v33 }
 0x563   : > { %v5645_v15 = vpop.permute.xlu1 %5644  ;;  %5814 = vst [vmem:[%s10099_s21 + $0x2e0] sm:$0xff] %v5680_v9 }
 0x564   : > { %5786 = vst [vmem:[%s10099_s21 + $0x200] sm:$0xff] %v5645_v15 }
 0x565   : > { %5787 = vst [vmem:[%s10099_s21 + $0x208] sm:$0xff] %v5645_v15 }
 0x566   : > { %5788 = vst [vmem:[%s10099_s21 + $0x210] sm:$0xff] %v5645_v15 }
 0x567   : > { %5789 = vst [vmem:[%s10099_s21 + $0x218] sm:$0xff] %v5645_v15 }
 0x568   : > { %5815 = vst [vmem:[%s10099_s21 + $0x2e8] sm:$0xff] %v5680_v9 }
 0x569   : > { %5816 = vst [vmem:[%s10099_s21 + $0x2f0] sm:$0xff] %v5680_v9 }
 0x56a   : > { %5817 = vst [vmem:[%s10099_s21 + $0x2f8] sm:$0xff] %v5680_v9 }
 0x56b   : > { %v5660_v37 = vpop.permute.xlu1 %5659  ;;  %5818 = vst [vmem:[%s10099_s21 + $0x300] sm:$0xff] %v5685_v24 }
 0x56c   : > { %5798 = vst [vmem:[%s10099_s21 + $0x260] sm:$0xff] %v5660_v37 }
 0x56d   : > { %5799 = vst [vmem:[%s10099_s21 + $0x268] sm:$0xff] %v5660_v37 }
 0x56e   : > { %5800 = vst [vmem:[%s10099_s21 + $0x270] sm:$0xff] %v5660_v37 }
 0x56f   : > { %5801 = vst [vmem:[%s10099_s21 + $0x278] sm:$0xff] %v5660_v37 }
 0x570   : > { %5819 = vst [vmem:[%s10099_s21 + $0x308] sm:$0xff] %v5685_v24 }
 0x571   : > { %5820 = vst [vmem:[%s10099_s21 + $0x310] sm:$0xff] %v5685_v24 }
 0x572   : > { %5821 = vst [vmem:[%s10099_s21 + $0x318] sm:$0xff] %v5685_v24 }
 0x573   : > { %v5675_v49 = vpop.permute.xlu1 %5674  ;;  %5826 = vst [vmem:[%s10099_s21 + $0x340] sm:$0xff] %v5695_v7 }
 0x574   : > { %5810 = vst [vmem:[%s10099_s21 + $0x2c0] sm:$0xff] %v5675_v49 }
 0x575   : > { %5811 = vst [vmem:[%s10099_s21 + $0x2c8] sm:$0xff] %v5675_v49 }
 0x576   : > { %5812 = vst [vmem:[%s10099_s21 + $0x2d0] sm:$0xff] %v5675_v49 }
 0x577   : > { %5813 = vst [vmem:[%s10099_s21 + $0x2d8] sm:$0xff] %v5675_v49 }
 0x578   : > { %5827 = vst [vmem:[%s10099_s21 + $0x348] sm:$0xff] %v5695_v7 }
 0x579   : > { %5828 = vst [vmem:[%s10099_s21 + $0x350] sm:$0xff] %v5695_v7 }
 0x57a   : > { %5829 = vst [vmem:[%s10099_s21 + $0x358] sm:$0xff] %v5695_v7 }
 0x57b   : > { %v5690_v2 = vpop.permute.xlu1 %5689  ;;  %5838 = vst [vmem:[%s10099_s21 + $0x3a0] sm:$0xff] %v5710_v25 }
 0x57c   : > { %5822 = vst [vmem:[%s10099_s21 + $0x320] sm:$0xff] %v5690_v2 }
 0x57d   : > { %5823 = vst [vmem:[%s10099_s21 + $0x328] sm:$0xff] %v5690_v2 }
 0x57e   : > { %5824 = vst [vmem:[%s10099_s21 + $0x330] sm:$0xff] %v5690_v2 }
 0x57f   : > { %5825 = vst [vmem:[%s10099_s21 + $0x338] sm:$0xff] %v5690_v2  ;;  %v5700_v57 = vpop.permute.xlu0 %5699 }
 0x580   : > { %5830 = vst [vmem:[%s10099_s21 + $0x360] sm:$0xff] %v5700_v57 }
 0x581   : > { %5831 = vst [vmem:[%s10099_s21 + $0x368] sm:$0xff] %v5700_v57 }
 0x582   : > { %5832 = vst [vmem:[%s10099_s21 + $0x370] sm:$0xff] %v5700_v57 }
 0x583   : > { %v5705_v0 = vpop.permute.xlu1 %5704  ;;  %5833 = vst [vmem:[%s10099_s21 + $0x378] sm:$0xff] %v5700_v57 }
 0x584   : > { %5834 = vst [vmem:[%s10099_s21 + $0x380] sm:$0xff] %v5705_v0 }
 0x585   : > { %5835 = vst [vmem:[%s10099_s21 + $0x388] sm:$0xff] %v5705_v0 }
 0x586   : > { %5836 = vst [vmem:[%s10099_s21 + $0x390] sm:$0xff] %v5705_v0 }
 0x587   : > { %5837 = vst [vmem:[%s10099_s21 + $0x398] sm:$0xff] %v5705_v0 }
 0x588   : > { %5839 = vst [vmem:[%s10099_s21 + $0x3a8] sm:$0xff] %v5710_v25 }
 0x589   : > { %5840 = vst [vmem:[%s10099_s21 + $0x3b0] sm:$0xff] %v5710_v25 }
 0x58a   : > { %5841 = vst [vmem:[%s10099_s21 + $0x3b8] sm:$0xff] %v5710_v25 }
 0x5a5   : > { %v5720_v6 = vpop.permute.xlu1 %5719 }
 0x5a6   : > { %5846 = vst [vmem:[%s10099_s21 + $0x3e0] sm:$0xff] %v5720_v6 }
 0x5a7   : > { %5847 = vst [vmem:[%s10099_s21 + $0x3e8] sm:$0xff] %v5720_v6 }
 0x5a8   : > { %5848 = vst [vmem:[%s10099_s21 + $0x3f0] sm:$0xff] %v5720_v6 }
 0x5a9   : > { %5849 = vst [vmem:[%s10099_s21 + $0x3f8] sm:$0xff] %v5720_v6 }
 0x5cc   : > { %v5715_v19 = vpop.permute.xlu0 %5714 }
 0x5cd   : > { %5842 = vst [vmem:[%s10099_s21 + $0x3c0] sm:$0xff] %v5715_v19 }
 0x5ce   : > { %5843 = vst [vmem:[%s10099_s21 + $0x3c8] sm:$0xff] %v5715_v19 }
 0x5cf   : > { %5844 = vst [vmem:[%s10099_s21 + $0x3d0] sm:$0xff] %v5715_v19 }
 0x5d0   : > { %5845 = vst [vmem:[%s10099_s21 + $0x3d8] sm:$0xff] %v5715_v19 }
 0x5d1   : > { %6307 = shalt.err (!%p6304_p7)
}
 0x5d2   : > { %s6372_s11 = smov 512   ;;  %s6373_s18 = smov 32  }
 0x5d3   : > { %6063 = dma.vmem_to_hbm [thread:$0]  (%p6434_p4), %s5867_s29, 16384, %s5869_s30, %s5851_s4, %s6372_s11, %s6372_s11, %s6373_s18  }
 0x5d4 PF: > { %p6075_p9 = scmp.ge.s32.totalorder %s6362_s17, 2  ;;  %s5883_s19 = sand.u32 1, %s6342_s12  }
 0x5d5   : > { %s5884_s21 = scalar_lea.sflag [#allocation3], %s5883_s19 }
 0x5d6   : > { %p6070_p10 = pnand %p6075_p9, %p6441_p8 }
 0x5d8   : > { %p6071_p11 = pneg %p6070_p10 }
 0x5da   : > { %6337 = dma.done.wait (%p6071_p11), %s5884_s21, 16384  }
 0x5db   : > { %6339 = vsyncadd (%p6071_p11), %s5884_s21, 4294950912  ;;  %s17_s17 = sadd.s32 1, %s6362_s17   ;;  %s10340_s12 = smov %s6346_s13 }
 0x5dc   : > { %p14_p12 = scmp.ge.s32.totalorder %s17_s17, 4   ;;  %s10341_s13 = smov %s6350_s14 }
 0x5dd   : > { %s10342_s14 = smov %s6447_s25  ;;  %s10343_s15 = smov %s6358_s16 }
 0x5de   : > { %s10344_s16 = smov %s10346_s20  ;;  %16 = sbr.rel (!%p14_p12) target bundleno = 5 (0x5), region = 71 }
 0x5e3   :  { %5890 = vsyncpa [#allocation3], 1 }
 0x5e4   :  { %5892 = vsyncpa [#allocation3 + $0x1], 1 }
 0x5e5   :  { %5893 = vsyncpa [#allocation4], 1 }
 0x5e6   :  { %5895 = vsyncpa [#allocation4 + $0x1], 1 }

</bundles_post_ra>
